<compile_context>
chip_gen: v7x
topology: tpu7x:2x2x1
jax: 0.10.0
libtpu: 0.0.40
codegen_flags: <defaults>
</compile_context>

<pallas_src>
import functools

import jax
import jax.numpy as jnp
from jax.experimental import pallas as pl
from jax.experimental.pallas import tpu as pltpu

FEAT_DIM = 1792                   # EfficientNet-b4 feature dim
C_STEM = 128                      # stand-in stem width (lane-dense, 128 lanes)
K_PAD = 128                       # 9 taps * C_in, zero-padded to one lane tile
SE_C = 3 * FEAT_DIM + 1           # 5377 = feature ++ feature_op ++ diff ++ slice_num
SE_R = 16                         # SEBlock reduction ratio
SE_HID = SE_C // SE_R             # 336 (model hidden width)
SE_HID_PAD = 384                  # zero-padded to 3*128 for lane-dense matmuls
SE_DENSE = 3 * FEAT_DIM           # 5376 = 42*128 lane-dense SE output


def _vmem_limit_bytes():
    """Generation-dependent scoped-VMEM budget with headroom for pipelining."""
    try:
        cap = int(getattr(pltpu.get_tpu_info(), "vmem_capacity_bytes",
                          64 * 1024 * 1024))
    except Exception:
        cap = 64 * 1024 * 1024            # assume the smallest (v7x per-core)
    if cap >= 128 * 1024 * 1024:          # v5e / v6e
        return 96 * 1024 * 1024
    return 48 * 1024 * 1024               # v7x (64 MiB per TensorCore)


_VMEM_LIMIT = _vmem_limit_bytes()
_VMEM_SPEC = pl.BlockSpec(memory_space=pltpu.MemorySpace.VMEM)


# ---------------------------------------------------------------------------
# Backbone stem kernel: fused 3x3 conv (single lane-dense im2col matmul)
# + bias + swish + running global-average-pool accumulation.
# grid = (image blocks "parallel", row tiles "arbitrary").
# TODO(synk): full EfficientNet-b4 MBConv stack is an external module; it is
# represented here by this simplified stand-in feature extractor.
# ---------------------------------------------------------------------------
def _stem_pool_kernel(x_ref, w_ref, b_ref, pooled_ref, acc_ref, *, inv_hw):
    r = pl.program_id(1)

    @pl.when(r == 0)
    def _():
        acc_ref[...] = jnp.zeros_like(acc_ref)

    nb, rt, k = x_ref.shape                                  # (img_blk, row_tile, K_PAD)
    x = x_ref[...].reshape(nb * rt, k)                       # bf16, lane-dense
    y = jnp.dot(x, w_ref[...], preferred_element_type=jnp.float32)
    y = y + b_ref[...]
    y = y * jax.nn.sigmoid(y)                                # swish (f32 VPU/EUP)
    # Running pooled sum per image (sublane reduce over the row tile).
    acc_ref[...] += jnp.sum(y.reshape(nb, rt, C_STEM), axis=1)

    @pl.when(r == pl.num_programs(1) - 1)
    def _():
        pooled_ref[...] = acc_ref[...] * inv_hw


def _pick_img_block(b):
    # 8 images per step when possible (dense sublanes); otherwise the whole
    # batch per step (block == full dim is always a legal BlockSpec).
    return 8 if b % 8 == 0 else b


def _pick_row_tile(hw):
    for t in (2048, 1024, 512, 256, 128):
        if hw > t and hw % t == 0:
            return t
    return hw


def _im2col_3x3(x_nchw):
    """NCHW -> padded NHWC -> (B, H*W, 9*C zero-padded to K_PAD) bf16 im2col.

    With C=4 the im2col expansion is tiny; doing it in the wrapper removes all
    per-tap slice/reshape relayouts from the kernel and yields a lane-dense
    MXU operand.
    """
    b, c, h, w = x_nchw.shape
    assert 9 * c <= K_PAD, "stem im2col width exceeds one lane tile"
    x = jnp.transpose(x_nchw, (0, 2, 3, 1)).astype(jnp.bfloat16)
    xp = jnp.pad(x, ((0, 0), (1, 1), (1, 1), (0, 0)))
    taps = [xp[:, dh:dh + h, dw:dw + w, :] for dh in range(3) for dw in range(3)]
    cols = jnp.concatenate(taps, axis=-1).reshape(b, h * w, 9 * c)
    return jnp.pad(cols, ((0, 0), (0, 0), (0, K_PAD - 9 * c)))


def stem_pool_forward(cols, kp):
    """cols: (B, HW, K_PAD) bf16 im2col.  Returns pooled (B, C_STEM) f32."""
    b, hw, k = cols.shape
    img_blk = _pick_img_block(b)
    row_tile = _pick_row_tile(hw)
    return pl.pallas_call(
        functools.partial(_stem_pool_kernel, inv_hw=1.0 / hw),
        out_shape=jax.ShapeDtypeStruct((b, C_STEM), jnp.float32),
        grid=(b // img_blk, hw // row_tile),
        in_specs=[
            pl.BlockSpec((img_blk, row_tile, k), lambda i, r: (i, r, 0)),
            # TODO(synk): constant-index weights could be single-buffered via
            # pipeline_mode=pl.Buffered(1); they are only ~33 KiB here.
            pl.BlockSpec((k, C_STEM), lambda i, r: (0, 0)),
            pl.BlockSpec((1, C_STEM), lambda i, r: (0, 0)),
        ],
        out_specs=pl.BlockSpec((img_blk, C_STEM), lambda i, r: (i, 0)),
        scratch_shapes=[pltpu.VMEM((img_blk, C_STEM), jnp.float32)],
        compiler_params=pltpu.CompilerParams(
            dimension_semantics=("parallel", "arbitrary"),
            vmem_limit_bytes=_VMEM_LIMIT),
    )(cols, kp["w_stem"], kp["b_stem"])


# ---------------------------------------------------------------------------
# Fused head kernel: pooled -> 1792-d feature (M = 2N matmul), backbone fc,
# feature diff, (decomposed) concat, SEBlock, dropout (identity), fc.
# W1 is pre-folded in the wrapper:
#   cat([f,fo,df,sl]) @ W1 == f @ (W1_f+W1_df) + fo @ (W1_fo-W1_df) + sl*w1_sl
# All 1-column fcs are VPU multiply + lane reductions (no 1-column MXU matmuls).
# ---------------------------------------------------------------------------
def _head_kernel(pooled_ref, sl_ref,
                 w_head_ref, b_head_ref, w_fc_ref, b_fc_ref,
                 w1a_ref, w1b_ref, w1s_ref, w2m_ref, w2s_ref,
                 wt_f_ref, wt_fo_ref, wt_df_ref, wt_sl_ref, bt_ref,
                 out_ref, se_ref, se_sl_ref, total_ref, *, n):
    d = FEAT_DIM
    # Projection to the EfficientNet-b4 feature, batched over all 2N images.
    pooled = pooled_ref[...]                                 # (2N, C_STEM) f32
    feat = jnp.dot(pooled.astype(jnp.bfloat16), w_head_ref[...],
                   preferred_element_type=jnp.float32) + b_head_ref[...]
    feat = feat * jax.nn.sigmoid(feat)                       # (2N, 1792) swish

    # Backbone fc (1792 -> 1): VPU multiply + lane reduce.
    out_ref[...] = (jnp.sum(feat * w_fc_ref[...], axis=-1, keepdims=True)
                    + b_fc_ref[...])

    f, fo = feat[0:n], feat[n:2 * n]
    sl = sl_ref[...]                                         # (N, 1)
    df = f - fo

    # SE squeeze (folded, lane-dense 384 hidden) + ReLU.
    s = jnp.dot(f.astype(jnp.bfloat16), w1a_ref[...],
                preferred_element_type=jnp.float32)
    s = s + jnp.dot(fo.astype(jnp.bfloat16), w1b_ref[...],
                    preferred_element_type=jnp.float32)
    s = s + sl * w1s_ref[...]
    s = jnp.maximum(s, 0.0)                                  # (N, 384)

    # SE excite: 5376 dense channels on the MXU; slice_num channel on the VPU.
    e = jax.nn.sigmoid(jnp.dot(s.astype(jnp.bfloat16), w2m_ref[...],
                               preferred_element_type=jnp.float32))   # (N, 5376)
    e_sl = jax.nn.sigmoid(jnp.sum(s * w2s_ref[...], axis=-1, keepdims=True))

    # se_feature = cat_feature * excitation (channel-wise scaling).
    se_f = f * e[:, 0:d]
    se_fo = fo * e[:, d:2 * d]
    se_df = df * e[:, 2 * d:3 * d]
    se_sl = sl * e_sl
    se_ref[:, 0:d] = se_f
    se_ref[:, d:2 * d] = se_fo
    se_ref[:, 2 * d:3 * d] = se_df
    se_sl_ref[...] = se_sl

    # total_out = fc(dropout(se_feature)); Dropout(0.2) is identity at inference.
    tot = jnp.sum(se_f * wt_f_ref[...] + se_fo * wt_fo_ref[...]
                  + se_df * wt_df_ref[...], axis=-1, keepdims=True)
    total_ref[...] = tot + se_sl * wt_sl_ref[...] + bt_ref[...]


def head_forward(pooled, slice_num, kp):
    n = slice_num.shape[0]
    b = pooled.shape[0]
    # TODO(synk): for large N this call should get a batch-row grid
    # (dimension_semantics=("parallel",)) so both v7x TensorCores are used.
    return pl.pallas_call(
        functools.partial(_head_kernel, n=n),
        out_shape=(jax.ShapeDtypeStruct((b, 1), jnp.float32),
                   jax.ShapeDtypeStruct((n, SE_DENSE), jnp.float32),
                   jax.ShapeDtypeStruct((n, 1), jnp.float32),
                   jax.ShapeDtypeStruct((n, 1), jnp.float32)),
        in_specs=[_VMEM_SPEC] * 16,
        out_specs=(_VMEM_SPEC,) * 4,
        compiler_params=pltpu.CompilerParams(vmem_limit_bytes=_VMEM_LIMIT),
    )(pooled, slice_num,
      kp["w_head"], kp["b_head"], kp["w_fc_row"], kp["b_fc"],
      kp["w1a"], kp["w1b"], kp["w1s"], kp["w2m"], kp["w2s_row"],
      kp["wt_f"], kp["wt_fo"], kp["wt_df"], kp["wt_sl"], kp["b_total"])


# ---------------------------------------------------------------------------
# Parameters (deterministic synthetic init) + kernel-ready prep
# ---------------------------------------------------------------------------
def init_params(key, c_in):
    ks = jax.random.split(key, 10)

    def dense(k, shape, fan_in):
        return jax.random.normal(k, shape, jnp.float32) / jnp.sqrt(
            jnp.asarray(fan_in, jnp.float32))

    return {
        "w_stem": dense(ks[0], (9, c_in, C_STEM), c_in * 9),
        "b_stem": 0.01 * jax.random.normal(ks[1], (1, C_STEM), jnp.float32),
        "w_head": dense(ks[2], (C_STEM, FEAT_DIM), C_STEM),
        "b_head": 0.01 * jax.random.normal(ks[3], (1, FEAT_DIM), jnp.float32),
        "w_fc": dense(ks[4], (FEAT_DIM, 1), FEAT_DIM),        # EfficientNet._fc
        "b_fc": 0.01 * jax.random.normal(ks[5], (1, 1), jnp.float32),
        "w_se1": dense(ks[6], (SE_C, SE_HID), SE_C),          # SEBlock reduce
        "w_se2": dense(ks[7], (SE_HID, SE_C), SE_HID),        # SEBlock expand
        # TODO(synk): the reference declares self.fc = nn.Linear(1792, 1), which is
        # shape-incompatible with the 5377-d se_feature it is applied to; we use
        # (SE_C, 1) so the total_out path is actually runnable.
        "w_total": dense(ks[8], (SE_C, 1), SE_C),
        "b_total": 0.01 * jax.random.normal(ks[9], (1, 1), jnp.float32),
    }


def _prep_params(p):
    """bf16 casts, stem K-pad, SE-hidden zero-pad (336->384), W1 fold, fc rows."""
    d = FEAT_DIM
    c_in = p["w_stem"].shape[1]
    w_stem = p["w_stem"].reshape(9 * c_in, C_STEM)
    w_stem = jnp.pad(w_stem, ((0, K_PAD - 9 * c_in), (0, 0)))   # (128, 128)
    pad = SE_HID_PAD - SE_HID
    w1 = jnp.pad(p["w_se1"], ((0, 0), (0, pad)))          # (5377, 384)
    w2 = jnp.pad(p["w_se2"], ((0, pad), (0, 0)))          # (384, 5377)
    w1_f, w1_fo = w1[0:d], w1[d:2 * d]
    w1_df, w1_sl = w1[2 * d:3 * d], w1[3 * d:3 * d + 1]
    wt = p["w_total"]
    return {
        "w_stem": w_stem.astype(jnp.bfloat16),
        "b_stem": p["b_stem"],
        "w_head": p["w_head"].astype(jnp.bfloat16),        # (128, 1792)
        "b_head": p["b_head"],
        "w_fc_row": p["w_fc"].T,                           # (1, 1792) f32
        "b_fc": p["b_fc"],
        "w1a": (w1_f + w1_df).astype(jnp.bfloat16),        # (1792, 384)
        "w1b": (w1_fo - w1_df).astype(jnp.bfloat16),       # (1792, 384)
        "w1s": w1_sl,                                      # (1, 384) f32
        "w2m": w2[:, 0:3 * d].astype(jnp.bfloat16),        # (384, 5376)
        "w2s_row": w2[:, 3 * d:3 * d + 1].T,               # (1, 384) f32
        "wt_f": wt[0:d].T,                                 # (1, 1792) f32
        "wt_fo": wt[d:2 * d].T,                            # (1, 1792) f32
        "wt_df": wt[2 * d:3 * d].T,                        # (1, 1792) f32
        "wt_sl": wt[3 * d:3 * d + 1],                      # (1, 1) f32
        "b_total": p["b_total"],
    }


@functools.partial(jax.jit, static_argnames=("feature_extract",))
def hemi_compare_forward(params, segment, segment_op, slice_num,
                         feature_extract=False):
    kp = _prep_params(params)
    n = segment.shape[0]
    # Single fused backbone pass over segment ++ segment_op (weights DMA'd once).
    x = jnp.concatenate([segment, segment_op], axis=0)       # (2N, C, H, W)
    cols = _im2col_3x3(x)                                    # (2N, HW, 128) bf16
    pooled = stem_pool_forward(cols, kp)                     # (2N, 128) f32
    out_all, se_dense, se_sl, total_out = head_forward(pooled, slice_num, kp)
    # Append the slice_num SE channel to restore the 5377-wide se_feature.
    se_feature = jnp.concatenate([se_dense, se_sl], axis=-1)
    if feature_extract:
        return se_feature
    return se_feature, out_all[:n], out_all[n:], total_out


if __name__ == "__main__":
    key = jax.random.PRNGKey(0)
    kp, k1, k2, k3 = jax.random.split(key, 4)

    N, C, H, W = 2, 4, 16, 16
    params = init_params(kp, C)
    segment = jax.random.normal(k1, (N, C, H, W), jnp.float32)
    segment_op = jax.random.normal(k2, (N, C, H, W), jnp.float32)
    slice_num = jax.random.uniform(k3, (N, 1), jnp.float32)

    se_feature, out, out_op, total_out = hemi_compare_forward(
        params, segment, segment_op, slice_num, feature_extract=False)
    jax.block_until_ready((se_feature, out, out_op, total_out))

    assert se_feature.shape == (N, SE_C)
    assert out.shape == (N, 1)
    assert out_op.shape == (N, 1)
    assert total_out.shape == (N, 1)
    assert bool(jnp.all(jnp.isfinite(se_feature)))
    assert bool(jnp.all(jnp.isfinite(total_out)))
    print("KERNEL_OK")
</pallas_src>

<mosaic_0001>
module attributes {stable_mosaic.version = 11 : i64} {
  func.func @_stem_pool_kernel(%arg0: i32, %arg1: i32, %arg2: memref<4x128x128xbf16, #tpu.memory_space<vmem>>, %arg3: memref<128x128xbf16, #tpu.memory_space<vmem>>, %arg4: memref<1x128xf32, #tpu.memory_space<vmem>>, %arg5: memref<4x128xf32, #tpu.memory_space<vmem>>, %arg6: memref<4x128xf32, #tpu.memory_space<vmem>>) attributes {dimension_semantics = [#tpu.dimension_semantics<parallel>, #tpu.dimension_semantics<arbitrary>], iteration_bounds = array<i64: 1, 2>, scalar_prefetch = 0 : i64, scratch_operands = 1 : i64, tpu.core_type = #tpu.core_type<tc>, window_params = [{transform_indices = @transform_0, window_bounds = array<i64: 4, 128, 128>}, {pipeline_mode = #tpu.pipeline_mode<synchronous>, transform_indices = @transform_1, window_bounds = array<i64: 128, 128>}, {pipeline_mode = #tpu.pipeline_mode<synchronous>, transform_indices = @transform_2, window_bounds = array<i64: 1, 128>}, {transform_indices = @transform_3, window_bounds = array<i64: 4, 128>}]} {
    %c0_i32 = arith.constant 0 : i32
    %0 = arith.cmpi eq, %arg1, %c0_i32 : i32
    %1 = arith.extui %0 : i1 to i32
    %c0_i32_0 = arith.constant 0 : i32
    %2 = arith.cmpi ne, %1, %c0_i32_0 : i32
    scf.if %2 {
      %cst_14 = arith.constant 0.000000e+00 : f32
      %24 = vector.broadcast %cst_14 : f32 to vector<4x128xf32>
      %c0_15 = arith.constant 0 : index
      %c0_16 = arith.constant 0 : index
      %25 = vector.load %arg6[%c0_15, %c0_16] : memref<4x128xf32, #tpu.memory_space<vmem>>, vector<4x128xf32>
      tpu.vector_store %arg6[%c0_15, %c0_16], %24 {strides = array<i32>} : memref<4x128xf32, #tpu.memory_space<vmem>>, vector<4x128xf32>,
    } else {
    }
    %c0 = arith.constant 0 : index
    %c0_1 = arith.constant 0 : index
    %c0_2 = arith.constant 0 : index
    %3 = vector.load %arg2[%c0, %c0_1, %c0_2] : memref<4x128x128xbf16, #tpu.memory_space<vmem>>, vector<4x128x128xbf16>
    %4 = vector.shape_cast %3 : vector<4x128x128xbf16> to vector<512x128xbf16>
    %c0_3 = arith.constant 0 : index
    %c0_4 = arith.constant 0 : index
    %5 = vector.load %arg3[%c0_3, %c0_4] : memref<128x128xbf16, #tpu.memory_space<vmem>>, vector<128x128xbf16>
    %cst = arith.constant dense<0.000000e+00> : vector<512x128xf32>
    %6 = tpu.matmul %4, %5, %cst {dimension_numbers = #tpu.dot_dimension_numbers<[1], [0], [0], [1], [0, 0, 1, 1], [], []>} : vector<512x128xbf16>, vector<128x128xbf16>, vector<512x128xf32> -> vector<512x128xf32>
    %c0_5 = arith.constant 0 : index
    %c0_6 = arith.constant 0 : index
    %7 = vector.load %arg4[%c0_5, %c0_6] : memref<1x128xf32, #tpu.memory_space<vmem>>, vector<1x128xf32>
    %8 = vector.broadcast %7 : vector<1x128xf32> to vector<512x128xf32>
    %9 = arith.addf %6, %8 : vector<512x128xf32>
    %10 = arith.negf %9 : vector<512x128xf32>
    %11 = math.exp %10 : vector<512x128xf32>
    %cst_7 = arith.constant 1.000000e+00 : f32
    %12 = vector.broadcast %cst_7 : f32 to vector<512x128xf32>
    %13 = arith.addf %12, %11 : vector<512x128xf32>
    %14 = arith.divf %12, %13 : vector<512x128xf32>
    %15 = arith.mulf %9, %14 : vector<512x128xf32>
    %c0_8 = arith.constant 0 : index
    %c0_9 = arith.constant 0 : index
    %16 = vector.load %arg6[%c0_8, %c0_9] : memref<4x128xf32, #tpu.memory_space<vmem>>, vector<4x128xf32>
    %17 = vector.shape_cast %15 : vector<512x128xf32> to vector<4x128x128xf32>
    %cst_10 = arith.constant dense<0.000000e+00> : vector<4x128xf32>
    %18 = vector.multi_reduction <add>, %17, %cst_10 [1] : vector<4x128x128xf32> to vector<4x128xf32>
    %19 = arith.addf %16, %18 : vector<4x128xf32>
    %c0_11 = arith.constant 0 : index
    %c0_12 = arith.constant 0 : index
    %20 = vector.load %arg6[%c0_11, %c0_12] : memref<4x128xf32, #tpu.memory_space<vmem>>, vector<4x128xf32>
    tpu.vector_store %arg6[%c0_11, %c0_12], %19 {strides = array<i32>} : memref<4x128xf32, #tpu.memory_space<vmem>>, vector<4x128xf32>,
    %c1_i32 = arith.constant 1 : i32
    %21 = arith.cmpi eq, %arg1, %c1_i32 : i32
    %22 = arith.extui %21 : i1 to i32
    %c0_i32_13 = arith.constant 0 : i32
    %23 = arith.cmpi ne, %22, %c0_i32_13 : i32
    scf.if %23 {
      %c0_14 = arith.constant 0 : index
      %c0_15 = arith.constant 0 : index
      %24 = vector.load %arg6[%c0_14, %c0_15] : memref<4x128xf32, #tpu.memory_space<vmem>>, vector<4x128xf32>
      %cst_16 = arith.constant 3.906250e-03 : f32
      %25 = vector.broadcast %cst_16 : f32 to vector<4x128xf32>
      %26 = arith.mulf %24, %25 : vector<4x128xf32>
      %c0_17 = arith.constant 0 : index
      %c0_18 = arith.constant 0 : index
      %27 = vector.load %arg5[%c0_17, %c0_18] : memref<4x128xf32, #tpu.memory_space<vmem>>, vector<4x128xf32>
      tpu.vector_store %arg5[%c0_17, %c0_18], %26 {strides = array<i32>} : memref<4x128xf32, #tpu.memory_space<vmem>>, vector<4x128xf32>,
    } else {
    }
    return
  }
  func.func @transform_0(%arg0: i32, %arg1: i32) -> (i32, i32, i32) {
    %c0_i32 = arith.constant 0 : i32
    %c0_i32_0 = arith.constant 0 : i32
    return %arg0, %arg1, %c0_i32 : i32, i32, i32
  }
  func.func @transform_1(%arg0: i32, %arg1: i32) -> (i32, i32) {
    %c0_i32 = arith.constant 0 : i32
    %c0_i32_0 = arith.constant 0 : i32
    %c0_i32_1 = arith.constant 0 : i32
    return %c0_i32, %c0_i32_0 : i32, i32
  }
  func.func @transform_2(%arg0: i32, %arg1: i32) -> (i32, i32) {
    %c0_i32 = arith.constant 0 : i32
    %c0_i32_0 = arith.constant 0 : i32
    %c0_i32_1 = arith.constant 0 : i32
    return %c0_i32, %c0_i32_0 : i32, i32
  }
  func.func @transform_3(%arg0: i32, %arg1: i32) -> (i32, i32) {
    %c0_i32 = arith.constant 0 : i32
    %c0_i32_0 = arith.constant 0 : i32
    return %arg0, %c0_i32 : i32, i32
  }
}

module attributes {stable_mosaic.version = 11 : i64} {
  func.func @_head_kernel(%arg0: memref<4x128xf32, #tpu.memory_space<vmem>>, %arg1: memref<2x1xf32, #tpu.memory_space<vmem>>, %arg2: memref<128x1792xbf16, #tpu.memory_space<vmem>>, %arg3: memref<1x1792xf32, #tpu.memory_space<vmem>>, %arg4: memref<1x1792xf32, #tpu.memory_space<vmem>>, %arg5: memref<1x1xf32, #tpu.memory_space<vmem>>, %arg6: memref<1792x384xbf16, #tpu.memory_space<vmem>>, %arg7: memref<1792x384xbf16, #tpu.memory_space<vmem>>, %arg8: memref<1x384xf32, #tpu.memory_space<vmem>>, %arg9: memref<384x5376xbf16, #tpu.memory_space<vmem>>, %arg10: memref<1x384xf32, #tpu.memory_space<vmem>>, %arg11: memref<1x1792xf32, #tpu.memory_space<vmem>>, %arg12: memref<1x1792xf32, #tpu.memory_space<vmem>>, %arg13: memref<1x1792xf32, #tpu.memory_space<vmem>>, %arg14: memref<1x1xf32, #tpu.memory_space<vmem>>, %arg15: memref<1x1xf32, #tpu.memory_space<vmem>>, %arg16: memref<4x1xf32, #tpu.memory_space<vmem>>, %arg17: memref<2x5376xf32, #tpu.memory_space<vmem>>, %arg18: memref<2x1xf32, #tpu.memory_space<vmem>>, %arg19: memref<2x1xf32, #tpu.memory_space<vmem>>) attributes {dimension_semantics = [], scalar_prefetch = 0 : i64, scratch_operands = 0 : i64, tpu.core_type = #tpu.core_type<tc>} {
    %c0 = arith.constant 0 : index
    %c0_0 = arith.constant 0 : index
    %0 = vector.load %arg0[%c0, %c0_0] : memref<4x128xf32, #tpu.memory_space<vmem>>, vector<4x128xf32>
    %1 = arith.truncf %0 : vector<4x128xf32> to vector<4x128xbf16>
    %c0_1 = arith.constant 0 : index
    %c0_2 = arith.constant 0 : index
    %2 = vector.load %arg2[%c0_1, %c0_2] : memref<128x1792xbf16, #tpu.memory_space<vmem>>, vector<128x1792xbf16>
    %cst = arith.constant dense<0.000000e+00> : vector<4x1792xf32>
    %3 = tpu.matmul %1, %2, %cst {dimension_numbers = #tpu.dot_dimension_numbers<[1], [0], [0], [1], [0, 0, 1, 1], [], []>} : vector<4x128xbf16>, vector<128x1792xbf16>, vector<4x1792xf32> -> vector<4x1792xf32>
    %c0_3 = arith.constant 0 : index
    %c0_4 = arith.constant 0 : index
    %4 = vector.load %arg3[%c0_3, %c0_4] : memref<1x1792xf32, #tpu.memory_space<vmem>>, vector<1x1792xf32>
    %5 = vector.broadcast %4 : vector<1x1792xf32> to vector<4x1792xf32>
    %6 = arith.addf %3, %5 : vector<4x1792xf32>
    %7 = arith.negf %6 : vector<4x1792xf32>
    %8 = math.exp %7 : vector<4x1792xf32>
    %cst_5 = arith.constant 1.000000e+00 : f32
    %9 = vector.broadcast %cst_5 : f32 to vector<4x1792xf32>
    %10 = arith.addf %9, %8 : vector<4x1792xf32>
    %11 = arith.divf %9, %10 : vector<4x1792xf32>
    %12 = arith.mulf %6, %11 : vector<4x1792xf32>
    %c0_6 = arith.constant 0 : index
    %c0_7 = arith.constant 0 : index
    %13 = vector.load %arg4[%c0_6, %c0_7] : memref<1x1792xf32, #tpu.memory_space<vmem>>, vector<1x1792xf32>
    %14 = vector.broadcast %13 : vector<1x1792xf32> to vector<4x1792xf32>
    %15 = arith.mulf %12, %14 : vector<4x1792xf32>
    %cst_8 = arith.constant dense<0.000000e+00> : vector<4xf32>
    %16 = vector.multi_reduction <add>, %15, %cst_8 [1] : vector<4x1792xf32> to vector<4xf32>
    %17 = vector.shape_cast %16 : vector<4xf32> to vector<4x1xf32>
    %c0_9 = arith.constant 0 : index
    %c0_10 = arith.constant 0 : index
    %18 = vector.load %arg5[%c0_9, %c0_10] : memref<1x1xf32, #tpu.memory_space<vmem>>, vector<1x1xf32>
    %19 = vector.broadcast %18 : vector<1x1xf32> to vector<4x1xf32>
    %20 = arith.addf %17, %19 : vector<4x1xf32>
    %c0_11 = arith.constant 0 : index
    %c0_12 = arith.constant 0 : index
    %21 = vector.load %arg16[%c0_11, %c0_12] : memref<4x1xf32, #tpu.memory_space<vmem>>, vector<4x1xf32>
    tpu.vector_store %arg16[%c0_11, %c0_12], %20 {strides = array<i32>} : memref<4x1xf32, #tpu.memory_space<vmem>>, vector<4x1xf32>,
    %22 = vector.extract_strided_slice %12 {offsets = [0, 0], sizes = [2, 1792], strides = [1, 1]} : vector<4x1792xf32> to vector<2x1792xf32>
    %23 = vector.extract_strided_slice %12 {offsets = [2, 0], sizes = [2, 1792], strides = [1, 1]} : vector<4x1792xf32> to vector<2x1792xf32>
    %c0_13 = arith.constant 0 : index
    %c0_14 = arith.constant 0 : index
    %24 = vector.load %arg1[%c0_13, %c0_14] : memref<2x1xf32, #tpu.memory_space<vmem>>, vector<2x1xf32>
    %25 = arith.subf %22, %23 : vector<2x1792xf32>
    %26 = arith.truncf %22 : vector<2x1792xf32> to vector<2x1792xbf16>
    %c0_15 = arith.constant 0 : index
    %c0_16 = arith.constant 0 : index
    %27 = vector.load %arg6[%c0_15, %c0_16] : memref<1792x384xbf16, #tpu.memory_space<vmem>>, vector<1792x384xbf16>
    %cst_17 = arith.constant dense<0.000000e+00> : vector<2x384xf32>
    %28 = tpu.matmul %26, %27, %cst_17 {dimension_numbers = #tpu.dot_dimension_numbers<[1], [0], [0], [1], [0, 0, 1, 1], [], []>} : vector<2x1792xbf16>, vector<1792x384xbf16>, vector<2x384xf32> -> vector<2x384xf32>
    %29 = arith.truncf %23 : vector<2x1792xf32> to vector<2x1792xbf16>
    %c0_18 = arith.constant 0 : index
    %c0_19 = arith.constant 0 : index
    %30 = vector.load %arg7[%c0_18, %c0_19] : memref<1792x384xbf16, #tpu.memory_space<vmem>>, vector<1792x384xbf16>
    %cst_20 = arith.constant dense<0.000000e+00> : vector<2x384xf32>
    %31 = tpu.matmul %29, %30, %cst_20 {dimension_numbers = #tpu.dot_dimension_numbers<[1], [0], [0], [1], [0, 0, 1, 1], [], []>} : vector<2x1792xbf16>, vector<1792x384xbf16>, vector<2x384xf32> -> vector<2x384xf32>
    %32 = arith.addf %28, %31 : vector<2x384xf32>
    %c0_21 = arith.constant 0 : index
    %c0_22 = arith.constant 0 : index
    %33 = vector.load %arg8[%c0_21, %c0_22] : memref<1x384xf32, #tpu.memory_space<vmem>>, vector<1x384xf32>
    %34 = vector.broadcast %24 : vector<2x1xf32> to vector<2x384xf32>
    %35 = vector.broadcast %33 : vector<1x384xf32> to vector<2x384xf32>
    %36 = arith.mulf %34, %35 : vector<2x384xf32>
    %37 = arith.addf %32, %36 : vector<2x384xf32>
    %cst_23 = arith.constant 0.000000e+00 : f32
    %38 = vector.broadcast %cst_23 : f32 to vector<2x384xf32>
    %39 = arith.maximumf %37, %38 : vector<2x384xf32>
    %40 = arith.truncf %39 : vector<2x384xf32> to vector<2x384xbf16>
    %c0_24 = arith.constant 0 : index
    %c0_25 = arith.constant 0 : index
    %41 = vector.load %arg9[%c0_24, %c0_25] : memref<384x5376xbf16, #tpu.memory_space<vmem>>, vector<384x5376xbf16>
    %cst_26 = arith.constant dense<0.000000e+00> : vector<2x5376xf32>
    %42 = tpu.matmul %40, %41, %cst_26 {dimension_numbers = #tpu.dot_dimension_numbers<[1], [0], [0], [1], [0, 0, 1, 1], [], []>} : vector<2x384xbf16>, vector<384x5376xbf16>, vector<2x5376xf32> -> vector<2x5376xf32>
    %43 = arith.negf %42 : vector<2x5376xf32>
    %44 = math.exp %43 : vector<2x5376xf32>
    %cst_27 = arith.constant 1.000000e+00 : f32
    %45 = vector.broadcast %cst_27 : f32 to vector<2x5376xf32>
    %46 = arith.addf %45, %44 : vector<2x5376xf32>
    %47 = arith.divf %45, %46 : vector<2x5376xf32>
    %c0_28 = arith.constant 0 : index
    %c0_29 = arith.constant 0 : index
    %48 = vector.load %arg10[%c0_28, %c0_29] : memref<1x384xf32, #tpu.memory_space<vmem>>, vector<1x384xf32>
    %49 = vector.broadcast %48 : vector<1x384xf32> to vector<2x384xf32>
    %50 = arith.mulf %39, %49 : vector<2x384xf32>
    %cst_30 = arith.constant dense<0.000000e+00> : vector<2xf32>
    %51 = vector.multi_reduction <add>, %50, %cst_30 [1] : vector<2x384xf32> to vector<2xf32>
    %52 = vector.shape_cast %51 : vector<2xf32> to vector<2x1xf32>
    %53 = arith.negf %52 : vector<2x1xf32>
    %54 = math.exp %53 : vector<2x1xf32>
    %cst_31 = arith.constant 1.000000e+00 : f32
    %55 = vector.broadcast %cst_31 : f32 to vector<2x1xf32>
    %56 = arith.addf %55, %54 : vector<2x1xf32>
    %57 = arith.divf %55, %56 : vector<2x1xf32>
    %58 = vector.extract_strided_slice %47 {offsets = [0, 0], sizes = [2, 1792], strides = [1, 1]} : vector<2x5376xf32> to vector<2x1792xf32>
    %59 = arith.mulf %22, %58 : vector<2x1792xf32>
    %60 = vector.extract_strided_slice %47 {offsets = [0, 1792], sizes = [2, 1792], strides = [1, 1]} : vector<2x5376xf32> to vector<2x1792xf32>
    %61 = arith.mulf %23, %60 : vector<2x1792xf32>
    %62 = vector.extract_strided_slice %47 {offsets = [0, 3584], sizes = [2, 1792], strides = [1, 1]} : vector<2x5376xf32> to vector<2x1792xf32>
    %63 = arith.mulf %25, %62 : vector<2x1792xf32>
    %64 = arith.mulf %24, %57 : vector<2x1xf32>
    %c0_32 = arith.constant 0 : index
    %c0_33 = arith.constant 0 : index
    %65 = vector.load %arg17[%c0_32, %c0_33] : memref<2x5376xf32, #tpu.memory_space<vmem>>, vector<2x1792xf32>
    tpu.vector_store %arg17[%c0_32, %c0_33], %59 {strides = array<i32>} : memref<2x5376xf32, #tpu.memory_space<vmem>>, vector<2x1792xf32>,
    %c0_34 = arith.constant 0 : index
    %c1792 = arith.constant 1792 : index
    %66 = vector.load %arg17[%c0_34, %c1792] : memref<2x5376xf32, #tpu.memory_space<vmem>>, vector<2x1792xf32>
    tpu.vector_store %arg17[%c0_34, %c1792], %61 {strides = array<i32>} : memref<2x5376xf32, #tpu.memory_space<vmem>>, vector<2x1792xf32>,
    %c0_35 = arith.constant 0 : index
    %c3584 = arith.constant 3584 : index
    %67 = vector.load %arg17[%c0_35, %c3584] : memref<2x5376xf32, #tpu.memory_space<vmem>>, vector<2x1792xf32>
    tpu.vector_store %arg17[%c0_35, %c3584], %63 {strides = array<i32>} : memref<2x5376xf32, #tpu.memory_space<vmem>>, vector<2x1792xf32>,
    %c0_36 = arith.constant 0 : index
    %c0_37 = arith.constant 0 : index
    %68 = vector.load %arg18[%c0_36, %c0_37] : memref<2x1xf32, #tpu.memory_space<vmem>>, vector<2x1xf32>
    tpu.vector_store %arg18[%c0_36, %c0_37], %64 {strides = array<i32>} : memref<2x1xf32, #tpu.memory_space<vmem>>, vector<2x1xf32>,
    %c0_38 = arith.constant 0 : index
    %c0_39 = arith.constant 0 : index
    %69 = vector.load %arg11[%c0_38, %c0_39] : memref<1x1792xf32, #tpu.memory_space<vmem>>, vector<1x1792xf32>
    %70 = vector.broadcast %69 : vector<1x1792xf32> to vector<2x1792xf32>
    %71 = arith.mulf %59, %70 : vector<2x1792xf32>
    %c0_40 = arith.constant 0 : index
    %c0_41 = arith.constant 0 : index
    %72 = vector.load %arg12[%c0_40, %c0_41] : memref<1x1792xf32, #tpu.memory_space<vmem>>, vector<1x1792xf32>
    %73 = vector.broadcast %72 : vector<1x1792xf32> to vector<2x1792xf32>
    %74 = arith.mulf %61, %73 : vector<2x1792xf32>
    %75 = arith.addf %71, %74 : vector<2x1792xf32>
    %c0_42 = arith.constant 0 : index
    %c0_43 = arith.constant 0 : index
    %76 = vector.load %arg13[%c0_42, %c0_43] : memref<1x1792xf32, #tpu.memory_space<vmem>>, vector<1x1792xf32>
    %77 = vector.broadcast %76 : vector<1x1792xf32> to vector<2x1792xf32>
    %78 = arith.mulf %63, %77 : vector<2x1792xf32>
    %79 = arith.addf %75, %78 : vector<2x1792xf32>
    %cst_44 = arith.constant dense<0.000000e+00> : vector<2xf32>
    %80 = vector.multi_reduction <add>, %79, %cst_44 [1] : vector<2x1792xf32> to vector<2xf32>
    %81 = vector.shape_cast %80 : vector<2xf32> to vector<2x1xf32>
    %c0_45 = arith.constant 0 : index
    %c0_46 = arith.constant 0 : index
    %82 = vector.load %arg14[%c0_45, %c0_46] : memref<1x1xf32, #tpu.memory_space<vmem>>, vector<1x1xf32>
    %83 = vector.broadcast %82 : vector<1x1xf32> to vector<2x1xf32>
    %84 = arith.mulf %64, %83 : vector<2x1xf32>
    %85 = arith.addf %81, %84 : vector<2x1xf32>
    %c0_47 = arith.constant 0 : index
    %c0_48 = arith.constant 0 : index
    %86 = vector.load %arg15[%c0_47, %c0_48] : memref<1x1xf32, #tpu.memory_space<vmem>>, vector<1x1xf32>
    %87 = vector.broadcast %86 : vector<1x1xf32> to vector<2x1xf32>
    %88 = arith.addf %85, %87 : vector<2x1xf32>
    %c0_49 = arith.constant 0 : index
    %c0_50 = arith.constant 0 : index
    %89 = vector.load %arg19[%c0_49, %c0_50] : memref<2x1xf32, #tpu.memory_space<vmem>>, vector<2x1xf32>
    tpu.vector_store %arg19[%c0_49, %c0_50], %88 {strides = array<i32>} : memref<2x1xf32, #tpu.memory_space<vmem>>, vector<2x1xf32>,
    return
  }
}

</mosaic_0001>

<bundles_post_ra>
// kernel: hemi_compare_forward.2
= control target key start
LH: loop header
LB: loop body
LE: loop exit
PB: predicated region body
PF: predicated region fallthrough
CT: control target
= control target key end

     0   :  { %s2378_s12 = smov 0   ;;  %s2380_s13 = smov 0   ;;  %s3032_s0 = inlined_call_operand.vmem [shape: bf16[4,256,128], index: 0, kind: input, shape index: {}]   ;;  %s3033_s1 = inlined_call_operand.vmem [shape: bf16[128,128], index: 1, kind: input, shape index: {}]   ;;  %s3034_s2 = inlined_call_operand.vmem [shape: f32[1,128], index: 2, kind: input, shape index: {}]   ;;  %s3035_s3 = inlined_call_operand.vmem [shape: f32[4,128], index: 3, kind: output, shape index: {}]  }
   0x1   :  { %s2382_s14 = smov 0   ;;  %s2384_s15 = smov 0  }
   0x2   :  { %s2386_s16 = smov 0  }
   0x3 LB: > { %s22_s17 = sadd.s32 1, %s2351_s15  ;;  %p41_p1 = scmp.ne.s32.totalorder %s2343_s13, %s2339_s12  ;;  %s2355_s16 = sphi %s2386_s16, %s13_s16   ;;  %s2351_s15 = sphi %s2384_s15, %s3067_s15   ;;  %s2347_s14 = sphi %s2382_s14, %s3066_s14   ;;  %s2343_s13 = sphi %s2380_s13, %s3065_s13   ;;  %s2339_s12 = sphi %s2378_s12, %s3064_s12  }
   0x4   : > { %p23_p0 = scmp.ge.s32.totalorder %s22_s17, 2  ;;  %p42_p2 = scmp.eq.s32.totalorder %s2355_s16, 0 }
   0x5   : > { %s34_s19 = sadd.s32 1, %s2343_s13  ;;  %p1727_p5 = scmp.ge.s32.totalorder %s2355_s16, 2 }
   0x6   : > { %s3069_s17 = smov (%p23_p0, %s22_s17), 0  ;;  %p43_p3 = por %p42_p2, %p41_p1 }
   0x7   : > { %s30_s18 = ssub.s32 %s2351_s15, %s3069_s17  ;;  %141 = sbr.rel (%p1727_p5) target bundleno = 34 (0x22), region = 24 }
   0x8   : > { %p32_p4 = scmp.eq.s32.totalorder %s30_s18, 0 }
   0xa   : > { %s2413_s20 = scalar_select %p32_p4, %s2343_s13, %s34_s19  }
   0xe   : > { %144 = sbr.rel (!%p43_p3) target bundleno = 34 (0x22), region = 28  ;;  %s146_s21 = sand.u32 (%p43_p3), 1, %s2343_s13  }
   0xf   : > { %s1843_s22 = sshll.u32 (%p43_p3), %s2351_s15, 6  ;;  %s1728_s23 = sshll.u32 (%p43_p3), %s146_s21, 8 }
  0x10   : > { %s2421_s26 = scalar_lea.vmem (%p43_p3), %s3032_s0, %s1843_s22  ;;  %s2426_s27 = scalar_lea.vmem (%p43_p3), [#allocation3], %s1728_s23 }
  0x11   : > { %v170_v0 = vld [vmem:[%s2421_s26] sm:$0xff] (%p43_p3)   ;;  %v174_v1 = vld [vmem:[%s2421_s26 + $0x8] sm:$0xff] (%p43_p3)   ;;  %v178_v2 = vld [vmem:[%s2421_s26 + $0x10] sm:$0xff] (%p43_p3)  }
  0x12   : > { %171 = vst [vmem:[%s2426_s27] sm:$0xff] (%p43_p3), %v170_v0   ;;  %175 = vst [vmem:[%s2426_s27 + $0x8] sm:$0xff] (%p43_p3), %v174_v1   ;;  %v182_v3 = vld [vmem:[%s2421_s26 + $0x18] sm:$0xff] (%p43_p3)   ;;  %v186_v4 = vld [vmem:[%s2421_s26 + $0x20] sm:$0xff] (%p43_p3)  }
  0x13   : > { %179 = vst [vmem:[%s2426_s27 + $0x10] sm:$0xff] (%p43_p3), %v178_v2   ;;  %v190_v5 = vld [vmem:[%s2421_s26 + $0x28] sm:$0xff] (%p43_p3)   ;;  %183 = vst [vmem:[%s2426_s27 + $0x18] sm:$0xff] (%p43_p3), %v182_v3   ;;  %v194_v6 = vld [vmem:[%s2421_s26 + $0x30] sm:$0xff] (%p43_p3)  }
  0x14   : > { %187 = vst [vmem:[%s2426_s27 + $0x20] sm:$0xff] (%p43_p3), %v186_v4   ;;  %191 = vst [vmem:[%s2426_s27 + $0x28] sm:$0xff] (%p43_p3), %v190_v5   ;;  %v198_v7 = vld [vmem:[%s2421_s26 + $0x38] sm:$0xff] (%p43_p3)   ;;  %v202_v8 = vld [vmem:[%s2421_s26 + $0x80] sm:$0xff] (%p43_p3)  }
  0x15   : > { %195 = vst [vmem:[%s2426_s27 + $0x30] sm:$0xff] %v194_v6   ;;  %199 = vst [vmem:[%s2426_s27 + $0x38] sm:$0xff] %v198_v7   ;;  %v206_v9 = vld [vmem:[%s2421_s26 + $0x88] sm:$0xff]   ;;  %v210_v10 = vld [vmem:[%s2421_s26 + $0x90] sm:$0xff]  }
  0x16   : > { %203 = vst [vmem:[%s2426_s27 + $0x40] sm:$0xff] %v202_v8   ;;  %v214_v11 = vld [vmem:[%s2421_s26 + $0x98] sm:$0xff]   ;;  %207 = vst [vmem:[%s2426_s27 + $0x48] sm:$0xff] %v206_v9   ;;  %v218_v12 = vld [vmem:[%s2421_s26 + $0xa0] sm:$0xff]  }
  0x17   : > { %211 = vst [vmem:[%s2426_s27 + $0x50] sm:$0xff] %v210_v10   ;;  %215 = vst [vmem:[%s2426_s27 + $0x58] sm:$0xff] %v214_v11   ;;  %v222_v13 = vld [vmem:[%s2421_s26 + $0xa8] sm:$0xff]   ;;  %v226_v14 = vld [vmem:[%s2421_s26 + $0xb0] sm:$0xff]  }
  0x18   : > { %219 = vst [vmem:[%s2426_s27 + $0x60] sm:$0xff] %v218_v12   ;;  %223 = vst [vmem:[%s2426_s27 + $0x68] sm:$0xff] %v222_v13   ;;  %v230_v15 = vld [vmem:[%s2421_s26 + $0xb8] sm:$0xff]   ;;  %v234_v16 = vld [vmem:[%s2421_s26 + $0x100] sm:$0xff]  }
  0x19   : > { %227 = vst [vmem:[%s2426_s27 + $0x70] sm:$0xff] %v226_v14   ;;  %v238_v17 = vld [vmem:[%s2421_s26 + $0x108] sm:$0xff]   ;;  %231 = vst [vmem:[%s2426_s27 + $0x78] sm:$0xff] %v230_v15   ;;  %v242_v18 = vld [vmem:[%s2421_s26 + $0x110] sm:$0xff]  }
  0x1a   : > { %235 = vst [vmem:[%s2426_s27 + $0x80] sm:$0xff] %v234_v16   ;;  %239 = vst [vmem:[%s2426_s27 + $0x88] sm:$0xff] %v238_v17   ;;  %v246_v19 = vld [vmem:[%s2421_s26 + $0x118] sm:$0xff]   ;;  %v250_v20 = vld [vmem:[%s2421_s26 + $0x120] sm:$0xff]  }
  0x1b   : > { %243 = vst [vmem:[%s2426_s27 + $0x90] sm:$0xff] %v242_v18   ;;  %247 = vst [vmem:[%s2426_s27 + $0x98] sm:$0xff] %v246_v19   ;;  %v254_v21 = vld [vmem:[%s2421_s26 + $0x128] sm:$0xff]   ;;  %v258_v22 = vld [vmem:[%s2421_s26 + $0x130] sm:$0xff]  }
  0x1c   : > { %251 = vst [vmem:[%s2426_s27 + $0xa0] sm:$0xff] %v250_v20   ;;  %v262_v23 = vld [vmem:[%s2421_s26 + $0x138] sm:$0xff]   ;;  %255 = vst [vmem:[%s2426_s27 + $0xa8] sm:$0xff] %v254_v21   ;;  %v266_v24 = vld [vmem:[%s2421_s26 + $0x180] sm:$0xff]  }
  0x1d   : > { %259 = vst [vmem:[%s2426_s27 + $0xb0] sm:$0xff] %v258_v22   ;;  %263 = vst [vmem:[%s2426_s27 + $0xb8] sm:$0xff] %v262_v23   ;;  %v270_v25 = vld [vmem:[%s2421_s26 + $0x188] sm:$0xff]   ;;  %v274_v26 = vld [vmem:[%s2421_s26 + $0x190] sm:$0xff]  }
  0x1e   : > { %267 = vst [vmem:[%s2426_s27 + $0xc0] sm:$0xff] %v266_v24   ;;  %271 = vst [vmem:[%s2426_s27 + $0xc8] sm:$0xff] %v270_v25   ;;  %v278_v27 = vld [vmem:[%s2421_s26 + $0x198] sm:$0xff]   ;;  %v282_v28 = vld [vmem:[%s2421_s26 + $0x1a0] sm:$0xff]  }
  0x1f   : > { %275 = vst [vmem:[%s2426_s27 + $0xd0] sm:$0xff] %v274_v26   ;;  %v286_v29 = vld [vmem:[%s2421_s26 + $0x1a8] sm:$0xff]   ;;  %279 = vst [vmem:[%s2426_s27 + $0xd8] sm:$0xff] %v278_v27   ;;  %v290_v30 = vld [vmem:[%s2421_s26 + $0x1b0] sm:$0xff]  }
  0x20   : > { %283 = vst [vmem:[%s2426_s27 + $0xe0] sm:$0xff] %v282_v28   ;;  %287 = vst [vmem:[%s2426_s27 + $0xe8] sm:$0xff] %v286_v29   ;;  %v294_v31 = vld [vmem:[%s2421_s26 + $0x1b8] sm:$0xff]  }
  0x21   : > { %291 = vst [vmem:[%s2426_s27 + $0xf0] sm:$0xff] %v290_v30   ;;  %295 = vst [vmem:[%s2426_s27 + $0xf8] sm:$0xff] %v294_v31  }
  0x22 PF: > { %p1731_p6 = scmp.ge.s32.totalorder %s2355_s16, 1  ;;  %p447_p7 = scmp.lt.s32.totalorder %s2355_s16, 3 }
  0x24   : > { %p448_p8 = pnand %p1731_p6, %p447_p7 }
  0x26   : > { %451 = sbr.rel (%p448_p8) target bundleno = 480 (0x1e0), region = 69 }
  0x2d   : > { %s454_s28 = sand.u32 1, %s2339_s12   ;;  %p1733_p9 = scmp.ne.s32.totalorder %s2347_s14, 0 }
  0x2e   : > { %s1732_s29 = sshll.u32 %s454_s28, 8  ;;  %v2357_v32 = vmov (!%p1733_p9), 0.0  }
  0x2f   : > { %s2492_s30 = scalar_lea.vmem [#allocation3], %s1732_s29  ;;  %486 = sbr.rel (%p1733_p9) target bundleno = 54 (0x36), region = 77  ;;  %487 = vst [vmem:[#allocation2] sm:$0xf] (!%p1733_p9), %v2357_v32 }
  0x36 PF: > { %v2021_v33 = vld [vmem:[%s3033_s1] sm:$0xff]   ;;  %v2022_v34 = vld [vmem:[%s3033_s1 + $0x8] sm:$0xff]   ;;  %v2023_v35 = vld [vmem:[%s3033_s1 + $0x10] sm:$0xff]   ;;  %vm1641_vm0 = vcmask 1041409   ;;  %vm1643_vm1 = vcmask 1042434   ;;  %vm1645_vm2 = vcmask 1043459  }
  0x37   : > { %1884 = vmatprep.subr.bf16.mxu0 %v2021_v33  ;;  %1964 = vmatprep.subr.bf16.mxu1 %v2021_v33  ;;  %v2024_v36 = vld [vmem:[%s3033_s1 + $0x18] sm:$0xff]   ;;  %v2029_v37 = vld [vmem:[%s2492_s30] sm:$0xff]   ;;  %v2027_v41 = vld [vmem:[%s3033_s1 + $0x30] sm:$0xff]   ;;  %p1839_p10 = scmp.ne.s32.totalorder %s2347_s14, 1 }
  0x38   : > { %1885 = vmatpush3.bf16.msra.mxu0 %v2021_v33  ;;  %1972 = vmatpush3.bf16.msra.mxu1 %v2021_v33  ;;  %v2030_v38 = vld [vmem:[%s2492_s30 + $0x80] sm:$0xff]   ;;  %v2028_v42 = vld [vmem:[%s3033_s1 + $0x38] sm:$0xff]   ;;  %v2031_v43 = vld [vmem:[%s2492_s30 + $0x8] sm:$0xff]  }
  0x39   : > { %1886 = vmatprep.subr.bf16.mxu0 %v2022_v34  ;;  %1965 = vmatprep.subr.bf16.mxu1 %v2022_v34  ;;  %v2025_v39 = vld [vmem:[%s3033_s1 + $0x20] sm:$0xff]   ;;  %v2026_v40 = vld [vmem:[%s3033_s1 + $0x28] sm:$0xff]   ;;  %v2033_v45 = vld [vmem:[%s2492_s30 + $0x10] sm:$0xff]  }
  0x3a   : > { %1900 = vmatprep.mubr.bf16.mxu0 %v2029_v37  ;;  %1932 = vmatprep.mubr.bf16.mxu1 %v2030_v38  ;;  %v2032_v44 = vld [vmem:[%s2492_s30 + $0x88] sm:$0xff]   ;;  %v2034_v46 = vld [vmem:[%s2492_s30 + $0x90] sm:$0xff]   ;;  %v2035_v47 = vld [vmem:[%s2492_s30 + $0x18] sm:$0xff]  }
  0x3b   : > { %v2036_v48 = vld [vmem:[%s2492_s30 + $0x98] sm:$0xff]   ;;  %v2037_v49 = vld [vmem:[%s2492_s30 + $0x20] sm:$0xff]   ;;  %v2039_v51 = vld [vmem:[%s2492_s30 + $0x28] sm:$0xff]  }
  0x3c   : > { %1887 = vmatpush3.bf16.msra.mxu0 %v2022_v34  ;;  %1973 = vmatpush3.bf16.msra.mxu1 %v2022_v34  ;;  %v2038_v50 = vld [vmem:[%s2492_s30 + $0xa0] sm:$0xff]   ;;  %v2040_v52 = vld [vmem:[%s2492_s30 + $0xa8] sm:$0xff]   ;;  %v2041_v53 = vld [vmem:[%s2492_s30 + $0x30] sm:$0xff]  }
  0x3d   : > { %1888 = vmatprep.subr.bf16.mxu0 %v2023_v35  ;;  %1966 = vmatprep.subr.bf16.mxu1 %v2023_v35  ;;  %v2042_v54 = vld [vmem:[%s2492_s30 + $0xb0] sm:$0xff]   ;;  %v2043_v55 = vld [vmem:[%s2492_s30 + $0x38] sm:$0xff]   ;;  %v2045_v57 = vld [vmem:[%s2492_s30 + $0x40] sm:$0xff]  }
  0x3e   : > { %v2044_v56 = vld [vmem:[%s2492_s30 + $0xb8] sm:$0xff]   ;;  %v2046_v58 = vld [vmem:[%s2492_s30 + $0xc0] sm:$0xff]   ;;  %v2047_v59 = vld [vmem:[%s2492_s30 + $0x48] sm:$0xff]  }
  0x3f   : > { %v2048_v60 = vld [vmem:[%s2492_s30 + $0xc8] sm:$0xff]   ;;  %v2049_v61 = vld [vmem:[%s2492_s30 + $0x50] sm:$0xff]   ;;  %v2051_v63 = vld [vmem:[%s2492_s30 + $0x58] sm:$0xff]  }
  0x40   : > { %1889 = vmatpush3.bf16.msra.mxu0 %v2023_v35  ;;  %1974 = vmatpush3.bf16.msra.mxu1 %v2023_v35  ;;  %v2050_v62 = vld [vmem:[%s2492_s30 + $0xd0] sm:$0xff]   ;;  %v2052_v0 = vld [vmem:[%s2492_s30 + $0xd8] sm:$0xff]   ;;  %v2053_v1 = vld [vmem:[%s2492_s30 + $0x60] sm:$0xff]  }
  0x41   : > { %1890 = vmatprep.subr.bf16.mxu0 %v2024_v36  ;;  %1967 = vmatprep.subr.bf16.mxu1 %v2024_v36  ;;  %v2054_v2 = vld [vmem:[%s2492_s30 + $0xe0] sm:$0xff]   ;;  %v2055_v3 = vld [vmem:[%s2492_s30 + $0x68] sm:$0xff]   ;;  %v2057_v5 = vld [vmem:[%s2492_s30 + $0x70] sm:$0xff]  }
  0x42   : > { %v2056_v4 = vld [vmem:[%s2492_s30 + $0xe8] sm:$0xff]   ;;  %v2058_v6 = vld [vmem:[%s2492_s30 + $0xf0] sm:$0xff]   ;;  %v2059_v7 = vld [vmem:[%s2492_s30 + $0x78] sm:$0xff]  }
  0x43   : > { %v2060_v8 = vld [vmem:[%s2492_s30 + $0xf8] sm:$0xff]  }
  0x44   : > { %1891 = vmatpush3.bf16.msra.mxu0 %v2024_v36  ;;  %1975 = vmatpush3.bf16.msra.mxu1 %v2024_v36  ;;  %v2554_v9 = vld [vmem:[%s3034_s2] ss:$0 sm:$0xff] }
  0x45   : > { %1892 = vmatprep.subr.bf16.mxu0 %v2025_v39  ;;  %1968 = vmatprep.subr.bf16.mxu1 %v2025_v39 }
  0x48   : > { %1893 = vmatpush3.bf16.msra.mxu0 %v2025_v39  ;;  %1976 = vmatpush3.bf16.msra.mxu1 %v2025_v39 }
  0x49   : > { %1894 = vmatprep.subr.bf16.mxu0 %v2026_v40  ;;  %1969 = vmatprep.subr.bf16.mxu1 %v2026_v40 }
  0x4c   : > { %1895 = vmatpush3.bf16.msra.mxu0 %v2026_v40  ;;  %1977 = vmatpush3.bf16.msra.mxu1 %v2026_v40 }
  0x4d   : > { %1896 = vmatprep.subr.bf16.mxu0 %v2027_v41  ;;  %1970 = vmatprep.subr.bf16.mxu1 %v2027_v41 }
  0x50   : > { %1897 = vmatpush3.bf16.msra.mxu0 %v2027_v41  ;;  %1978 = vmatpush3.bf16.msra.mxu1 %v2027_v41 }
  0x51   : > { %1898 = vmatprep.subr.bf16.mxu0 %v2028_v42  ;;  %1971 = vmatprep.subr.bf16.mxu1 %v2028_v42 }
  0x54   : > { %1899 = vmatpush3.bf16.msra.mxu0 %v2028_v42  ;;  %1979 = vmatpush3.bf16.msra.mxu1 %v2028_v42 }
  0x57   : > { %1901 = vmatmul.mubr.bf16.vlgmr.msra.gmra.mrb[0].mxu0 %v2031_v43  ;;  %1933 = vmatmul.mubr.bf16.vlgmr.msra.gmra.mrb[0].mxu1 %v2032_v44 }
  0x58   : > { %1904 = vmatprep.mubr.bf16.mxu0 %v2033_v45  ;;  %1936 = vmatprep.mubr.bf16.mxu1 %v2034_v46 }
  0x5f   : > { %1905 = vmatmul.mubr.bf16.gmra.mrb[4].mxu0 %v2035_v47  ;;  %1937 = vmatmul.mubr.bf16.gmra.mrb[4].mxu1 %v2036_v48 }
  0x60   : > { %1908 = vmatprep.mubr.bf16.mxu0 %v2037_v49  ;;  %1940 = vmatprep.mubr.bf16.mxu1 %v2038_v50 }
  0x67   : > { %1909 = vmatmul.mubr.bf16.gmra.mrb[8].mxu0 %v2039_v51  ;;  %1941 = vmatmul.mubr.bf16.gmra.mrb[8].mxu1 %v2040_v52 }
  0x68   : > { %1912 = vmatprep.mubr.bf16.mxu0 %v2041_v53  ;;  %1944 = vmatprep.mubr.bf16.mxu1 %v2042_v54 }
  0x6f   : > { %1913 = vmatmul.mubr.bf16.gmra.mrb[12].mxu0 %v2043_v55  ;;  %1945 = vmatmul.mubr.bf16.gmra.mrb[12].mxu1 %v2044_v56 }
  0x70   : > { %1916 = vmatprep.mubr.bf16.mxu0 %v2045_v57  ;;  %1948 = vmatprep.mubr.bf16.mxu1 %v2046_v58 }
  0x77   : > { %1917 = vmatmul.mubr.bf16.gmra.mrb[16].mxu0 %v2047_v59  ;;  %1949 = vmatmul.mubr.bf16.gmra.mrb[16].mxu1 %v2048_v60 }
  0x78   : > { %1920 = vmatprep.mubr.bf16.mxu0 %v2049_v61  ;;  %1952 = vmatprep.mubr.bf16.mxu1 %v2050_v62 }
  0x7f   : > { %1921 = vmatmul.mubr.bf16.gmra.mrb[20].mxu0 %v2051_v63  ;;  %1953 = vmatmul.mubr.bf16.gmra.mrb[20].mxu1 %v2052_v0 }
  0x80   : > { %1924 = vmatprep.mubr.bf16.mxu0 %v2053_v1  ;;  %1956 = vmatprep.mubr.bf16.mxu1 %v2054_v2 }
  0x87   : > { %1925 = vmatmul.mubr.bf16.gmra.mrb[24].mxu0 %v2055_v3  ;;  %1957 = vmatmul.mubr.bf16.gmra.mrb[24].mxu1 %v2056_v4 }
  0x88   : > { %1928 = vmatprep.mubr.bf16.mxu0 %v2057_v5  ;;  %1960 = vmatprep.mubr.bf16.mxu1 %v2058_v6 }
  0x8f   : > { %1929 = vmatmul.mubr.bf16.gmra.mrb[28].mxu0 %v2059_v7  ;;  %1961 = vmatmul.mubr.bf16.gmra.mrb[28].mxu1 %v2060_v8 }
 0x12a   : > { %v1902_v10 = vpop.f32.mrb[0].mxu0  ;;  %v1934_v11 = vpop.f32.mrb[0].mxu1 }
 0x12b   : > { %v2557_v12 = vadd.f32 %v1902_v10, %v2554_v9  ;;  %v2560_v13 = vadd.f32 %v1934_v11, %v2554_v9  ;;  %v849_v14 = vpop.f32.mrb[1].mxu0  ;;  %v977_v15 = vpop.f32.mrb[1].mxu1 }
 0x12c   : > { %v2563_v16 = vadd.f32 %v2554_v9, %v849_v14  ;;  %v2566_v17 = vadd.f32 %v2554_v9, %v977_v15  ;;  %v1903_v18 = vpop.f32.mrb[2].mxu0  ;;  %v1935_v19 = vpop.f32.mrb[2].mxu1 }
 0x12d   : > { %v1777_v20 = vmul.f32 -1.442695, %v2557_v12  ;;  %v1809_v21 = vmul.f32 -1.442695, %v2560_v13  ;;  %v2571_v22 = vadd.f32 %v1903_v18, %v2554_v9  ;;  %v2574_v23 = vadd.f32 %v1935_v19, %v2554_v9  ;;  %v852_v24 = vpop.f32.mrb[3].mxu0  ;;  %v980_v25 = vpop.f32.mrb[3].mxu1 }
 0x12e   : > { %v1775_v26 = vmul.f32 -1.442695, %v2563_v16  ;;  %v1807_v27 = vmul.f32 -1.442695, %v2566_v17  ;;  %v2579_v28 = vadd.f32 %v2554_v9, %v852_v24  ;;  %v2582_v29 = vadd.f32 %v2554_v9, %v980_v25 }
 0x12f   : > { %2061 = vpow2.f32 %v1777_v20  ;;  %v1778_v30 = vmul.f32 -1.442695, %v2571_v22  ;;  %v1810_v31 = vmul.f32 -1.442695, %v2574_v23 }
 0x130   : > { %2063 = vpow2.f32 %v1809_v21  ;;  %v1776_v32 = vmul.f32 -1.442695, %v2579_v28  ;;  %v1808_v33 = vmul.f32 -1.442695, %v2582_v29 }
 0x131   : > { %2065 = vpow2.f32 %v1775_v26 }
 0x132   : > { %2067 = vpow2.f32 %v1807_v27  ;;  %v1906_v34 = vpop.f32.mrb[4].mxu0  ;;  %v1938_v35 = vpop.f32.mrb[4].mxu1 }
 0x133   : > { %2069 = vpow2.f32 %v1778_v30  ;;  %v2589_v36 = vadd.f32 %v1906_v34, %v2554_v9  ;;  %v865_v37 = vpop.f32.mrb[5].mxu0  ;;  %v993_v38 = vpop.f32.mrb[5].mxu1  ;;  %v2592_v39 = vadd.f32 %v1938_v35, %v2554_v9 }
 0x134   : > { %2071 = vpow2.f32 %v1810_v31  ;;  %v2595_v40 = vadd.f32 %v2554_v9, %v865_v37  ;;  %v2598_v41 = vadd.f32 %v2554_v9, %v993_v38  ;;  %v1907_v42 = vpop.f32.mrb[6].mxu0  ;;  %v1939_v43 = vpop.f32.mrb[6].mxu1 }
 0x135   : > { %2073 = vpow2.f32 %v1776_v32  ;;  %v1781_v44 = vmul.f32 -1.442695, %v2589_v36  ;;  %v2602_v45 = vadd.f32 %v1907_v42, %v2554_v9  ;;  %v868_v46 = vpop.f32.mrb[7].mxu0  ;;  %v996_v47 = vpop.f32.mrb[7].mxu1  ;;  %v1813_v50 = vmul.f32 -1.442695, %v2592_v39 }
 0x136   : > { %2075 = vpow2.f32 %v1808_v33  ;;  %v1779_v48 = vmul.f32 -1.442695, %v2595_v40  ;;  %v1811_v49 = vmul.f32 -1.442695, %v2598_v41  ;;  %v2609_v18 = vadd.f32 %v1939_v43, %v2554_v9 }
 0x137   : > { %2077 = vpow2.f32 %v1781_v44  ;;  %v1782_v52 = vmul.f32 -1.442695, %v2602_v45  ;;  %v2612_v19 = vadd.f32 %v2554_v9, %v868_v46  ;;  %v2615_v24 = vadd.f32 %v2554_v9, %v996_v47 }
 0x138   : > { %2079 = vpow2.f32 %v1779_v48  ;;  %v1814_v37 = vmul.f32 -1.442695, %v2609_v18 }
 0x139   : > { %v2062_v51 = vpop.eup %2061  ;;  %2081 = vpow2.f32 %v1811_v49  ;;  %v1780_v46 = vmul.f32 -1.442695, %v2612_v19 }
 0x13a   : > { %v2064_v53 = vpop.eup %2063  ;;  %v1298_v54 = vadd.f32 1.0, %v2062_v51  ;;  %v1910_v55 = vpop.f32.mrb[8].mxu0  ;;  %2083 = vpow2.f32 %v1813_v50  ;;  %v1812_v51 = vmul.f32 -1.442695, %v2615_v24 }
 0x13b   : > { %v1942_v56 = vpop.f32.mrb[8].mxu1  ;;  %v2066_v57 = vpop.eup %2065  ;;  %v1330_v58 = vadd.f32 1.0, %v2064_v53  ;;  %2085 = vpow2.f32 %v1782_v52  ;;  %v2622_v32 = vadd.f32 %v1910_v55, %v2554_v9 }
 0x13c   : > { %v881_v59 = vpop.f32.mrb[9].mxu0  ;;  %v1009_v60 = vpop.f32.mrb[9].mxu1  ;;  %v1296_v62 = vadd.f32 1.0, %v2066_v57  ;;  %2087 = vrcp.f32 %v1298_v54  ;;  %v2630_v38 = vadd.f32 %v1942_v56, %v2554_v9 }
 0x13d   : > { %v2068_v61 = vpop.eup %2067  ;;  %v1911_v63 = vpop.f32.mrb[10].mxu0  ;;  %2089 = vrcp.f32 %v1330_v58  ;;  %v2638_v47 = vadd.f32 %v2554_v9, %v881_v59  ;;  %v2641_v48 = vadd.f32 %v2554_v9, %v1009_v60  ;;  %v1785_v55 = vmul.f32 -1.442695, %v2622_v32 }
 0x13e   : > { %v1943_v0 = vpop.f32.mrb[10].mxu1  ;;  %v2070_v1 = vpop.eup %2069  ;;  %v1328_v2 = vadd.f32 1.0, %v2068_v61  ;;  %2091 = vrcp.f32 %v1296_v62  ;;  %v2647_v52 = vadd.f32 %v1911_v63, %v2554_v9  ;;  %v1817_v59 = vmul.f32 -1.442695, %v2630_v38 }
 0x13f   : > { %v884_v3 = vpop.f32.mrb[11].mxu0  ;;  %v2072_v4 = vpop.eup %2071  ;;  %v1299_v8 = vadd.f32 1.0, %v2070_v1  ;;  %v2650_v53 = vadd.f32 %v1943_v0, %v2554_v9  ;;  %v1783_v61 = vmul.f32 -1.442695, %v2638_v47  ;;  %v1815_v62 = vmul.f32 -1.442695, %v2641_v48 }
 0x140   : > { %v1012_v5 = vpop.f32.mrb[11].mxu1  ;;  %v2074_v6 = vpop.eup %2073  ;;  %2093 = vrcp.f32 %v1328_v2  ;;  %v1331_v14 = vadd.f32 1.0, %v2072_v4  ;;  %v2654_v56 = vadd.f32 %v2554_v9, %v884_v3  ;;  %v1786_v2 = vmul.f32 -1.442695, %v2647_v52 }
 0x141   : > { %v2076_v7 = vpop.eup %2075  ;;  %v1297_v10 = vadd.f32 1.0, %v2074_v6  ;;  %v2657_v57 = vadd.f32 %v2554_v9, %v1012_v5  ;;  %v1818_v3 = vmul.f32 -1.442695, %v2650_v53 }
 0x142   : > { %v2078_v11 = vpop.eup %2077  ;;  %v1329_v15 = vadd.f32 1.0, %v2076_v7  ;;  %v1914_v20 = vpop.f32.mrb[12].mxu0 }
 0x143   : > { %2095 = vrcp.f32 %v1297_v10  ;;  %v2080_v21 = vpop.eup %2079  ;;  %v2617_v25 = vpop.f32.mrb[12].mxu1  ;;  %v1302_v30 = vadd.f32 1.0, %v2078_v11  ;;  %v2669_v4 = vadd.f32 %v1914_v20, %v2554_v9  ;;  %v1816_v10 = vmul.f32 -1.442695, %v2657_v57 }
 0x144   : > { %2097 = vrcp.f32 %v1329_v15  ;;  %v2619_v26 = vpop.f32.mrb[13].mxu0  ;;  %v2082_v27 = vpop.eup %2081  ;;  %v1300_v31 = vadd.f32 1.0, %v2080_v21 }
 0x145   : > { %2099 = vrcp.f32 %v1299_v8  ;;  %v2624_v33 = vpop.f32.mrb[13].mxu1  ;;  %v2626_v34 = vpop.f32.mrb[14].mxu0  ;;  %v1332_v35 = vadd.f32 1.0, %v2082_v27  ;;  %v1784_v8 = vmul.f32 -1.442695, %v2654_v56 }
 0x146   : > { %2101 = vrcp.f32 %v1331_v14  ;;  %v2632_v42 = vpop.f32.mrb[14].mxu1  ;;  %v2634_v43 = vpop.f32.mrb[15].mxu0 }
 0x147   : > { %v2084_v44 = vpop.eup %2083  ;;  %2103 = vrcp.f32 %v1300_v31  ;;  %v2643_v49 = vpop.f32.mrb[15].mxu1 }
 0x148   : > { %v2086_v50 = vpop.eup %2085  ;;  %2105 = vrcp.f32 %v1332_v35  ;;  %v1334_v27 = vadd.f32 1.0, %v2084_v44  ;;  %v1789_v44 = vmul.f32 -1.442695, %v2669_v4 }
 0x149   : > { %v2088_v54 = vpop.eup %2087  ;;  %2107 = vrcp.f32 %v1302_v30 }
 0x14a   : > { %v2090_v58 = vpop.eup %2089  ;;  %2109 = vpow2.f32 %v1814_v37  ;;  %v2662_v63 = vpop.f32.mrb[16].mxu0 }
 0x14b   : > { %v2092_v60 = vpop.eup %2091  ;;  %2111 = vpow2.f32 %v1780_v46  ;;  %v2664_v0 = vpop.f32.mrb[16].mxu1 }
 0x14c   : > { %v2094_v1 = vpop.eup %2093  ;;  %2113 = vpow2.f32 %v1812_v51  ;;  %v2671_v5 = vpop.f32.mrb[17].mxu0  ;;  %v1488_v21 = vmul.f32 %v2092_v60, %v2563_v16  ;;  %v2691_v51 = vadd.f32 %v2617_v25, %v2554_v9  ;;  %v1490_v16 = vmul.f32 %v2088_v54, %v2557_v12 }
 0x14d   : > { %v2673_v6 = vpop.f32.mrb[17].mxu1  ;;  %v2096_v7 = vpop.eup %2095  ;;  %2115 = vpow2.f32 %v1785_v55  ;;  %v1520_v37 = vmul.f32 %v2094_v1, %v2566_v17  ;;  %v1522_v60 = vmul.f32 %v2090_v58, %v2560_v13 }
 0x14e   : > { %v2677_v11 = vpop.f32.mrb[18].mxu0  ;;  %v2679_v14 = vpop.f32.mrb[18].mxu1  ;;  %v1489_v20 = vmul.f32 %v2096_v7, %v2579_v28  ;;  %2117 = vpow2.f32 %v1817_v59 }
 0x14f   : > { %v2098_v15 = vpop.eup %2097  ;;  %v2683_v30 = vpop.f32.mrb[19].mxu0  ;;  %2119 = vpow2.f32 %v1783_v61 }
 0x150   : > { %v2685_v31 = vpop.f32.mrb[19].mxu1  ;;  %v2100_v35 = vpop.eup %2099  ;;  %v1521_v46 = vmul.f32 %v2098_v15, %v2582_v29  ;;  %v1553_v28 = vadd.f32 %v1489_v20, %v1488_v21  ;;  %2121 = vpow2.f32 %v1815_v62 }
 0x151   : > { %3040 = vst [vmem:[#allocation4_spill] sm:$0xff] %v2685_v31  ;;  %v2102_v55 = vpop.eup %2101  ;;  %v1303_v31 = vadd.f32 1.0, %v2086_v50  ;;  %2123 = vpow2.f32 %v1786_v2  ;;  %v1491_v29 = vmul.f32 %v2100_v35, %v2571_v22  ;;  %v1821_v35 = vmul.f32 -1.442695, %v2691_v51 }
 0x152   : > { %v2104_v59 = vpop.eup %2103  ;;  %v1595_v7 = vadd.f32 %v1521_v46, %v1520_v37  ;;  %v1554_v61 = vadd.f32 %v1553_v28, %v1490_v16  ;;  %2125 = vpow2.f32 %v1818_v3  ;;  %v1523_v12 = vmul.f32 %v2102_v55, %v2574_v23  ;;  %v2702_v15 = vpop.f32.mrb[20].mxu0 }
 0x153   : > { %v2106_v17 = vpop.eup %2105  ;;  %v1492_v25 = vmul.f32 %v2104_v59, %v2595_v40  ;;  %2127 = vpow2.f32 %v1784_v8  ;;  %v2704_v13 = vpop.f32.mrb[20].mxu1 }
 0x154   : > { %v2698_v1 = vpop.eup %2107  ;;  %v1596_v54 = vadd.f32 %v1595_v7, %v1522_v60  ;;  %v1524_v62 = vmul.f32 %v2106_v17, %v2598_v41  ;;  %v1555_v58 = vadd.f32 %v1554_v61, %v1491_v29  ;;  %2129 = vpow2.f32 %v1816_v10  ;;  %v2706_v22 = vpop.f32.mrb[21].mxu0 }
 0x155   : > { %v2110_v50 = vpop.eup %2109  ;;  %v2708_v2 = vpop.f32.mrb[21].mxu1  ;;  %2131 = vrcp.f32 %v1334_v27 }
 0x156   : > { %v2112_v40 = vpop.eup %2111  ;;  %v1597_v3 = vadd.f32 %v1596_v54, %v1523_v12  ;;  %v2710_v21 = vpop.f32.mrb[22].mxu0  ;;  %v2714_v8 = vadd.f32 %v1555_v58, %v1492_v25  ;;  %2133 = vrcp.f32 %v1303_v31  ;;  %v1335_v27 = vadd.f32 1.0, %v2110_v50 }
 0x157   : > { %v2712_v23 = vpop.f32.mrb[22].mxu1  ;;  %v2114_v41 = vpop.eup %2113  ;;  %v1301_v20 = vadd.f32 1.0, %v2112_v40  ;;  %2135 = vpow2.f32 %v1789_v44  ;;  %v2727_v54 = vadd.f32 %v2554_v9, %v2619_v26  ;;  %v2731_v44 = vadd.f32 %v2554_v9, %v2624_v33 }
 0x158   : > { %v2717_v37 = vpop.f32.mrb[23].mxu0  ;;  %v2719_v10 = vpop.f32.mrb[23].mxu1  ;;  %v2721_v55 = vadd.f32 %v1597_v3, %v1524_v62  ;;  %v1333_v16 = vadd.f32 1.0, %v2114_v41  ;;  %v2739_v40 = vadd.f32 %v2626_v34, %v2554_v9  ;;  %v2743_v3 = vadd.f32 %v2632_v42, %v2554_v9 }
 0x159   : > { %v2116_v46 = vpop.eup %2115  ;;  %2137 = vrcp.f32 %v1301_v20  ;;  %v2747_v26 = vadd.f32 %v2554_v9, %v2634_v43  ;;  %v2755_v34 = vadd.f32 %v2554_v9, %v2643_v49  ;;  %v2770_v49 = vadd.f32 %v2664_v0, %v2554_v9 }
 0x15a   : > { %v2118_v28 = vpop.eup %2117  ;;  %2139 = vrcp.f32 %v1333_v16  ;;  %v1306_v7 = vadd.f32 1.0, %v2116_v46  ;;  %v2723_v25 = vpop.f32.mrb[24].mxu0  ;;  %3041 = vst [vmem:[#allocation5_spill] sm:$0xff] %v2739_v40  ;;  %3042 = vst [vmem:[#allocation6_spill] sm:$0xff] %v2743_v3 }
 0x15b   : > { %v2120_v59 = vpop.eup %2119  ;;  %2141 = vpow2.f32 %v1821_v35  ;;  %v1338_v29 = vadd.f32 1.0, %v2118_v28  ;;  %v2733_v62 = vpop.f32.mrb[24].mxu1  ;;  %3048 = vst [vmem:[#allocation12_spill] sm:$0xff] %v2770_v49 }
 0x15c   : > { %v2122_v60 = vpop.eup %2121  ;;  %v1304_v31 = vadd.f32 1.0, %v2120_v59  ;;  %2143 = vrcp.f32 %v1335_v27  ;;  %v2735_v50 = vpop.f32.mrb[25].mxu0  ;;  %v2763_v59 = vadd.f32 %v2662_v63, %v2554_v9 }
 0x15d   : > { %v2124_v17 = vpop.eup %2123  ;;  %v1336_v61 = vadd.f32 1.0, %v2122_v60  ;;  %v2749_v33 = vpop.f32.mrb[25].mxu1 }
 0x15e   : > { %v2126_v12 = vpop.eup %2125  ;;  %2145 = vrcp.f32 %v1304_v31  ;;  %v2751_v41 = vpop.f32.mrb[26].mxu0  ;;  %v1307_v35 = vadd.f32 1.0, %v2124_v17  ;;  %3046 = vst [vmem:[#allocation10_spill] sm:$0xff] %v2763_v59  ;;  %v1787_v31 = vmul.f32 -1.442695, %v2727_v54  ;;  %v2774_v17 = vadd.f32 %v2554_v9, %v2671_v5 }
 0x15f   : > { %v2128_v58 = vpop.eup %2127  ;;  %2147 = vrcp.f32 %v1336_v61  ;;  %3043 = vst [vmem:[#allocation7_spill] sm:$0xff] %v2751_v41  ;;  %v2757_v27 = vpop.f32.mrb[26].mxu1  ;;  %v1339_v43 = vadd.f32 1.0, %v2126_v12  ;;  %v1819_v61 = vmul.f32 -1.442695, %v2731_v44 }
 0x160   : > { %v2130_v20 = vpop.eup %2129  ;;  %2149 = vrcp.f32 %v1306_v7  ;;  %v1305_v46 = vadd.f32 1.0, %v2128_v58  ;;  %3044 = vst [vmem:[#allocation8_spill] sm:$0xff] %v2757_v27  ;;  %v2759_v42 = vpop.f32.mrb[27].mxu0  ;;  %v1790_v12 = vmul.f32 -1.442695, %v2739_v40 }
 0x161   : > { %3045 = vst [vmem:[#allocation9_spill] sm:$0xff] %v2759_v42  ;;  %v2132_v16 = vpop.eup %2131  ;;  %2151 = vrcp.f32 %v1338_v29  ;;  %v1337_v28 = vadd.f32 1.0, %v2130_v20  ;;  %v2765_v60 = vpop.f32.mrb[27].mxu1  ;;  %v1822_v58 = vmul.f32 -1.442695, %v2743_v3 }
 0x162   : > { %3047 = vst [vmem:[#allocation11_spill] sm:$0xff] %v2765_v60  ;;  %v2134_v7 = vpop.eup %2133  ;;  %2153 = vrcp.f32 %v1305_v46  ;;  %v1788_v20 = vmul.f32 -1.442695, %v2747_v26  ;;  %v1820_v60 = vmul.f32 -1.442695, %v2755_v34  ;;  %v2783_v42 = vpop.f32.mrb[28].mxu0 }
 0x163   : > { %v2136_v29 = vpop.eup %2135  ;;  %2155 = vrcp.f32 %v1337_v28  ;;  %v1793_v5 = vmul.f32 -1.442695, %v2763_v59  ;;  %3049 = vst [vmem:[#allocation13_spill] sm:$0xff] %v2783_v42  ;;  %v2785_v28 = vpop.f32.mrb[28].mxu1  ;;  %v1825_v41 = vmul.f32 -1.442695, %v2770_v49  ;;  %v1526_v42 = vmul.f32 %v2132_v16, %v2592_v39 }
 0x164   : > { %v2138_v63 = vpop.eup %2137  ;;  %2157 = vrcp.f32 %v1307_v35  ;;  %3050 = vst [vmem:[#allocation14_spill] sm:$0xff] %v2785_v28  ;;  %v1791_v3 = vmul.f32 -1.442695, %v2774_v17  ;;  %v2790_v40 = vpop.f32.mrb[29].mxu0 }
 0x165   : > { %v2140_v46 = vpop.eup %2139  ;;  %v1493_v0 = vmul.f32 %v2138_v63, %v2612_v19  ;;  %2159 = vrcp.f32 %v1339_v43  ;;  %v2792_v19 = vpop.f32.mrb[29].mxu1  ;;  %v1494_v63 = vmul.f32 %v2698_v1, %v2589_v36 }
 0x166   : > { %v2142_v27 = vpop.eup %2141  ;;  %v1525_v35 = vmul.f32 %v2140_v46, %v2615_v24  ;;  %2161 = vpow2.f32 %v1787_v31  ;;  %3051 = vst [vmem:[#allocation15_spill] sm:$0xff] %v2792_v19  ;;  %v2798_v59 = vpop.f32.mrb[30].mxu0  ;;  %v1495_v46 = vmul.f32 %v2134_v7, %v2602_v45  ;;  %v2806_v19 = vadd.f32 %v2677_v11, %v2554_v9 }
 0x167   : > { %v2144_v43 = vpop.eup %2143  ;;  %v1557_v28 = vadd.f32 %v2714_v8, %v1493_v0  ;;  %2163 = vpow2.f32 %v1819_v61  ;;  %v2800_v24 = vpop.f32.mrb[30].mxu1  ;;  %v2815_v61 = vadd.f32 %v2554_v9, %v2683_v30 }
 0x168   : > { %v2146_v31 = vpop.eup %2145  ;;  %v1599_v49 = vadd.f32 %v2721_v55, %v1525_v35  ;;  %2165 = vpow2.f32 %v1790_v12  ;;  %v2808_v36 = vpop.f32.mrb[31].mxu0  ;;  %v1527_v55 = vmul.f32 %v2144_v43, %v2609_v18  ;;  %v1310_v35 = vadd.f32 1.0, %v2136_v29 }
 0x169   : > { %v2810_v39 = vpop.f32.mrb[31].mxu1  ;;  %v2148_v1 = vpop.eup %2147  ;;  %v1558_v8 = vadd.f32 %v1557_v28, %v1494_v63  ;;  %v1496_v16 = vmul.f32 %v2146_v31, %v2638_v47  ;;  %2167 = vpow2.f32 %v1822_v58  ;;  %v2821_v28 = vadd.f32 %v2554_v9, %v2673_v6 }
 0x16a   : > { %v2150_v45 = vpop.eup %2149  ;;  %v1600_v7 = vadd.f32 %v1599_v49, %v1526_v42  ;;  %v1528_v11 = vmul.f32 %v2148_v1, %v2641_v48  ;;  %2169 = vpow2.f32 %v1788_v20  ;;  %v1794_v30 = vmul.f32 -1.442695, %v2806_v19 }
 0x16b   : > { %v2152_v12 = vpop.eup %2151  ;;  %v1559_v0 = vadd.f32 %v1558_v8, %v1495_v46  ;;  %2171 = vpow2.f32 %v1820_v60  ;;  %v2826_v18 = vadd.f32 %v2679_v14, %v2554_v9  ;;  %v1342_v20 = vadd.f32 1.0, %v2142_v27 }
 0x16c   : > { %v2154_v47 = vpop.eup %2153  ;;  %v1601_v58 = vadd.f32 %v1600_v7, %v1527_v55  ;;  %2173 = vpow2.f32 %v1793_v5  ;;  %v1792_v43 = vmul.f32 -1.442695, %v2815_v61  ;;  %v1498_v63 = vmul.f32 %v2150_v45, %v2622_v32 }
 0x16d   : > { %v2156_v42 = vpop.eup %2155  ;;  %v1560_v48 = vadd.f32 %v1559_v0, %v1496_v16  ;;  %v1497_v49 = vmul.f32 %v2154_v47, %v2654_v56  ;;  %2175 = vpow2.f32 %v1825_v41  ;;  %v1823_v14 = vmul.f32 -1.442695, %v2821_v28 }
 0x16e   : > { %v2158_v60 = vpop.eup %2157  ;;  %v1602_v29 = vadd.f32 %v1601_v58, %v1528_v11  ;;  %v1529_v6 = vmul.f32 %v2156_v42, %v2657_v57  ;;  %2177 = vpow2.f32 %v1791_v3  ;;  %v1530_v1 = vmul.f32 %v2152_v12, %v2630_v38 }
 0x16f   : > { %v2160_v5 = vpop.eup %2159  ;;  %v1561_v31 = vadd.f32 %v1560_v48, %v1497_v49  ;;  %2179 = vrcp.f32 %v1310_v35  ;;  %v1826_v41 = vmul.f32 -1.442695, %v2826_v18  ;;  %v1499_v57 = vmul.f32 %v2158_v60, %v2647_v52  ;;  %v3052_v48 = vld [vmem:[#allocation4_spill] sm:$0xff] }
 0x170   : > { %v2162_v46 = vpop.eup %2161  ;;  %v1603_v56 = vadd.f32 %v1602_v29, %v1529_v6  ;;  %2181 = vpow2.f32 %v1794_v30  ;;  %v1531_v32 = vmul.f32 %v2160_v5, %v2650_v53  ;;  %v2839_v49 = vadd.f32 %v2554_v9, %v3052_v48 }
 0x171   : > { %v2164_v27 = vpop.eup %2163  ;;  %v1562_v3 = vadd.f32 %v1561_v31, %v1498_v63  ;;  %2183 = vrcp.f32 %v1342_v20  ;;  %v1308_v8 = vadd.f32 1.0, %v2162_v46  ;;  %v2843_v29 = vadd.f32 %v2702_v15, %v2554_v9 }
 0x172   : > { %v2166_v16 = vpop.eup %2165  ;;  %v1604_v45 = vadd.f32 %v1603_v56, %v1530_v1  ;;  %v1340_v55 = vadd.f32 1.0, %v2164_v27  ;;  %2185 = vpow2.f32 %v1792_v43  ;;  %v2847_v63 = vadd.f32 %v2704_v13, %v2554_v9 }
 0x173   : > { %v2168_v7 = vpop.eup %2167  ;;  %2187 = vrcp.f32 %v1308_v8  ;;  %v1563_v11 = vadd.f32 %v1562_v3, %v1499_v57  ;;  %v1311_v35 = vadd.f32 1.0, %v2166_v16  ;;  %v1824_v46 = vmul.f32 -1.442695, %v2839_v49 }
 0x174   : > { %v2170_v38 = vpop.eup %2169  ;;  %2189 = vrcp.f32 %v1340_v55  ;;  %v1605_v12 = vadd.f32 %v1604_v45, %v1531_v32  ;;  %v1343_v58 = vadd.f32 1.0, %v2168_v7  ;;  %v2852_v1 = vadd.f32 %v2554_v9, %v2706_v22 }
 0x175   : > { %v2172_v0 = vpop.eup %2171  ;;  %v1309_v47 = vadd.f32 1.0, %v2170_v38  ;;  %2191 = vpow2.f32 %v1823_v14  ;;  %v1797_v56 = vmul.f32 -1.442695, %v2843_v29  ;;  %v2861_v13 = vadd.f32 %v2710_v21, %v2554_v9 }
 0x176   : > { %v2174_v52 = vpop.eup %2173  ;;  %v1341_v30 = vadd.f32 1.0, %v2172_v0  ;;  %2193 = vpow2.f32 %v1826_v41  ;;  %v2857_v41 = vadd.f32 %v2554_v9, %v2708_v2  ;;  %v2865_v3 = vadd.f32 %v2712_v23, %v2554_v9 }
 0x177   : > { %v2176_v42 = vpop.eup %2175  ;;  %2195 = vrcp.f32 %v1309_v47  ;;  %v1314_v53 = vadd.f32 1.0, %v2174_v52  ;;  %v2869_v22 = vadd.f32 %v2554_v9, %v2717_v37  ;;  %v1829_v2 = vmul.f32 -1.442695, %v2847_v63 }
 0x178   : > { %v2178_v20 = vpop.eup %2177  ;;  %2197 = vrcp.f32 %v1341_v30  ;;  %v1346_v60 = vadd.f32 1.0, %v2176_v42  ;;  %v2875_v21 = vadd.f32 %v2554_v9, %v2719_v10  ;;  %v1795_v23 = vmul.f32 -1.442695, %v2852_v1 }
 0x179   : > { %v2180_v6 = vpop.eup %2179  ;;  %2199 = vrcp.f32 %v1311_v35  ;;  %v1312_v43 = vadd.f32 1.0, %v2178_v20  ;;  %v1827_v37 = vmul.f32 -1.442695, %v2857_v41  ;;  %v1830_v35 = vmul.f32 -1.442695, %v2865_v3 }
 0x17a   : > { %v2182_v5 = vpop.eup %2181  ;;  %2201 = vrcp.f32 %v1343_v58  ;;  %v1796_v10 = vmul.f32 -1.442695, %v2869_v22  ;;  %v1828_v52 = vmul.f32 -1.442695, %v2875_v21  ;;  %v2896_v42 = vadd.f32 %v2554_v9, %v2735_v50 }
 0x17b   : > { %v2184_v31 = vpop.eup %2183  ;;  %2203 = vrcp.f32 %v1314_v53  ;;  %v1315_v14 = vadd.f32 1.0, %v2182_v5  ;;  %v1502_v53 = vmul.f32 %v2180_v6, %v2669_v4  ;;  %v3053_v5 = vld [vmem:[#allocation5_spill] sm:$0xff]  ;;  %v3054_v6 = vld [vmem:[#allocation6_spill] sm:$0xff] }
 0x17c   : > { %v2186_v15 = vpop.eup %2185  ;;  %2205 = vrcp.f32 %v1346_v60 }
 0x17d   : > { %v2188_v27 = vpop.eup %2187  ;;  %2207 = vrcp.f32 %v1312_v43  ;;  %v1313_v57 = vadd.f32 1.0, %v2186_v15 }
 0x17e   : > { %v2190_v8 = vpop.eup %2189  ;;  %v1500_v16 = vmul.f32 %v2188_v27, %v2727_v54  ;;  %2209 = vrcp.f32 %v1315_v14  ;;  %v1798_v54 = vmul.f32 -1.442695, %v2861_v13 }
 0x17f   : > { %v2192_v32 = vpop.eup %2191  ;;  %v1532_v45 = vmul.f32 %v2190_v8, %v2731_v44  ;;  %2211 = vrcp.f32 %v1313_v57 }
 0x180   : > { %v2194_v55 = vpop.eup %2193  ;;  %v1564_v7 = vadd.f32 %v1563_v11, %v1500_v16  ;;  %2213 = vpow2.f32 %v1824_v46  ;;  %v2887_v11 = vadd.f32 %v2723_v25, %v2554_v9  ;;  %v2901_v25 = vadd.f32 %v2554_v9, %v2749_v33 }
 0x181   : > { %v2196_v38 = vpop.eup %2195  ;;  %v1606_v0 = vadd.f32 %v1605_v12, %v1532_v45  ;;  %2215 = vpow2.f32 %v1797_v56  ;;  %v2892_v12 = vadd.f32 %v2733_v62, %v2554_v9  ;;  %v1344_v43 = vadd.f32 1.0, %v2192_v32 }
 0x182   : > { %v2198_v47 = vpop.eup %2197  ;;  %v1501_v44 = vmul.f32 %v2196_v38, %v2747_v26  ;;  %2217 = vpow2.f32 %v1829_v2  ;;  %v1347_v46 = vadd.f32 1.0, %v2194_v55  ;;  %v1799_v33 = vmul.f32 -1.442695, %v2896_v42 }
 0x183   : > { %v2200_v58 = vpop.eup %2199  ;;  %v1533_v30 = vmul.f32 %v2198_v47, %v2755_v34  ;;  %2219 = vpow2.f32 %v1795_v23  ;;  %v1534_v34 = vmul.f32 %v2184_v31, %v2691_v51  ;;  %v1831_v51 = vmul.f32 -1.442695, %v2901_v25 }
 0x184   : > { %v2202_v26 = vpop.eup %2201  ;;  %v1565_v48 = vadd.f32 %v1564_v7, %v1501_v44  ;;  %2221 = vpow2.f32 %v1827_v37  ;;  %v1503_v50 = vmul.f32 %v2200_v58, %v3053_v5  ;;  %v1801_v45 = vmul.f32 -1.442695, %v2887_v11 }
 0x185   : > { %v2204_v20 = vpop.eup %2203  ;;  %v1607_v60 = vadd.f32 %v1606_v0, %v1533_v30  ;;  %2223 = vpow2.f32 %v1798_v54  ;;  %v1535_v15 = vmul.f32 %v2202_v26, %v3054_v6  ;;  %v1833_v7 = vmul.f32 -1.442695, %v2892_v12  ;;  %v3055_v54 = vld [vmem:[#allocation10_spill] sm:$0xff] }
 0x186   : > { %v2904_v62 = vpop.eup %2205  ;;  %v1566_v14 = vadd.f32 %v1565_v48, %v1502_v53  ;;  %2225 = vpow2.f32 %v1830_v35  ;;  %v1506_v38 = vmul.f32 %v2204_v20, %v3055_v54  ;;  %v3056_v20 = vld [vmem:[#allocation7_spill] sm:$0xff] }
 0x187   : > { %v2208_v4 = vpop.eup %2207  ;;  %v1608_v56 = vadd.f32 %v1607_v60, %v1534_v34  ;;  %2227 = vpow2.f32 %v1796_v10  ;;  %v2922_v34 = vadd.f32 %v3056_v20, %v2554_v9  ;;  %v3063_v20 = vld [vmem:[#allocation12_spill] sm:$0xff] }
 0x188   : > { %v2210_v27 = vpop.eup %2209  ;;  %v2909_v57 = vadd.f32 %v1566_v14, %v1503_v50  ;;  %2229 = vpow2.f32 %v1828_v52  ;;  %v1504_v2 = vmul.f32 %v2208_v4, %v2774_v17  ;;  %v3059_v4 = vld [vmem:[#allocation11_spill] sm:$0xff] }
 0x189   : > { %v2212_v31 = vpop.eup %2211  ;;  %v2912_v8 = vadd.f32 %v1608_v56, %v1535_v15  ;;  %2231 = vrcp.f32 %v1344_v43  ;;  %v1507_v10 = vmul.f32 %v2210_v27, %v2806_v19  ;;  %v3057_v19 = vld [vmem:[#allocation8_spill] sm:$0xff]  ;;  %v3058_v43 = vld [vmem:[#allocation9_spill] sm:$0xff]  ;;  %v2934_v6 = vadd.f32 %v2554_v9, %v3059_v4 }
 0x18a   : > { %v2214_v16 = vpop.eup %2213  ;;  %2233 = vrcp.f32 %v1347_v46  ;;  %v1505_v32 = vmul.f32 %v2212_v31, %v2815_v61  ;;  %v2926_v60 = vadd.f32 %v3057_v19, %v2554_v9  ;;  %v2930_v5 = vadd.f32 %v2554_v9, %v3058_v43  ;;  %v3060_v27 = vld [vmem:[#allocation13_spill] sm:$0xff] }
 0x18b   : > { %v2216_v23 = vpop.eup %2215  ;;  %v1345_v55 = vadd.f32 1.0, %v2214_v16  ;;  %2235 = vpow2.f32 %v1799_v33  ;;  %v3061_v16 = vld [vmem:[#allocation14_spill] sm:$0xff]  ;;  %v2969_v19 = vadd.f32 %v2800_v24, %v2554_v9 }
 0x18c   : > { %v2218_v37 = vpop.eup %2217  ;;  %v1574_v0 = vadd.f32 %v1505_v32, %v1504_v2  ;;  %2237 = vpow2.f32 %v1831_v51  ;;  %v1318_v44 = vadd.f32 1.0, %v2216_v23  ;;  %v2938_v51 = vadd.f32 %v3060_v27, %v2554_v9 }
 0x18d   : > { %v2220_v35 = vpop.eup %2219  ;;  %2239 = vrcp.f32 %v1345_v55  ;;  %v1350_v58 = vadd.f32 1.0, %v2218_v37  ;;  %v2942_v2 = vadd.f32 %v3061_v16, %v2554_v9  ;;  %v2947_v23 = vadd.f32 %v2554_v9, %v2790_v40 }
 0x18e   : > { %v2222_v17 = vpop.eup %2221  ;;  %v1575_v47 = vadd.f32 %v1574_v0, %v1506_v38  ;;  %v1316_v61 = vadd.f32 1.0, %v2220_v35  ;;  %2241 = vpow2.f32 %v1801_v45  ;;  %v1802_v45 = vmul.f32 -1.442695, %v2922_v34 }
 0x18f   : > { %v2224_v52 = vpop.eup %2223  ;;  %v1348_v30 = vadd.f32 1.0, %v2222_v17  ;;  %2243 = vpow2.f32 %v1833_v7  ;;  %v1834_v37 = vmul.f32 -1.442695, %v2926_v60  ;;  %v1800_v54 = vmul.f32 -1.442695, %v2930_v5 }
 0x190   : > { %v2226_v26 = vpop.eup %2225  ;;  %2245 = vrcp.f32 %v1316_v61  ;;  %v1576_v53 = vadd.f32 %v1575_v47, %v1507_v10  ;;  %v1319_v14 = vadd.f32 1.0, %v2224_v52  ;;  %v1832_v35 = vmul.f32 -1.442695, %v2934_v6 }
 0x191   : > { %v2228_v48 = vpop.eup %2227  ;;  %2247 = vrcp.f32 %v1348_v30  ;;  %v1351_v56 = vadd.f32 1.0, %v2226_v26  ;;  %v1805_v10 = vmul.f32 -1.442695, %v2938_v51  ;;  %v1803_v52 = vmul.f32 -1.442695, %v2947_v23 }
 0x192   : > { %v2230_v50 = vpop.eup %2229  ;;  %2249 = vrcp.f32 %v1318_v44  ;;  %v1317_v46 = vadd.f32 1.0, %v2228_v48  ;;  %v1837_v44 = vmul.f32 -1.442695, %v2942_v2  ;;  %v2963_v26 = vadd.f32 %v2798_v59, %v2554_v9 }
 0x193   : > { %v2232_v15 = vpop.eup %2231  ;;  %2251 = vrcp.f32 %v1350_v58  ;;  %v1349_v33 = vadd.f32 1.0, %v2230_v50  ;;  %v3062_v58 = vld [vmem:[#allocation15_spill] sm:$0xff]  ;;  %v2978_v59 = vadd.f32 %v2554_v9, %v2810_v39  ;;  %v1838_v39 = vmul.f32 -1.442695, %v2969_v19 }
 0x194   : > { %v2234_v31 = vpop.eup %2233  ;;  %2253 = vrcp.f32 %v1317_v46  ;;  %v1536_v47 = vmul.f32 %v2232_v15, %v2821_v28  ;;  %v2959_v30 = vadd.f32 %v2554_v9, %v3062_v58  ;;  %v1538_v28 = vmul.f32 %v2904_v62, %v3063_v20 }
 0x195   : > { %v2236_v32 = vpop.eup %2235  ;;  %2255 = vrcp.f32 %v1349_v33  ;;  %v1539_v62 = vmul.f32 %v2234_v31, %v2826_v18 }
 0x196   : > { %v2238_v55 = vpop.eup %2237  ;;  %2257 = vrcp.f32 %v1319_v14  ;;  %v1320_v7 = vadd.f32 1.0, %v2236_v32  ;;  %v2974_v14 = vadd.f32 %v2554_v9, %v2808_v36  ;;  %v1806_v36 = vmul.f32 -1.442695, %v2963_v26 }
 0x197   : > { %v2240_v38 = vpop.eup %2239  ;;  %2259 = vrcp.f32 %v1351_v56  ;;  %v1352_v0 = vadd.f32 1.0, %v2238_v55  ;;  %v1836_v32 = vmul.f32 -1.442695, %v2978_v59 }
 0x198   : > { %v2242_v17 = vpop.eup %2241  ;;  %v1537_v40 = vmul.f32 %v2240_v38, %v2839_v49  ;;  %2261 = vrcp.f32 %v1320_v7  ;;  %v1804_v18 = vmul.f32 -1.442695, %v2974_v14 }
 0x199   : > { %v2244_v61 = vpop.eup %2243  ;;  %2263 = vrcp.f32 %v1352_v0 }
 0x19a   : > { %v2246_v48 = vpop.eup %2245  ;;  %v1616_v49 = vadd.f32 %v1537_v40, %v1536_v47  ;;  %2265 = vpow2.f32 %v1802_v45  ;;  %v1354_v0 = vadd.f32 1.0, %v2244_v61 }
 0x19b   : > { %v2248_v43 = vpop.eup %2247  ;;  %v1508_v50 = vmul.f32 %v2246_v48, %v2852_v1  ;;  %2267 = vpow2.f32 %v1834_v37  ;;  %v1835_v1 = vmul.f32 -1.442695, %v2959_v30  ;;  %v1322_v37 = vadd.f32 1.0, %v2242_v17 }
 0x19c   : > { %v2250_v46 = vpop.eup %2249  ;;  %v1617_v4 = vadd.f32 %v1616_v49, %v1538_v28  ;;  %v1540_v15 = vmul.f32 %v2248_v43, %v2857_v41  ;;  %2269 = vpow2.f32 %v1800_v54 }
 0x19d   : > { %v2252_v24 = vpop.eup %2251  ;;  %v1577_v56 = vadd.f32 %v1576_v53, %v1508_v50  ;;  %2271 = vpow2.f32 %v1832_v35  ;;  %v1510_v55 = vmul.f32 %v2250_v46, %v2843_v29 }
 0x19e   : > { %v2254_v33 = vpop.eup %2253  ;;  %v1618_v27 = vadd.f32 %v1617_v4, %v1539_v62  ;;  %2273 = vpow2.f32 %v1805_v10 }
 0x19f   : > { %v2256_v16 = vpop.eup %2255  ;;  %v1509_v9 = vmul.f32 %v2254_v33, %v2869_v22  ;;  %2275 = vpow2.f32 %v1837_v44  ;;  %v1542_v22 = vmul.f32 %v2252_v24, %v2847_v63 }
 0x1a0   : > { %v2258_v41 = vpop.eup %2257  ;;  %v1619_v31 = vadd.f32 %v1618_v27, %v1540_v15  ;;  %v1541_v53 = vmul.f32 %v2256_v16, %v2875_v21  ;;  %2277 = vpow2.f32 %v1803_v52 }
 0x1a1   : > { %v2260_v45 = vpop.eup %2259  ;;  %v1578_v7 = vadd.f32 %v1577_v56, %v1509_v9  ;;  %2279 = vpow2.f32 %v1835_v1  ;;  %v1511_v10 = vmul.f32 %v2258_v41, %v2861_v13 }
 0x1a2   : > { %v2262_v54 = vpop.eup %2261  ;;  %v1620_v38 = vadd.f32 %v1619_v31, %v1541_v53  ;;  %2281 = vpow2.f32 %v1806_v36  ;;  %v1543_v44 = vmul.f32 %v2260_v45, %v2865_v3 }
 0x1a3   : > { %v2264_v35 = vpop.eup %2263  ;;  %v1579_v47 = vadd.f32 %v1578_v7, %v1510_v55  ;;  %v1512_v21 = vmul.f32 %v2262_v54, %v2896_v42  ;;  %2283 = vpow2.f32 %v1838_v39 }
 0x1a4   : > { %v2266_v40 = vpop.eup %2265  ;;  %v1621_v29 = vadd.f32 %v1620_v38, %v1542_v22  ;;  %v1544_v17 = vmul.f32 %v2264_v35, %v2901_v25  ;;  %2285 = vpow2.f32 %v1804_v18 }
 0x1a5   : > { %v2268_v52 = vpop.eup %2267  ;;  %v1580_v58 = vadd.f32 %v1579_v47, %v1511_v10  ;;  %2287 = vpow2.f32 %v1836_v32  ;;  %v1323_v13 = vadd.f32 1.0, %v2266_v40 }
 0x1a6   : > { %v2270_v63 = vpop.eup %2269  ;;  %v1622_v61 = vadd.f32 %v1621_v29, %v1543_v44  ;;  %2289 = vrcp.f32 %v1322_v37  ;;  %v1355_v43 = vadd.f32 1.0, %v2268_v52 }
 0x1a7   : > { %v2272_v48 = vpop.eup %2271  ;;  %v1581_v20 = vadd.f32 %v1580_v58, %v1512_v21  ;;  %v1321_v28 = vadd.f32 1.0, %v2270_v63  ;;  %2291 = vrcp.f32 %v1354_v0 }
 0x1a8   : > { %v2274_v49 = vpop.eup %2273  ;;  %v1623_v42 = vadd.f32 %v1622_v61, %v1544_v17  ;;  %v1353_v50 = vadd.f32 1.0, %v2272_v48 }
 0x1a9   : > { %v2276_v3 = vpop.eup %2275  ;;  %2293 = vrcp.f32 %v1321_v28  ;;  %v1326_v62 = vadd.f32 1.0, %v2274_v49 }
 0x1aa   : > { %v2278_v46 = vpop.eup %2277  ;;  %2295 = vrcp.f32 %v1353_v50  ;;  %v1358_v24 = vadd.f32 1.0, %v2276_v3 }
 0x1ab   : > { %v2280_v25 = vpop.eup %2279  ;;  %2297 = vrcp.f32 %v1323_v13  ;;  %v1324_v4 = vadd.f32 1.0, %v2278_v46 }
 0x1ac   : > { %v2282_v15 = vpop.eup %2281  ;;  %2299 = vrcp.f32 %v1355_v43  ;;  %v1356_v56 = vadd.f32 1.0, %v2280_v25 }
 0x1ad   : > { %v2284_v1 = vpop.eup %2283  ;;  %2301 = vrcp.f32 %v1324_v4  ;;  %v1327_v36 = vadd.f32 1.0, %v2282_v15 }
 0x1ae   : > { %v2286_v33 = vpop.eup %2285  ;;  %2303 = vrcp.f32 %v1356_v56  ;;  %v1359_v9 = vadd.f32 1.0, %v2284_v1 }
 0x1af   : > { %v2288_v27 = vpop.eup %2287  ;;  %2305 = vrcp.f32 %v1326_v62  ;;  %v1325_v16 = vadd.f32 1.0, %v2286_v33 }
 0x1b0   : > { %2307 = vrcp.f32 %v1358_v24  ;;  %v1357_v39 = vadd.f32 1.0, %v2288_v27  ;;  %v2290_v18 = vpop.eup %2289 }
 0x1b1   : > { %2309 = vrcp.f32 %v1325_v16  ;;  %v2292_v41 = vpop.eup %2291  ;;  %v1514_v37 = vmul.f32 %v2290_v18, %v2887_v11  ;;  %v1568_v11 = vrot.slane %v2909_v57, 4 }
 0x1b2   : > { %2311 = vrcp.f32 %v1357_v39  ;;  %v1546_v38 = vmul.f32 %v2292_v41, %v2892_v12  ;;  %v1610_v12 = vrot.slane %v2912_v8, 4 }
 0x1b3   : > { %v2294_v31 = vpop.eup %2293  ;;  %2313 = vrcp.f32 %v1327_v36  ;;  %v1569_v13 = vadd.f32 %v1568_v11, %v2909_v57 }
 0x1b4   : > { %v2296_v53 = vpop.eup %2295  ;;  %v1513_v32 = vmul.f32 %v2294_v31, %v2930_v5  ;;  %2315 = vrcp.f32 %v1359_v9  ;;  %v1611_v49 = vadd.f32 %v1610_v12, %v2912_v8  ;;  %v1552_v31 = vld [vmem:[#allocation2] sm:$0xf] }
 0x1b5   : > { %v2298_v45 = vpop.eup %2297  ;;  %v1545_v55 = vmul.f32 %v2296_v53, %v2934_v6  ;;  %v1570_v25 = vrot.slane %v1569_v13, 2 }
 0x1b6   : > { %v2300_v7 = vpop.eup %2299  ;;  %v1582_v54 = vadd.f32 %v1581_v20, %v1513_v32  ;;  %v1515_v10 = vmul.f32 %v2298_v45, %v2922_v34 }
 0x1b7   : > { %v2302_v22 = vpop.eup %2301  ;;  %v1624_v0 = vadd.f32 %v1623_v42, %v1545_v55  ;;  %v1547_v5 = vmul.f32 %v2300_v7, %v2926_v60  ;;  %v1571_v24 = vadd.f32 %v1570_v25, %v1569_v13 }
 0x1b8   : > { %v2304_v35 = vpop.eup %2303  ;;  %v1583_v47 = vadd.f32 %v1582_v54, %v1514_v37  ;;  %v1516_v21 = vmul.f32 %v2302_v22, %v2947_v23 }
 0x1b9   : > { %v2306_v40 = vpop.eup %2305  ;;  %v1625_v44 = vadd.f32 %v1624_v0, %v1546_v38  ;;  %v1548_v6 = vmul.f32 %v2304_v35, %v2959_v30 }
 0x1ba   : > { %v2308_v29 = vpop.eup %2307  ;;  %v1584_v17 = vadd.f32 %v1583_v47, %v1515_v10  ;;  %v1518_v30 = vmul.f32 %v2306_v40, %v2938_v51 }
 0x1bb   : > { %v2310_v52 = vpop.eup %2309  ;;  %v1626_v58 = vadd.f32 %v1625_v44, %v1547_v5  ;;  %v1550_v42 = vmul.f32 %v2308_v29, %v2942_v2  ;;  %v1572_v2 = vrot.slane %v1571_v24, 1 }
 0x1bc   : > { %v2312_v63 = vpop.eup %2311  ;;  %v1585_v61 = vadd.f32 %v1584_v17, %v1516_v21  ;;  %v1517_v34 = vmul.f32 %v2310_v52, %v2974_v14 }
 0x1bd   : > { %v2314_v48 = vpop.eup %2313  ;;  %v1627_v23 = vadd.f32 %v1626_v58, %v1548_v6  ;;  %v1549_v20 = vmul.f32 %v2312_v63, %v2978_v59  ;;  %v1612_v59 = vrot.slane %v1611_v49, 2  ;;  %v1573_v9 = vadd.f32 %v1572_v2, %v1571_v24 }
 0x1be   : > { %v2316_v60 = vpop.eup %2315  ;;  %v1586_v28 = vadd.f32 %v1585_v61, %v1517_v34  ;;  %v1519_v50 = vmul.f32 %v2314_v48, %v2963_v26 }
 0x1bf   : > { %v1628_v43 = vadd.f32 %v1627_v23, %v1549_v20  ;;  %v1551_v14 = vmul.f32 %v2316_v60, %v2969_v19  ;;  %v1613_v56 = vadd.f32 %v1612_v59, %v1611_v49 }
 0x1c0   : > { %v1587_v3 = vadd.f32 %v1586_v28, %v1518_v30 }
 0x1c1   : > { %v1629_v46 = vadd.f32 %v1628_v43, %v1550_v42  ;;  %v1614_v36 = vrot.slane %v1613_v56, 1 }
 0x1c2   : > { %v1588_v62 = vadd.f32 %v1587_v3, %v1519_v50 }
 0x1c3   : > { %v1630_v4 = vadd.f32 %v1629_v46, %v1551_v14  ;;  %v1615_v18 = vadd.f32 %v1614_v36, %v1613_v56 }
 0x1c4   : > { %v1589_v15 = vrot.slane %v1588_v62, 4 }
 0x1c5   : > { %v1631_v57 = vrot.slane %v1630_v4, 4 }
 0x1c6   : > { %v1590_v51 = vadd.f32 %v1589_v15, %v1588_v62 }
 0x1c7   : > { %v1632_v1 = vadd.f32 %v1631_v57, %v1630_v4 }
 0x1c8   : > { %v1591_v8 = vrot.slane %v1590_v51, 2 }
 0x1c9   : > { %v1633_v33 = vrot.slane %v1632_v1, 2 }
 0x1ca   : > { %v1592_v27 = vadd.f32 %v1591_v8, %v1590_v51 }
 0x1cb   : > { %v1634_v26 = vadd.f32 %v1633_v33, %v1632_v1 }
 0x1cc   : > { %v1593_v16 = vrot.slane %v1592_v27, 1 }
 0x1cd   : > { %v1635_v19 = vrot.slane %v1634_v26, 1 }
 0x1ce   : > { %v1594_v39 = vadd.f32 %v1593_v16, %v1592_v27 }
 0x1cf   : > { %v1636_v53 = vadd.f32 %v1635_v19, %v1634_v26  ;;  %1653 = sbr.rel (%p1839_p10) target bundleno = 480 (0x1e0), region = 81 }
 0x1d0   : > { %v1642_v41 = vsel %vm1641_vm0, %v1594_v39, %v1573_v9 }
 0x1d1   : > { %v1644_v32 = vsel %vm1643_vm1, %v1615_v18, %v1642_v41 }
 0x1d2   : > { %v1646_v45 = vsel %vm1645_vm2, %v1636_v53, %v1644_v32 }
 0x1d3   : > { %v1648_v55 = vadd.f32 %v1646_v45, %v1552_v31 }
 0x1d5   : > { %1649 = vst [vmem:[#allocation2] sm:$0xf] %v1648_v55 }
 0x1dc   : > { %v1654_v7 = vld [vmem:[#allocation2] sm:$0xf] }
 0x1dd   : > { %v1655_v37 = vmul.f32 0.00390625, %v1654_v7 }
 0x1df   : > { %1656 = vst [vmem:[%s3035_s3] sm:$0xf] %v1655_v37 }
 0x1e0 PF: > { %s13_s16 = sadd.s32 1, %s2355_s16   ;;  %s3064_s12 = smov %s2343_s13 }
 0x1e1   : > { %p10_p11 = scmp.ge.s32.totalorder %s13_s16, 4   ;;  %s3065_s13 = smov %s2413_s20 }
 0x1e2   : > { %s3066_s14 = smov %s2351_s15  ;;  %s3067_s15 = smov %s3069_s17 }
 0x1e3   :  { %12 = sbr.rel (!%p10_p11) target bundleno = 3 (0x3), region = 116 }

// kernel: hemi_compare_forward.3
= control target key start
LH: loop header
LB: loop body
LE: loop exit
PB: predicated region body
PF: predicated region fallthrough
CT: control target
= control target key end

     0   :  { %v27396_v1 = vmov 0   ;;  %vm15128_vm0 = vcmask 1041408   ;;  %vm15471_vm1 = vcmask 1024   ;;  %vm1285_vm2 = vcmask 1043456   ;;  %s27373_s2 = inlined_call_operand.vmem [shape: bf16[128,1792], index: 2, kind: input, shape index: {}]   ;;  %s27374_s0 = inlined_call_operand.vmem [shape: f32[4,128], index: 0, kind: input, shape index: {}]   ;;  %s27375_s7 = inlined_call_operand.vmem [shape: bf16[1792,384], index: 7, kind: input, shape index: {}]   ;;  %s27376_s3 = inlined_call_operand.vmem [shape: f32[1,1792], index: 3, kind: input, shape index: {}]   ;;  %s27377_s6 = inlined_call_operand.vmem [shape: bf16[1792,384], index: 6, kind: input, shape index: {}]   ;;  %s27378_s1 = inlined_call_operand.vmem [shape: f32[2,1], index: 1, kind: input, shape index: {}]   ;;  %s27379_s9 = inlined_call_operand.vmem [shape: bf16[384,5376], index: 9, kind: input, shape index: {}]   ;;  %s27380_s8 = inlined_call_operand.vmem [shape: f32[1,384], index: 8, kind: input, shape index: {}]   ;;  %s27381_s10 = inlined_call_operand.vmem [shape: f32[1,384], index: 10, kind: input, shape index: {}]   ;;  %s27382_s14 = inlined_call_operand.<no memory space> [shape: f32[1,1], index: 14, kind: input, shape index: {}]   ;;  %s27383_s18 = inlined_call_operand.vmem [shape: f32[2,1], index: 18, kind: output, shape index: {2}]   ;;  %s27384_s17 = inlined_call_operand.vmem [shape: f32[2,5376], index: 17, kind: output, shape index: {1}]   ;;  %s27385_s12 = inlined_call_operand.vmem [shape: f32[1,1792], index: 12, kind: input, shape index: {}]   ;;  %s27386_s11 = inlined_call_operand.vmem [shape: f32[1,1792], index: 11, kind: input, shape index: {}]   ;;  %s27387_s13 = inlined_call_operand.vmem [shape: f32[1,1792], index: 13, kind: input, shape index: {}]   ;;  %s27388_s15 = inlined_call_operand.<no memory space> [shape: f32[1,1], index: 15, kind: input, shape index: {}]   ;;  %s27389_s4 = inlined_call_operand.vmem [shape: f32[1,1792], index: 4, kind: input, shape index: {}]   ;;  %s27390_s5 = inlined_call_operand.<no memory space> [shape: f32[1,1], index: 5, kind: input, shape index: {}]   ;;  %s27391_s19 = inlined_call_operand.vmem [shape: f32[2,1], index: 19, kind: output, shape index: {3}]   ;;  %s27392_s16 = inlined_call_operand.vmem [shape: f32[4,1], index: 16, kind: output, shape index: {0}]  }
   0x1   :  { %27407 = sst [smem:[#allocation13_spill]] %s27373_s2  ;;  %844 = vmatprep.mubr.bf16.mxu0 %v27396_v1  ;;  %967 = vmatprep.mubr.bf16.mxu1 %v27396_v1  ;;  %vm1323_vm3 = vcmask 3072  }
   0x2   :  { %27408 = sst [smem:[#allocation14_spill]] %s27374_s0  ;;  %s27411_s20 = sld [smem:[#allocation13_spill]]  ;;  %18118 = vset.pattern.permute.xlu0 %v27396_v1 }
   0x3   :  { %27409 = sst [smem:[#allocation15_spill]] %s27375_s7  ;;  %s27412_s28 = sld [smem:[#allocation14_spill]] }
   0x4   :  { %27410 = sst [smem:[#allocation16_spill]] %s27376_s3  ;;  %s27413_s7 = sld [smem:[#allocation15_spill]] }
   0x5   :  { %s27414_s25 = sld [smem:[#allocation16_spill]] }
   0x8   :  { %v18119_v0 = vld [vmem:[%s27411_s20 + $0x4] ss:$56 sps:$4 sm:$0xff]   ;;  %v18121_v2 = vld [vmem:[%s27411_s20] ss:$56 sps:$4 sm:$0xff]   ;;  %v18122_v3 = vld [vmem:[%s27411_s20 + $0x74] ss:$56 sps:$4 sm:$0xff]  }
   0x9   :  { %812 = vmatprep.subr.bf16.mxu0 %v18119_v0  ;;  %v18124_v4 = vld [vmem:[%s27411_s20 + $0x70] ss:$56 sps:$4 sm:$0xff]   ;;  %v18125_v5 = vld [vmem:[%s27411_s20 + $0xe4] ss:$56 sps:$4 sm:$0xff]   ;;  %v18127_v6 = vld [vmem:[%s27411_s20 + $0xe0] ss:$56 sps:$4 sm:$0xff]  }
   0xa   :  { %813 = vmatpush1.bf16.msra.mxu0 %v18121_v2  ;;  %v18128_v7 = vld [vmem:[%s27411_s20 + $0x154] ss:$56 sps:$4 sm:$0xff]   ;;  %v18130_v8 = vld [vmem:[%s27411_s20 + $0x150] ss:$56 sps:$4 sm:$0xff]   ;;  %v18131_v9 = vld [vmem:[%s27411_s20 + $0x1c4] ss:$56 sps:$4 sm:$0xff]  }
   0xb   :  { %814 = vmatprep.subr.bf16.mxu0 %v18122_v3  ;;  %v18133_v10 = vld [vmem:[%s27411_s20 + $0x1c0] ss:$56 sps:$4 sm:$0xff]   ;;  %v18134_v11 = vld [vmem:[%s27411_s20 + $0x234] ss:$56 sps:$4 sm:$0xff]   ;;  %v18136_v12 = vld [vmem:[%s27411_s20 + $0x230] ss:$56 sps:$4 sm:$0xff]  }
   0xc   :  { %v18137_v13 = vld [vmem:[%s27411_s20 + $0x2a4] ss:$56 sps:$4 sm:$0xff]   ;;  %v18139_v14 = vld [vmem:[%s27411_s20 + $0x2a0] ss:$56 sps:$4 sm:$0xff]   ;;  %v18140_v16 = vld [vmem:[%s27411_s20 + $0x314] ss:$56 sps:$4 sm:$0xff]  }
   0xd   :  { %v18170_v15 = vld [vmem:[%s27411_s20 + $0x1c] ss:$56 sps:$4 sm:$0xff]   ;;  %v18142_v17 = vld [vmem:[%s27411_s20 + $0x310] ss:$56 sps:$4 sm:$0xff]   ;;  %v18176_v19 = vld [vmem:[%s27411_s20 + $0x8c] ss:$56 sps:$4 sm:$0xff]  }
   0xe   :  { %815 = vmatpush1.bf16.msra.mxu0 %v18124_v4  ;;  %935 = vmatprep.subr.bf16.mxu1 %v18170_v15  ;;  %v18175_v18 = vld [vmem:[%s27411_s20 + $0x18] ss:$56 sps:$4 sm:$0xff]   ;;  %v64_v20 = vld [vmem:[%s27412_s28] sm:$0xf]  ;;  %v18145_v21 = vld [vmem:[%s27411_s20 + $0xc] ss:$56 sps:$4 sm:$0xff]  }
   0xf   :  { %816 = vmatprep.subr.bf16.mxu0 %v18125_v5  ;;  %936 = vmatpush1.bf16.msra.mxu1 %v18175_v18  ;;  %v18181_v22 = vld [vmem:[%s27411_s20 + $0x88] ss:$56 sps:$4 sm:$0xff]   ;;  %v18182_v23 = vld [vmem:[%s27411_s20 + $0xfc] ss:$56 sps:$4 sm:$0xff]   ;;  %v21100_v24 = vpack.c.bf16 %v64_v20, %v64_v20  ;;  %v18187_v27 = vld [vmem:[%s27411_s20 + $0xf8] ss:$56 sps:$4 sm:$0xff]  }
  0x10   :  { %937 = vmatprep.subr.bf16.mxu1 %v18176_v19  ;;  %v18143_v25 = vld [vmem:[%s27411_s20 + $0x8] ss:$56 sps:$4 sm:$0xff]   ;;  %v18148_v26 = vld [vmem:[%s27411_s20 + $0x7c] ss:$56 sps:$4 sm:$0xff]   ;;  %v18188_v28 = vld [vmem:[%s27411_s20 + $0x16c] ss:$56 sps:$4 sm:$0xff]  }
  0x11   :  { %v18146_v29 = vld [vmem:[%s27411_s20 + $0x78] ss:$56 sps:$4 sm:$0xff]   ;;  %v18151_v30 = vld [vmem:[%s27411_s20 + $0xec] ss:$56 sps:$4 sm:$0xff]   ;;  %v18193_v31 = vld [vmem:[%s27411_s20 + $0x168] ss:$56 sps:$4 sm:$0xff]  }
  0x12   :  { %817 = vmatpush1.bf16.msra.mxu0 %v18127_v6  ;;  %v18194_v32 = vld [vmem:[%s27411_s20 + $0x1dc] ss:$56 sps:$4 sm:$0xff]   ;;  %v18149_v33 = vld [vmem:[%s27411_s20 + $0xe8] ss:$56 sps:$4 sm:$0xff]   ;;  %v18199_v35 = vld [vmem:[%s27411_s20 + $0x1d8] ss:$56 sps:$4 sm:$0xff]  }
  0x13   :  { %818 = vmatprep.subr.bf16.mxu0 %v18128_v7  ;;  %938 = vmatpush1.bf16.msra.mxu1 %v18181_v22  ;;  %v18154_v34 = vld [vmem:[%s27411_s20 + $0x15c] ss:$56 sps:$4 sm:$0xff]   ;;  %v18200_v36 = vld [vmem:[%s27411_s20 + $0x24c] ss:$56 sps:$4 sm:$0xff]   ;;  %v18152_v37 = vld [vmem:[%s27411_s20 + $0x158] ss:$56 sps:$4 sm:$0xff]  }
  0x14   :  { %939 = vmatprep.subr.bf16.mxu1 %v18182_v23  ;;  %v18157_v38 = vld [vmem:[%s27411_s20 + $0x1cc] ss:$56 sps:$4 sm:$0xff]   ;;  %v18205_v39 = vld [vmem:[%s27411_s20 + $0x248] ss:$56 sps:$4 sm:$0xff]   ;;  %v18206_v40 = vld [vmem:[%s27411_s20 + $0x2bc] ss:$56 sps:$4 sm:$0xff]  }
  0x15   :  { %v18155_v41 = vld [vmem:[%s27411_s20 + $0x1c8] ss:$56 sps:$4 sm:$0xff]   ;;  %v18160_v42 = vld [vmem:[%s27411_s20 + $0x23c] ss:$56 sps:$4 sm:$0xff]   ;;  %v18211_v43 = vld [vmem:[%s27411_s20 + $0x2b8] ss:$56 sps:$4 sm:$0xff]  }
  0x16   :  { %819 = vmatpush1.bf16.msra.mxu0 %v18130_v8  ;;  %v18212_v44 = vld [vmem:[%s27411_s20 + $0x32c] ss:$56 sps:$4 sm:$0xff]   ;;  %v18158_v45 = vld [vmem:[%s27411_s20 + $0x238] ss:$56 sps:$4 sm:$0xff]   ;;  %v18214_v47 = vld [vmem:[%s27411_s20 + $0x328] ss:$56 sps:$4 sm:$0xff]  }
  0x17   :  { %820 = vmatprep.subr.bf16.mxu0 %v18131_v9  ;;  %940 = vmatpush1.bf16.msra.mxu1 %v18187_v27  ;;  %v18163_v46 = vld [vmem:[%s27411_s20 + $0x2ac] ss:$56 sps:$4 sm:$0xff]   ;;  %v18161_v49 = vld [vmem:[%s27411_s20 + $0x2a8] ss:$56 sps:$4 sm:$0xff]   ;;  %v18166_v50 = vld [vmem:[%s27411_s20 + $0x31c] ss:$56 sps:$4 sm:$0xff]  }
  0x18   :  { %941 = vmatprep.subr.bf16.mxu1 %v18188_v28  ;;  %v18223_v48 = vld [vmem:[%s27411_s20 + $0x2c] ss:$56 sps:$4 sm:$0xff]   ;;  %v18221_v51 = vld [vmem:[%s27411_s20 + $0x28] ss:$56 sps:$4 sm:$0xff]   ;;  %v18229_v52 = vld [vmem:[%s27411_s20 + $0x9c] ss:$56 sps:$4 sm:$0xff]  }
  0x19   :  { %v18164_v53 = vld [vmem:[%s27411_s20 + $0x318] ss:$56 sps:$4 sm:$0xff]   ;;  %v18169_v54 = vld [vmem:[%s27411_s20 + $0x14] ss:$56 sps:$4 sm:$0xff]   ;;  %v18174_v58 = vld [vmem:[%s27411_s20 + $0x84] ss:$56 sps:$4 sm:$0xff]  }
  0x1a   :  { %821 = vmatpush1.bf16.msra.mxu0 %v18133_v10  ;;  %v18227_v55 = vld [vmem:[%s27411_s20 + $0x98] ss:$56 sps:$4 sm:$0xff]   ;;  %v18235_v56 = vld [vmem:[%s27411_s20 + $0x10c] ss:$56 sps:$4 sm:$0xff]   ;;  %v18233_v59 = vld [vmem:[%s27411_s20 + $0x108] ss:$56 sps:$4 sm:$0xff]  }
  0x1b   :  { %822 = vmatprep.subr.bf16.mxu0 %v18134_v11  ;;  %942 = vmatpush1.bf16.msra.mxu1 %v18193_v31  ;;  %v18167_v57 = vld [vmem:[%s27411_s20 + $0x10] ss:$56 sps:$4 sm:$0xff]   ;;  %v18241_v60 = vld [vmem:[%s27411_s20 + $0x17c] ss:$56 sps:$4 sm:$0xff]   ;;  %v18172_v61 = vld [vmem:[%s27411_s20 + $0x80] ss:$56 sps:$4 sm:$0xff]  }
  0x1c   :  { %943 = vmatprep.subr.bf16.mxu1 %v18194_v32  ;;  %v18180_v62 = vld [vmem:[%s27411_s20 + $0xf4] ss:$56 sps:$4 sm:$0xff]   ;;  %v18239_v63 = vld [vmem:[%s27411_s20 + $0x178] ss:$56 sps:$4 sm:$0xff]   ;;  %v18186_v3 = vld [vmem:[%s27411_s20 + $0x164] ss:$56 sps:$4 sm:$0xff]  }
  0x1d   :  { %v18247_v0 = vld [vmem:[%s27411_s20 + $0x1ec] ss:$56 sps:$4 sm:$0xff]   ;;  %v18178_v2 = vld [vmem:[%s27411_s20 + $0xf0] ss:$56 sps:$4 sm:$0xff]   ;;  %v18253_v5 = vld [vmem:[%s27411_s20 + $0x25c] ss:$56 sps:$4 sm:$0xff]  }
  0x1e   :  { %823 = vmatpush1.bf16.msra.mxu0 %v18136_v12  ;;  %v18245_v4 = vld [vmem:[%s27411_s20 + $0x1e8] ss:$56 sps:$4 sm:$0xff]   ;;  %v18192_v7 = vld [vmem:[%s27411_s20 + $0x1d4] ss:$56 sps:$4 sm:$0xff]   ;;  %v18251_v8 = vld [vmem:[%s27411_s20 + $0x258] ss:$56 sps:$4 sm:$0xff]  }
  0x1f   :  { %824 = vmatprep.subr.bf16.mxu0 %v18137_v13  ;;  %944 = vmatpush1.bf16.msra.mxu1 %v18199_v35  ;;  %v18184_v6 = vld [vmem:[%s27411_s20 + $0x160] ss:$56 sps:$4 sm:$0xff]   ;;  %v18259_v9 = vld [vmem:[%s27411_s20 + $0x2cc] ss:$56 sps:$4 sm:$0xff]   ;;  %v18190_v10 = vld [vmem:[%s27411_s20 + $0x1d0] ss:$56 sps:$4 sm:$0xff]  }
  0x20   :  { %945 = vmatprep.subr.bf16.mxu1 %v18200_v36  ;;  %v18198_v11 = vld [vmem:[%s27411_s20 + $0x244] ss:$56 sps:$4 sm:$0xff]   ;;  %v18257_v12 = vld [vmem:[%s27411_s20 + $0x2c8] ss:$56 sps:$4 sm:$0xff]   ;;  %v18204_v15 = vld [vmem:[%s27411_s20 + $0x2b4] ss:$56 sps:$4 sm:$0xff]  }
  0x21   :  { %v18262_v13 = vld [vmem:[%s27411_s20 + $0x33c] ss:$56 sps:$4 sm:$0xff]   ;;  %v18202_v18 = vld [vmem:[%s27411_s20 + $0x2b0] ss:$56 sps:$4 sm:$0xff]   ;;  %v18287_v20 = vld [vmem:[%s27413_s7] ss:$12 sps:$4 sm:$0xff]  }
  0x22   :  { %825 = vmatpush1.bf16.msra.mxu0 %v18139_v14  ;;  %v18196_v14 = vld [vmem:[%s27411_s20 + $0x240] ss:$56 sps:$4 sm:$0xff]   ;;  %v18210_v19 = vld [vmem:[%s27411_s20 + $0x324] ss:$56 sps:$4 sm:$0xff]   ;;  %v18220_v28 = vld [vmem:[%s27411_s20 + $0x94] ss:$56 sps:$4 sm:$0xff]  }
  0x23   :  { %826 = vmatprep.subr.bf16.mxu0 %v18140_v16  ;;  %946 = vmatpush1.bf16.msra.mxu1 %v18205_v39  ;;  %v18260_v16 = vld [vmem:[%s27411_s20 + $0x338] ss:$56 sps:$4 sm:$0xff]   ;;  %v18217_v23 = vld [vmem:[%s27411_s20 + $0x24] ss:$56 sps:$4 sm:$0xff]   ;;  %v18232_v36 = vld [vmem:[%s27411_s20 + $0x174] ss:$56 sps:$4 sm:$0xff]  }
  0x24   :  { %947 = vmatprep.subr.bf16.mxu1 %v18206_v40  ;;  %v18208_v22 = vld [vmem:[%s27411_s20 + $0x320] ss:$56 sps:$4 sm:$0xff]   ;;  %v18218_v31 = vld [vmem:[%s27411_s20 + $0x90] ss:$56 sps:$4 sm:$0xff]   ;;  %v18226_v32 = vld [vmem:[%s27411_s20 + $0x104] ss:$56 sps:$4 sm:$0xff]  }
  0x25   :  { %v18215_v27 = vld [vmem:[%s27411_s20 + $0x20] ss:$56 sps:$4 sm:$0xff]   ;;  %v18230_v39 = vld [vmem:[%s27411_s20 + $0x170] ss:$56 sps:$4 sm:$0xff]   ;;  %v18238_v40 = vld [vmem:[%s27411_s20 + $0x1e4] ss:$56 sps:$4 sm:$0xff]  }
  0x26   :  { %827 = vmatpush1.bf16.msra.mxu0 %v18142_v17  ;;  %v18289_v17 = vld [vmem:[%s27413_s7 + $0x4] ss:$12 sps:$4 sm:$0xff]   ;;  %v18224_v35 = vld [vmem:[%s27411_s20 + $0x100] ss:$56 sps:$4 sm:$0xff]  }
  0x27   :  { %853 = vmatprep.subr.bf16.mxu0 %v18145_v21  ;;  %948 = vmatpush1.bf16.msra.mxu1 %v18211_v43  ;;  %v18292_v21 = vld [vmem:[%s27413_s7 + $0x1c] ss:$12 sps:$4 sm:$0xff]   ;;  %v18236_v43 = vld [vmem:[%s27411_s20 + $0x1e0] ss:$56 sps:$4 sm:$0xff]  }
  0x28   :  { %949 = vmatprep.subr.bf16.mxu1 %v18212_v44  ;;  %v18244_v44 = vld [vmem:[%s27411_s20 + $0x254] ss:$56 sps:$4 sm:$0xff]  }
  0x29   :  { %845 = vmatmul.mubr.bf16.vlgmr.msra.gmra.mrb[0].mxu0 %v21100_v24 }
  0x2a   :  { %854 = vmatpush1.bf16.msra.mxu0 %v18143_v25  ;;  %885 = vmatprep.mubr.bf16.mxu0 %v27396_v1  ;;  %v18290_v25 = vld [vmem:[%s27413_s7 + $0x18] ss:$12 sps:$4 sm:$0xff]  }
  0x2b   :  { %855 = vmatprep.subr.bf16.mxu0 %v18148_v26  ;;  %950 = vmatpush1.bf16.msra.mxu1 %v18214_v47  ;;  %v18295_v26 = vld [vmem:[%s27413_s7 + $0x34] ss:$12 sps:$4 sm:$0xff]   ;;  %v18250_v47 = vld [vmem:[%s27411_s20 + $0x2c4] ss:$56 sps:$4 sm:$0xff]  }
  0x2c   :  { %1017 = vmatprep.subr.bf16.mxu1 %v18223_v48  ;;  %v18310_v48 = vld [vmem:[%s27413_s7 + $0xac] ss:$12 sps:$4 sm:$0xff]  }
  0x2e   :  { %856 = vmatpush1.bf16.msra.mxu0 %v18146_v29  ;;  %968 = vmatmul.mubr.bf16.vlgmr.msra.gmra.mrb[0].mxu1 %v21100_v24  ;;  %v18293_v29 = vld [vmem:[%s27413_s7 + $0x30] ss:$12 sps:$4 sm:$0xff]  }
  0x2f   :  { %857 = vmatprep.subr.bf16.mxu0 %v18151_v30  ;;  %1018 = vmatpush1.bf16.msra.mxu1 %v18221_v51  ;;  %v18298_v30 = vld [vmem:[%s27413_s7 + $0x4c] ss:$12 sps:$4 sm:$0xff]   ;;  %v18313_v51 = vld [vmem:[%s27413_s7 + $0xc4] ss:$12 sps:$4 sm:$0xff]  }
  0x30   :  { %1019 = vmatprep.subr.bf16.mxu1 %v18229_v52  ;;  %1049 = vmatprep.mubr.bf16.mxu1 %v27396_v1  ;;  %v18256_v52 = vld [vmem:[%s27411_s20 + $0x334] ss:$56 sps:$4 sm:$0xff]  }
  0x32   :  { %858 = vmatpush1.bf16.msra.mxu0 %v18149_v33  ;;  %v18296_v33 = vld [vmem:[%s27413_s7 + $0x48] ss:$12 sps:$4 sm:$0xff]  }
  0x33   :  { %859 = vmatprep.subr.bf16.mxu0 %v18154_v34  ;;  %1020 = vmatpush1.bf16.msra.mxu1 %v18227_v55  ;;  %v18301_v34 = vld [vmem:[%s27413_s7 + $0x64] ss:$12 sps:$4 sm:$0xff]   ;;  %v18319_v55 = vld [vmem:[%s27413_s7 + $0xdc] ss:$12 sps:$4 sm:$0xff]  }
  0x34   :  { %1021 = vmatprep.subr.bf16.mxu1 %v18235_v56  ;;  %v18265_v56 = vld [vmem:[%s27411_s20 + $0x34] ss:$56 sps:$4 sm:$0xff]  }
  0x36   :  { %860 = vmatpush1.bf16.msra.mxu0 %v18152_v37  ;;  %v18299_v37 = vld [vmem:[%s27413_s7 + $0x60] ss:$12 sps:$4 sm:$0xff]  }
  0x37   :  { %861 = vmatprep.subr.bf16.mxu0 %v18157_v38  ;;  %1022 = vmatpush1.bf16.msra.mxu1 %v18233_v59  ;;  %v18304_v38 = vld [vmem:[%s27413_s7 + $0x7c] ss:$12 sps:$4 sm:$0xff]   ;;  %v18325_v59 = vld [vmem:[%s27413_s7 + $0xf4] ss:$12 sps:$4 sm:$0xff]  }
  0x38   :  { %1023 = vmatprep.subr.bf16.mxu1 %v18241_v60  ;;  %v18268_v60 = vld [vmem:[%s27411_s20 + $0xa4] ss:$56 sps:$4 sm:$0xff]  }
  0x3a   :  { %862 = vmatpush1.bf16.msra.mxu0 %v18155_v41  ;;  %v18302_v41 = vld [vmem:[%s27413_s7 + $0x78] ss:$12 sps:$4 sm:$0xff]  }
  0x3b   :  { %863 = vmatprep.subr.bf16.mxu0 %v18160_v42  ;;  %1024 = vmatpush1.bf16.msra.mxu1 %v18239_v63  ;;  %v18307_v42 = vld [vmem:[%s27413_s7 + $0x94] ss:$12 sps:$4 sm:$0xff]   ;;  %v18331_v63 = vld [vmem:[%s27413_s7 + $0x10c] ss:$12 sps:$4 sm:$0xff]  }
  0x3c   :  { %1025 = vmatprep.subr.bf16.mxu1 %v18247_v0  ;;  %v18271_v0 = vld [vmem:[%s27411_s20 + $0x114] ss:$56 sps:$4 sm:$0xff]  }
  0x3e   :  { %864 = vmatpush1.bf16.msra.mxu0 %v18158_v45  ;;  %v18305_v45 = vld [vmem:[%s27413_s7 + $0x90] ss:$12 sps:$4 sm:$0xff]  }
  0x3f   :  { %865 = vmatprep.subr.bf16.mxu0 %v18163_v46  ;;  %1026 = vmatpush1.bf16.msra.mxu1 %v18245_v4  ;;  %v18242_v46 = vld [vmem:[%s27411_s20 + $0x250] ss:$56 sps:$4 sm:$0xff]  }
  0x40   :  { %1027 = vmatprep.subr.bf16.mxu1 %v18253_v5  ;;  %v18337_v4 = vld [vmem:[%s27413_s7 + $0x124] ss:$12 sps:$4 sm:$0xff]  }
  0x41   :  { %v18274_v5 = vld [vmem:[%s27411_s20 + $0x184] ss:$56 sps:$4 sm:$0xff]  }
  0x42   :  { %866 = vmatpush1.bf16.msra.mxu0 %v18161_v49  ;;  %v18308_v49 = vld [vmem:[%s27413_s7 + $0xa8] ss:$12 sps:$4 sm:$0xff]  }
  0x43   :  { %867 = vmatprep.subr.bf16.mxu0 %v18166_v50  ;;  %1028 = vmatpush1.bf16.msra.mxu1 %v18251_v8  ;;  %v18248_v50 = vld [vmem:[%s27411_s20 + $0x2c0] ss:$56 sps:$4 sm:$0xff]   ;;  %v18343_v8 = vld [vmem:[%s27413_s7 + $0x13c] ss:$12 sps:$4 sm:$0xff]  }
  0x44   :  { %1029 = vmatprep.subr.bf16.mxu1 %v18259_v9  ;;  %v18277_v9 = vld [vmem:[%s27411_s20 + $0x1f4] ss:$56 sps:$4 sm:$0xff]  }
  0x46   :  { %868 = vmatpush1.bf16.msra.mxu0 %v18164_v53  ;;  %v18311_v53 = vld [vmem:[%s27413_s7 + $0xc0] ss:$12 sps:$4 sm:$0xff]  }
  0x47   :  { %894 = vmatprep.subr.bf16.mxu0 %v18169_v54  ;;  %1030 = vmatpush1.bf16.msra.mxu1 %v18257_v12  ;;  %v18254_v54 = vld [vmem:[%s27411_s20 + $0x330] ss:$56 sps:$4 sm:$0xff]   ;;  %v18349_v12 = vld [vmem:[%s27413_s7 + $0x154] ss:$12 sps:$4 sm:$0xff]  }
  0x48   :  { %1031 = vmatprep.subr.bf16.mxu1 %v18262_v13  ;;  %v18280_v13 = vld [vmem:[%s27411_s20 + $0x264] ss:$56 sps:$4 sm:$0xff]  }
  0x49   :  { %886 = vmatmul.mubr.bf16.vlgmr.msra.gmra.mrb[4].mxu0 %v21100_v24 }
  0x4a   :  { %895 = vmatpush1.bf16.msra.mxu0 %v18167_v57  ;;  %926 = vmatprep.mubr.bf16.mxu0 %v27396_v1  ;;  %v18317_v57 = vld [vmem:[%s27413_s7 + $0xd8] ss:$12 sps:$4 sm:$0xff]  }
  0x4b   :  { %896 = vmatprep.subr.bf16.mxu0 %v18174_v58  ;;  %1032 = vmatpush1.bf16.msra.mxu1 %v18260_v16  ;;  %v18263_v58 = vld [vmem:[%s27411_s20 + $0x30] ss:$56 sps:$4 sm:$0xff]   ;;  %v18355_v16 = vld [vmem:[%s27413_s7 + $0x16c] ss:$12 sps:$4 sm:$0xff]  }
  0x4c   :  { %4126 = vmatprep.subr.bf16.mxu1 %v18289_v17  ;;  %v18283_v17 = vld [vmem:[%s27411_s20 + $0x2d4] ss:$56 sps:$4 sm:$0xff]  }
  0x4e   :  { %897 = vmatpush1.bf16.msra.mxu0 %v18172_v61  ;;  %1050 = vmatmul.mubr.bf16.vlgmr.msra.gmra.mrb[4].mxu1 %v21100_v24  ;;  %v18323_v61 = vld [vmem:[%s27413_s7 + $0xf0] ss:$12 sps:$4 sm:$0xff]  }
  0x4f   :  { %898 = vmatprep.subr.bf16.mxu0 %v18180_v62  ;;  %4127 = vmatpush1.bf16.msra.mxu1 %v18287_v20  ;;  %v18266_v62 = vld [vmem:[%s27411_s20 + $0xa0] ss:$56 sps:$4 sm:$0xff]   ;;  %v18364_v20 = vld [vmem:[%s27413_s7 + $0x304] ss:$12 sps:$4 sm:$0xff]  }
  0x50   :  { %4128 = vmatprep.subr.bf16.mxu1 %v18292_v21  ;;  %v18286_v21 = vld [vmem:[%s27411_s20 + $0x344] ss:$56 sps:$4 sm:$0xff]  }
  0x52   :  { %899 = vmatpush1.bf16.msra.mxu0 %v18178_v2  ;;  %v18329_v2 = vld [vmem:[%s27413_s7 + $0x108] ss:$12 sps:$4 sm:$0xff]  }
  0x53   :  { %900 = vmatprep.subr.bf16.mxu0 %v18186_v3  ;;  %4129 = vmatpush1.bf16.msra.mxu1 %v18290_v25  ;;  %v18269_v3 = vld [vmem:[%s27411_s20 + $0x110] ss:$56 sps:$4 sm:$0xff]   ;;  %v18314_v25 = vld [vmem:[%s27413_s7 + $0x180] ss:$12 sps:$4 sm:$0xff]  }
  0x54   :  { %4130 = vmatprep.subr.bf16.mxu1 %v18295_v26  ;;  %v18322_v26 = vld [vmem:[%s27413_s7 + $0x19c] ss:$12 sps:$4 sm:$0xff]  }
  0x56   :  { %901 = vmatpush1.bf16.msra.mxu0 %v18184_v6  ;;  %v18335_v6 = vld [vmem:[%s27413_s7 + $0x120] ss:$12 sps:$4 sm:$0xff]  }
  0x57   :  { %902 = vmatprep.subr.bf16.mxu0 %v18192_v7  ;;  %4131 = vmatpush1.bf16.msra.mxu1 %v18293_v29  ;;  %v18272_v7 = vld [vmem:[%s27411_s20 + $0x180] ss:$56 sps:$4 sm:$0xff]   ;;  %v18326_v29 = vld [vmem:[%s27413_s7 + $0x1b0] ss:$12 sps:$4 sm:$0xff]  }
  0x58   :  { %4132 = vmatprep.subr.bf16.mxu1 %v18298_v30  ;;  %v18334_v30 = vld [vmem:[%s27413_s7 + $0x1cc] ss:$12 sps:$4 sm:$0xff]  }
  0x5a   :  { %903 = vmatpush1.bf16.msra.mxu0 %v18190_v10  ;;  %v18341_v10 = vld [vmem:[%s27413_s7 + $0x138] ss:$12 sps:$4 sm:$0xff]  }
  0x5b   :  { %904 = vmatprep.subr.bf16.mxu0 %v18198_v11  ;;  %4133 = vmatpush1.bf16.msra.mxu1 %v18296_v33  ;;  %v18275_v11 = vld [vmem:[%s27411_s20 + $0x1f0] ss:$56 sps:$4 sm:$0xff]  }
  0x5c   :  { %4134 = vmatprep.subr.bf16.mxu1 %v18301_v34  ;;  %v18346_v33 = vld [vmem:[%s27413_s7 + $0x1fc] ss:$12 sps:$4 sm:$0xff]   ;;  %v18344_v34 = vld [vmem:[%s27413_s7 + $0x1f8] ss:$12 sps:$4 sm:$0xff]  }
  0x5e   :  { %905 = vmatpush1.bf16.msra.mxu0 %v18196_v14  ;;  %v18347_v14 = vld [vmem:[%s27413_s7 + $0x150] ss:$12 sps:$4 sm:$0xff]  }
  0x5f   :  { %906 = vmatprep.subr.bf16.mxu0 %v18204_v15  ;;  %4135 = vmatpush1.bf16.msra.mxu1 %v18299_v37  ;;  %v18278_v15 = vld [vmem:[%s27411_s20 + $0x260] ss:$56 sps:$4 sm:$0xff]  }
  0x60   :  { %4136 = vmatprep.subr.bf16.mxu1 %v18304_v38  ;;  %v18358_v37 = vld [vmem:[%s27413_s7 + $0x22c] ss:$12 sps:$4 sm:$0xff]   ;;  %v18356_v38 = vld [vmem:[%s27413_s7 + $0x228] ss:$12 sps:$4 sm:$0xff]  }
  0x62   :  { %907 = vmatpush1.bf16.msra.mxu0 %v18202_v18  ;;  %v18353_v18 = vld [vmem:[%s27413_s7 + $0x168] ss:$12 sps:$4 sm:$0xff]  }
  0x63   :  { %908 = vmatprep.subr.bf16.mxu0 %v18210_v19  ;;  %4137 = vmatpush1.bf16.msra.mxu1 %v18302_v41  ;;  %v18281_v19 = vld [vmem:[%s27411_s20 + $0x2d0] ss:$56 sps:$4 sm:$0xff]  }
  0x64   :  { %4138 = vmatprep.subr.bf16.mxu1 %v18307_v42  ;;  %v18367_v41 = vld [vmem:[%s27413_s7 + $0x25c] ss:$12 sps:$4 sm:$0xff]   ;;  %v18365_v42 = vld [vmem:[%s27413_s7 + $0x258] ss:$12 sps:$4 sm:$0xff]  }
  0x66   :  { %909 = vmatpush1.bf16.msra.mxu0 %v18208_v22  ;;  %v18284_v22 = vld [vmem:[%s27411_s20 + $0x340] ss:$56 sps:$4 sm:$0xff]  }
  0x67   :  { %976 = vmatprep.subr.bf16.mxu0 %v18217_v23  ;;  %4139 = vmatpush1.bf16.msra.mxu1 %v18305_v45  ;;  %v18316_v23 = vld [vmem:[%s27413_s7 + $0x184] ss:$12 sps:$4 sm:$0xff]   ;;  %v18379_v45 = vld [vmem:[%s27413_s7 + $0x28c] ss:$12 sps:$4 sm:$0xff]  }
  0x68   :  { %4140 = vmatprep.subr.bf16.mxu1 %v18310_v48  ;;  %v18383_v48 = vld [vmem:[%s27413_s7 + $0x2a0] ss:$12 sps:$4 sm:$0xff]  }
  0x69   :  { %927 = vmatmul.mubr.bf16.vlgmr.msra.gmra.mrb[8].mxu0 %v21100_v24 }
  0x6a   :  { %977 = vmatpush1.bf16.msra.mxu0 %v18215_v27  ;;  %1008 = vmatprep.mubr.bf16.mxu0 %v27396_v1  ;;  %v18320_v27 = vld [vmem:[%s27413_s7 + $0x198] ss:$12 sps:$4 sm:$0xff]  }
  0x6b   :  { %978 = vmatprep.subr.bf16.mxu0 %v18220_v28  ;;  %4141 = vmatpush1.bf16.msra.mxu1 %v18308_v49  ;;  %v18328_v28 = vld [vmem:[%s27413_s7 + $0x1b4] ss:$12 sps:$4 sm:$0xff]   ;;  %v18391_v49 = vld [vmem:[%s27413_s7 + $0x2bc] ss:$12 sps:$4 sm:$0xff]  }
  0x6c   :  { %4142 = vmatprep.subr.bf16.mxu1 %v18313_v51  ;;  %v18397_v51 = vld [vmem:[%s27413_s7 + $0x2d4] ss:$12 sps:$4 sm:$0xff]  }
  0x6e   :  { %979 = vmatpush1.bf16.msra.mxu0 %v18218_v31  ;;  %v18340_v31 = vld [vmem:[%s27413_s7 + $0x1e4] ss:$12 sps:$4 sm:$0xff]  }
  0x6f   :  { %980 = vmatprep.subr.bf16.mxu0 %v18226_v32  ;;  %4143 = vmatpush1.bf16.msra.mxu1 %v18311_v53  ;;  %v18338_v32 = vld [vmem:[%s27413_s7 + $0x1e0] ss:$12 sps:$4 sm:$0xff]  }
  0x70   :  { %4144 = vmatprep.subr.bf16.mxu1 %v18319_v55  ;;  %v18403_v53 = vld [vmem:[%s27413_s7 + $0x2ec] ss:$12 sps:$4 sm:$0xff]   ;;  %v18412_v55 = vld [vmem:[%s27413_s7 + $0x484] ss:$12 sps:$4 sm:$0xff]  }
  0x72   :  { %981 = vmatpush1.bf16.msra.mxu0 %v18224_v35  ;;  %v18352_v35 = vld [vmem:[%s27413_s7 + $0x214] ss:$12 sps:$4 sm:$0xff]  }
  0x73   :  { %982 = vmatprep.subr.bf16.mxu0 %v18232_v36  ;;  %4145 = vmatpush1.bf16.msra.mxu1 %v18317_v57  ;;  %v18350_v36 = vld [vmem:[%s27413_s7 + $0x210] ss:$12 sps:$4 sm:$0xff]  }
  0x74   :  { %4146 = vmatprep.subr.bf16.mxu1 %v18325_v59 }
  0x76   :  { %983 = vmatpush1.bf16.msra.mxu0 %v18230_v39  ;;  %v18361_v39 = vld [vmem:[%s27413_s7 + $0x244] ss:$12 sps:$4 sm:$0xff]  }
  0x77   :  { %984 = vmatprep.subr.bf16.mxu0 %v18238_v40  ;;  %4147 = vmatpush1.bf16.msra.mxu1 %v18323_v61  ;;  %v18359_v40 = vld [vmem:[%s27413_s7 + $0x240] ss:$12 sps:$4 sm:$0xff]  }
  0x78   :  { %4148 = vmatprep.subr.bf16.mxu1 %v18331_v63 }
  0x7a   :  { %985 = vmatpush1.bf16.msra.mxu0 %v18236_v43  ;;  %v18373_v43 = vld [vmem:[%s27413_s7 + $0x274] ss:$12 sps:$4 sm:$0xff]  }
  0x7b   :  { %986 = vmatprep.subr.bf16.mxu0 %v18244_v44  ;;  %4149 = vmatpush1.bf16.msra.mxu1 %v18329_v2  ;;  %v18371_v44 = vld [vmem:[%s27413_s7 + $0x270] ss:$12 sps:$4 sm:$0xff]  }
  0x7c   :  { %4150 = vmatprep.subr.bf16.mxu1 %v18337_v4 }
  0x7e   :  { %987 = vmatpush1.bf16.msra.mxu0 %v18242_v46  ;;  %v18377_v46 = vld [vmem:[%s27413_s7 + $0x288] ss:$12 sps:$4 sm:$0xff]  }
  0x7f   :  { %988 = vmatprep.subr.bf16.mxu0 %v18250_v47  ;;  %4151 = vmatpush1.bf16.msra.mxu1 %v18335_v6  ;;  %v18385_v47 = vld [vmem:[%s27413_s7 + $0x2a4] ss:$12 sps:$4 sm:$0xff]  }
  0x80   :  { %4152 = vmatprep.subr.bf16.mxu1 %v18343_v8 }
  0x82   :  { %989 = vmatpush1.bf16.msra.mxu0 %v18248_v50  ;;  %v18389_v50 = vld [vmem:[%s27413_s7 + $0x2b8] ss:$12 sps:$4 sm:$0xff]  }
  0x83   :  { %990 = vmatprep.subr.bf16.mxu0 %v18256_v52  ;;  %4153 = vmatpush1.bf16.msra.mxu1 %v18341_v10  ;;  %v18395_v52 = vld [vmem:[%s27413_s7 + $0x2d0] ss:$12 sps:$4 sm:$0xff]  }
  0x84   :  { %4154 = vmatprep.subr.bf16.mxu1 %v18349_v12 }
  0x86   :  { %991 = vmatpush1.bf16.msra.mxu0 %v18254_v54  ;;  %v18401_v54 = vld [vmem:[%s27413_s7 + $0x2e8] ss:$12 sps:$4 sm:$0xff]  }
  0x87   :  { %1058 = vmatprep.subr.bf16.mxu0 %v18265_v56  ;;  %4155 = vmatpush1.bf16.msra.mxu1 %v18347_v14  ;;  %v182_v56 = vlaneseq }
  0x88   :  { %4156 = vmatprep.subr.bf16.mxu1 %v18355_v16 }
  0x89   :  { %1009 = vmatmul.mubr.bf16.vlgmr.msra.gmra.mrb[12].mxu0 %v21100_v24  ;;  %v21582_v57 = vshrl.u32 %v182_v56, 7  ;;  %v21670_v56 = vld [vmem:[%s27414_s25 + $0x8] sm:$0x3f] }
  0x8a   :  { %1059 = vmatpush1.bf16.msra.mxu0 %v18263_v58  ;;  %1090 = vmatprep.mubr.bf16.mxu0 %v27396_v1  ;;  %v21587_v58 = vld [vmem:[%s27414_s25] sm:$0xff] }
  0x8b   :  { %1060 = vmatprep.subr.bf16.mxu0 %v18268_v60  ;;  %4157 = vmatpush1.bf16.msra.mxu1 %v18353_v18  ;;  %v21590_v59 = vsub.s32 0, %v21582_v57  ;;  %v21593_v60 = vsub.s32 1, %v21582_v57  ;;  %v21600_v12 = vsub.s32 7, %v21582_v57  ;;  %v21605_v14 = vsub.s32 2, %v21582_v57 }
  0x8c   :  { %4208 = vmatprep.subr.bf16.mxu1 %v18364_v20  ;;  %v21610_v16 = vsub.s32 3, %v21582_v57 }
  0x8d   :  { %v185_v61 = vrot.slane %v21587_v58, %v21590_v59 }
  0x8e   :  { %1061 = vmatpush1.bf16.msra.mxu0 %v18266_v62  ;;  %v189_v62 = vrot.slane %v21587_v58, %v21593_v60 }
  0x8f   :  { %1062 = vmatprep.subr.bf16.mxu0 %v18271_v0 }
  0x92   :  { %1063 = vmatpush1.bf16.msra.mxu0 %v18269_v3 }
  0x93   :  { %1064 = vmatprep.subr.bf16.mxu0 %v18274_v5 }
  0x96   :  { %1065 = vmatpush1.bf16.msra.mxu0 %v18272_v7 }
  0x97   :  { %1066 = vmatprep.subr.bf16.mxu0 %v18277_v9 }
  0x9a   :  { %1067 = vmatpush1.bf16.msra.mxu0 %v18275_v11 }
  0x9b   :  { %1068 = vmatprep.subr.bf16.mxu0 %v18280_v13  ;;  %v213_v13 = vrot.slane %v21587_v58, %v21600_v12 }
  0x9e   :  { %1069 = vmatpush1.bf16.msra.mxu0 %v18278_v15 }
  0x9f   :  { %1070 = vmatprep.subr.bf16.mxu0 %v18283_v17 }
  0xa2   :  { %1071 = vmatpush1.bf16.msra.mxu0 %v18281_v19 }
  0xa3   :  { %1072 = vmatprep.subr.bf16.mxu0 %v18286_v21 }
  0xa6   :  { %1073 = vmatpush1.bf16.msra.mxu0 %v18284_v22 }
  0xa7   :  { %4167 = vmatprep.subr.bf16.mxu0 %v18316_v23 }
  0xa9   :  { %1091 = vmatmul.mubr.bf16.vlgmr.msra.gmra.mrb[16].mxu0 %v21100_v24  ;;  %v18332_v24 = vld [vmem:[%s27413_s7 + $0x1c8] ss:$12 sps:$4 sm:$0xff]  }
  0xaa   :  { %4168 = vmatpush1.bf16.msra.mxu0 %v18314_v25  ;;  %v193_v25 = vrot.slane %v21587_v58, %v21605_v14 }
  0xab   :  { %4169 = vmatprep.subr.bf16.mxu0 %v18322_v26 }
  0xae   :  { %4170 = vmatpush1.bf16.msra.mxu0 %v18320_v27 }
  0xaf   :  { %4171 = vmatprep.subr.bf16.mxu0 %v18328_v28  ;;  %v197_v28 = vrot.slane %v21587_v58, %v21610_v16 }
  0xb2   :  { %4172 = vmatpush1.bf16.msra.mxu0 %v18326_v29 }
  0xb3   :  { %4173 = vmatprep.subr.bf16.mxu0 %v18334_v30 }
  0xb6   :  { %4174 = vmatpush1.bf16.msra.mxu0 %v18332_v24 }
  0xb7   :  { %4175 = vmatprep.subr.bf16.mxu0 %v18340_v31  ;;  %v18362_v31 = vld [vmem:[%s27413_s7 + $0x300] ss:$12 sps:$4 sm:$0xff]  }
  0xba   :  { %4176 = vmatpush1.bf16.msra.mxu0 %v18338_v32 }
  0xbb   :  { %4177 = vmatprep.subr.bf16.mxu0 %v18346_v33 }
  0xbe   :  { %4178 = vmatpush1.bf16.msra.mxu0 %v18344_v34 }
  0xbf   :  { %4179 = vmatprep.subr.bf16.mxu0 %v18352_v35 }
  0xc2   :  { %4180 = vmatpush1.bf16.msra.mxu0 %v18350_v36 }
  0xc3   :  { %4181 = vmatprep.subr.bf16.mxu0 %v18358_v37 }
  0xc6   :  { %4182 = vmatpush1.bf16.msra.mxu0 %v18356_v38 }
  0xc7   :  { %4183 = vmatprep.subr.bf16.mxu0 %v18361_v39 }
  0xca   :  { %4184 = vmatpush1.bf16.msra.mxu0 %v18359_v40  ;;  %v18370_v40 = vld [vmem:[%s27413_s7 + $0x31c] ss:$12 sps:$4 sm:$0xff]  }
  0xcb   :  { %4185 = vmatprep.subr.bf16.mxu0 %v18367_v41 }
  0xce   :  { %4186 = vmatpush1.bf16.msra.mxu0 %v18365_v42  ;;  %v18368_v42 = vld [vmem:[%s27413_s7 + $0x318] ss:$12 sps:$4 sm:$0xff]  }
  0xcf   :  { %4187 = vmatprep.subr.bf16.mxu0 %v18373_v43  ;;  %v18376_v43 = vld [vmem:[%s27413_s7 + $0x334] ss:$12 sps:$4 sm:$0xff]  }
  0xd2   :  { %4188 = vmatpush1.bf16.msra.mxu0 %v18371_v44 }
  0xd3   :  { %4189 = vmatprep.subr.bf16.mxu0 %v18379_v45  ;;  %v18374_v45 = vld [vmem:[%s27413_s7 + $0x330] ss:$12 sps:$4 sm:$0xff]  }
  0xd6   :  { %4190 = vmatpush1.bf16.msra.mxu0 %v18377_v46  ;;  %v18382_v46 = vld [vmem:[%s27413_s7 + $0x34c] ss:$12 sps:$4 sm:$0xff]  }
  0xd7   :  { %4191 = vmatprep.subr.bf16.mxu0 %v18385_v47 }
  0xda   :  { %4192 = vmatpush1.bf16.msra.mxu0 %v18383_v48  ;;  %v18380_v48 = vld [vmem:[%s27413_s7 + $0x348] ss:$12 sps:$4 sm:$0xff]  }
  0xdb   :  { %4193 = vmatprep.subr.bf16.mxu0 %v18391_v49 }
  0xde   :  { %4194 = vmatpush1.bf16.msra.mxu0 %v18389_v50  ;;  %v18388_v50 = vld [vmem:[%s27413_s7 + $0x364] ss:$12 sps:$4 sm:$0xff]  }
  0xdf   :  { %4195 = vmatprep.subr.bf16.mxu0 %v18397_v51 }
  0xe2   :  { %4196 = vmatpush1.bf16.msra.mxu0 %v18395_v52 }
  0xe3   :  { %4197 = vmatprep.subr.bf16.mxu0 %v18403_v53 }
  0xe6   :  { %4198 = vmatpush1.bf16.msra.mxu0 %v18401_v54  ;;  %v18386_v54 = vld [vmem:[%s27413_s7 + $0x360] ss:$12 sps:$4 sm:$0xff]  }
  0xe7   :  { %4249 = vmatprep.subr.bf16.mxu0 %v18412_v55  ;;  %v18394_v55 = vld [vmem:[%s27413_s7 + $0x37c] ss:$12 sps:$4 sm:$0xff]  }
  0xfc   :  { %v846_v63 = vpop.f32.mrb[0].mxu0 }
  0xfd   :  { %v847_v0 = vadd.f32 %v846_v63, %v185_v61  ;;  %v848_v2 = vpop.f32.mrb[1].mxu0  ;;  %v18392_v61 = vld [vmem:[%s27413_s7 + $0x378] ss:$12 sps:$4 sm:$0xff]   ;;  %v18400_v63 = vld [vmem:[%s27413_s7 + $0x394] ss:$12 sps:$4 sm:$0xff]  }
  0xfe   :  { %v849_v3 = vadd.f32 %v848_v2, %v189_v62  ;;  %v850_v4 = vpop.f32.mrb[2].mxu0  ;;  %v225_v62 = vrot.slane %v21670_v56, %v21605_v14 }
  0xff   :  { %v15982_v5 = vmul.f32 -1.442695, %v847_v0  ;;  %v851_v6 = vpop.f32.mrb[3].mxu0  ;;  %v21687_v4 = vsub.s32 5, %v21582_v57 }
 0x100   :  { %v15983_v7 = vmul.f32 -1.442695, %v849_v3 }
 0x101   :  { %20695 = vpow2.f32 %v15982_v5  ;;  %v21607_v15 = vpop.f32.mrb[0].mxu1 }
 0x102   :  { %20697 = vpow2.f32 %v15983_v7  ;;  %v971_v17 = vpop.f32.mrb[1].mxu1 }
 0x103   :  { %v21612_v18 = vadd.f32 %v971_v17, %v213_v13  ;;  %v973_v19 = vpop.f32.mrb[2].mxu1 }
 0x104   :  { %v974_v21 = vpop.f32.mrb[3].mxu1 }
 0x105   :  { %v15989_v26 = vmul.f32 -1.442695, %v21612_v18  ;;  %v18404_v21 = vld [vmem:[%s27413_s7 + $0x3a8] ss:$12 sps:$4 sm:$0xff]  }
 0x10b   :  { %v20696_v8 = vpop.eup %20695 }
 0x10c   :  { %v20698_v9 = vpop.eup %20697  ;;  %v1141_v10 = vadd.f32 1.0, %v20696_v8  ;;  %v18406_v8 = vld [vmem:[%s27413_s7 + $0x3ac] ss:$12 sps:$4 sm:$0xff]  }
 0x10d   :  { %v1142_v11 = vadd.f32 1.0, %v20698_v9 }
 0x10e   :  { %20699 = vrcp.f32 %v1141_v10 }
 0x10f   :  { %20701 = vrcp.f32 %v1142_v11 }
 0x110   :  { %20703 = vpow2.f32 %v15989_v26  ;;  %v18409_v26 = vld [vmem:[%s27413_s7 + $0x3c4] ss:$12 sps:$4 sm:$0xff]  }
 0x118   :  { %v20700_v20 = vpop.eup %20699 }
 0x119   :  { %v20702_v22 = vpop.eup %20701  ;;  %v21614_v23 = vmul.f32 %v20700_v20, %v847_v0  ;;  %v21681_v0 = vsub.s32 4, %v21582_v57 }
 0x11a   :  { %v21619_v27 = vmul.f32 %v20702_v22, %v849_v3  ;;  %v20704_v44 = vpop.eup %20703  ;;  %v18398_v3 = vld [vmem:[%s27413_s7 + $0x390] ss:$12 sps:$4 sm:$0xff]   ;;  %v205_v22 = vrot.slane %v21587_v58, %v21687_v4 }
 0x11b   :  { %v21625_v29 = vpack.c.bf16 %v21614_v23, %v21614_v23  ;;  %v1148_v47 = vadd.f32 1.0, %v20704_v44  ;;  %v201_v19 = vrot.slane %v21587_v58, %v21681_v0  ;;  %v18418_v44 = vld [vmem:[%s27413_s7 + $0x49c] ss:$12 sps:$4 sm:$0xff]  }
 0x11c   :  { %v887_v30 = vpop.f32.mrb[4].mxu0  ;;  %v21629_v24 = vpack.c.bf16 %v21619_v27, %v21619_v27 }
 0x11d   :  { %v888_v32 = vadd.f32 %v887_v30, %v193_v25  ;;  %v889_v33 = vpop.f32.mrb[5].mxu0  ;;  %v2306_v39 = vrot.slane %v21625_v29, 1 }
 0x11e   :  { %v890_v34 = vadd.f32 %v889_v33, %v197_v28  ;;  %v891_v35 = vpop.f32.mrb[6].mxu0  ;;  %v2307_v36 = vrot.slane %v21629_v24, 1 }
 0x11f   :  { %v15984_v37 = vmul.f32 -1.442695, %v888_v32  ;;  %v892_v38 = vpop.f32.mrb[7].mxu0 }
 0x120   :  { %v15985_v41 = vmul.f32 -1.442695, %v890_v34  ;;  %4158 = vmatprep.mubr.bf16.mxu1 %v2307_v36  ;;  %v18410_v38 = vld [vmem:[%s27413_s7 + $0x480] ss:$12 sps:$4 sm:$0xff]  }
 0x121   :  { %20705 = vpow2.f32 %v15984_v37  ;;  %4159 = vmatmul.mubr.bf16.vlgmr.msra.gmra.mrb[8].mxu1 %v2306_v39  ;;  %v1051_v2 = vpop.f32.mrb[4].mxu1 }
 0x122   :  { %20707 = vpow2.f32 %v15985_v41  ;;  %4209 = vmatpush1.bf16.msra.mxu1 %v18362_v31  ;;  %v21689_v5 = vadd.f32 %v1051_v2, %v225_v62  ;;  %v21691_v6 = vpop.f32.mrb[5].mxu1  ;;  %v18428_v62 = vld [vmem:[%s27413_s7 + $0x4c8] ss:$12 sps:$4 sm:$0xff]   ;;  %v21783_v2 = vsub.s32 6, %v21582_v57 }
 0x123   :  { %4210 = vmatprep.subr.bf16.mxu1 %v18370_v40  ;;  %20709 = vrcp.f32 %v1148_v47  ;;  %v1055_v9 = vpop.f32.mrb[6].mxu1  ;;  %v18415_v40 = vld [vmem:[%s27413_s7 + $0x3dc] ss:$12 sps:$4 sm:$0xff]  }
 0x124   :  { %v1056_v11 = vpop.f32.mrb[7].mxu1 }
 0x125   :  { %v18431_v11 = vld [vmem:[%s27413_s7 + $0x420] ss:$12 sps:$4 sm:$0xff]  }
 0x126   :  { %4211 = vmatpush1.bf16.msra.mxu1 %v18368_v42 }
 0x127   :  { %4212 = vmatprep.subr.bf16.mxu1 %v18376_v43 }
 0x12a   :  { %4213 = vmatpush1.bf16.msra.mxu1 %v18374_v45 }
 0x12b   :  { %v20706_v49 = vpop.eup %20705  ;;  %4214 = vmatprep.subr.bf16.mxu1 %v18382_v46 }
 0x12c   :  { %v20708_v51 = vpop.eup %20707  ;;  %v1143_v52 = vadd.f32 1.0, %v20706_v49  ;;  %v18416_v49 = vld [vmem:[%s27413_s7 + $0x498] ss:$12 sps:$4 sm:$0xff]  }
 0x12d   :  { %v1144_v53 = vadd.f32 1.0, %v20708_v51  ;;  %v20710_v7 = vpop.eup %20709  ;;  %v18424_v51 = vld [vmem:[%s27413_s7 + $0x4b4] ss:$12 sps:$4 sm:$0xff]  }
 0x12e   :  { %20711 = vrcp.f32 %v1143_v52  ;;  %4215 = vmatpush1.bf16.msra.mxu1 %v18380_v48  ;;  %v21708_v25 = vmul.f32 %v20710_v7, %v21612_v18  ;;  %v18413_v48 = vld [vmem:[%s27413_s7 + $0x3d8] ss:$12 sps:$4 sm:$0xff]   ;;  %v18419_v52 = vld [vmem:[%s27413_s7 + $0x3f0] ss:$12 sps:$4 sm:$0xff]  }
 0x12f   :  { %20713 = vrcp.f32 %v1144_v53  ;;  %4216 = vmatprep.subr.bf16.mxu1 %v18388_v50  ;;  %v18421_v50 = vld [vmem:[%s27413_s7 + $0x3f4] ss:$12 sps:$4 sm:$0xff]   ;;  %v18422_v53 = vld [vmem:[%s27413_s7 + $0x4b0] ss:$12 sps:$4 sm:$0xff]  }
 0x130   :  { %v18436_v7 = vld [vmem:[%s27413_s7 + $0x4e4] ss:$12 sps:$4 sm:$0xff]  }
 0x132   :  { %4217 = vmatpush1.bf16.msra.mxu1 %v18386_v54  ;;  %v18427_v54 = vld [vmem:[%s27413_s7 + $0x40c] ss:$12 sps:$4 sm:$0xff]  }
 0x133   :  { %4218 = vmatprep.subr.bf16.mxu1 %v18394_v55  ;;  %v18430_v55 = vld [vmem:[%s27413_s7 + $0x4cc] ss:$12 sps:$4 sm:$0xff]  }
 0x136   :  { %4219 = vmatpush1.bf16.msra.mxu1 %v18392_v61  ;;  %v18425_v61 = vld [vmem:[%s27413_s7 + $0x408] ss:$12 sps:$4 sm:$0xff]  }
 0x137   :  { %4220 = vmatprep.subr.bf16.mxu1 %v18400_v63 }
 0x138   :  { %v20712_v10 = vpop.eup %20711 }
 0x139   :  { %v20714_v13 = vpop.eup %20713  ;;  %v21696_v17 = vmul.f32 %v20712_v10, %v888_v32  ;;  %v21723_v32 = vpack.c.bf16 %v21708_v25, %v21708_v25 }
 0x13a   :  { %v21700_v20 = vmul.f32 %v20714_v13, %v890_v34  ;;  %4221 = vmatpush1.bf16.msra.mxu1 %v18398_v3  ;;  %v18407_v34 = vld [vmem:[%s27413_s7 + $0x3c0] ss:$12 sps:$4 sm:$0xff]   ;;  %v18433_v3 = vld [vmem:[%s27413_s7 + $0x424] ss:$12 sps:$4 sm:$0xff]  }
 0x13b   :  { %4222 = vmatprep.subr.bf16.mxu1 %v18406_v8  ;;  %v21715_v28 = vpack.c.bf16 %v21696_v17, %v21696_v17  ;;  %v2313_v47 = vrot.slane %v21723_v32, 1  ;;  %v18434_v13 = vld [vmem:[%s27413_s7 + $0x4e0] ss:$12 sps:$4 sm:$0xff]  }
 0x13c   :  { %v928_v30 = vpop.f32.mrb[8].mxu0  ;;  %v21719_v31 = vpack.c.bf16 %v21700_v20, %v21700_v20 }
 0x13d   :  { %v21725_v18 = vadd.f32 %v928_v30, %v201_v19  ;;  %v930_v33 = vpop.f32.mrb[9].mxu0  ;;  %v2308_v43 = vrot.slane %v21715_v28, 1  ;;  %v209_v19 = vrot.slane %v21587_v58, %v21783_v2  ;;  %v18437_v30 = vld [vmem:[%s27413_s7 + $0x438] ss:$12 sps:$4 sm:$0xff]  }
 0x13e   :  { %v21730_v35 = vadd.f32 %v930_v33, %v205_v22  ;;  %4223 = vmatpush1.bf16.msra.mxu1 %v18404_v21  ;;  %v2309_v37 = vrot.slane %v21719_v31, 1  ;;  %v932_v41 = vpop.f32.mrb[10].mxu0  ;;  %v18439_v21 = vld [vmem:[%s27413_s7 + $0x43c] ss:$12 sps:$4 sm:$0xff]   ;;  %v18440_v58 = vld [vmem:[%s27413_s7 + $0x4f8] ss:$12 sps:$4 sm:$0xff]  }
 0x13f   :  { %v15986_v42 = vmul.f32 -1.442695, %v21725_v18  ;;  %4224 = vmatprep.subr.bf16.mxu1 %v18409_v26  ;;  %v933_v45 = vpop.f32.mrb[11].mxu0  ;;  %v18442_v22 = vld [vmem:[%s27413_s7 + $0x4fc] ss:$12 sps:$4 sm:$0xff]   ;;  %v229_v26 = vrot.slane %v21670_v56, %v21610_v16  ;;  %v21814_v33 = vadd.f32 %v21607_v15, %v209_v19 }
 0x140   :  { %v15987_v46 = vmul.f32 -1.442695, %v21730_v35  ;;  %4199 = vmatprep.mubr.bf16.mxu0 %v2309_v37  ;;  %v18443_v15 = vld [vmem:[%s27413_s7 + $0x450] ss:$12 sps:$4 sm:$0xff]  }
 0x141   :  { %20715 = vpow2.f32 %v15986_v42  ;;  %4200 = vmatmul.mubr.bf16.vlgmr.msra.gmra.mrb[20].mxu0 %v2308_v43  ;;  %v18446_v41 = vld [vmem:[%s27413_s7 + $0x510] ss:$12 sps:$4 sm:$0xff]   ;;  %v15988_v42 = vmul.f32 -1.442695, %v21814_v33 }
 0x142   :  { %20717 = vpow2.f32 %v15987_v46  ;;  %4225 = vmatpush1.bf16.msra.mxu1 %v18407_v34  ;;  %4250 = vmatpush1.bf16.msra.mxu0 %v18410_v38  ;;  %v18445_v34 = vld [vmem:[%s27413_s7 + $0x454] ss:$12 sps:$4 sm:$0xff]  }
 0x143   :  { %4226 = vmatprep.subr.bf16.mxu1 %v18415_v40  ;;  %4251 = vmatprep.subr.bf16.mxu0 %v18418_v44  ;;  %v18448_v38 = vld [vmem:[%s27413_s7 + $0x514] ss:$12 sps:$4 sm:$0xff]   ;;  %v21823_v40 = vadd.f32 %v21691_v6, %v229_v26  ;;  %v18451_v44 = vld [vmem:[%s27413_s7 + $0x46c] ss:$12 sps:$4 sm:$0xff]  }
 0x144   :  { %4281 = vmatprep.mubr.bf16.mxu0 %v2313_v47  ;;  %v18454_v6 = vld [vmem:[%s27413_s7 + $0x52c] ss:$12 sps:$4 sm:$0xff]  }
 0x145   :  { %v15993_v46 = vmul.f32 -1.442695, %v21823_v40  ;;  %v18464_v26 = vld [vmem:[%s27413_s7 + $0x618] ss:$12 sps:$4 sm:$0xff]  }
 0x146   :  { %4227 = vmatpush1.bf16.msra.mxu1 %v18413_v48  ;;  %4252 = vmatpush1.bf16.msra.mxu0 %v18416_v49 }
 0x147   :  { %4228 = vmatprep.subr.bf16.mxu1 %v18421_v50  ;;  %4253 = vmatprep.subr.bf16.mxu0 %v18424_v51  ;;  %v18449_v51 = vld [vmem:[%s27413_s7 + $0x468] ss:$12 sps:$4 sm:$0xff]  }
 0x14a   :  { %4229 = vmatpush1.bf16.msra.mxu1 %v18419_v52  ;;  %4254 = vmatpush1.bf16.msra.mxu0 %v18422_v53  ;;  %v18452_v52 = vld [vmem:[%s27413_s7 + $0x528] ss:$12 sps:$4 sm:$0xff]   ;;  %v221_v53 = vrot.slane %v21670_v56, %v21593_v60 }
 0x14b   :  { %v20716_v63 = vpop.eup %20715  ;;  %4230 = vmatprep.subr.bf16.mxu1 %v18427_v54  ;;  %4255 = vmatprep.subr.bf16.mxu0 %v18430_v55 }
 0x14c   :  { %v20718_v8 = vpop.eup %20717  ;;  %v1145_v9 = vadd.f32 1.0, %v20716_v63 }
 0x14d   :  { %v1146_v10 = vadd.f32 1.0, %v20718_v8  ;;  %v18455_v8 = vld [vmem:[%s27413_s7 + $0x540] ss:$12 sps:$4 sm:$0xff]  }
 0x14e   :  { %20719 = vrcp.f32 %v1145_v9  ;;  %4231 = vmatpush1.bf16.msra.mxu1 %v18425_v61  ;;  %4256 = vmatpush1.bf16.msra.mxu0 %v18428_v62  ;;  %v18458_v9 = vld [vmem:[%s27413_s7 + $0x600] ss:$12 sps:$4 sm:$0xff]  }
 0x14f   :  { %20721 = vrcp.f32 %v1146_v10  ;;  %4232 = vmatprep.subr.bf16.mxu1 %v18433_v3  ;;  %4257 = vmatprep.subr.bf16.mxu0 %v18436_v7 }
 0x150   :  { %20723 = vpow2.f32 %v15988_v42  ;;  %v18475_v42 = vld [vmem:[%s27413_s7 + $0x58c] ss:$12 sps:$4 sm:$0xff]  }
 0x151   :  { %20725 = vpow2.f32 %v15993_v46  ;;  %v18473_v46 = vld [vmem:[%s27413_s7 + $0x588] ss:$12 sps:$4 sm:$0xff]  }
 0x152   :  { %4233 = vmatpush1.bf16.msra.mxu1 %v18431_v11  ;;  %4258 = vmatpush1.bf16.msra.mxu0 %v18434_v13  ;;  %v18463_v11 = vld [vmem:[%s27413_s7 + $0x55c] ss:$12 sps:$4 sm:$0xff]  }
 0x153   :  { %4234 = vmatprep.subr.bf16.mxu1 %v18439_v21  ;;  %4259 = vmatprep.subr.bf16.mxu0 %v18442_v22  ;;  %v18466_v13 = vld [vmem:[%s27413_s7 + $0x61c] ss:$12 sps:$4 sm:$0xff]   ;;  %v18461_v22 = vld [vmem:[%s27413_s7 + $0x558] ss:$12 sps:$4 sm:$0xff]  }
 0x156   :  { %4235 = vmatpush1.bf16.msra.mxu1 %v18437_v30  ;;  %4260 = vmatpush1.bf16.msra.mxu0 %v18440_v58  ;;  %v18469_v30 = vld [vmem:[%s27413_s7 + $0x574] ss:$12 sps:$4 sm:$0xff]  }
 0x157   :  { %4236 = vmatprep.subr.bf16.mxu1 %v18445_v34  ;;  %4261 = vmatprep.subr.bf16.mxu0 %v18448_v38  ;;  %v18472_v58 = vld [vmem:[%s27413_s7 + $0x634] ss:$12 sps:$4 sm:$0xff]  }
 0x158   :  { %v20720_v45 = vpop.eup %20719 }
 0x159   :  { %v20722_v48 = vpop.eup %20721  ;;  %v21840_v49 = vmul.f32 %v20720_v45, %v21725_v18  ;;  %v18457_v18 = vld [vmem:[%s27413_s7 + $0x544] ss:$12 sps:$4 sm:$0xff]  }
 0x15a   :  { %v21843_v50 = vmul.f32 %v20722_v48, %v21730_v35  ;;  %4237 = vmatpush1.bf16.msra.mxu1 %v18443_v15  ;;  %4262 = vmatpush1.bf16.msra.mxu0 %v18446_v41  ;;  %v18460_v35 = vld [vmem:[%s27413_s7 + $0x604] ss:$12 sps:$4 sm:$0xff]   ;;  %v20724_v34 = vpop.eup %20723  ;;  %v18476_v48 = vld [vmem:[%s27413_s7 + $0x648] ss:$12 sps:$4 sm:$0xff]  }
 0x15b   :  { %27415 = vst [vmem:[#allocation5_spill] sm:$0xff] %v21840_v49  ;;  %4238 = vmatprep.subr.bf16.mxu1 %v18451_v44  ;;  %4263 = vmatprep.subr.bf16.mxu0 %v18454_v6  ;;  %v21861_v54 = vpack.c.bf16 %v21840_v49, %v21840_v49  ;;  %v20726_v38 = vpop.eup %20725  ;;  %v18467_v15 = vld [vmem:[%s27413_s7 + $0x570] ss:$12 sps:$4 sm:$0xff]   ;;  %v18478_v44 = vld [vmem:[%s27413_s7 + $0x64c] ss:$12 sps:$4 sm:$0xff]   ;;  %v1147_v6 = vadd.f32 1.0, %v20724_v34 }
 0x15c   :  { %v21863_v55 = vpop.f32.mrb[12].mxu0  ;;  %v21867_v61 = vpack.c.bf16 %v21843_v50, %v21843_v50  ;;  %v18470_v41 = vld [vmem:[%s27413_s7 + $0x630] ss:$12 sps:$4 sm:$0xff]   ;;  %v1152_v45 = vadd.f32 1.0, %v20726_v38  ;;  %v18499_v38 = vld [vmem:[%s27413_s7 + $0x5ec] ss:$12 sps:$4 sm:$0xff]  }
 0x15d   :  { %v1012_v62 = vpop.f32.mrb[13].mxu0  ;;  %v2310_v63 = vrot.slane %v21861_v54, 1 }
 0x15e   :  { %4239 = vmatpush1.bf16.msra.mxu1 %v18449_v51  ;;  %4264 = vmatpush1.bf16.msra.mxu0 %v18452_v52  ;;  %v21870_v3 = vadd.f32 %v1012_v62, %v221_v53  ;;  %v2311_v7 = vrot.slane %v21867_v61, 1  ;;  %v1014_v10 = vpop.f32.mrb[14].mxu0  ;;  %v18481_v51 = vld [vmem:[%s27413_s7 + $0x5a4] ss:$12 sps:$4 sm:$0xff]   ;;  %v18479_v62 = vld [vmem:[%s27413_s7 + $0x5a0] ss:$12 sps:$4 sm:$0xff]  }
 0x15f   :  { %4265 = vmatprep.subr.bf16.mxu0 %v18457_v18  ;;  %4290 = vmatprep.subr.bf16.mxu1 %v18460_v35  ;;  %v1015_v19 = vpop.f32.mrb[15].mxu0  ;;  %v18484_v52 = vld [vmem:[%s27413_s7 + $0x664] ss:$12 sps:$4 sm:$0xff]   ;;  %v217_v18 = vrot.slane %v21670_v56, %v21590_v59  ;;  %v18490_v10 = vld [vmem:[%s27413_s7 + $0x67c] ss:$12 sps:$4 sm:$0xff]  }
 0x160   :  { %v15991_v21 = vmul.f32 -1.442695, %v21870_v3  ;;  %4240 = vmatprep.mubr.bf16.mxu1 %v2311_v7  ;;  %v18488_v19 = vld [vmem:[%s27413_s7 + $0x678] ss:$12 sps:$4 sm:$0xff]  }
 0x161   :  { %4241 = vmatmul.mubr.bf16.vlgmr.msra.gmra.mrb[12].mxu1 %v2310_v63 }
 0x162   :  { %20727 = vpow2.f32 %v15991_v21  ;;  %4266 = vmatpush1.bf16.msra.mxu0 %v18455_v8  ;;  %4291 = vmatpush1.bf16.msra.mxu1 %v18458_v9  ;;  %v18482_v8 = vld [vmem:[%s27413_s7 + $0x660] ss:$12 sps:$4 sm:$0xff]   ;;  %v18487_v9 = vld [vmem:[%s27413_s7 + $0x5bc] ss:$12 sps:$4 sm:$0xff]  }
 0x163   :  { %4267 = vmatprep.subr.bf16.mxu0 %v18463_v11  ;;  %4292 = vmatprep.subr.bf16.mxu1 %v18466_v13  ;;  %20729 = vrcp.f32 %v1147_v6  ;;  %v21941_v11 = vadd.f32 %v21863_v55, %v217_v18  ;;  %v18485_v13 = vld [vmem:[%s27413_s7 + $0x5b8] ss:$12 sps:$4 sm:$0xff]   ;;  %v18493_v21 = vld [vmem:[%s27413_s7 + $0x5d4] ss:$12 sps:$4 sm:$0xff]  }
 0x164   :  { %20731 = vrcp.f32 %v1152_v45  ;;  %v18496_v55 = vld [vmem:[%s27413_s7 + $0x694] ss:$12 sps:$4 sm:$0xff]  }
 0x166   :  { %4268 = vmatpush1.bf16.msra.mxu0 %v18461_v22  ;;  %4293 = vmatpush1.bf16.msra.mxu1 %v18464_v26  ;;  %v15990_v22 = vmul.f32 -1.442695, %v21941_v11 }
 0x167   :  { %4269 = vmatprep.subr.bf16.mxu0 %v18469_v30  ;;  %4294 = vmatprep.subr.bf16.mxu1 %v18472_v58  ;;  %v18491_v30 = vld [vmem:[%s27413_s7 + $0x5d0] ss:$12 sps:$4 sm:$0xff]  }
 0x168   :  { %v18494_v58 = vld [vmem:[%s27413_s7 + $0x690] ss:$12 sps:$4 sm:$0xff]  }
 0x16a   :  { %4270 = vmatpush1.bf16.msra.mxu0 %v18467_v15  ;;  %4295 = vmatpush1.bf16.msra.mxu1 %v18470_v41  ;;  %v18502_v15 = vld [vmem:[%s27413_s7 + $0x6ac] ss:$12 sps:$4 sm:$0xff]  }
 0x16b   :  { %4271 = vmatprep.subr.bf16.mxu0 %v18475_v42  ;;  %4296 = vmatprep.subr.bf16.mxu1 %v18478_v44  ;;  %v233_v44 = vrot.slane %v21670_v56, %v21681_v0 }
 0x16c   :  { %v20728_v53 = vpop.eup %20727 }
 0x16d   :  { %v1150_v35 = vadd.f32 1.0, %v20728_v53  ;;  %v20730_v26 = vpop.eup %20729 }
 0x16e   :  { %4272 = vmatpush1.bf16.msra.mxu0 %v18473_v46  ;;  %4297 = vmatpush1.bf16.msra.mxu1 %v18476_v48  ;;  %v20732_v34 = vpop.eup %20731  ;;  %v21969_v42 = vmul.f32 %v20730_v26, %v21814_v33  ;;  %v18497_v46 = vld [vmem:[%s27413_s7 + $0x5e8] ss:$12 sps:$4 sm:$0xff]   ;;  %v237_v48 = vrot.slane %v21670_v56, %v21687_v4 }
 0x16f   :  { %20733 = vrcp.f32 %v1150_v35  ;;  %4273 = vmatprep.subr.bf16.mxu0 %v18481_v51  ;;  %4298 = vmatprep.subr.bf16.mxu1 %v18484_v52  ;;  %v21977_v45 = vmul.f32 %v20732_v34, %v21823_v40  ;;  %v18500_v33 = vld [vmem:[%s27413_s7 + $0x6a8] ss:$12 sps:$4 sm:$0xff]   ;;  %v18505_v40 = vld [vmem:[%s27413_s7 + $0x6c4] ss:$12 sps:$4 sm:$0xff]  }
 0x170   :  { %20735 = vpow2.f32 %v15990_v22  ;;  %v18508_v51 = vld [vmem:[%s27413_s7 + $0x784] ss:$12 sps:$4 sm:$0xff]  }
 0x171   :  { %v22003_v56 = vpack.c.bf16 %v21977_v45, %v21977_v45  ;;  %v18512_v34 = vld [vmem:[%s27413_s7 + $0x798] ss:$12 sps:$4 sm:$0xff]  }
 0x172   :  { %4274 = vmatpush1.bf16.msra.mxu0 %v18479_v62  ;;  %4299 = vmatpush1.bf16.msra.mxu1 %v18482_v8  ;;  %v18503_v8 = vld [vmem:[%s27413_s7 + $0x6c0] ss:$12 sps:$4 sm:$0xff]  }
 0x173   :  { %4275 = vmatprep.subr.bf16.mxu0 %v18487_v9  ;;  %4300 = vmatprep.subr.bf16.mxu1 %v18490_v10  ;;  %v18506_v9 = vld [vmem:[%s27413_s7 + $0x780] ss:$12 sps:$4 sm:$0xff]  }
 0x176   :  { %4276 = vmatpush1.bf16.msra.mxu0 %v18485_v13  ;;  %4301 = vmatpush1.bf16.msra.mxu1 %v18488_v19 }
 0x177   :  { %4277 = vmatprep.subr.bf16.mxu0 %v18493_v21  ;;  %4302 = vmatprep.subr.bf16.mxu1 %v18496_v55  ;;  %v18511_v21 = vld [vmem:[%s27413_s7 + $0x6dc] ss:$12 sps:$4 sm:$0xff]  }
 0x178   :  { %v18514_v55 = vld [vmem:[%s27413_s7 + $0x79c] ss:$12 sps:$4 sm:$0xff]  }
 0x179   :  { %v20734_v41 = vpop.eup %20733 }
 0x17a   :  { %v21974_v6 = vmul.f32 %v20734_v41, %v21870_v3  ;;  %4278 = vmatpush1.bf16.msra.mxu0 %v18491_v30  ;;  %4303 = vmatpush1.bf16.msra.mxu1 %v18494_v58  ;;  %v21989_v3 = vpack.c.bf16 %v21969_v42, %v21969_v42  ;;  %v2317_v30 = vrot.slane %v22003_v56, 1  ;;  %v18509_v58 = vld [vmem:[%s27413_s7 + $0x6d8] ss:$12 sps:$4 sm:$0xff]   ;;  %v18520_v41 = vld [vmem:[%s27413_s7 + $0x7b4] ss:$12 sps:$4 sm:$0xff]  }
 0x17b   :  { %4279 = vmatprep.subr.bf16.mxu0 %v18499_v38  ;;  %4304 = vmatprep.subr.bf16.mxu1 %v18502_v15  ;;  %v20736_v38 = vpop.eup %20735  ;;  %v18517_v15 = vld [vmem:[%s27413_s7 + $0x6f4] ss:$12 sps:$4 sm:$0xff]  }
 0x17c   :  { %v1092_v52 = vpop.f32.mrb[16].mxu0  ;;  %v21999_v53 = vpack.c.bf16 %v21974_v6, %v21974_v6  ;;  %v2312_v19 = vrot.slane %v21989_v3, 1 }
 0x17d   :  { %v22005_v18 = vadd.f32 %v1092_v52, %v233_v44  ;;  %v1094_v35 = vpop.f32.mrb[17].mxu0  ;;  %v1149_v44 = vadd.f32 1.0, %v20736_v38  ;;  %v18524_v52 = vld [vmem:[%s27413_s7 + $0x7c8] ss:$12 sps:$4 sm:$0xff]  }
 0x17e   :  { %4280 = vmatpush1.bf16.msra.mxu0 %v18497_v46  ;;  %4305 = vmatpush1.bf16.msra.mxu1 %v18500_v33  ;;  %v22007_v62 = vadd.f32 %v1094_v35, %v237_v48  ;;  %v2315_v10 = vrot.slane %v21999_v53, 1  ;;  %v1096_v13 = vpop.f32.mrb[18].mxu0  ;;  %v18515_v46 = vld [vmem:[%s27413_s7 + $0x6f0] ss:$12 sps:$4 sm:$0xff]   ;;  %v18523_v48 = vld [vmem:[%s27413_s7 + $0x70c] ss:$12 sps:$4 sm:$0xff]  }
 0x17f   :  { %4306 = vmatprep.subr.bf16.mxu1 %v18505_v40  ;;  %4331 = vmatprep.subr.bf16.mxu0 %v18508_v51  ;;  %v1097_v22 = vpop.f32.mrb[19].mxu0  ;;  %v18518_v33 = vld [vmem:[%s27413_s7 + $0x7b0] ss:$12 sps:$4 sm:$0xff]   ;;  %v18526_v40 = vld [vmem:[%s27413_s7 + $0x7cc] ss:$12 sps:$4 sm:$0xff]  }
 0x180   :  { %v15995_v26 = vmul.f32 -1.442695, %v22007_v62  ;;  %4322 = vmatprep.mubr.bf16.mxu1 %v2315_v10  ;;  %v18521_v51 = vld [vmem:[%s27413_s7 + $0x708] ss:$12 sps:$4 sm:$0xff]   ;;  %v18529_v35 = vld [vmem:[%s27413_s7 + $0x724] ss:$12 sps:$4 sm:$0xff]  }
 0x181   :  { %4282 = vmatmul.mubr.bf16.vlgmr.msra.gmra.mrb[24].mxu0 %v2312_v19  ;;  %v18535_v22 = vld [vmem:[%s27413_s7 + $0x73c] ss:$12 sps:$4 sm:$0xff]   ;;  %v18541_v38 = vld [vmem:[%s27413_s7 + $0x754] ss:$12 sps:$4 sm:$0xff]  }
 0x182   :  { %20737 = vpow2.f32 %v15995_v26  ;;  %4307 = vmatpush1.bf16.msra.mxu1 %v18503_v8  ;;  %4332 = vmatpush1.bf16.msra.mxu0 %v18506_v9  ;;  %v18532_v8 = vld [vmem:[%s27413_s7 + $0x7e4] ss:$12 sps:$4 sm:$0xff]   ;;  %v18538_v26 = vld [vmem:[%s27413_s7 + $0x7fc] ss:$12 sps:$4 sm:$0xff]  }
 0x183   :  { %4308 = vmatprep.subr.bf16.mxu1 %v18511_v21  ;;  %4333 = vmatprep.subr.bf16.mxu0 %v18514_v55  ;;  %20739 = vrcp.f32 %v1149_v44  ;;  %v18527_v21 = vld [vmem:[%s27413_s7 + $0x720] ss:$12 sps:$4 sm:$0xff]   ;;  %v18539_v44 = vld [vmem:[%s27413_s7 + $0x750] ss:$12 sps:$4 sm:$0xff]  }
 0x184   :  { %4363 = vmatprep.mubr.bf16.mxu0 %v2317_v30  ;;  %v18530_v55 = vld [vmem:[%s27413_s7 + $0x7e0] ss:$12 sps:$4 sm:$0xff]  }
 0x186   :  { %4309 = vmatpush1.bf16.msra.mxu1 %v18509_v58  ;;  %4334 = vmatpush1.bf16.msra.mxu0 %v18512_v34  ;;  %v18533_v58 = vld [vmem:[%s27413_s7 + $0x738] ss:$12 sps:$4 sm:$0xff]  }
 0x187   :  { %4310 = vmatprep.subr.bf16.mxu1 %v18517_v15  ;;  %4335 = vmatprep.subr.bf16.mxu0 %v18520_v41  ;;  %v18536_v34 = vld [vmem:[%s27413_s7 + $0x7f8] ss:$12 sps:$4 sm:$0xff]   ;;  %v18544_v15 = vld [vmem:[%s27413_s7 + $0x814] ss:$12 sps:$4 sm:$0xff]  }
 0x18a   :  { %4311 = vmatpush1.bf16.msra.mxu1 %v18515_v46  ;;  %4336 = vmatpush1.bf16.msra.mxu0 %v18518_v33  ;;  %v18542_v46 = vld [vmem:[%s27413_s7 + $0x810] ss:$12 sps:$4 sm:$0xff]  }
 0x18b   :  { %4312 = vmatprep.subr.bf16.mxu1 %v18523_v48  ;;  %4337 = vmatprep.subr.bf16.mxu0 %v18526_v40  ;;  %v15992_v48 = vmul.f32 -1.442695, %v21689_v5  ;;  %v18547_v40 = vld [vmem:[%s27413_s7 + $0x76c] ss:$12 sps:$4 sm:$0xff]  }
 0x18c   :  { %v20738_v9 = vpop.eup %20737 }
 0x18d   :  { %v1154_v13 = vadd.f32 1.0, %v20738_v9  ;;  %v20740_v41 = vpop.eup %20739  ;;  %v18548_v9 = vld [vmem:[%s27413_s7 + $0x828] ss:$12 sps:$4 sm:$0xff]  }
 0x18e   :  { %4313 = vmatpush1.bf16.msra.mxu1 %v18521_v51  ;;  %4338 = vmatpush1.bf16.msra.mxu0 %v18524_v52  ;;  %v22098_v33 = vmul.f32 %v20740_v41, %v21941_v11  ;;  %v18550_v51 = vld [vmem:[%s27413_s7 + $0x82c] ss:$12 sps:$4 sm:$0xff]  }
 0x18f   :  { %20741 = vrcp.f32 %v1154_v13  ;;  %4314 = vmatprep.subr.bf16.mxu1 %v18529_v35  ;;  %4339 = vmatprep.subr.bf16.mxu0 %v18532_v8  ;;  %v18545_v8 = vld [vmem:[%s27413_s7 + $0x768] ss:$12 sps:$4 sm:$0xff]   ;;  %v18553_v13 = vld [vmem:[%s27413_s7 + $0x844] ss:$12 sps:$4 sm:$0xff]  }
 0x190   :  { %27416 = vst [vmem:[#allocation6_spill] sm:$0xff] %v22098_v33  ;;  %v22109_v35 = vpack.c.bf16 %v22098_v33, %v22098_v33  ;;  %20743 = vpow2.f32 %v15992_v48  ;;  %v18560_v41 = vld [vmem:[%s27413_s7 + $0x918] ss:$12 sps:$4 sm:$0xff]  }
 0x192   :  { %4315 = vmatpush1.bf16.msra.mxu1 %v18527_v21  ;;  %4340 = vmatpush1.bf16.msra.mxu0 %v18530_v55  ;;  %v2314_v55 = vrot.slane %v22109_v35, 1 }
 0x193   :  { %4316 = vmatprep.subr.bf16.mxu1 %v18535_v22  ;;  %4341 = vmatprep.subr.bf16.mxu0 %v18538_v26  ;;  %v18551_v22 = vld [vmem:[%s27413_s7 + $0x840] ss:$12 sps:$4 sm:$0xff]  }
 0x194   :  { %v18554_v26 = vld [vmem:[%s27413_s7 + $0x900] ss:$12 sps:$4 sm:$0xff]  }
 0x196   :  { %4317 = vmatpush1.bf16.msra.mxu1 %v18533_v58  ;;  %4342 = vmatpush1.bf16.msra.mxu0 %v18536_v34  ;;  %v18559_v58 = vld [vmem:[%s27413_s7 + $0x85c] ss:$12 sps:$4 sm:$0xff]  }
 0x197   :  { %4318 = vmatprep.subr.bf16.mxu1 %v18541_v38  ;;  %4343 = vmatprep.subr.bf16.mxu0 %v18544_v15  ;;  %v18562_v34 = vld [vmem:[%s27413_s7 + $0x91c] ss:$12 sps:$4 sm:$0xff]   ;;  %v18557_v15 = vld [vmem:[%s27413_s7 + $0x858] ss:$12 sps:$4 sm:$0xff]  }
 0x199   :  { %v20742_v52 = vpop.eup %20741 }
 0x19a   :  { %v22112_v11 = vmul.f32 %v20742_v52, %v22007_v62  ;;  %4319 = vmatpush1.bf16.msra.mxu1 %v18539_v44  ;;  %4344 = vmatpush1.bf16.msra.mxu0 %v18542_v46  ;;  %v18556_v62 = vld [vmem:[%s27413_s7 + $0x904] ss:$12 sps:$4 sm:$0xff]   ;;  %v18565_v44 = vld [vmem:[%s27413_s7 + $0x874] ss:$12 sps:$4 sm:$0xff]   ;;  %v20744_v48 = vpop.eup %20743  ;;  %v18571_v52 = vld [vmem:[%s27413_s7 + $0x88c] ss:$12 sps:$4 sm:$0xff]  }
 0x19b   :  { %4320 = vmatprep.subr.bf16.mxu1 %v18547_v40  ;;  %4345 = vmatprep.subr.bf16.mxu0 %v18550_v51  ;;  %v18568_v46 = vld [vmem:[%s27413_s7 + $0x934] ss:$12 sps:$4 sm:$0xff]   ;;  %v18563_v40 = vld [vmem:[%s27413_s7 + $0x870] ss:$12 sps:$4 sm:$0xff]  }
 0x19c   :  { %27417 = vst [vmem:[#allocation7_spill] sm:$0xff] %v22112_v11  ;;  %v22128_v21 = vpack.c.bf16 %v22112_v11, %v22112_v11  ;;  %v18566_v51 = vld [vmem:[%s27413_s7 + $0x930] ss:$12 sps:$4 sm:$0xff]  }
 0x19e   :  { %4321 = vmatpush1.bf16.msra.mxu1 %v18545_v8  ;;  %4346 = vmatpush1.bf16.msra.mxu0 %v18548_v9  ;;  %v2319_v38 = vrot.slane %v22128_v21, 1  ;;  %v18574_v8 = vld [vmem:[%s27413_s7 + $0x94c] ss:$12 sps:$4 sm:$0xff]   ;;  %v1151_v9 = vadd.f32 1.0, %v20744_v48  ;;  %v18589_v48 = vld [vmem:[%s27413_s7 + $0x8d4] ss:$12 sps:$4 sm:$0xff]  }
 0x19f   :  { %4347 = vmatprep.subr.bf16.mxu0 %v18553_v13  ;;  %4372 = vmatprep.subr.bf16.mxu1 %v18556_v62  ;;  %v18569_v13 = vld [vmem:[%s27413_s7 + $0x888] ss:$12 sps:$4 sm:$0xff]  }
 0x1a0   :  { %v18572_v62 = vld [vmem:[%s27413_s7 + $0x948] ss:$12 sps:$4 sm:$0xff]   ;;  %20745 = vrcp.f32 %v1151_v9  ;;  %v15994_v9 = vmul.f32 -1.442695, %v22005_v18 }
 0x1a1   :  { %4323 = vmatmul.mubr.bf16.vlgmr.msra.gmra.mrb[16].mxu1 %v2314_v55 }
 0x1a2   :  { %4348 = vmatpush1.bf16.msra.mxu0 %v18551_v22  ;;  %4373 = vmatpush1.bf16.msra.mxu1 %v18554_v26  ;;  %v18577_v22 = vld [vmem:[%s27413_s7 + $0x8a4] ss:$12 sps:$4 sm:$0xff]   ;;  %20747 = vpow2.f32 %v15994_v9 }
 0x1a3   :  { %4349 = vmatprep.subr.bf16.mxu0 %v18559_v58  ;;  %4374 = vmatprep.subr.bf16.mxu1 %v18562_v34  ;;  %v18580_v26 = vld [vmem:[%s27413_s7 + $0x964] ss:$12 sps:$4 sm:$0xff]   ;;  %v18575_v58 = vld [vmem:[%s27413_s7 + $0x8a0] ss:$12 sps:$4 sm:$0xff]  }
 0x1a4   :  { %4404 = vmatprep.mubr.bf16.mxu1 %v2319_v38  ;;  %v18578_v34 = vld [vmem:[%s27413_s7 + $0x960] ss:$12 sps:$4 sm:$0xff]   ;;  %v18612_v9 = vld [vmem:[%s27413_s7 + $0xf8] ss:$12 sps:$4 sm:$0xff]  }
 0x1a6   :  { %4350 = vmatpush1.bf16.msra.mxu0 %v18557_v15  ;;  %4375 = vmatpush1.bf16.msra.mxu1 %v18560_v41  ;;  %v18583_v15 = vld [vmem:[%s27413_s7 + $0x8bc] ss:$12 sps:$4 sm:$0xff]  }
 0x1a7   :  { %4351 = vmatprep.subr.bf16.mxu0 %v18565_v44  ;;  %4376 = vmatprep.subr.bf16.mxu1 %v18568_v46  ;;  %v18586_v41 = vld [vmem:[%s27413_s7 + $0x97c] ss:$12 sps:$4 sm:$0xff]   ;;  %v18581_v44 = vld [vmem:[%s27413_s7 + $0x8b8] ss:$12 sps:$4 sm:$0xff]  }
 0x1a8   :  { %v18584_v46 = vld [vmem:[%s27413_s7 + $0x978] ss:$12 sps:$4 sm:$0xff]  }
 0x1aa   :  { %4352 = vmatpush1.bf16.msra.mxu0 %v18563_v40  ;;  %4377 = vmatpush1.bf16.msra.mxu1 %v18566_v51  ;;  %v18592_v40 = vld [vmem:[%s27413_s7 + $0x994] ss:$12 sps:$4 sm:$0xff]   ;;  %v20746_v51 = vpop.eup %20745 }
 0x1ab   :  { %4353 = vmatprep.subr.bf16.mxu0 %v18571_v52  ;;  %4378 = vmatprep.subr.bf16.mxu1 %v18574_v8  ;;  %v18587_v52 = vld [vmem:[%s27413_s7 + $0x8d0] ss:$12 sps:$4 sm:$0xff]  }
 0x1ac   :  { %v18590_v8 = vld [vmem:[%s27413_s7 + $0x990] ss:$12 sps:$4 sm:$0xff]  }
 0x1ae   :  { %4354 = vmatpush1.bf16.msra.mxu0 %v18569_v13  ;;  %4379 = vmatpush1.bf16.msra.mxu1 %v18572_v62  ;;  %v18595_v13 = vld [vmem:[%s27413_s7 + $0x8ec] ss:$12 sps:$4 sm:$0xff]  }
 0x1af   :  { %4355 = vmatprep.subr.bf16.mxu0 %v18577_v22  ;;  %4380 = vmatprep.subr.bf16.mxu1 %v18580_v26  ;;  %v18598_v62 = vld [vmem:[%s27413_s7 + $0x9ac] ss:$12 sps:$4 sm:$0xff]   ;;  %v22222_v22 = vmul.f32 %v20746_v51, %v21689_v5  ;;  %v18593_v26 = vld [vmem:[%s27413_s7 + $0x8e8] ss:$12 sps:$4 sm:$0xff]   ;;  %v18601_v5 = vld [vmem:[%s27413_s7 + $0x9c4] ss:$12 sps:$4 sm:$0xff]  }
 0x1b0   :  { %v18604_v51 = vld [vmem:[%s27413_s7 + $0x9d8] ss:$12 sps:$4 sm:$0xff]  }
 0x1b2   :  { %4356 = vmatpush1.bf16.msra.mxu0 %v18575_v58  ;;  %4381 = vmatpush1.bf16.msra.mxu1 %v18578_v34  ;;  %v18596_v58 = vld [vmem:[%s27413_s7 + $0x9a8] ss:$12 sps:$4 sm:$0xff]   ;;  %v22232_v34 = vpack.c.bf16 %v22222_v22, %v22222_v22 }
 0x1b3   :  { %4357 = vmatprep.subr.bf16.mxu0 %v18583_v15  ;;  %4382 = vmatprep.subr.bf16.mxu1 %v18586_v41  ;;  %v18602_v15 = vld [vmem:[%s27413_s7 + $0xc8] ss:$12 sps:$4 sm:$0xff]   ;;  %v18599_v41 = vld [vmem:[%s27413_s7 + $0x9c0] ss:$12 sps:$4 sm:$0xff]  }
 0x1b6   :  { %4358 = vmatpush1.bf16.msra.mxu0 %v18581_v44  ;;  %4383 = vmatpush1.bf16.msra.mxu1 %v18584_v46  ;;  %v18603_v44 = vld [vmem:[%s27413_s7 + $0x8] ss:$12 sps:$4 sm:$0xff]   ;;  %v2316_v46 = vrot.slane %v22232_v34, 1 }
 0x1b7   :  { %4359 = vmatprep.subr.bf16.mxu0 %v18589_v48  ;;  %4384 = vmatprep.subr.bf16.mxu1 %v18592_v40  ;;  %v18606_v48 = vld [vmem:[%s27413_s7 + $0x9dc] ss:$12 sps:$4 sm:$0xff]   ;;  %v18607_v40 = vld [vmem:[%s27413_s7 + $0xe0] ss:$12 sps:$4 sm:$0xff]  }
 0x1ba   :  { %4360 = vmatpush1.bf16.msra.mxu0 %v18587_v52  ;;  %4385 = vmatpush1.bf16.msra.mxu1 %v18590_v8  ;;  %v18608_v52 = vld [vmem:[%s27413_s7 + $0x20] ss:$12 sps:$4 sm:$0xff]  }
 0x1bb   :  { %4361 = vmatprep.subr.bf16.mxu0 %v18595_v13  ;;  %4386 = vmatprep.subr.bf16.mxu1 %v18598_v62  ;;  %v18611_v8 = vld [vmem:[%s27413_s7 + $0x9f4] ss:$12 sps:$4 sm:$0xff]   ;;  %v20748_v13 = vpop.eup %20747  ;;  %v18609_v62 = vld [vmem:[%s27413_s7 + $0x9f0] ss:$12 sps:$4 sm:$0xff]  }
 0x1be   :  { %4362 = vmatpush1.bf16.msra.mxu0 %v18593_v26  ;;  %4387 = vmatpush1.bf16.msra.mxu1 %v18596_v58  ;;  %v18616_v26 = vld [vmem:[%s27413_s7 + $0xa0c] ss:$12 sps:$4 sm:$0xff]   ;;  %v18617_v58 = vld [vmem:[%s27413_s7 + $0x110] ss:$12 sps:$4 sm:$0xff]  }
 0x1bf   :  { %4388 = vmatprep.subr.bf16.mxu1 %v18601_v5  ;;  %17724 = vmatprep.subr.bf16.mxu0 %v18602_v15  ;;  %v1153_v5 = vadd.f32 1.0, %v20748_v13  ;;  %v18614_v15 = vld [vmem:[%s27413_s7 + $0xa08] ss:$12 sps:$4 sm:$0xff]   ;;  %v18628_v13 = vld [vmem:[%s27413_s7 + $0x80] ss:$12 sps:$4 sm:$0xff]  }
 0x1c1   :  { %4364 = vmatmul.mubr.bf16.vlgmr.msra.gmra.mrb[28].mxu0 %v2316_v46  ;;  %20749 = vrcp.f32 %v1153_v5  ;;  %v18633_v5 = vld [vmem:[%s27413_s7 + $0x98] ss:$12 sps:$4 sm:$0xff]  }
 0x1c2   :  { %4389 = vmatpush1.bf16.msra.mxu1 %v18599_v41  ;;  %17725 = vmatpush3.bf16.msra.mxu0 %v18603_v44  ;;  %v18618_v41 = vld [vmem:[%s27413_s7 + $0x50] ss:$12 sps:$4 sm:$0xff]  }
 0x1c3   :  { %4445 = vmatprep.mubr.bf16.mxu0 %v2307_v36  ;;  %4390 = vmatprep.subr.bf16.mxu1 %v18606_v48  ;;  %v18613_v36 = vld [vmem:[%s27413_s7 + $0x38] ss:$12 sps:$4 sm:$0xff]   ;;  %v18622_v48 = vld [vmem:[%s27413_s7 + $0x128] ss:$12 sps:$4 sm:$0xff]  }
 0x1c4   :  { %17726 = vmatprep.subr.bf16.mxu0 %v18607_v40  ;;  %v18621_v44 = vld [vmem:[%s27413_s7 + $0xa24] ss:$12 sps:$4 sm:$0xff]   ;;  %v18619_v40 = vld [vmem:[%s27413_s7 + $0xa20] ss:$12 sps:$4 sm:$0xff]  }
 0x1c6   :  { %4391 = vmatpush1.bf16.msra.mxu1 %v18604_v51  ;;  %17727 = vmatpush3.bf16.msra.mxu0 %v18608_v52  ;;  %v18623_v51 = vld [vmem:[%s27413_s7 + $0x68] ss:$12 sps:$4 sm:$0xff]  }
 0x1c7   :  { %4392 = vmatprep.subr.bf16.mxu1 %v18611_v8  ;;  %17728 = vmatprep.subr.bf16.mxu0 %v18612_v9  ;;  %v18626_v52 = vld [vmem:[%s27413_s7 + $0xa3c] ss:$12 sps:$4 sm:$0xff]   ;;  %v18627_v8 = vld [vmem:[%s27413_s7 + $0x140] ss:$12 sps:$4 sm:$0xff]   ;;  %v18624_v9 = vld [vmem:[%s27413_s7 + $0xa38] ss:$12 sps:$4 sm:$0xff]  }
 0x1ca   :  { %4393 = vmatpush1.bf16.msra.mxu1 %v18609_v62  ;;  %17729 = vmatpush3.bf16.msra.mxu0 %v18613_v36  ;;  %v18631_v62 = vld [vmem:[%s27413_s7 + $0xa54] ss:$12 sps:$4 sm:$0xff]   ;;  %v18632_v36 = vld [vmem:[%s27413_s7 + $0x158] ss:$12 sps:$4 sm:$0xff]  }
 0x1cb   :  { %4394 = vmatprep.subr.bf16.mxu1 %v18616_v26  ;;  %17730 = vmatprep.subr.bf16.mxu0 %v18617_v58  ;;  %v20750_v26 = vpop.eup %20749  ;;  %v18629_v58 = vld [vmem:[%s27413_s7 + $0xa50] ss:$12 sps:$4 sm:$0xff]  }
 0x1ce   :  { %4395 = vmatpush1.bf16.msra.mxu1 %v18614_v15  ;;  %17731 = vmatpush3.bf16.msra.mxu0 %v18618_v41  ;;  %v18636_v15 = vld [vmem:[%s27413_s7 + $0xa6c] ss:$12 sps:$4 sm:$0xff]   ;;  %v18637_v41 = vld [vmem:[%s27413_s7 + $0x170] ss:$12 sps:$4 sm:$0xff]  }
 0x1cf   :  { %4396 = vmatprep.subr.bf16.mxu1 %v18621_v44  ;;  %17732 = vmatprep.subr.bf16.mxu0 %v18622_v48  ;;  %v18634_v44 = vld [vmem:[%s27413_s7 + $0xa68] ss:$12 sps:$4 sm:$0xff]   ;;  %v18638_v48 = vld [vmem:[%s27413_s7 + $0xb0] ss:$12 sps:$4 sm:$0xff]  }
 0x1d2   :  { %4397 = vmatpush1.bf16.msra.mxu1 %v18619_v40  ;;  %17733 = vmatpush3.bf16.msra.mxu0 %v18623_v51  ;;  %v22336_v40 = vmul.f32 %v20750_v26, %v22005_v18  ;;  %v18641_v18 = vld [vmem:[%s27413_s7 + $0x188] ss:$12 sps:$4 sm:$0xff]   ;;  %v18645_v26 = vld [vmem:[%s27413_s7 + $0x1a0] ss:$12 sps:$4 sm:$0xff]  }
 0x1d3   :  { %4398 = vmatprep.subr.bf16.mxu1 %v18626_v52  ;;  %17734 = vmatprep.subr.bf16.mxu0 %v18627_v8  ;;  %v18639_v52 = vld [vmem:[%s27413_s7 + $0x248] ss:$12 sps:$4 sm:$0xff]  }
 0x1d4   :  { %27418 = vst [vmem:[#allocation8_spill] sm:$0xff] %v22336_v40  ;;  %v22340_v51 = vpack.c.bf16 %v22336_v40, %v22336_v40  ;;  %v18640_v8 = vld [vmem:[%s27413_s7 + $0x3c8] ss:$12 sps:$4 sm:$0xff]  }
 0x1d6   :  { %4399 = vmatpush1.bf16.msra.mxu1 %v18624_v9  ;;  %17735 = vmatpush3.bf16.msra.mxu0 %v18628_v13  ;;  %v18642_v9 = vld [vmem:[%s27413_s7 + $0x308] ss:$12 sps:$4 sm:$0xff]   ;;  %v2318_v13 = vrot.slane %v22340_v51, 1 }
 0x1d7   :  { %4400 = vmatprep.subr.bf16.mxu1 %v18631_v62  ;;  %17736 = vmatprep.subr.bf16.mxu0 %v18632_v36  ;;  %v18643_v62 = vld [vmem:[%s27413_s7 + $0x260] ss:$12 sps:$4 sm:$0xff]  }
 0x1d8   :  { %v18644_v36 = vld [vmem:[%s27413_s7 + $0x3e0] ss:$12 sps:$4 sm:$0xff]  }
 0x1da   :  { %4401 = vmatpush1.bf16.msra.mxu1 %v18629_v58  ;;  %17737 = vmatpush3.bf16.msra.mxu0 %v18633_v5  ;;  %v18646_v58 = vld [vmem:[%s27413_s7 + $0x320] ss:$12 sps:$4 sm:$0xff]   ;;  %v18647_v5 = vld [vmem:[%s27413_s7 + $0x278] ss:$12 sps:$4 sm:$0xff]  }
 0x1db   :  { %4402 = vmatprep.subr.bf16.mxu1 %v18636_v15  ;;  %17738 = vmatprep.subr.bf16.mxu0 %v18637_v41  ;;  %v18651_v15 = vld [vmem:[%s27413_s7 + $0x290] ss:$12 sps:$4 sm:$0xff]  }
 0x1dc   :  { %v18652_v41 = vld [vmem:[%s27413_s7 + $0x410] ss:$12 sps:$4 sm:$0xff]  }
 0x1de   :  { %4403 = vmatpush1.bf16.msra.mxu1 %v18634_v44  ;;  %17739 = vmatpush3.bf16.msra.mxu0 %v18638_v48  ;;  %v18653_v44 = vld [vmem:[%s27413_s7 + $0x1d0] ss:$12 sps:$4 sm:$0xff]  }
 0x1df   :  { %17746 = vmatprep.subr.bf16.mxu0 %v18639_v52  ;;  %17768 = vmatprep.subr.bf16.mxu1 %v18640_v8  ;;  %v18654_v48 = vld [vmem:[%s27413_s7 + $0x350] ss:$12 sps:$4 sm:$0xff]   ;;  %v18655_v52 = vld [vmem:[%s27413_s7 + $0x2a8] ss:$12 sps:$4 sm:$0xff]  }
 0x1e0   :  { %v18656_v8 = vld [vmem:[%s27413_s7 + $0x428] ss:$12 sps:$4 sm:$0xff]  }
 0x1e1   :  { %4405 = vmatmul.mubr.bf16.vlgmr.msra.gmra.mrb[20].mxu1 %v2318_v13  ;;  %4446 = vmatmul.mubr.bf16.vlgmr.msra.gmra.mrb[32].mxu0 %v2306_v39  ;;  %v18648_v39 = vld [vmem:[%s27413_s7 + $0x3f8] ss:$12 sps:$4 sm:$0xff]  }
 0x1e2   :  { %17747 = vmatpush3.bf16.msra.mxu0 %v18641_v18  ;;  %4485 = vmatprep.mubr.bf16.mxu0 %v2309_v37  ;;  %v18649_v37 = vld [vmem:[%s27413_s7 + $0x1b8] ss:$12 sps:$4 sm:$0xff]   ;;  %v18657_v18 = vld [vmem:[%s27413_s7 + $0x1e8] ss:$12 sps:$4 sm:$0xff]  }
 0x1e3   :  { %17769 = vmatpush3.bf16.msra.mxu1 %v18642_v9  ;;  %4525 = vmatprep.mubr.bf16.mxu1 %v2311_v7  ;;  %v18650_v7 = vld [vmem:[%s27413_s7 + $0x338] ss:$12 sps:$4 sm:$0xff]   ;;  %v18658_v9 = vld [vmem:[%s27413_s7 + $0x368] ss:$12 sps:$4 sm:$0xff]  }
 0x1e4   :  { %17748 = vmatprep.subr.bf16.mxu0 %v18643_v62  ;;  %17770 = vmatprep.subr.bf16.mxu1 %v18644_v36  ;;  %v18659_v62 = vld [vmem:[%s27413_s7 + $0x2c0] ss:$12 sps:$4 sm:$0xff]  }
 0x1e5   :  { %v18660_v36 = vld [vmem:[%s27413_s7 + $0x440] ss:$12 sps:$4 sm:$0xff]  }
 0x1e6   :  { %17749 = vmatpush3.bf16.msra.mxu0 %v18645_v26  ;;  %v18661_v26 = vld [vmem:[%s27413_s7 + $0x200] ss:$12 sps:$4 sm:$0xff]  }
 0x1e7   :  { %17771 = vmatpush3.bf16.msra.mxu1 %v18646_v58  ;;  %17750 = vmatprep.subr.bf16.mxu0 %v18647_v5  ;;  %v18662_v58 = vld [vmem:[%s27413_s7 + $0x380] ss:$12 sps:$4 sm:$0xff]   ;;  %v18663_v5 = vld [vmem:[%s27413_s7 + $0x2d8] ss:$12 sps:$4 sm:$0xff]  }
 0x1e8   :  { %17772 = vmatprep.subr.bf16.mxu1 %v18648_v39  ;;  %v18664_v39 = vld [vmem:[%s27413_s7 + $0x458] ss:$12 sps:$4 sm:$0xff]  }
 0x1ea   :  { %17751 = vmatpush3.bf16.msra.mxu0 %v18649_v37 }
 0x1eb   :  { %17773 = vmatpush3.bf16.msra.mxu1 %v18650_v7  ;;  %17752 = vmatprep.subr.bf16.mxu0 %v18651_v15 }
 0x1ec   :  { %17774 = vmatprep.subr.bf16.mxu1 %v18652_v41  ;;  %v18665_v41 = vld [vmem:[%s27413_s7 + $0x218] ss:$12 sps:$4 sm:$0xff]  }
 0x1ee   :  { %17753 = vmatpush3.bf16.msra.mxu0 %v18653_v44 }
 0x1ef   :  { %17775 = vmatpush3.bf16.msra.mxu1 %v18654_v48  ;;  %17754 = vmatprep.subr.bf16.mxu0 %v18655_v52  ;;  %v18666_v48 = vld [vmem:[%s27413_s7 + $0x398] ss:$12 sps:$4 sm:$0xff]   ;;  %v18667_v52 = vld [vmem:[%s27413_s7 + $0x2f0] ss:$12 sps:$4 sm:$0xff]  }
 0x1f0   :  { %17776 = vmatprep.subr.bf16.mxu1 %v18656_v8  ;;  %v18668_v8 = vld [vmem:[%s27413_s7 + $0x470] ss:$12 sps:$4 sm:$0xff]  }
 0x1f2   :  { %17755 = vmatpush3.bf16.msra.mxu0 %v18657_v18  ;;  %v18669_v18 = vld [vmem:[%s27413_s7 + $0x230] ss:$12 sps:$4 sm:$0xff]  }
 0x1f3   :  { %17777 = vmatpush3.bf16.msra.mxu1 %v18658_v9  ;;  %17756 = vmatprep.subr.bf16.mxu0 %v18659_v62  ;;  %v18670_v9 = vld [vmem:[%s27413_s7 + $0x3b0] ss:$12 sps:$4 sm:$0xff]   ;;  %v18671_v62 = vld [vmem:[%s27413_s7 + $0x548] ss:$12 sps:$4 sm:$0xff]  }
 0x1f4   :  { %v22429_v37 = vpop.f32.mrb[8].mxu1  ;;  %17778 = vmatprep.subr.bf16.mxu1 %v18660_v36  ;;  %v18672_v36 = vld [vmem:[%s27413_s7 + $0x6c8] ss:$12 sps:$4 sm:$0xff]  }
 0x1f5   :  { %v22431_v7 = vpop.f32.mrb[9].mxu1 }
 0x1f6   :  { %17757 = vmatpush3.bf16.msra.mxu0 %v18661_v26  ;;  %v4164_v15 = vpop.f32.mrb[10].mxu1  ;;  %v18673_v26 = vld [vmem:[%s27413_s7 + $0x488] ss:$12 sps:$4 sm:$0xff]  }
 0x1f7   :  { %17779 = vmatpush3.bf16.msra.mxu1 %v18662_v58  ;;  %v4165_v44 = vpop.f32.mrb[11].mxu1  ;;  %17758 = vmatprep.subr.bf16.mxu0 %v18663_v5  ;;  %v18674_v58 = vld [vmem:[%s27413_s7 + $0x608] ss:$12 sps:$4 sm:$0xff]   ;;  %v18675_v5 = vld [vmem:[%s27413_s7 + $0x560] ss:$12 sps:$4 sm:$0xff]  }
 0x1f8   :  { %17780 = vmatprep.subr.bf16.mxu1 %v18664_v39  ;;  %v18676_v39 = vld [vmem:[%s27413_s7 + $0x6e0] ss:$12 sps:$4 sm:$0xff]   ;;  %v18681_v44 = vld [vmem:[%s27413_s7 + $0x4b8] ss:$12 sps:$4 sm:$0xff]  }
 0x1f9   :  { %v18677_v15 = vld [vmem:[%s27413_s7 + $0x4a0] ss:$12 sps:$4 sm:$0xff]  }
 0x1fa   :  { %17759 = vmatpush3.bf16.msra.mxu0 %v18665_v41  ;;  %v18678_v41 = vld [vmem:[%s27413_s7 + $0x620] ss:$12 sps:$4 sm:$0xff]  }
 0x1fb   :  { %17781 = vmatpush3.bf16.msra.mxu1 %v18666_v48  ;;  %17760 = vmatprep.subr.bf16.mxu0 %v18667_v52  ;;  %v18684_v48 = vld [vmem:[%s27413_s7 + $0x710] ss:$12 sps:$4 sm:$0xff]  }
 0x1fc   :  { %17782 = vmatprep.subr.bf16.mxu1 %v18668_v8  ;;  %v18685_v52 = vld [vmem:[%s27413_s7 + $0x4d0] ss:$12 sps:$4 sm:$0xff]  }
 0x1fd   :  { %v18686_v8 = vld [vmem:[%s27413_s7 + $0x650] ss:$12 sps:$4 sm:$0xff]  }
 0x1fe   :  { %17761 = vmatpush3.bf16.msra.mxu0 %v18669_v18  ;;  %v18687_v18 = vld [vmem:[%s27413_s7 + $0x5a8] ss:$12 sps:$4 sm:$0xff]  }
 0x1ff   :  { %17783 = vmatpush3.bf16.msra.mxu1 %v18670_v9  ;;  %17790 = vmatprep.subr.bf16.mxu0 %v18671_v62  ;;  %v18688_v9 = vld [vmem:[%s27413_s7 + $0x728] ss:$12 sps:$4 sm:$0xff]  }
 0x200   :  { %17812 = vmatprep.subr.bf16.mxu1 %v18672_v36  ;;  %v18689_v62 = vld [vmem:[%s27413_s7 + $0x4e8] ss:$12 sps:$4 sm:$0xff]  }
 0x201   :  { %4486 = vmatmul.mubr.bf16.vlgmr.msra.gmra.mrb[36].mxu0 %v2308_v43  ;;  %v18679_v43 = vld [vmem:[%s27413_s7 + $0x578] ss:$12 sps:$4 sm:$0xff]   ;;  %v18690_v36 = vld [vmem:[%s27413_s7 + $0x668] ss:$12 sps:$4 sm:$0xff]  }
 0x202   :  { %4526 = vmatmul.mubr.bf16.vlgmr.msra.gmra.mrb[24].mxu1 %v2310_v63  ;;  %17791 = vmatpush3.bf16.msra.mxu0 %v18673_v26  ;;  %v18680_v63 = vld [vmem:[%s27413_s7 + $0x6f8] ss:$12 sps:$4 sm:$0xff]   ;;  %v18691_v26 = vld [vmem:[%s27413_s7 + $0x5c0] ss:$12 sps:$4 sm:$0xff]  }
 0x203   :  { %4565 = vmatprep.mubr.bf16.mxu0 %v2313_v47  ;;  %17813 = vmatpush3.bf16.msra.mxu1 %v18674_v58  ;;  %v18682_v47 = vld [vmem:[%s27413_s7 + $0x638] ss:$12 sps:$4 sm:$0xff]   ;;  %v18692_v58 = vld [vmem:[%s27413_s7 + $0x740] ss:$12 sps:$4 sm:$0xff]  }
 0x204   :  { %4605 = vmatprep.mubr.bf16.mxu1 %v2315_v10  ;;  %17792 = vmatprep.subr.bf16.mxu0 %v18675_v5  ;;  %v18683_v10 = vld [vmem:[%s27413_s7 + $0x590] ss:$12 sps:$4 sm:$0xff]   ;;  %v18693_v5 = vld [vmem:[%s27413_s7 + $0x500] ss:$12 sps:$4 sm:$0xff]  }
 0x205   :  { %17814 = vmatprep.subr.bf16.mxu1 %v18676_v39  ;;  %v18694_v39 = vld [vmem:[%s27413_s7 + $0x680] ss:$12 sps:$4 sm:$0xff]  }
 0x206   :  { %17793 = vmatpush3.bf16.msra.mxu0 %v18677_v15  ;;  %v18695_v15 = vld [vmem:[%s27413_s7 + $0x5d8] ss:$12 sps:$4 sm:$0xff]  }
 0x207   :  { %17815 = vmatpush3.bf16.msra.mxu1 %v18678_v41  ;;  %17794 = vmatprep.subr.bf16.mxu0 %v18679_v43  ;;  %v18696_v41 = vld [vmem:[%s27413_s7 + $0x758] ss:$12 sps:$4 sm:$0xff]  }
 0x208   :  { %17816 = vmatprep.subr.bf16.mxu1 %v18680_v63 }
 0x20a   :  { %17795 = vmatpush3.bf16.msra.mxu0 %v18681_v44 }
 0x20b   :  { %17817 = vmatpush3.bf16.msra.mxu1 %v18682_v47  ;;  %17796 = vmatprep.subr.bf16.mxu0 %v18683_v10 }
 0x20c   :  { %17818 = vmatprep.subr.bf16.mxu1 %v18684_v48  ;;  %v18697_v48 = vld [vmem:[%s27413_s7 + $0x518] ss:$12 sps:$4 sm:$0xff]  }
 0x20e   :  { %17797 = vmatpush3.bf16.msra.mxu0 %v18685_v52 }
 0x20f   :  { %17819 = vmatpush3.bf16.msra.mxu1 %v18686_v8  ;;  %17798 = vmatprep.subr.bf16.mxu0 %v18687_v18  ;;  %v18698_v8 = vld [vmem:[%s27413_s7 + $0x698] ss:$12 sps:$4 sm:$0xff]   ;;  %v18701_v18 = vld [vmem:[%s27413_s7 + $0x530] ss:$12 sps:$4 sm:$0xff]  }
 0x210   :  { %17820 = vmatprep.subr.bf16.mxu1 %v18688_v9  ;;  %v18702_v9 = vld [vmem:[%s27413_s7 + $0x6b0] ss:$12 sps:$4 sm:$0xff]  }
 0x212   :  { %17799 = vmatpush3.bf16.msra.mxu0 %v18689_v62  ;;  %v18703_v62 = vld [vmem:[%s27413_s7 + $0x848] ss:$12 sps:$4 sm:$0xff]  }
 0x213   :  { %17821 = vmatpush3.bf16.msra.mxu1 %v18690_v36  ;;  %17800 = vmatprep.subr.bf16.mxu0 %v18691_v26  ;;  %v18704_v36 = vld [vmem:[%s27413_s7 + $0x9c8] ss:$12 sps:$4 sm:$0xff]  }
 0x214   :  { %v4201_v43 = vpop.f32.mrb[20].mxu0  ;;  %17822 = vmatprep.subr.bf16.mxu1 %v18692_v58  ;;  %v18705_v26 = vld [vmem:[%s27413_s7 + $0x788] ss:$12 sps:$4 sm:$0xff]  }
 0x215   :  { %v22538_v63 = vadd.f32 %v4201_v43, %v22429_v37  ;;  %v4203_v44 = vpop.f32.mrb[21].mxu0  ;;  %v18699_v37 = vld [vmem:[%s27413_s7 + $0x5f0] ss:$12 sps:$4 sm:$0xff]   ;;  %v18706_v58 = vld [vmem:[%s27413_s7 + $0x908] ss:$12 sps:$4 sm:$0xff]  }
 0x216   :  { %v22541_v47 = vadd.f32 %v4203_v44, %v22431_v7  ;;  %17801 = vmatpush3.bf16.msra.mxu0 %v18693_v5  ;;  %v4205_v10 = vpop.f32.mrb[22].mxu0  ;;  %v18700_v7 = vld [vmem:[%s27413_s7 + $0x770] ss:$12 sps:$4 sm:$0xff]   ;;  %v18707_v5 = vld [vmem:[%s27413_s7 + $0x860] ss:$12 sps:$4 sm:$0xff]  }
 0x217   :  { %17823 = vmatpush3.bf16.msra.mxu1 %v18694_v39  ;;  %v4206_v52 = vpop.f32.mrb[23].mxu0  ;;  %17802 = vmatprep.subr.bf16.mxu0 %v18695_v15  ;;  %v18708_v39 = vld [vmem:[%s27413_s7 + $0x9e0] ss:$12 sps:$4 sm:$0xff]   ;;  %v18711_v43 = vld [vmem:[%s27413_s7 + $0x878] ss:$12 sps:$4 sm:$0xff]  }
 0x218   :  { %17824 = vmatprep.subr.bf16.mxu1 %v18696_v41  ;;  %v18709_v15 = vld [vmem:[%s27413_s7 + $0x7a0] ss:$12 sps:$4 sm:$0xff]   ;;  %v18715_v44 = vld [vmem:[%s27413_s7 + $0x890] ss:$12 sps:$4 sm:$0xff]   ;;  %v18719_v52 = vld [vmem:[%s27413_s7 + $0x8a8] ss:$12 sps:$4 sm:$0xff]  }
 0x219   :  { %v18710_v41 = vld [vmem:[%s27413_s7 + $0x920] ss:$12 sps:$4 sm:$0xff]   ;;  %v18717_v10 = vld [vmem:[%s27413_s7 + $0x7d0] ss:$12 sps:$4 sm:$0xff]  }
 0x21a   :  { %17803 = vmatpush3.bf16.msra.mxu0 %v18697_v48  ;;  %v18718_v48 = vld [vmem:[%s27413_s7 + $0x950] ss:$12 sps:$4 sm:$0xff]  }
 0x21b   :  { %17825 = vmatpush3.bf16.msra.mxu1 %v18698_v8  ;;  %17804 = vmatprep.subr.bf16.mxu0 %v18699_v37  ;;  %v18720_v8 = vld [vmem:[%s27413_s7 + $0xa28] ss:$12 sps:$4 sm:$0xff]  }
 0x21c   :  { %17826 = vmatprep.subr.bf16.mxu1 %v18700_v7  ;;  %v18721_v37 = vld [vmem:[%s27413_s7 + $0x7e8] ss:$12 sps:$4 sm:$0xff]  }
 0x21d   :  { %v18722_v7 = vld [vmem:[%s27413_s7 + $0x968] ss:$12 sps:$4 sm:$0xff]  }
 0x21e   :  { %17805 = vmatpush3.bf16.msra.mxu0 %v18701_v18  ;;  %v18723_v18 = vld [vmem:[%s27413_s7 + $0x8c0] ss:$12 sps:$4 sm:$0xff]  }
 0x21f   :  { %17827 = vmatpush3.bf16.msra.mxu1 %v18702_v9  ;;  %17834 = vmatprep.subr.bf16.mxu0 %v18703_v62  ;;  %v18724_v9 = vld [vmem:[%s27413_s7 + $0xa40] ss:$12 sps:$4 sm:$0xff]  }
 0x220   :  { %17856 = vmatprep.subr.bf16.mxu1 %v18704_v36  ;;  %v18725_v62 = vld [vmem:[%s27413_s7 + $0x800] ss:$12 sps:$4 sm:$0xff]  }
 0x221   :  { %4566 = vmatmul.mubr.bf16.vlgmr.msra.gmra.mrb[40].mxu0 %v2312_v19  ;;  %v18712_v19 = vld [vmem:[%s27413_s7 + $0x9f8] ss:$12 sps:$4 sm:$0xff]   ;;  %v18726_v36 = vld [vmem:[%s27413_s7 + $0x980] ss:$12 sps:$4 sm:$0xff]  }
 0x222   :  { %4606 = vmatmul.mubr.bf16.vlgmr.msra.gmra.mrb[28].mxu1 %v2314_v55  ;;  %17835 = vmatpush3.bf16.msra.mxu0 %v18705_v26  ;;  %v18714_v55 = vld [vmem:[%s27413_s7 + $0x938] ss:$12 sps:$4 sm:$0xff]  }
 0x223   :  { %4645 = vmatprep.mubr.bf16.mxu0 %v2317_v30  ;;  %17857 = vmatpush3.bf16.msra.mxu1 %v18706_v58  ;;  %v18713_v30 = vld [vmem:[%s27413_s7 + $0x7b8] ss:$12 sps:$4 sm:$0xff]  }
 0x224   :  { %4685 = vmatprep.mubr.bf16.mxu1 %v2319_v38  ;;  %17836 = vmatprep.subr.bf16.mxu0 %v18707_v5  ;;  %v18716_v38 = vld [vmem:[%s27413_s7 + $0xa10] ss:$12 sps:$4 sm:$0xff]   ;;  %v18727_v26 = vld [vmem:[%s27413_s7 + $0x8d8] ss:$12 sps:$4 sm:$0xff]  }
 0x225   :  { %17858 = vmatprep.subr.bf16.mxu1 %v18708_v39  ;;  %v18728_v58 = vld [vmem:[%s27413_s7 + $0xa58] ss:$12 sps:$4 sm:$0xff]  }
 0x226   :  { %17837 = vmatpush3.bf16.msra.mxu0 %v18709_v15 }
 0x227   :  { %17859 = vmatpush3.bf16.msra.mxu1 %v18710_v41  ;;  %17838 = vmatprep.subr.bf16.mxu0 %v18711_v43 }
 0x228   :  { %17860 = vmatprep.subr.bf16.mxu1 %v18712_v19  ;;  %v18729_v19 = vld [vmem:[%s27413_s7 + $0x818] ss:$12 sps:$4 sm:$0xff]  }
 0x22a   :  { %17839 = vmatpush3.bf16.msra.mxu0 %v18713_v30 }
 0x22b   :  { %17861 = vmatpush3.bf16.msra.mxu1 %v18714_v55  ;;  %17840 = vmatprep.subr.bf16.mxu0 %v18715_v44  ;;  %v18730_v55 = vld [vmem:[%s27413_s7 + $0x998] ss:$12 sps:$4 sm:$0xff]   ;;  %v18733_v44 = vld [vmem:[%s27413_s7 + $0x830] ss:$12 sps:$4 sm:$0xff]  }
 0x22c   :  { %17862 = vmatprep.subr.bf16.mxu1 %v18716_v38  ;;  %v18734_v38 = vld [vmem:[%s27413_s7 + $0x9b0] ss:$12 sps:$4 sm:$0xff]  }
 0x22e   :  { %17841 = vmatpush3.bf16.msra.mxu0 %v18717_v10  ;;  %v18737_v10 = vld [vmem:[%s27377_s6 + $0x4] ss:$12 sps:$4 sm:$0xff]  }
 0x22f   :  { %17863 = vmatpush3.bf16.msra.mxu1 %v18718_v48  ;;  %17842 = vmatprep.subr.bf16.mxu0 %v18719_v52  ;;  %v18735_v48 = vld [vmem:[%s27377_s6] ss:$12 sps:$4 sm:$0xff]   ;;  %v18740_v52 = vld [vmem:[%s27377_s6 + $0x184] ss:$12 sps:$4 sm:$0xff]  }
 0x230   :  { %17864 = vmatprep.subr.bf16.mxu1 %v18720_v8  ;;  %v18738_v8 = vld [vmem:[%s27377_s6 + $0x180] ss:$12 sps:$4 sm:$0xff]  }
 0x232   :  { %17843 = vmatpush3.bf16.msra.mxu0 %v18721_v37  ;;  %v18743_v37 = vld [vmem:[%s27377_s6 + $0x1c] ss:$12 sps:$4 sm:$0xff]  }
 0x233   :  { %17865 = vmatpush3.bf16.msra.mxu1 %v18722_v7  ;;  %17844 = vmatprep.subr.bf16.mxu0 %v18723_v18  ;;  %v18741_v7 = vld [vmem:[%s27377_s6 + $0x18] ss:$12 sps:$4 sm:$0xff]   ;;  %v18746_v18 = vld [vmem:[%s27377_s6 + $0x19c] ss:$12 sps:$4 sm:$0xff]  }
 0x234   :  { %v4242_v5 = vpop.f32.mrb[12].mxu1  ;;  %17866 = vmatprep.subr.bf16.mxu1 %v18724_v9  ;;  %v18744_v9 = vld [vmem:[%s27377_s6 + $0x198] ss:$12 sps:$4 sm:$0xff]  }
 0x235   :  { %v22648_v39 = vadd.f32 %v4242_v5, %v22538_v63  ;;  %v4244_v15 = vpop.f32.mrb[13].mxu1  ;;  %v18731_v63 = vld [vmem:[%s27413_s7 + $0x8f0] ss:$12 sps:$4 sm:$0xff]   ;;  %v18758_v5 = vld [vmem:[%s27377_s6 + $0x1cc] ss:$12 sps:$4 sm:$0xff]  }
 0x236   :  { %v22651_v41 = vadd.f32 %v4244_v15, %v22541_v47  ;;  %17845 = vmatpush3.bf16.msra.mxu0 %v18725_v62  ;;  %v4246_v43 = vpop.f32.mrb[14].mxu1  ;;  %v18732_v47 = vld [vmem:[%s27413_s7 + $0xa70] ss:$12 sps:$4 sm:$0xff]   ;;  %v18752_v62 = vld [vmem:[%s27377_s6 + $0x1b4] ss:$12 sps:$4 sm:$0xff]  }
 0x237   :  { %17867 = vmatpush3.bf16.msra.mxu1 %v18726_v36  ;;  %v4247_v30 = vpop.f32.mrb[15].mxu1  ;;  %17846 = vmatprep.subr.bf16.mxu0 %v18727_v26  ;;  %v18750_v36 = vld [vmem:[%s27377_s6 + $0x1b0] ss:$12 sps:$4 sm:$0xff]   ;;  %v18755_v26 = vld [vmem:[%s27377_s6 + $0x4c] ss:$12 sps:$4 sm:$0xff]  }
 0x238   :  { %17868 = vmatprep.subr.bf16.mxu1 %v18728_v58  ;;  %v18753_v58 = vld [vmem:[%s27377_s6 + $0x48] ss:$12 sps:$4 sm:$0xff]   ;;  %v18761_v43 = vld [vmem:[%s27377_s6 + $0x64] ss:$12 sps:$4 sm:$0xff]  }
 0x239   :  { %v18756_v15 = vld [vmem:[%s27377_s6 + $0x1c8] ss:$12 sps:$4 sm:$0xff]   ;;  %v18764_v30 = vld [vmem:[%s27377_s6 + $0x1e4] ss:$12 sps:$4 sm:$0xff]  }
 0x23a   :  { %17847 = vmatpush3.bf16.msra.mxu0 %v18729_v19  ;;  %v18759_v19 = vld [vmem:[%s27377_s6 + $0x60] ss:$12 sps:$4 sm:$0xff]  }
 0x23b   :  { %17869 = vmatpush3.bf16.msra.mxu1 %v18730_v55  ;;  %17848 = vmatprep.subr.bf16.mxu0 %v18731_v63  ;;  %v18762_v55 = vld [vmem:[%s27377_s6 + $0x1e0] ss:$12 sps:$4 sm:$0xff]   ;;  %v18767_v63 = vld [vmem:[%s27377_s6 + $0x7c] ss:$12 sps:$4 sm:$0xff]  }
 0x23c   :  { %17870 = vmatprep.subr.bf16.mxu1 %v18732_v47  ;;  %v18770_v47 = vld [vmem:[%s27377_s6 + $0x1fc] ss:$12 sps:$4 sm:$0xff]  }
 0x23e   :  { %17849 = vmatpush3.bf16.msra.mxu0 %v18733_v44  ;;  %v18765_v44 = vld [vmem:[%s27377_s6 + $0x78] ss:$12 sps:$4 sm:$0xff]  }
 0x23f   :  { %17871 = vmatpush3.bf16.msra.mxu1 %v18734_v38  ;;  %6485 = vmatprep.subr.bf16.mxu0 %v18737_v10  ;;  %v18768_v38 = vld [vmem:[%s27377_s6 + $0x1f8] ss:$12 sps:$4 sm:$0xff]   ;;  %v18773_v10 = vld [vmem:[%s27377_s6 + $0x94] ss:$12 sps:$4 sm:$0xff]  }
 0x240   :  { %6526 = vmatprep.subr.bf16.mxu1 %v18740_v52 }
 0x241   :  { %4646 = vmatmul.mubr.bf16.vlgmr.msra.gmra.mrb[44].mxu0 %v2316_v46  ;;  %v18749_v46 = vld [vmem:[%s27377_s6 + $0x34] ss:$12 sps:$4 sm:$0xff]  }
 0x242   :  { %4686 = vmatmul.mubr.bf16.vlgmr.msra.gmra.mrb[32].mxu1 %v2318_v13  ;;  %6486 = vmatpush1.bf16.msra.mxu0 %v18735_v48  ;;  %v18747_v13 = vld [vmem:[%s27377_s6 + $0x30] ss:$12 sps:$4 sm:$0xff]   ;;  %v18776_v48 = vld [vmem:[%s27377_s6 + $0x214] ss:$12 sps:$4 sm:$0xff]  }
 0x243   :  { %6517 = vmatprep.mubr.bf16.mxu0 %v21629_v24  ;;  %6527 = vmatpush1.bf16.msra.mxu1 %v18738_v8 }
 0x244   :  { %6558 = vmatprep.mubr.bf16.mxu1 %v21719_v31  ;;  %6487 = vmatprep.subr.bf16.mxu0 %v18743_v37 }
 0x245   :  { %6528 = vmatprep.subr.bf16.mxu1 %v18746_v18  ;;  %v18774_v18 = vld [vmem:[%s27377_s6 + $0x210] ss:$12 sps:$4 sm:$0xff]  }
 0x246   :  { %6488 = vmatpush1.bf16.msra.mxu0 %v18741_v7  ;;  %v18771_v7 = vld [vmem:[%s27377_s6 + $0x90] ss:$12 sps:$4 sm:$0xff]  }
 0x247   :  { %6529 = vmatpush1.bf16.msra.mxu1 %v18744_v9  ;;  %6489 = vmatprep.subr.bf16.mxu0 %v18749_v46 }
 0x248   :  { %6530 = vmatprep.subr.bf16.mxu1 %v18752_v62  ;;  %v18779_v62 = vld [vmem:[%s27377_s6 + $0xac] ss:$12 sps:$4 sm:$0xff]  }
 0x24a   :  { %6490 = vmatpush1.bf16.msra.mxu0 %v18747_v13 }
 0x24b   :  { %6531 = vmatpush1.bf16.msra.mxu1 %v18750_v36  ;;  %6491 = vmatprep.subr.bf16.mxu0 %v18755_v26  ;;  %v18780_v36 = vld [vmem:[%s27377_s6 + $0x228] ss:$12 sps:$4 sm:$0xff]   ;;  %v18785_v26 = vld [vmem:[%s27377_s6 + $0xc4] ss:$12 sps:$4 sm:$0xff]  }
 0x24c   :  { %6532 = vmatprep.subr.bf16.mxu1 %v18758_v5  ;;  %v18788_v5 = vld [vmem:[%s27377_s6 + $0x244] ss:$12 sps:$4 sm:$0xff]  }
 0x24e   :  { %6492 = vmatpush1.bf16.msra.mxu0 %v18753_v58  ;;  %v18783_v58 = vld [vmem:[%s27377_s6 + $0xc0] ss:$12 sps:$4 sm:$0xff]  }
 0x24f   :  { %6533 = vmatpush1.bf16.msra.mxu1 %v18756_v15  ;;  %6493 = vmatprep.subr.bf16.mxu0 %v18761_v43  ;;  %v18786_v15 = vld [vmem:[%s27377_s6 + $0x240] ss:$12 sps:$4 sm:$0xff]   ;;  %v18791_v43 = vld [vmem:[%s27377_s6 + $0xdc] ss:$12 sps:$4 sm:$0xff]  }
 0x250   :  { %6534 = vmatprep.subr.bf16.mxu1 %v18764_v30  ;;  %v18794_v30 = vld [vmem:[%s27377_s6 + $0x25c] ss:$12 sps:$4 sm:$0xff]  }
 0x252   :  { %6494 = vmatpush1.bf16.msra.mxu0 %v18759_v19  ;;  %v18789_v19 = vld [vmem:[%s27377_s6 + $0xd8] ss:$12 sps:$4 sm:$0xff]  }
 0x253   :  { %6535 = vmatpush1.bf16.msra.mxu1 %v18762_v55  ;;  %6495 = vmatprep.subr.bf16.mxu0 %v18767_v63  ;;  %v18792_v55 = vld [vmem:[%s27377_s6 + $0x258] ss:$12 sps:$4 sm:$0xff]   ;;  %v18797_v63 = vld [vmem:[%s27377_s6 + $0xf4] ss:$12 sps:$4 sm:$0xff]  }
 0x254   :  { %v4283_v52 = vpop.f32.mrb[24].mxu0  ;;  %6536 = vmatprep.subr.bf16.mxu1 %v18770_v47  ;;  %v18795_v47 = vld [vmem:[%s27377_s6 + $0xf0] ss:$12 sps:$4 sm:$0xff]  }
 0x255   :  { %v22756_v8 = vadd.f32 %v4283_v52, %v22648_v39  ;;  %v4285_v37 = vpop.f32.mrb[25].mxu0  ;;  %v18782_v39 = vld [vmem:[%s27377_s6 + $0x22c] ss:$12 sps:$4 sm:$0xff]  }
 0x256   :  { %v22765_v9 = vadd.f32 %v4285_v37, %v22651_v41  ;;  %v4287_v46 = vpop.f32.mrb[26].mxu0  ;;  %6496 = vmatpush1.bf16.msra.mxu0 %v18765_v44  ;;  %v18777_v41 = vld [vmem:[%s27377_s6 + $0xa8] ss:$12 sps:$4 sm:$0xff]   ;;  %v18806_v52 = vld [vmem:[%s27377_s6 + $0x28c] ss:$12 sps:$4 sm:$0xff]  }
 0x257   :  { %6537 = vmatpush1.bf16.msra.mxu1 %v18768_v38  ;;  %v4288_v13 = vpop.f32.mrb[27].mxu0  ;;  %6497 = vmatprep.subr.bf16.mxu0 %v18773_v10  ;;  %v18800_v44 = vld [vmem:[%s27377_s6 + $0x274] ss:$12 sps:$4 sm:$0xff]   ;;  %v18798_v38 = vld [vmem:[%s27377_s6 + $0x270] ss:$12 sps:$4 sm:$0xff]  }
 0x258   :  { %6538 = vmatprep.subr.bf16.mxu1 %v18776_v48  ;;  %v18803_v10 = vld [vmem:[%s27377_s6 + $0x10c] ss:$12 sps:$4 sm:$0xff]   ;;  %v18801_v48 = vld [vmem:[%s27377_s6 + $0x108] ss:$12 sps:$4 sm:$0xff]   ;;  %v18812_v46 = vld [vmem:[%s27377_s6 + $0x2a4] ss:$12 sps:$4 sm:$0xff]  }
 0x259   :  { %v18804_v37 = vld [vmem:[%s27377_s6 + $0x288] ss:$12 sps:$4 sm:$0xff]  }
 0x25a   :  { %6498 = vmatpush1.bf16.msra.mxu0 %v18771_v7  ;;  %v18809_v7 = vld [vmem:[%s27377_s6 + $0x124] ss:$12 sps:$4 sm:$0xff]   ;;  %v18818_v13 = vld [vmem:[%s27377_s6 + $0x2bc] ss:$12 sps:$4 sm:$0xff]  }
 0x25b   :  { %6539 = vmatpush1.bf16.msra.mxu1 %v18774_v18  ;;  %6499 = vmatprep.subr.bf16.mxu0 %v18779_v62  ;;  %v18807_v18 = vld [vmem:[%s27377_s6 + $0x120] ss:$12 sps:$4 sm:$0xff]  }
 0x25c   :  { %6540 = vmatprep.subr.bf16.mxu1 %v18782_v39  ;;  %v18810_v62 = vld [vmem:[%s27377_s6 + $0x2a0] ss:$12 sps:$4 sm:$0xff]   ;;  %v18815_v39 = vld [vmem:[%s27377_s6 + $0x13c] ss:$12 sps:$4 sm:$0xff]  }
 0x25e   :  { %6500 = vmatpush1.bf16.msra.mxu0 %v18777_v41  ;;  %v18813_v41 = vld [vmem:[%s27377_s6 + $0x138] ss:$12 sps:$4 sm:$0xff]  }
 0x25f   :  { %6541 = vmatpush1.bf16.msra.mxu1 %v18780_v36  ;;  %6501 = vmatprep.subr.bf16.mxu0 %v18785_v26  ;;  %v18816_v36 = vld [vmem:[%s27377_s6 + $0x2b8] ss:$12 sps:$4 sm:$0xff]   ;;  %v18821_v26 = vld [vmem:[%s27377_s6 + $0x154] ss:$12 sps:$4 sm:$0xff]  }
 0x260   :  { %6542 = vmatprep.subr.bf16.mxu1 %v18788_v5 }
 0x262   :  { %6502 = vmatpush1.bf16.msra.mxu0 %v18783_v58  ;;  %v18824_v58 = vld [vmem:[%s27377_s6 + $0x2d4] ss:$12 sps:$4 sm:$0xff]  }
 0x263   :  { %6543 = vmatpush1.bf16.msra.mxu1 %v18786_v15  ;;  %6503 = vmatprep.subr.bf16.mxu0 %v18791_v43 }
 0x264   :  { %6544 = vmatprep.subr.bf16.mxu1 %v18794_v30  ;;  %v18822_v30 = vld [vmem:[%s27377_s6 + $0x2d0] ss:$12 sps:$4 sm:$0xff]  }
 0x266   :  { %6504 = vmatpush1.bf16.msra.mxu0 %v18789_v19  ;;  %v18819_v19 = vld [vmem:[%s27377_s6 + $0x150] ss:$12 sps:$4 sm:$0xff]  }
 0x267   :  { %6545 = vmatpush1.bf16.msra.mxu1 %v18792_v55  ;;  %6505 = vmatprep.subr.bf16.mxu0 %v18797_v63 }
 0x268   :  { %6546 = vmatprep.subr.bf16.mxu1 %v18800_v44 }
 0x26a   :  { %6506 = vmatpush1.bf16.msra.mxu0 %v18795_v47  ;;  %v18827_v47 = vld [vmem:[%s27377_s6 + $0x16c] ss:$12 sps:$4 sm:$0xff]  }
 0x26b   :  { %6547 = vmatpush1.bf16.msra.mxu1 %v18798_v38  ;;  %6507 = vmatprep.subr.bf16.mxu0 %v18803_v10  ;;  %v18828_v38 = vld [vmem:[%s27377_s6 + $0x2e8] ss:$12 sps:$4 sm:$0xff]   ;;  %v18833_v10 = vld [vmem:[%s27377_s6 + $0x304] ss:$12 sps:$4 sm:$0xff]  }
 0x26c   :  { %6548 = vmatprep.subr.bf16.mxu1 %v18806_v52  ;;  %v18831_v52 = vld [vmem:[%s27377_s6 + $0x300] ss:$12 sps:$4 sm:$0xff]  }
 0x26e   :  { %6508 = vmatpush1.bf16.msra.mxu0 %v18801_v48  ;;  %v18836_v48 = vld [vmem:[%s27377_s6 + $0x484] ss:$12 sps:$4 sm:$0xff]  }
 0x26f   :  { %6549 = vmatpush1.bf16.msra.mxu1 %v18804_v37  ;;  %6509 = vmatprep.subr.bf16.mxu0 %v18809_v7  ;;  %v18834_v37 = vld [vmem:[%s27377_s6 + $0x480] ss:$12 sps:$4 sm:$0xff]   ;;  %v18839_v7 = vld [vmem:[%s27377_s6 + $0x31c] ss:$12 sps:$4 sm:$0xff]  }
 0x270   :  { %6550 = vmatprep.subr.bf16.mxu1 %v18812_v46  ;;  %v18842_v46 = vld [vmem:[%s27377_s6 + $0x49c] ss:$12 sps:$4 sm:$0xff]  }
 0x272   :  { %6510 = vmatpush1.bf16.msra.mxu0 %v18807_v18  ;;  %v18837_v18 = vld [vmem:[%s27377_s6 + $0x318] ss:$12 sps:$4 sm:$0xff]  }
 0x273   :  { %6551 = vmatpush1.bf16.msra.mxu1 %v18810_v62  ;;  %6511 = vmatprep.subr.bf16.mxu0 %v18815_v39  ;;  %v18840_v62 = vld [vmem:[%s27377_s6 + $0x498] ss:$12 sps:$4 sm:$0xff]   ;;  %v18845_v39 = vld [vmem:[%s27377_s6 + $0x334] ss:$12 sps:$4 sm:$0xff]  }
 0x274   :  { %v4324_v5 = vpop.f32.mrb[16].mxu1  ;;  %6552 = vmatprep.subr.bf16.mxu1 %v18818_v13  ;;  %v18848_v13 = vld [vmem:[%s27377_s6 + $0x4b4] ss:$12 sps:$4 sm:$0xff]  }
 0x275   :  { %v22858_v15 = vadd.f32 %v4324_v5, %v22756_v8  ;;  %v4326_v43 = vpop.f32.mrb[17].mxu1  ;;  %v18830_v8 = vld [vmem:[%s27377_s6 + $0x2ec] ss:$12 sps:$4 sm:$0xff]   ;;  %v18849_v5 = vld [vmem:[%s27377_s6 + $0x348] ss:$12 sps:$4 sm:$0xff]  }
 0x276   :  { %v22867_v55 = vadd.f32 %v4326_v43, %v22765_v9  ;;  %v4328_v63 = vpop.f32.mrb[18].mxu1  ;;  %6512 = vmatpush1.bf16.msra.mxu0 %v18813_v41  ;;  %v18825_v9 = vld [vmem:[%s27377_s6 + $0x168] ss:$12 sps:$4 sm:$0xff]   ;;  %v18843_v41 = vld [vmem:[%s27377_s6 + $0x330] ss:$12 sps:$4 sm:$0xff]  }
 0x277   :  { %6553 = vmatpush1.bf16.msra.mxu1 %v18816_v36  ;;  %v4329_v44 = vpop.f32.mrb[19].mxu1  ;;  %6513 = vmatprep.subr.bf16.mxu0 %v18821_v26  ;;  %v18846_v36 = vld [vmem:[%s27377_s6 + $0x4b0] ss:$12 sps:$4 sm:$0xff]   ;;  %v18851_v26 = vld [vmem:[%s27377_s6 + $0x34c] ss:$12 sps:$4 sm:$0xff]  }
 0x278   :  { %6554 = vmatprep.subr.bf16.mxu1 %v18824_v58  ;;  %v18854_v58 = vld [vmem:[%s27377_s6 + $0x4cc] ss:$12 sps:$4 sm:$0xff]   ;;  %v18852_v43 = vld [vmem:[%s27377_s6 + $0x4c8] ss:$12 sps:$4 sm:$0xff]  }
 0x279   :  { %v18855_v63 = vld [vmem:[%s27377_s6 + $0x360] ss:$12 sps:$4 sm:$0xff]   ;;  %v18866_v44 = vld [vmem:[%s27377_s6 + $0x4fc] ss:$12 sps:$4 sm:$0xff]  }
 0x27a   :  { %6514 = vmatpush1.bf16.msra.mxu0 %v18819_v19  ;;  %v18857_v19 = vld [vmem:[%s27377_s6 + $0x364] ss:$12 sps:$4 sm:$0xff]  }
 0x27b   :  { %6555 = vmatpush1.bf16.msra.mxu1 %v18822_v30  ;;  %6515 = vmatprep.subr.bf16.mxu0 %v18827_v47  ;;  %v18860_v30 = vld [vmem:[%s27377_s6 + $0x4e4] ss:$12 sps:$4 sm:$0xff]   ;;  %v18858_v47 = vld [vmem:[%s27377_s6 + $0x4e0] ss:$12 sps:$4 sm:$0xff]  }
 0x27c   :  { %6556 = vmatprep.subr.bf16.mxu1 %v18830_v8  ;;  %v18863_v8 = vld [vmem:[%s27377_s6 + $0x37c] ss:$12 sps:$4 sm:$0xff]  }
 0x27e   :  { %6516 = vmatpush1.bf16.msra.mxu0 %v18825_v9  ;;  %v18861_v9 = vld [vmem:[%s27377_s6 + $0x378] ss:$12 sps:$4 sm:$0xff]  }
 0x27f   :  { %6557 = vmatpush1.bf16.msra.mxu1 %v18828_v38  ;;  %6567 = vmatprep.subr.bf16.mxu0 %v18833_v10  ;;  %v18864_v38 = vld [vmem:[%s27377_s6 + $0x4f8] ss:$12 sps:$4 sm:$0xff]   ;;  %v18869_v10 = vld [vmem:[%s27377_s6 + $0x394] ss:$12 sps:$4 sm:$0xff]  }
 0x280   :  { %6608 = vmatprep.subr.bf16.mxu1 %v18836_v48  ;;  %v18872_v48 = vld [vmem:[%s27377_s6 + $0x514] ss:$12 sps:$4 sm:$0xff]  }
 0x281   :  { %6518 = vmatmul.mubr.bf16.vlgmr.msra.gmra.mrb[48].mxu0 %v21625_v29 }
 0x282   :  { %6559 = vmatmul.mubr.bf16.vlgmr.msra.gmra.mrb[36].mxu1 %v21715_v28  ;;  %6568 = vmatpush1.bf16.msra.mxu0 %v18831_v52 }
 0x283   :  { %6599 = vmatprep.mubr.bf16.mxu0 %v21867_v61  ;;  %6609 = vmatpush1.bf16.msra.mxu1 %v18834_v37 }
 0x284   :  { %6640 = vmatprep.mubr.bf16.mxu1 %v21723_v32  ;;  %6569 = vmatprep.subr.bf16.mxu0 %v18839_v7 }
 0x285   :  { %6610 = vmatprep.subr.bf16.mxu1 %v18842_v46  ;;  %v18870_v46 = vld [vmem:[%s27377_s6 + $0x510] ss:$12 sps:$4 sm:$0xff]  }
 0x286   :  { %6570 = vmatpush1.bf16.msra.mxu0 %v18837_v18  ;;  %v18867_v18 = vld [vmem:[%s27377_s6 + $0x390] ss:$12 sps:$4 sm:$0xff]  }
 0x287   :  { %6611 = vmatpush1.bf16.msra.mxu1 %v18840_v62  ;;  %6571 = vmatprep.subr.bf16.mxu0 %v18845_v39 }
 0x288   :  { %6612 = vmatprep.subr.bf16.mxu1 %v18848_v13  ;;  %v18875_v13 = vld [vmem:[%s27377_s6 + $0x3ac] ss:$12 sps:$4 sm:$0xff]  }
 0x28a   :  { %6572 = vmatpush1.bf16.msra.mxu0 %v18843_v41 }
 0x28b   :  { %6613 = vmatpush1.bf16.msra.mxu1 %v18846_v36  ;;  %6573 = vmatprep.subr.bf16.mxu0 %v18851_v26  ;;  %v18876_v36 = vld [vmem:[%s27377_s6 + $0x528] ss:$12 sps:$4 sm:$0xff]   ;;  %v18881_v26 = vld [vmem:[%s27377_s6 + $0x3c4] ss:$12 sps:$4 sm:$0xff]  }
 0x28c   :  { %6614 = vmatprep.subr.bf16.mxu1 %v18854_v58  ;;  %v18884_v58 = vld [vmem:[%s27377_s6 + $0x544] ss:$12 sps:$4 sm:$0xff]  }
 0x28e   :  { %6574 = vmatpush1.bf16.msra.mxu0 %v18849_v5  ;;  %v18879_v5 = vld [vmem:[%s27377_s6 + $0x3c0] ss:$12 sps:$4 sm:$0xff]  }
 0x28f   :  { %6615 = vmatpush1.bf16.msra.mxu1 %v18852_v43  ;;  %6575 = vmatprep.subr.bf16.mxu0 %v18857_v19  ;;  %v18882_v43 = vld [vmem:[%s27377_s6 + $0x540] ss:$12 sps:$4 sm:$0xff]   ;;  %v18887_v19 = vld [vmem:[%s27377_s6 + $0x3dc] ss:$12 sps:$4 sm:$0xff]  }
 0x290   :  { %6616 = vmatprep.subr.bf16.mxu1 %v18860_v30  ;;  %v18890_v30 = vld [vmem:[%s27377_s6 + $0x55c] ss:$12 sps:$4 sm:$0xff]  }
 0x292   :  { %6576 = vmatpush1.bf16.msra.mxu0 %v18855_v63  ;;  %v18885_v63 = vld [vmem:[%s27377_s6 + $0x3d8] ss:$12 sps:$4 sm:$0xff]  }
 0x293   :  { %6617 = vmatpush1.bf16.msra.mxu1 %v18858_v47  ;;  %6577 = vmatprep.subr.bf16.mxu0 %v18863_v8  ;;  %v18888_v47 = vld [vmem:[%s27377_s6 + $0x558] ss:$12 sps:$4 sm:$0xff]   ;;  %v18893_v8 = vld [vmem:[%s27377_s6 + $0x3f4] ss:$12 sps:$4 sm:$0xff]  }
 0x294   :  { %v4365_v52 = vpop.f32.mrb[28].mxu0  ;;  %6618 = vmatprep.subr.bf16.mxu1 %v18866_v44  ;;  %v18896_v44 = vld [vmem:[%s27377_s6 + $0x574] ss:$12 sps:$4 sm:$0xff]  }
 0x295   :  { %v22964_v37 = vadd.f32 %v4365_v52, %v22858_v15  ;;  %v4367_v7 = vpop.f32.mrb[29].mxu0  ;;  %v18878_v15 = vld [vmem:[%s27377_s6 + $0x52c] ss:$12 sps:$4 sm:$0xff]   ;;  %v18897_v52 = vld [vmem:[%s27377_s6 + $0x408] ss:$12 sps:$4 sm:$0xff]  }
 0x296   :  { %v22973_v62 = vadd.f32 %v4367_v7, %v22867_v55  ;;  %v4369_v39 = vpop.f32.mrb[30].mxu0  ;;  %6578 = vmatpush1.bf16.msra.mxu0 %v18861_v9  ;;  %v18873_v55 = vld [vmem:[%s27377_s6 + $0x3a8] ss:$12 sps:$4 sm:$0xff]   ;;  %v18891_v9 = vld [vmem:[%s27377_s6 + $0x3f0] ss:$12 sps:$4 sm:$0xff]  }
 0x297   :  { %6619 = vmatpush1.bf16.msra.mxu1 %v18864_v38  ;;  %v4370_v41 = vpop.f32.mrb[31].mxu0  ;;  %6579 = vmatprep.subr.bf16.mxu0 %v18869_v10  ;;  %v18894_v38 = vld [vmem:[%s27377_s6 + $0x570] ss:$12 sps:$4 sm:$0xff]   ;;  %v18899_v10 = vld [vmem:[%s27377_s6 + $0x40c] ss:$12 sps:$4 sm:$0xff]  }
 0x298   :  { %6620 = vmatprep.subr.bf16.mxu1 %v18872_v48  ;;  %v18902_v48 = vld [vmem:[%s27377_s6 + $0x58c] ss:$12 sps:$4 sm:$0xff]   ;;  %v18900_v7 = vld [vmem:[%s27377_s6 + $0x588] ss:$12 sps:$4 sm:$0xff]  }
 0x299   :  { %v18903_v39 = vld [vmem:[%s27377_s6 + $0x420] ss:$12 sps:$4 sm:$0xff]   ;;  %v18914_v41 = vld [vmem:[%s27377_s6 + $0x5bc] ss:$12 sps:$4 sm:$0xff]  }
 0x29a   :  { %6580 = vmatpush1.bf16.msra.mxu0 %v18867_v18  ;;  %v18905_v18 = vld [vmem:[%s27377_s6 + $0x424] ss:$12 sps:$4 sm:$0xff]  }
 0x29b   :  { %6621 = vmatpush1.bf16.msra.mxu1 %v18870_v46  ;;  %6581 = vmatprep.subr.bf16.mxu0 %v18875_v13  ;;  %v18908_v46 = vld [vmem:[%s27377_s6 + $0x5a4] ss:$12 sps:$4 sm:$0xff]   ;;  %v18906_v13 = vld [vmem:[%s27377_s6 + $0x5a0] ss:$12 sps:$4 sm:$0xff]  }
 0x29c   :  { %6622 = vmatprep.subr.bf16.mxu1 %v18878_v15  ;;  %v18911_v15 = vld [vmem:[%s27377_s6 + $0x43c] ss:$12 sps:$4 sm:$0xff]  }
 0x29e   :  { %6582 = vmatpush1.bf16.msra.mxu0 %v18873_v55  ;;  %v18909_v55 = vld [vmem:[%s27377_s6 + $0x438] ss:$12 sps:$4 sm:$0xff]  }
 0x29f   :  { %6623 = vmatpush1.bf16.msra.mxu1 %v18876_v36  ;;  %6583 = vmatprep.subr.bf16.mxu0 %v18881_v26  ;;  %v18912_v36 = vld [vmem:[%s27377_s6 + $0x5b8] ss:$12 sps:$4 sm:$0xff]   ;;  %v18917_v26 = vld [vmem:[%s27377_s6 + $0x454] ss:$12 sps:$4 sm:$0xff]  }
 0x2a0   :  { %6624 = vmatprep.subr.bf16.mxu1 %v18884_v58 }
 0x2a2   :  { %6584 = vmatpush1.bf16.msra.mxu0 %v18879_v5 }
 0x2a3   :  { %6625 = vmatpush1.bf16.msra.mxu1 %v18882_v43  ;;  %6585 = vmatprep.subr.bf16.mxu0 %v18887_v19  ;;  %v18920_v43 = vld [vmem:[%s27377_s6 + $0x5d4] ss:$12 sps:$4 sm:$0xff]  }
 0x2a4   :  { %6626 = vmatprep.subr.bf16.mxu1 %v18890_v30 }
 0x2a6   :  { %6586 = vmatpush1.bf16.msra.mxu0 %v18885_v63 }
 0x2a7   :  { %6627 = vmatpush1.bf16.msra.mxu1 %v18888_v47  ;;  %6587 = vmatprep.subr.bf16.mxu0 %v18893_v8 }
 0x2a8   :  { %6628 = vmatprep.subr.bf16.mxu1 %v18896_v44 }
 0x2aa   :  { %6588 = vmatpush1.bf16.msra.mxu0 %v18891_v9 }
 0x2ab   :  { %6629 = vmatpush1.bf16.msra.mxu1 %v18894_v38  ;;  %6589 = vmatprep.subr.bf16.mxu0 %v18899_v10  ;;  %v18915_v38 = vld [vmem:[%s27377_s6 + $0x450] ss:$12 sps:$4 sm:$0xff]  }
 0x2ac   :  { %6630 = vmatprep.subr.bf16.mxu1 %v18902_v48 }
 0x2ae   :  { %6590 = vmatpush1.bf16.msra.mxu0 %v18897_v52  ;;  %v18926_v52 = vld [vmem:[%s27377_s6 + $0x5ec] ss:$12 sps:$4 sm:$0xff]  }
 0x2af   :  { %6631 = vmatpush1.bf16.msra.mxu1 %v18900_v7  ;;  %6591 = vmatprep.subr.bf16.mxu0 %v18905_v18  ;;  %v18921_v7 = vld [vmem:[%s27377_s6 + $0x468] ss:$12 sps:$4 sm:$0xff]  }
 0x2b0   :  { %6632 = vmatprep.subr.bf16.mxu1 %v18908_v46  ;;  %v18924_v18 = vld [vmem:[%s27377_s6 + $0x5e8] ss:$12 sps:$4 sm:$0xff]   ;;  %v18929_v46 = vld [vmem:[%s27377_s6 + $0x604] ss:$12 sps:$4 sm:$0xff]  }
 0x2b2   :  { %6592 = vmatpush1.bf16.msra.mxu0 %v18903_v39  ;;  %v18932_v39 = vld [vmem:[%s27377_s6 + $0x784] ss:$12 sps:$4 sm:$0xff]  }
 0x2b3   :  { %6633 = vmatpush1.bf16.msra.mxu1 %v18906_v13  ;;  %6593 = vmatprep.subr.bf16.mxu0 %v18911_v15  ;;  %v18927_v13 = vld [vmem:[%s27377_s6 + $0x600] ss:$12 sps:$4 sm:$0xff]  }
 0x2b4   :  { %v4406_v58 = vpop.f32.mrb[20].mxu1  ;;  %v17740_v5 = vpop.f32.mrb[32].mxu0  ;;  %6634 = vmatprep.subr.bf16.mxu1 %v18914_v41  ;;  %v18930_v15 = vld [vmem:[%s27377_s6 + $0x780] ss:$12 sps:$4 sm:$0xff]   ;;  %v18935_v41 = vld [vmem:[%s27377_s6 + $0x61c] ss:$12 sps:$4 sm:$0xff]  }
 0x2b5   :  { %v23066_v19 = vadd.f32 %v4406_v58, %v22964_v37  ;;  %v4408_v30 = vpop.f32.mrb[21].mxu1  ;;  %v17741_v63 = vpop.f32.mrb[33].mxu0  ;;  %v18918_v37 = vld [vmem:[%s27377_s6 + $0x5d0] ss:$12 sps:$4 sm:$0xff]   ;;  %v18941_v58 = vld [vmem:[%s27377_s6 + $0x634] ss:$12 sps:$4 sm:$0xff]  }
 0x2b6   :  { %v23069_v47 = vadd.f32 %v4408_v30, %v22973_v62  ;;  %v23071_v8 = vadd.f32 %v17741_v63, %v17740_v5  ;;  %v4410_v44 = vpop.f32.mrb[22].mxu1  ;;  %v17743_v9 = vpop.f32.mrb[34].mxu0  ;;  %6594 = vmatpush1.bf16.msra.mxu0 %v18909_v55  ;;  %v18923_v62 = vld [vmem:[%s27377_s6 + $0x46c] ss:$12 sps:$4 sm:$0xff]   ;;  %v18938_v55 = vld [vmem:[%s27377_s6 + $0x79c] ss:$12 sps:$4 sm:$0xff]  }
 0x2b7   :  { %6635 = vmatpush1.bf16.msra.mxu1 %v18912_v36  ;;  %v4411_v10 = vpop.f32.mrb[23].mxu1  ;;  %v17744_v48 = vpop.f32.mrb[35].mxu0  ;;  %6595 = vmatprep.subr.bf16.mxu0 %v18917_v26  ;;  %v18933_v36 = vld [vmem:[%s27377_s6 + $0x618] ss:$12 sps:$4 sm:$0xff]   ;;  %v18944_v5 = vld [vmem:[%s27377_s6 + $0x7b4] ss:$12 sps:$4 sm:$0xff]  }
 0x2b8   :  { %6636 = vmatprep.subr.bf16.mxu1 %v18920_v43  ;;  %v18936_v26 = vld [vmem:[%s27377_s6 + $0x798] ss:$12 sps:$4 sm:$0xff]   ;;  %v18939_v43 = vld [vmem:[%s27377_s6 + $0x630] ss:$12 sps:$4 sm:$0xff]   ;;  %v18945_v9 = vld [vmem:[%s27377_s6 + $0x648] ss:$12 sps:$4 sm:$0xff]  }
 0x2b9   :  { %v18942_v30 = vld [vmem:[%s27377_s6 + $0x7b0] ss:$12 sps:$4 sm:$0xff]   ;;  %v18947_v63 = vld [vmem:[%s27377_s6 + $0x64c] ss:$12 sps:$4 sm:$0xff]  }
 0x2ba   :  { %6596 = vmatpush1.bf16.msra.mxu0 %v18915_v38  ;;  %v18950_v44 = vld [vmem:[%s27377_s6 + $0x7cc] ss:$12 sps:$4 sm:$0xff]   ;;  %v18948_v38 = vld [vmem:[%s27377_s6 + $0x7c8] ss:$12 sps:$4 sm:$0xff]   ;;  %v18953_v10 = vld [vmem:[%s27377_s6 + $0x664] ss:$12 sps:$4 sm:$0xff]  }
 0x2bb   :  { %6637 = vmatpush1.bf16.msra.mxu1 %v18918_v37  ;;  %6597 = vmatprep.subr.bf16.mxu0 %v18923_v62  ;;  %v18956_v48 = vld [vmem:[%s27377_s6 + $0x7e4] ss:$12 sps:$4 sm:$0xff]   ;;  %v18951_v37 = vld [vmem:[%s27377_s6 + $0x660] ss:$12 sps:$4 sm:$0xff]  }
 0x2bc   :  { %6638 = vmatprep.subr.bf16.mxu1 %v18926_v52  ;;  %v18954_v62 = vld [vmem:[%s27377_s6 + $0x7e0] ss:$12 sps:$4 sm:$0xff]   ;;  %v18959_v52 = vld [vmem:[%s27377_s6 + $0x67c] ss:$12 sps:$4 sm:$0xff]  }
 0x2be   :  { %6598 = vmatpush1.bf16.msra.mxu0 %v18921_v7  ;;  %v18962_v7 = vld [vmem:[%s27377_s6 + $0x7fc] ss:$12 sps:$4 sm:$0xff]  }
 0x2bf   :  { %6639 = vmatpush1.bf16.msra.mxu1 %v18924_v18  ;;  %6649 = vmatprep.subr.bf16.mxu0 %v18929_v46  ;;  %v18957_v18 = vld [vmem:[%s27377_s6 + $0x678] ss:$12 sps:$4 sm:$0xff]  }
 0x2c0   :  { %6690 = vmatprep.subr.bf16.mxu1 %v18932_v39  ;;  %v18960_v46 = vld [vmem:[%s27377_s6 + $0x7f8] ss:$12 sps:$4 sm:$0xff]   ;;  %v18965_v39 = vld [vmem:[%s27377_s6 + $0x694] ss:$12 sps:$4 sm:$0xff]  }
 0x2c1   :  { %6600 = vmatmul.mubr.bf16.vlgmr.msra.gmra.mrb[52].mxu0 %v21861_v54 }
 0x2c2   :  { %6641 = vmatmul.mubr.bf16.vlgmr.msra.gmra.mrb[40].mxu1 %v21989_v3  ;;  %6650 = vmatpush1.bf16.msra.mxu0 %v18927_v13 }
 0x2c3   :  { %6681 = vmatprep.mubr.bf16.mxu0 %v21999_v53  ;;  %6691 = vmatpush1.bf16.msra.mxu1 %v18930_v15  ;;  %v18968_v15 = vld [vmem:[%s27377_s6 + $0x814] ss:$12 sps:$4 sm:$0xff]  }
 0x2c4   :  { %6722 = vmatprep.mubr.bf16.mxu1 %v22003_v56  ;;  %6651 = vmatprep.subr.bf16.mxu0 %v18935_v41 }
 0x2c5   :  { %6692 = vmatprep.subr.bf16.mxu1 %v18938_v55 }
 0x2c6   :  { %6652 = vmatpush1.bf16.msra.mxu0 %v18933_v36 }
 0x2c7   :  { %6693 = vmatpush1.bf16.msra.mxu1 %v18936_v26  ;;  %6653 = vmatprep.subr.bf16.mxu0 %v18941_v58 }
 0x2c8   :  { %6694 = vmatprep.subr.bf16.mxu1 %v18944_v5  ;;  %v18963_v5 = vld [vmem:[%s27377_s6 + $0x690] ss:$12 sps:$4 sm:$0xff]  }
 0x2ca   :  { %6654 = vmatpush1.bf16.msra.mxu0 %v18939_v43 }
 0x2cb   :  { %6695 = vmatpush1.bf16.msra.mxu1 %v18942_v30  ;;  %6655 = vmatprep.subr.bf16.mxu0 %v18947_v63 }
 0x2cc   :  { %6696 = vmatprep.subr.bf16.mxu1 %v18950_v44  ;;  %v18966_v44 = vld [vmem:[%s27377_s6 + $0x810] ss:$12 sps:$4 sm:$0xff]  }
 0x2ce   :  { %6656 = vmatpush1.bf16.msra.mxu0 %v18945_v9  ;;  %v18971_v9 = vld [vmem:[%s27377_s6 + $0x6ac] ss:$12 sps:$4 sm:$0xff]  }
 0x2cf   :  { %6697 = vmatpush1.bf16.msra.mxu1 %v18948_v38  ;;  %6657 = vmatprep.subr.bf16.mxu0 %v18953_v10 }
 0x2d0   :  { %6698 = vmatprep.subr.bf16.mxu1 %v18956_v48  ;;  %v18974_v48 = vld [vmem:[%s27377_s6 + $0x82c] ss:$12 sps:$4 sm:$0xff]  }
 0x2d2   :  { %6658 = vmatpush1.bf16.msra.mxu0 %v18951_v37 }
 0x2d3   :  { %6699 = vmatpush1.bf16.msra.mxu1 %v18954_v62  ;;  %6659 = vmatprep.subr.bf16.mxu0 %v18959_v52  ;;  %v18969_v62 = vld [vmem:[%s27377_s6 + $0x6a8] ss:$12 sps:$4 sm:$0xff]  }
 0x2d4   :  { %v17762_v13 = vpop.f32.mrb[36].mxu0  ;;  %6700 = vmatprep.subr.bf16.mxu1 %v18962_v7  ;;  %v18972_v52 = vld [vmem:[%s27377_s6 + $0x828] ss:$12 sps:$4 sm:$0xff]   ;;  %v18980_v7 = vld [vmem:[%s27377_s6 + $0x844] ss:$12 sps:$4 sm:$0xff]  }
 0x2d5   :  { %v17784_v41 = vpop.f32.mrb[24].mxu1  ;;  %v17763_v55 = vpop.f32.mrb[37].mxu0 }
 0x2d6   :  { %v17764_v36 = vadd.f32 %v17763_v55, %v17762_v13  ;;  %v17785_v26 = vpop.f32.mrb[25].mxu1  ;;  %v17765_v58 = vpop.f32.mrb[38].mxu0  ;;  %6660 = vmatpush1.bf16.msra.mxu0 %v18957_v18  ;;  %v18975_v18 = vld [vmem:[%s27377_s6 + $0x6c0] ss:$12 sps:$4 sm:$0xff]   ;;  %v18986_v13 = vld [vmem:[%s27377_s6 + $0x85c] ss:$12 sps:$4 sm:$0xff]  }
 0x2d7   :  { %v17786_v43 = vadd.f32 %v17785_v26, %v17784_v41  ;;  %v17787_v30 = vpop.f32.mrb[26].mxu1  ;;  %6701 = vmatpush1.bf16.msra.mxu1 %v18960_v46  ;;  %v17766_v63 = vpop.f32.mrb[39].mxu0  ;;  %6661 = vmatprep.subr.bf16.mxu0 %v18965_v39  ;;  %v18978_v46 = vld [vmem:[%s27377_s6 + $0x840] ss:$12 sps:$4 sm:$0xff]   ;;  %v18983_v39 = vld [vmem:[%s27377_s6 + $0x6dc] ss:$12 sps:$4 sm:$0xff]  }
 0x2d8   :  { %v4488_v38 = vadd.f32 %v17764_v36, %v23071_v8  ;;  %v17788_v10 = vpop.f32.mrb[27].mxu1  ;;  %6702 = vmatprep.subr.bf16.mxu1 %v18968_v15  ;;  %v18977_v8 = vld [vmem:[%s27377_s6 + $0x6c4] ss:$12 sps:$4 sm:$0xff]   ;;  %v18989_v55 = vld [vmem:[%s27377_s6 + $0x6f4] ss:$12 sps:$4 sm:$0xff]  }
 0x2d9   :  { %v18981_v15 = vld [vmem:[%s27377_s6 + $0x6d8] ss:$12 sps:$4 sm:$0xff]   ;;  %v18992_v36 = vld [vmem:[%s27377_s6 + $0x874] ss:$12 sps:$4 sm:$0xff]   ;;  %v18987_v26 = vld [vmem:[%s27377_s6 + $0x6f0] ss:$12 sps:$4 sm:$0xff]  }
 0x2da   :  { %v23186_v37 = vadd.f32 %v17786_v43, %v4488_v38  ;;  %6662 = vmatpush1.bf16.msra.mxu0 %v18963_v5  ;;  %v18984_v41 = vld [vmem:[%s27377_s6 + $0x858] ss:$12 sps:$4 sm:$0xff]   ;;  %v18990_v58 = vld [vmem:[%s27377_s6 + $0x870] ss:$12 sps:$4 sm:$0xff]   ;;  %v18993_v30 = vld [vmem:[%s27377_s6 + $0x708] ss:$12 sps:$4 sm:$0xff]  }
 0x2db   :  { %6703 = vmatpush1.bf16.msra.mxu1 %v18966_v44  ;;  %6663 = vmatprep.subr.bf16.mxu0 %v18971_v9  ;;  %v18995_v5 = vld [vmem:[%s27377_s6 + $0x70c] ss:$12 sps:$4 sm:$0xff]   ;;  %v18996_v63 = vld [vmem:[%s27377_s6 + $0x888] ss:$12 sps:$4 sm:$0xff]   ;;  %v19001_v44 = vld [vmem:[%s27377_s6 + $0x724] ss:$12 sps:$4 sm:$0xff]  }
 0x2dc   :  { %6704 = vmatprep.subr.bf16.mxu1 %v18974_v48  ;;  %v18998_v43 = vld [vmem:[%s27377_s6 + $0x88c] ss:$12 sps:$4 sm:$0xff]   ;;  %v19004_v9 = vld [vmem:[%s27377_s6 + $0x8a4] ss:$12 sps:$4 sm:$0xff]   ;;  %v19007_v48 = vld [vmem:[%s27377_s6 + $0x73c] ss:$12 sps:$4 sm:$0xff]  }
 0x2dd   :  { %v18999_v38 = vld [vmem:[%s27377_s6 + $0x720] ss:$12 sps:$4 sm:$0xff]  }
 0x2de   :  { %6664 = vmatpush1.bf16.msra.mxu0 %v18969_v62  ;;  %v19002_v10 = vld [vmem:[%s27377_s6 + $0x8a0] ss:$12 sps:$4 sm:$0xff]   ;;  %v19010_v62 = vld [vmem:[%s27377_s6 + $0x8bc] ss:$12 sps:$4 sm:$0xff]  }
 0x2df   :  { %6705 = vmatpush1.bf16.msra.mxu1 %v18972_v52  ;;  %6665 = vmatprep.subr.bf16.mxu0 %v18977_v8  ;;  %v19005_v52 = vld [vmem:[%s27377_s6 + $0x738] ss:$12 sps:$4 sm:$0xff]  }
 0x2e0   :  { %6706 = vmatprep.subr.bf16.mxu1 %v18980_v7  ;;  %v19008_v8 = vld [vmem:[%s27377_s6 + $0x8b8] ss:$12 sps:$4 sm:$0xff]   ;;  %v19013_v7 = vld [vmem:[%s27377_s6 + $0x754] ss:$12 sps:$4 sm:$0xff]  }
 0x2e2   :  { %6666 = vmatpush1.bf16.msra.mxu0 %v18975_v18 }
 0x2e3   :  { %6707 = vmatpush1.bf16.msra.mxu1 %v18978_v46  ;;  %6667 = vmatprep.subr.bf16.mxu0 %v18983_v39  ;;  %v19016_v46 = vld [vmem:[%s27377_s6 + $0x8d4] ss:$12 sps:$4 sm:$0xff]  }
 0x2e4   :  { %6708 = vmatprep.subr.bf16.mxu1 %v18986_v13 }
 0x2e6   :  { %6668 = vmatpush1.bf16.msra.mxu0 %v18981_v15 }
 0x2e7   :  { %6709 = vmatpush1.bf16.msra.mxu1 %v18984_v41  ;;  %6669 = vmatprep.subr.bf16.mxu0 %v18989_v55 }
 0x2e8   :  { %6710 = vmatprep.subr.bf16.mxu1 %v18992_v36  ;;  %v19011_v36 = vld [vmem:[%s27377_s6 + $0x750] ss:$12 sps:$4 sm:$0xff]  }
 0x2ea   :  { %6670 = vmatpush1.bf16.msra.mxu0 %v18987_v26 }
 0x2eb   :  { %6711 = vmatpush1.bf16.msra.mxu1 %v18990_v58  ;;  %6671 = vmatprep.subr.bf16.mxu0 %v18995_v5 }
 0x2ec   :  { %6712 = vmatprep.subr.bf16.mxu1 %v18998_v43  ;;  %v19014_v43 = vld [vmem:[%s27377_s6 + $0x8d0] ss:$12 sps:$4 sm:$0xff]  }
 0x2ee   :  { %6672 = vmatpush1.bf16.msra.mxu0 %v18993_v30  ;;  %v19019_v30 = vld [vmem:[%s27377_s6 + $0x76c] ss:$12 sps:$4 sm:$0xff]  }
 0x2ef   :  { %6713 = vmatpush1.bf16.msra.mxu1 %v18996_v63  ;;  %6673 = vmatprep.subr.bf16.mxu0 %v19001_v44 }
 0x2f0   :  { %6714 = vmatprep.subr.bf16.mxu1 %v19004_v9  ;;  %v19022_v9 = vld [vmem:[%s27377_s6 + $0x8ec] ss:$12 sps:$4 sm:$0xff]  }
 0x2f2   :  { %6674 = vmatpush1.bf16.msra.mxu0 %v18999_v38 }
 0x2f3   :  { %6715 = vmatpush1.bf16.msra.mxu1 %v19002_v10  ;;  %6675 = vmatprep.subr.bf16.mxu0 %v19007_v48  ;;  %v19017_v10 = vld [vmem:[%s27377_s6 + $0x768] ss:$12 sps:$4 sm:$0xff]  }
 0x2f4   :  { %v17806_v18 = vpop.f32.mrb[40].mxu0  ;;  %6716 = vmatprep.subr.bf16.mxu1 %v19010_v62  ;;  %v19020_v48 = vld [vmem:[%s27377_s6 + $0x8e8] ss:$12 sps:$4 sm:$0xff]  }
 0x2f5   :  { %v17828_v39 = vpop.f32.mrb[28].mxu1  ;;  %v17807_v13 = vpop.f32.mrb[41].mxu0  ;;  %v19026_v62 = vld [vmem:[%s27377_s6 + $0xc8] ss:$12 sps:$4 sm:$0xff]  }
 0x2f6   :  { %v17808_v15 = vadd.f32 %v17807_v13, %v17806_v18  ;;  %v17829_v41 = vpop.f32.mrb[29].mxu1  ;;  %v17809_v55 = vpop.f32.mrb[42].mxu0  ;;  %6676 = vmatpush1.bf16.msra.mxu0 %v19005_v52  ;;  %v19023_v52 = vld [vmem:[%s27377_s6 + $0x900] ss:$12 sps:$4 sm:$0xff]  }
 0x2f7   :  { %v17830_v26 = vadd.f32 %v17829_v41, %v17828_v39  ;;  %v17831_v58 = vpop.f32.mrb[30].mxu1  ;;  %6717 = vmatpush1.bf16.msra.mxu1 %v19008_v8  ;;  %v17810_v5 = vpop.f32.mrb[43].mxu0  ;;  %6677 = vmatprep.subr.bf16.mxu0 %v19013_v7  ;;  %v19027_v8 = vld [vmem:[%s27377_s6 + $0x8] ss:$12 sps:$4 sm:$0xff]   ;;  %v19031_v18 = vld [vmem:[%s27377_s6 + $0xe0] ss:$12 sps:$4 sm:$0xff]  }
 0x2f8   :  { %v4568_v63 = vadd.f32 %v17808_v15, %v23186_v37  ;;  %v17832_v44 = vpop.f32.mrb[31].mxu1  ;;  %6718 = vmatprep.subr.bf16.mxu1 %v19016_v46  ;;  %v19025_v37 = vld [vmem:[%s27377_s6 + $0x904] ss:$12 sps:$4 sm:$0xff]   ;;  %v19030_v7 = vld [vmem:[%s27377_s6 + $0x91c] ss:$12 sps:$4 sm:$0xff]  }
 0x2f9   :  { %v19028_v46 = vld [vmem:[%s27377_s6 + $0x918] ss:$12 sps:$4 sm:$0xff]   ;;  %v19032_v39 = vld [vmem:[%s27377_s6 + $0x20] ss:$12 sps:$4 sm:$0xff]   ;;  %v19033_v41 = vld [vmem:[%s27377_s6 + $0x930] ss:$12 sps:$4 sm:$0xff]  }
 0x2fa   :  { %v23285_v38 = vadd.f32 %v17830_v26, %v4568_v63  ;;  %6678 = vmatpush1.bf16.msra.mxu0 %v19011_v36  ;;  %v19035_v13 = vld [vmem:[%s27377_s6 + $0x934] ss:$12 sps:$4 sm:$0xff]   ;;  %v19036_v15 = vld [vmem:[%s27377_s6 + $0xf8] ss:$12 sps:$4 sm:$0xff]   ;;  %v19041_v36 = vld [vmem:[%s27377_s6 + $0x110] ss:$12 sps:$4 sm:$0xff]  }
 0x2fb   :  { %6719 = vmatpush1.bf16.msra.mxu1 %v19014_v43  ;;  %6679 = vmatprep.subr.bf16.mxu0 %v19019_v30  ;;  %v19037_v55 = vld [vmem:[%s27377_s6 + $0x38] ss:$12 sps:$4 sm:$0xff]   ;;  %v19038_v26 = vld [vmem:[%s27377_s6 + $0x948] ss:$12 sps:$4 sm:$0xff]   ;;  %v19042_v58 = vld [vmem:[%s27377_s6 + $0x50] ss:$12 sps:$4 sm:$0xff]  }
 0x2fc   :  { %6720 = vmatprep.subr.bf16.mxu1 %v19022_v9  ;;  %v19045_v5 = vld [vmem:[%s27377_s6 + $0x964] ss:$12 sps:$4 sm:$0xff]   ;;  %v19046_v43 = vld [vmem:[%s27377_s6 + $0x128] ss:$12 sps:$4 sm:$0xff]   ;;  %v19043_v30 = vld [vmem:[%s27377_s6 + $0x960] ss:$12 sps:$4 sm:$0xff]  }
 0x2fd   :  { %v19047_v63 = vld [vmem:[%s27377_s6 + $0x68] ss:$12 sps:$4 sm:$0xff]   ;;  %v19051_v9 = vld [vmem:[%s27377_s6 + $0x140] ss:$12 sps:$4 sm:$0xff]  }
 0x2fe   :  { %6680 = vmatpush1.bf16.msra.mxu0 %v19017_v10  ;;  %v19050_v44 = vld [vmem:[%s27377_s6 + $0x97c] ss:$12 sps:$4 sm:$0xff]   ;;  %v19048_v10 = vld [vmem:[%s27377_s6 + $0x978] ss:$12 sps:$4 sm:$0xff]  }
 0x2ff   :  { %6721 = vmatpush1.bf16.msra.mxu1 %v19020_v48  ;;  %6731 = vmatprep.subr.bf16.mxu0 %v19025_v37  ;;  %v19052_v48 = vld [vmem:[%s27377_s6 + $0x80] ss:$12 sps:$4 sm:$0xff]  }
 0x300   :  { %17878 = vmatprep.subr.bf16.mxu1 %v19026_v62  ;;  %v19055_v37 = vld [vmem:[%s27377_s6 + $0x994] ss:$12 sps:$4 sm:$0xff]  }
 0x301   :  { %6682 = vmatmul.mubr.bf16.vlgmr.msra.gmra.mrb[56].mxu0 %v22109_v35 }
 0x302   :  { %6723 = vmatmul.mubr.bf16.vlgmr.msra.gmra.mrb[44].mxu1 %v22232_v34  ;;  %6732 = vmatpush1.bf16.msra.mxu0 %v19023_v52  ;;  %v19056_v52 = vld [vmem:[%s27377_s6 + $0x158] ss:$12 sps:$4 sm:$0xff]  }
 0x303   :  { %6763 = vmatprep.mubr.bf16.mxu0 %v22128_v21  ;;  %17879 = vmatpush3.bf16.msra.mxu1 %v19027_v8 }
 0x304   :  { %6804 = vmatprep.mubr.bf16.mxu1 %v21629_v24  ;;  %6733 = vmatprep.subr.bf16.mxu0 %v19030_v7  ;;  %v19040_v24 = vld [vmem:[%s27377_s6 + $0x94c] ss:$12 sps:$4 sm:$0xff]  }
 0x305   :  { %17880 = vmatprep.subr.bf16.mxu1 %v19031_v18 }
 0x306   :  { %6734 = vmatpush1.bf16.msra.mxu0 %v19028_v46 }
 0x307   :  { %17881 = vmatpush3.bf16.msra.mxu1 %v19032_v39  ;;  %6735 = vmatprep.subr.bf16.mxu0 %v19035_v13  ;;  %v19053_v13 = vld [vmem:[%s27377_s6 + $0x990] ss:$12 sps:$4 sm:$0xff]  }
 0x308   :  { %17882 = vmatprep.subr.bf16.mxu1 %v19036_v15  ;;  %v1325_v15 = vld [vmem:[%s27378_s1] sm:$0x3] }
 0x309   :  { %7055 = vperm.xlu0 %18118, %v1325_v15   ;;  %v19082_v15 = vld [vmem:[%s27377_s6 + $0x1d0] ss:$12 sps:$4 sm:$0xff]  }
 0x30a   :  { %6736 = vmatpush1.bf16.msra.mxu0 %v19033_v41 }
 0x30b   :  { %17883 = vmatpush3.bf16.msra.mxu1 %v19037_v55  ;;  %6737 = vmatprep.subr.bf16.mxu0 %v19040_v24 }
 0x30c   :  { %17884 = vmatprep.subr.bf16.mxu1 %v19041_v36  ;;  %v19057_v36 = vld [vmem:[%s27377_s6 + $0x98] ss:$12 sps:$4 sm:$0xff]  }
 0x30e   :  { %6738 = vmatpush1.bf16.msra.mxu0 %v19038_v26  ;;  %v19060_v26 = vld [vmem:[%s27377_s6 + $0x9ac] ss:$12 sps:$4 sm:$0xff]  }
 0x30f   :  { %17885 = vmatpush3.bf16.msra.mxu1 %v19042_v58  ;;  %6739 = vmatprep.subr.bf16.mxu0 %v19045_v5 }
 0x310   :  { %17886 = vmatprep.subr.bf16.mxu1 %v19046_v43  ;;  %v19061_v43 = vld [vmem:[%s27377_s6 + $0x170] ss:$12 sps:$4 sm:$0xff]  }
 0x312   :  { %6740 = vmatpush1.bf16.msra.mxu0 %v19043_v30 }
 0x313   :  { %17887 = vmatpush3.bf16.msra.mxu1 %v19047_v63  ;;  %6741 = vmatprep.subr.bf16.mxu0 %v19050_v44  ;;  %v19058_v63 = vld [vmem:[%s27377_s6 + $0x9a8] ss:$12 sps:$4 sm:$0xff]   ;;  %v19065_v44 = vld [vmem:[%s27377_s6 + $0x9c4] ss:$12 sps:$4 sm:$0xff]  }
 0x314   :  { %v17850_v62 = vpop.f32.mrb[44].mxu0  ;;  %17888 = vmatprep.subr.bf16.mxu1 %v19051_v9  ;;  %v19066_v9 = vld [vmem:[%s27377_s6 + $0x248] ss:$12 sps:$4 sm:$0xff]  }
 0x315   :  { %v17872_v8 = vpop.f32.mrb[32].mxu1  ;;  %v17851_v7 = vpop.f32.mrb[45].mxu0 }
 0x316   :  { %v17852_v18 = vadd.f32 %v17851_v7, %v17850_v62  ;;  %v17873_v46 = vpop.f32.mrb[33].mxu1  ;;  %v17853_v39 = vpop.f32.mrb[46].mxu0  ;;  %6742 = vmatpush1.bf16.msra.mxu0 %v19048_v10  ;;  %v19063_v10 = vld [vmem:[%s27377_s6 + $0x9c0] ss:$12 sps:$4 sm:$0xff]  }
 0x317   :  { %v17874_v41 = vadd.f32 %v17873_v46, %v17872_v8  ;;  %v17875_v55 = vpop.f32.mrb[34].mxu1  ;;  %17889 = vmatpush3.bf16.msra.mxu1 %v19052_v48  ;;  %v17854_v24 = vpop.f32.mrb[47].mxu0  ;;  %6743 = vmatprep.subr.bf16.mxu0 %v19055_v37  ;;  %v19067_v48 = vld [vmem:[%s27377_s6 + $0x188] ss:$12 sps:$4 sm:$0xff]   ;;  %v19071_v62 = vld [vmem:[%s27377_s6 + $0x260] ss:$12 sps:$4 sm:$0xff]  }
 0x318   :  { %v4648_v58 = vadd.f32 %v17852_v18, %v23285_v38  ;;  %v17876_v5 = vpop.f32.mrb[35].mxu1  ;;  %17890 = vmatprep.subr.bf16.mxu1 %v19056_v52  ;;  %v19062_v38 = vld [vmem:[%s27377_s6 + $0xb0] ss:$12 sps:$4 sm:$0xff]   ;;  %v19068_v52 = vld [vmem:[%s27377_s6 + $0x9d8] ss:$12 sps:$4 sm:$0xff]  }
 0x319   :  { %v19070_v37 = vld [vmem:[%s27377_s6 + $0x9dc] ss:$12 sps:$4 sm:$0xff]   ;;  %v19072_v8 = vld [vmem:[%s27377_s6 + $0x1a0] ss:$12 sps:$4 sm:$0xff]   ;;  %v19088_v5 = vld [vmem:[%s27377_s6 + $0xa38] ss:$12 sps:$4 sm:$0xff]  }
 0x31a   :  { %v23391_v30 = vadd.f32 %v17874_v41, %v4648_v58  ;;  %6744 = vmatpush1.bf16.msra.mxu0 %v19053_v13  ;;  %v19075_v7 = vld [vmem:[%s27377_s6 + $0x9f4] ss:$12 sps:$4 sm:$0xff]   ;;  %v19073_v18 = vld [vmem:[%s27377_s6 + $0x9f0] ss:$12 sps:$4 sm:$0xff]   ;;  %v19080_v46 = vld [vmem:[%s27377_s6 + $0xa0c] ss:$12 sps:$4 sm:$0xff]  }
 0x31b   :  { %17891 = vmatpush3.bf16.msra.mxu1 %v19057_v36  ;;  %6745 = vmatprep.subr.bf16.mxu0 %v19060_v26  ;;  %v19081_v39 = vld [vmem:[%s27377_s6 + $0x290] ss:$12 sps:$4 sm:$0xff]   ;;  %v19078_v13 = vld [vmem:[%s27377_s6 + $0xa08] ss:$12 sps:$4 sm:$0xff]   ;;  %v19083_v24 = vld [vmem:[%s27377_s6 + $0xa20] ss:$12 sps:$4 sm:$0xff]  }
 0x31c   :  { %17892 = vmatprep.subr.bf16.mxu1 %v19061_v43  ;;  %v19085_v41 = vld [vmem:[%s27377_s6 + $0xa24] ss:$12 sps:$4 sm:$0xff]   ;;  %v19086_v55 = vld [vmem:[%s27377_s6 + $0x2a8] ss:$12 sps:$4 sm:$0xff]   ;;  %v19091_v58 = vld [vmem:[%s27377_s6 + $0x2c0] ss:$12 sps:$4 sm:$0xff]  }
 0x31d   :  { %v19087_v36 = vld [vmem:[%s27377_s6 + $0x1e8] ss:$12 sps:$4 sm:$0xff]   ;;  %v19092_v43 = vld [vmem:[%s27377_s6 + $0x200] ss:$12 sps:$4 sm:$0xff]  }
 0x31e   :  { %6746 = vmatpush1.bf16.msra.mxu0 %v19058_v63  ;;  %v19090_v26 = vld [vmem:[%s27377_s6 + $0xa3c] ss:$12 sps:$4 sm:$0xff]   ;;  %v19095_v63 = vld [vmem:[%s27377_s6 + $0xa54] ss:$12 sps:$4 sm:$0xff]  }
 0x31f   :  { %17893 = vmatpush3.bf16.msra.mxu1 %v19062_v38  ;;  %6747 = vmatprep.subr.bf16.mxu0 %v19065_v44  ;;  %v19096_v38 = vld [vmem:[%s27377_s6 + $0x2d8] ss:$12 sps:$4 sm:$0xff]   ;;  %v19093_v44 = vld [vmem:[%s27377_s6 + $0xa50] ss:$12 sps:$4 sm:$0xff]  }
 0x320   :  { %17900 = vmatprep.subr.bf16.mxu1 %v19066_v9  ;;  %v19097_v9 = vld [vmem:[%s27377_s6 + $0x218] ss:$12 sps:$4 sm:$0xff]  }
 0x322   :  { %6805 = vmatmul.mubr.bf16.vlgmr.msra.gmra.mrb[48].mxu1 %v21625_v29  ;;  %6748 = vmatpush1.bf16.msra.mxu0 %v19063_v10  ;;  %v19076_v29 = vld [vmem:[%s27377_s6 + $0x278] ss:$12 sps:$4 sm:$0xff]  }
 0x323   :  { %17901 = vmatpush3.bf16.msra.mxu1 %v19067_v48  ;;  %6844 = vmatprep.mubr.bf16.mxu1 %v21719_v31  ;;  %v19077_v31 = vld [vmem:[%s27377_s6 + $0x1b8] ss:$12 sps:$4 sm:$0xff]   ;;  %v19101_v48 = vld [vmem:[%s27377_s6 + $0x2f0] ss:$12 sps:$4 sm:$0xff]  }
 0x324   :  { %6749 = vmatprep.subr.bf16.mxu0 %v19070_v37  ;;  %17902 = vmatprep.subr.bf16.mxu1 %v19071_v62  ;;  %v19100_v10 = vld [vmem:[%s27377_s6 + $0xa6c] ss:$12 sps:$4 sm:$0xff]   ;;  %v19098_v37 = vld [vmem:[%s27377_s6 + $0xa68] ss:$12 sps:$4 sm:$0xff]   ;;  %v19102_v62 = vld [vmem:[%s27377_s6 + $0x230] ss:$12 sps:$4 sm:$0xff]  }
 0x326   :  { %6750 = vmatpush1.bf16.msra.mxu0 %v19068_v52  ;;  %v19103_v52 = vld [vmem:[%s27377_s6 + $0x3c8] ss:$12 sps:$4 sm:$0xff]  }
 0x327   :  { %17903 = vmatpush3.bf16.msra.mxu1 %v19072_v8  ;;  %6751 = vmatprep.subr.bf16.mxu0 %v19075_v7  ;;  %v19104_v8 = vld [vmem:[%s27377_s6 + $0x548] ss:$12 sps:$4 sm:$0xff]  }
 0x328   :  { %17904 = vmatprep.subr.bf16.mxu1 %v19076_v29  ;;  %v19105_v7 = vld [vmem:[%s27377_s6 + $0x308] ss:$12 sps:$4 sm:$0xff]  }
 0x329   :  { %v19106_v29 = vld [vmem:[%s27377_s6 + $0x488] ss:$12 sps:$4 sm:$0xff]  }
 0x32a   :  { %6752 = vmatpush1.bf16.msra.mxu0 %v19073_v18  ;;  %v19107_v18 = vld [vmem:[%s27377_s6 + $0x3e0] ss:$12 sps:$4 sm:$0xff]  }
 0x32b   :  { %17905 = vmatpush3.bf16.msra.mxu1 %v19077_v31  ;;  %6753 = vmatprep.subr.bf16.mxu0 %v19080_v46  ;;  %v19108_v31 = vld [vmem:[%s27377_s6 + $0x560] ss:$12 sps:$4 sm:$0xff]  }
 0x32c   :  { %17906 = vmatprep.subr.bf16.mxu1 %v19081_v39  ;;  %v19109_v46 = vld [vmem:[%s27377_s6 + $0x320] ss:$12 sps:$4 sm:$0xff]  }
 0x32d   :  { %v19110_v39 = vld [vmem:[%s27377_s6 + $0x4a0] ss:$12 sps:$4 sm:$0xff]  }
 0x32e   :  { %6754 = vmatpush1.bf16.msra.mxu0 %v19078_v13  ;;  %v19111_v13 = vld [vmem:[%s27377_s6 + $0x3f8] ss:$12 sps:$4 sm:$0xff]  }
 0x32f   :  { %17907 = vmatpush3.bf16.msra.mxu1 %v19082_v15  ;;  %6755 = vmatprep.subr.bf16.mxu0 %v19085_v41  ;;  %v19114_v15 = vld [vmem:[%s27377_s6 + $0x4b8] ss:$12 sps:$4 sm:$0xff]   ;;  %v19116_v41 = vld [vmem:[%s27377_s6 + $0x590] ss:$12 sps:$4 sm:$0xff]  }
 0x330   :  { %17908 = vmatprep.subr.bf16.mxu1 %v19086_v55  ;;  %v19117_v55 = vld [vmem:[%s27377_s6 + $0x350] ss:$12 sps:$4 sm:$0xff]  }
 0x332   :  { %6756 = vmatpush1.bf16.msra.mxu0 %v19083_v24  ;;  %v19118_v24 = vld [vmem:[%s27377_s6 + $0x4d0] ss:$12 sps:$4 sm:$0xff]  }
 0x333   :  { %17909 = vmatpush3.bf16.msra.mxu1 %v19087_v36  ;;  %6757 = vmatprep.subr.bf16.mxu0 %v19090_v26  ;;  %v19119_v36 = vld [vmem:[%s27377_s6 + $0x428] ss:$12 sps:$4 sm:$0xff]  }
 0x334   :  { %17910 = vmatprep.subr.bf16.mxu1 %v19091_v58  ;;  %v19120_v26 = vld [vmem:[%s27377_s6 + $0x5a8] ss:$12 sps:$4 sm:$0xff]  }
 0x335   :  { %v19121_v58 = vld [vmem:[%s27377_s6 + $0x368] ss:$12 sps:$4 sm:$0xff]  }
 0x336   :  { %6758 = vmatpush1.bf16.msra.mxu0 %v19088_v5  ;;  %v19122_v5 = vld [vmem:[%s27377_s6 + $0x4e8] ss:$12 sps:$4 sm:$0xff]  }
 0x337   :  { %17911 = vmatpush3.bf16.msra.mxu1 %v19092_v43  ;;  %6759 = vmatprep.subr.bf16.mxu0 %v19095_v63  ;;  %v19123_v43 = vld [vmem:[%s27377_s6 + $0x440] ss:$12 sps:$4 sm:$0xff]  }
 0x338   :  { %17912 = vmatprep.subr.bf16.mxu1 %v19096_v38  ;;  %v19124_v63 = vld [vmem:[%s27377_s6 + $0x5c0] ss:$12 sps:$4 sm:$0xff]  }
 0x339   :  { %v19125_v38 = vld [vmem:[%s27377_s6 + $0x380] ss:$12 sps:$4 sm:$0xff]  }
 0x33a   :  { %6760 = vmatpush1.bf16.msra.mxu0 %v19093_v44  ;;  %v19126_v44 = vld [vmem:[%s27377_s6 + $0x500] ss:$12 sps:$4 sm:$0xff]  }
 0x33b   :  { %17913 = vmatpush3.bf16.msra.mxu1 %v19097_v9  ;;  %6761 = vmatprep.subr.bf16.mxu0 %v19100_v10  ;;  %v19127_v9 = vld [vmem:[%s27377_s6 + $0x458] ss:$12 sps:$4 sm:$0xff]  }
 0x33c   :  { %17914 = vmatprep.subr.bf16.mxu1 %v19101_v48  ;;  %v19128_v48 = vld [vmem:[%s27377_s6 + $0x5d8] ss:$12 sps:$4 sm:$0xff]  }
 0x33e   :  { %6762 = vmatpush1.bf16.msra.mxu0 %v19098_v37 }
 0x33f   :  { %17915 = vmatpush3.bf16.msra.mxu1 %v19102_v62  ;;  %17922 = vmatprep.subr.bf16.mxu0 %v19103_v52 }
 0x340   :  { %17944 = vmatprep.subr.bf16.mxu1 %v19104_v8 }
 0x341   :  { %6764 = vmatmul.mubr.bf16.vlgmr.msra.gmra.mrb[60].mxu0 %v22340_v51 }
 0x342   :  { %6845 = vmatmul.mubr.bf16.vlgmr.msra.gmra.mrb[52].mxu1 %v21715_v28  ;;  %17923 = vmatpush3.bf16.msra.mxu0 %v19105_v7  ;;  %v19112_v28 = vld [vmem:[%s27377_s6 + $0x578] ss:$12 sps:$4 sm:$0xff]  }
 0x343   :  { %6884 = vmatprep.mubr.bf16.mxu0 %v21867_v61  ;;  %17945 = vmatpush3.bf16.msra.mxu1 %v19106_v29  ;;  %v19113_v61 = vld [vmem:[%s27377_s6 + $0x338] ss:$12 sps:$4 sm:$0xff]  }
 0x344   :  { %6924 = vmatprep.mubr.bf16.mxu1 %v21723_v32  ;;  %17924 = vmatprep.subr.bf16.mxu0 %v19107_v18  ;;  %v19115_v32 = vld [vmem:[%s27377_s6 + $0x410] ss:$12 sps:$4 sm:$0xff]   ;;  %v19129_v18 = vld [vmem:[%s27377_s6 + $0x398] ss:$12 sps:$4 sm:$0xff]  }
 0x345   :  { %17946 = vmatprep.subr.bf16.mxu1 %v19108_v31 }
 0x346   :  { %17925 = vmatpush3.bf16.msra.mxu0 %v19109_v46 }
 0x347   :  { %17947 = vmatpush3.bf16.msra.mxu1 %v19110_v39  ;;  %17926 = vmatprep.subr.bf16.mxu0 %v19111_v13 }
 0x348   :  { %17948 = vmatprep.subr.bf16.mxu1 %v19112_v28 }
 0x34a   :  { %17927 = vmatpush3.bf16.msra.mxu0 %v19113_v61  ;;  %v19132_v61 = vld [vmem:[%s27377_s6 + $0x5f0] ss:$12 sps:$4 sm:$0xff]  }
 0x34b   :  { %17949 = vmatpush3.bf16.msra.mxu1 %v19114_v15  ;;  %17928 = vmatprep.subr.bf16.mxu0 %v19115_v32  ;;  %v19133_v15 = vld [vmem:[%s27377_s6 + $0x3b0] ss:$12 sps:$4 sm:$0xff]  }
 0x34c   :  { %17950 = vmatprep.subr.bf16.mxu1 %v19116_v41  ;;  %v19134_v32 = vld [vmem:[%s27377_s6 + $0x530] ss:$12 sps:$4 sm:$0xff]   ;;  %v19135_v41 = vld [vmem:[%s27377_s6 + $0x6c8] ss:$12 sps:$4 sm:$0xff]  }
 0x34e   :  { %17929 = vmatpush3.bf16.msra.mxu0 %v19117_v55  ;;  %v19136_v55 = vld [vmem:[%s27377_s6 + $0x848] ss:$12 sps:$4 sm:$0xff]  }
 0x34f   :  { %17951 = vmatpush3.bf16.msra.mxu1 %v19118_v24  ;;  %17930 = vmatprep.subr.bf16.mxu0 %v19119_v36  ;;  %v19137_v24 = vld [vmem:[%s27377_s6 + $0x608] ss:$12 sps:$4 sm:$0xff]  }
 0x350   :  { %17952 = vmatprep.subr.bf16.mxu1 %v19120_v26  ;;  %v19138_v36 = vld [vmem:[%s27377_s6 + $0x788] ss:$12 sps:$4 sm:$0xff]   ;;  %v19139_v26 = vld [vmem:[%s27377_s6 + $0x6e0] ss:$12 sps:$4 sm:$0xff]  }
 0x352   :  { %17931 = vmatpush3.bf16.msra.mxu0 %v19121_v58  ;;  %v19140_v58 = vld [vmem:[%s27377_s6 + $0x860] ss:$12 sps:$4 sm:$0xff]  }
 0x353   :  { %17953 = vmatpush3.bf16.msra.mxu1 %v19122_v5  ;;  %17932 = vmatprep.subr.bf16.mxu0 %v19123_v43  ;;  %v19141_v5 = vld [vmem:[%s27377_s6 + $0x620] ss:$12 sps:$4 sm:$0xff]  }
 0x354   :  { %v6519_v10 = vpop.f32.mrb[48].mxu0  ;;  %17954 = vmatprep.subr.bf16.mxu1 %v19124_v63  ;;  %v19142_v43 = vld [vmem:[%s27377_s6 + $0x7a0] ss:$12 sps:$4 sm:$0xff]   ;;  %v19146_v63 = vld [vmem:[%s27377_s6 + $0x7b8] ss:$12 sps:$4 sm:$0xff]  }
 0x355   :  { %v6520_v37 = vadd.f32 %v6519_v10, %v23066_v19  ;;  %v6560_v62 = vpop.f32.mrb[36].mxu1  ;;  %v6521_v52 = vpop.f32.mrb[49].mxu0  ;;  %v19130_v19 = vld [vmem:[%s27377_s6 + $0x518] ss:$12 sps:$4 sm:$0xff]   ;;  %v19151_v10 = vld [vmem:[%s27377_s6 + $0x728] ss:$12 sps:$4 sm:$0xff]  }
 0x356   :  { %v6522_v8 = vadd.f32 %v6521_v52, %v23069_v47  ;;  %v6562_v7 = vpop.f32.mrb[37].mxu1  ;;  %v6523_v29 = vpop.f32.mrb[50].mxu0  ;;  %17933 = vmatpush3.bf16.msra.mxu0 %v19125_v38  ;;  %v19131_v47 = vld [vmem:[%s27377_s6 + $0x470] ss:$12 sps:$4 sm:$0xff]   ;;  %v19155_v52 = vld [vmem:[%s27377_s6 + $0x740] ss:$12 sps:$4 sm:$0xff]  }
 0x357   :  { %v23584_v31 = vadd.f32 %v6560_v62, %v6520_v37  ;;  %v6564_v46 = vpop.f32.mrb[38].mxu1  ;;  %17955 = vmatpush3.bf16.msra.mxu1 %v19126_v44  ;;  %v6524_v39 = vpop.f32.mrb[51].mxu0  ;;  %17934 = vmatprep.subr.bf16.mxu0 %v19127_v9  ;;  %v19148_v38 = vld [vmem:[%s27377_s6 + $0x890] ss:$12 sps:$4 sm:$0xff]   ;;  %v19153_v37 = vld [vmem:[%s27377_s6 + $0x668] ss:$12 sps:$4 sm:$0xff]  }
 0x358   :  { %v23592_v13 = vadd.f32 %v6562_v7, %v6522_v8  ;;  %v6565_v28 = vpop.f32.mrb[39].mxu1  ;;  %17956 = vmatprep.subr.bf16.mxu1 %v19128_v48  ;;  %v19149_v44 = vld [vmem:[%s27377_s6 + $0x650] ss:$12 sps:$4 sm:$0xff]   ;;  %v19152_v48 = vld [vmem:[%s27377_s6 + $0x8a8] ss:$12 sps:$4 sm:$0xff]  }
 0x359   :  { %v19150_v9 = vld [vmem:[%s27377_s6 + $0x7d0] ss:$12 sps:$4 sm:$0xff]   ;;  %v19154_v62 = vld [vmem:[%s27377_s6 + $0x7e8] ss:$12 sps:$4 sm:$0xff]   ;;  %v19156_v8 = vld [vmem:[%s27377_s6 + $0x8c0] ss:$12 sps:$4 sm:$0xff]  }
 0x35a   :  { %17935 = vmatpush3.bf16.msra.mxu0 %v19129_v18  ;;  %v19157_v7 = vld [vmem:[%s27377_s6 + $0x680] ss:$12 sps:$4 sm:$0xff]   ;;  %v19159_v18 = vld [vmem:[%s27377_s6 + $0x758] ss:$12 sps:$4 sm:$0xff]   ;;  %v19164_v28 = vld [vmem:[%s27377_s6 + $0x8f0] ss:$12 sps:$4 sm:$0xff]  }
 0x35b   :  { %17957 = vmatpush3.bf16.msra.mxu1 %v19130_v19  ;;  %17936 = vmatprep.subr.bf16.mxu0 %v19131_v47  ;;  %v19158_v29 = vld [vmem:[%s27377_s6 + $0x800] ss:$12 sps:$4 sm:$0xff]   ;;  %v19160_v46 = vld [vmem:[%s27377_s6 + $0x8d8] ss:$12 sps:$4 sm:$0xff]   ;;  %v19163_v47 = vld [vmem:[%s27377_s6 + $0x770] ss:$12 sps:$4 sm:$0xff]  }
 0x35c   :  { %17958 = vmatprep.subr.bf16.mxu1 %v19132_v61  ;;  %v19161_v39 = vld [vmem:[%s27377_s6 + $0x698] ss:$12 sps:$4 sm:$0xff]   ;;  %v19165_v61 = vld [vmem:[%s27377_s6 + $0x6b0] ss:$12 sps:$4 sm:$0xff]  }
 0x35d   :  { %v19162_v19 = vld [vmem:[%s27377_s6 + $0x818] ss:$12 sps:$4 sm:$0xff]  }
 0x35e   :  { %17937 = vmatpush3.bf16.msra.mxu0 %v19133_v15  ;;  %v19166_v15 = vld [vmem:[%s27377_s6 + $0x830] ss:$12 sps:$4 sm:$0xff]  }
 0x35f   :  { %17959 = vmatpush3.bf16.msra.mxu1 %v19134_v32  ;;  %17966 = vmatprep.subr.bf16.mxu0 %v19135_v41  ;;  %v19167_v32 = vld [vmem:[%s27377_s6 + $0x9c8] ss:$12 sps:$4 sm:$0xff]   ;;  %v19185_v41 = vld [vmem:[%s27379_s9 + $0x4] ss:$168 sps:$4 sm:$0xff]  }
 0x360   :  { %17988 = vmatprep.subr.bf16.mxu1 %v19136_v55  ;;  %v19168_v55 = vld [vmem:[%s27377_s6 + $0x908] ss:$12 sps:$4 sm:$0xff]  }
 0x361   :  { %6885 = vmatmul.mubr.bf16.vlgmr.msra.gmra.mrb[64].mxu0 %v21861_v54  ;;  %v19143_v54 = vld [vmem:[%s27377_s6 + $0x6f8] ss:$12 sps:$4 sm:$0xff]  }
 0x362   :  { %6925 = vmatmul.mubr.bf16.vlgmr.msra.gmra.mrb[56].mxu1 %v21989_v3  ;;  %17967 = vmatpush3.bf16.msra.mxu0 %v19137_v24  ;;  %v19144_v3 = vld [vmem:[%s27377_s6 + $0x878] ss:$12 sps:$4 sm:$0xff]   ;;  %v19169_v24 = vld [vmem:[%s27377_s6 + $0x9e0] ss:$12 sps:$4 sm:$0xff]  }
 0x363   :  { %6964 = vmatprep.mubr.bf16.mxu0 %v21999_v53  ;;  %17989 = vmatpush3.bf16.msra.mxu1 %v19138_v36  ;;  %v19145_v53 = vld [vmem:[%s27377_s6 + $0x638] ss:$12 sps:$4 sm:$0xff]   ;;  %v19183_v36 = vld [vmem:[%s27379_s9] ss:$168 sps:$4 sm:$0xff]  }
 0x364   :  { %7004 = vmatprep.mubr.bf16.mxu1 %v22003_v56  ;;  %17968 = vmatprep.subr.bf16.mxu0 %v19139_v26  ;;  %v19147_v56 = vld [vmem:[%s27377_s6 + $0x710] ss:$12 sps:$4 sm:$0xff]   ;;  %v19170_v26 = vld [vmem:[%s27377_s6 + $0x920] ss:$12 sps:$4 sm:$0xff]  }
 0x365   :  { %17990 = vmatprep.subr.bf16.mxu1 %v19140_v58  ;;  %v19191_v58 = vld [vmem:[%s27379_s9 + $0x154] ss:$168 sps:$4 sm:$0xff]  }
 0x366   :  { %17969 = vmatpush3.bf16.msra.mxu0 %v19141_v5  ;;  %v19171_v5 = vld [vmem:[%s27377_s6 + $0x9f8] ss:$12 sps:$4 sm:$0xff]  }
 0x367   :  { %17991 = vmatpush3.bf16.msra.mxu1 %v19142_v43  ;;  %17970 = vmatprep.subr.bf16.mxu0 %v19143_v54  ;;  %v19189_v43 = vld [vmem:[%s27379_s9 + $0x150] ss:$168 sps:$4 sm:$0xff]  }
 0x368   :  { %17992 = vmatprep.subr.bf16.mxu1 %v19144_v3  ;;  %v19173_v54 = vld [vmem:[%s27377_s6 + $0xa10] ss:$12 sps:$4 sm:$0xff]  }
 0x369   :  { %v19203_v3 = vld [vmem:[%s27379_s9 + $0x3f4] ss:$168 sps:$4 sm:$0xff]  }
 0x36a   :  { %17971 = vmatpush3.bf16.msra.mxu0 %v19145_v53  ;;  %v19174_v53 = vld [vmem:[%s27377_s6 + $0x950] ss:$12 sps:$4 sm:$0xff]  }
 0x36b   :  { %17993 = vmatpush3.bf16.msra.mxu1 %v19146_v63  ;;  %17972 = vmatprep.subr.bf16.mxu0 %v19147_v56  ;;  %v19175_v63 = vld [vmem:[%s27377_s6 + $0xa28] ss:$12 sps:$4 sm:$0xff]   ;;  %v19201_v56 = vld [vmem:[%s27379_s9 + $0x3f0] ss:$168 sps:$4 sm:$0xff]  }
 0x36c   :  { %17994 = vmatprep.subr.bf16.mxu1 %v19148_v38  ;;  %v19209_v38 = vld [vmem:[%s27379_s9 + $0x544] ss:$168 sps:$4 sm:$0xff]  }
 0x36e   :  { %17973 = vmatpush3.bf16.msra.mxu0 %v19149_v44  ;;  %v19176_v44 = vld [vmem:[%s27377_s6 + $0x968] ss:$12 sps:$4 sm:$0xff]  }
 0x36f   :  { %17995 = vmatpush3.bf16.msra.mxu1 %v19150_v9  ;;  %17974 = vmatprep.subr.bf16.mxu0 %v19151_v10  ;;  %v19177_v9 = vld [vmem:[%s27377_s6 + $0xa40] ss:$12 sps:$4 sm:$0xff]  }
 0x370   :  { %17996 = vmatprep.subr.bf16.mxu1 %v19152_v48  ;;  %v19207_v10 = vld [vmem:[%s27379_s9 + $0x540] ss:$168 sps:$4 sm:$0xff]   ;;  %v19215_v48 = vld [vmem:[%s27379_s9 + $0x694] ss:$168 sps:$4 sm:$0xff]  }
 0x372   :  { %17975 = vmatpush3.bf16.msra.mxu0 %v19153_v37  ;;  %v19178_v37 = vld [vmem:[%s27377_s6 + $0x980] ss:$12 sps:$4 sm:$0xff]  }
 0x373   :  { %17997 = vmatpush3.bf16.msra.mxu1 %v19154_v62  ;;  %17976 = vmatprep.subr.bf16.mxu0 %v19155_v52  ;;  %v19179_v62 = vld [vmem:[%s27377_s6 + $0xa58] ss:$12 sps:$4 sm:$0xff]  }
 0x374   :  { %17998 = vmatprep.subr.bf16.mxu1 %v19156_v8  ;;  %v19213_v52 = vld [vmem:[%s27379_s9 + $0x690] ss:$168 sps:$4 sm:$0xff]   ;;  %v19221_v8 = vld [vmem:[%s27379_s9 + $0x7e4] ss:$168 sps:$4 sm:$0xff]  }
 0x376   :  { %17977 = vmatpush3.bf16.msra.mxu0 %v19157_v7 }
 0x377   :  { %17999 = vmatpush3.bf16.msra.mxu1 %v19158_v29  ;;  %17978 = vmatprep.subr.bf16.mxu0 %v19159_v18  ;;  %v19180_v29 = vld [vmem:[%s27377_s6 + $0x998] ss:$12 sps:$4 sm:$0xff]  }
 0x378   :  { %18000 = vmatprep.subr.bf16.mxu1 %v19160_v46 }
 0x37a   :  { %17979 = vmatpush3.bf16.msra.mxu0 %v19161_v39 }
 0x37b   :  { %18001 = vmatpush3.bf16.msra.mxu1 %v19162_v19  ;;  %17980 = vmatprep.subr.bf16.mxu0 %v19163_v47 }
 0x37c   :  { %18002 = vmatprep.subr.bf16.mxu1 %v19164_v28 }
 0x37e   :  { %17981 = vmatpush3.bf16.msra.mxu0 %v19165_v61 }
 0x37f   :  { %18003 = vmatpush3.bf16.msra.mxu1 %v19166_v15  ;;  %18010 = vmatprep.subr.bf16.mxu0 %v19167_v32 }
 0x380   :  { %13134 = vmatprep.subr.bf16.mxu1 %v19185_v41  ;;  %v19181_v41 = vld [vmem:[%s27377_s6 + $0xa70] ss:$12 sps:$4 sm:$0xff]  }
 0x381   :  { %6965 = vmatmul.mubr.bf16.vlgmr.msra.gmra.mrb[68].mxu0 %v22109_v35  ;;  %v19197_v35 = vld [vmem:[%s27379_s9 + $0x2a4] ss:$168 sps:$4 sm:$0xff]  }
 0x382   :  { %7005 = vmatmul.mubr.bf16.vlgmr.msra.gmra.mrb[60].mxu1 %v22232_v34  ;;  %18011 = vmatpush3.bf16.msra.mxu0 %v19168_v55  ;;  %v19172_v34 = vld [vmem:[%s27377_s6 + $0x938] ss:$12 sps:$4 sm:$0xff]  }
 0x383   :  { %7044 = vmatprep.mubr.bf16.mxu0 %v22128_v21  ;;  %18012 = vmatprep.subr.bf16.mxu0 %v19169_v24  ;;  %v19195_v21 = vld [vmem:[%s27379_s9 + $0x2a0] ss:$168 sps:$4 sm:$0xff]   ;;  %v19227_v24 = vld [vmem:[%s27379_s9 + $0x934] ss:$168 sps:$4 sm:$0xff]  }
 0x384   :  { %13135 = vmatpush1.bf16.msra.mxu1 %v19183_v36  ;;  %v19182_v36 = vld [vmem:[%s27377_s6 + $0x9b0] ss:$12 sps:$4 sm:$0xff]  }
 0x385   :  { %13136 = vmatprep.subr.bf16.mxu1 %v19191_v58  ;;  %v19186_v58 = vld [vmem:[%s27379_s9 + $0x8] ss:$168 sps:$4 sm:$0xff]  }
 0x386   :  { %18013 = vmatpush3.bf16.msra.mxu0 %v19170_v26  ;;  %v19188_v26 = vld [vmem:[%s27379_s9 + $0xc] ss:$168 sps:$4 sm:$0xff]  }
 0x387   :  { %18014 = vmatprep.subr.bf16.mxu0 %v19171_v5  ;;  %v19225_v5 = vld [vmem:[%s27379_s9 + $0x930] ss:$168 sps:$4 sm:$0xff]  }
 0x388   :  { %13137 = vmatpush1.bf16.msra.mxu1 %v19189_v43  ;;  %v19233_v43 = vld [vmem:[%s27379_s9 + $0xa84] ss:$168 sps:$4 sm:$0xff]  }
 0x389   :  { %13138 = vmatprep.subr.bf16.mxu1 %v19197_v35  ;;  %v19194_v35 = vld [vmem:[%s27379_s9 + $0x15c] ss:$168 sps:$4 sm:$0xff]  }
 0x38a   :  { %18015 = vmatpush3.bf16.msra.mxu0 %v19172_v34  ;;  %v19231_v34 = vld [vmem:[%s27379_s9 + $0xa80] ss:$168 sps:$4 sm:$0xff]  }
 0x38b   :  { %18016 = vmatprep.subr.bf16.mxu0 %v19173_v54  ;;  %v19239_v54 = vld [vmem:[%s27379_s9 + $0xbd4] ss:$168 sps:$4 sm:$0xff]  }
 0x38c   :  { %13139 = vmatpush1.bf16.msra.mxu1 %v19195_v21  ;;  %v19192_v21 = vld [vmem:[%s27379_s9 + $0x158] ss:$168 sps:$4 sm:$0xff]  }
 0x38d   :  { %13140 = vmatprep.subr.bf16.mxu1 %v19203_v3  ;;  %v19200_v3 = vld [vmem:[%s27379_s9 + $0x2ac] ss:$168 sps:$4 sm:$0xff]  }
 0x38e   :  { %18017 = vmatpush3.bf16.msra.mxu0 %v19174_v53  ;;  %v19237_v53 = vld [vmem:[%s27379_s9 + $0xbd0] ss:$168 sps:$4 sm:$0xff]  }
 0x38f   :  { %18018 = vmatprep.subr.bf16.mxu0 %v19175_v63  ;;  %v19245_v63 = vld [vmem:[%s27379_s9 + $0xd24] ss:$168 sps:$4 sm:$0xff]  }
 0x390   :  { %13141 = vmatpush1.bf16.msra.mxu1 %v19201_v56  ;;  %v19198_v56 = vld [vmem:[%s27379_s9 + $0x2a8] ss:$168 sps:$4 sm:$0xff]  }
 0x391   :  { %13142 = vmatprep.subr.bf16.mxu1 %v19209_v38  ;;  %v19243_v38 = vld [vmem:[%s27379_s9 + $0xd20] ss:$168 sps:$4 sm:$0xff]  }
 0x392   :  { %18019 = vmatpush3.bf16.msra.mxu0 %v19176_v44  ;;  %v19251_v44 = vld [vmem:[%s27379_s9 + $0xe74] ss:$168 sps:$4 sm:$0xff]  }
 0x393   :  { %18020 = vmatprep.subr.bf16.mxu0 %v19177_v9  ;;  %v19204_v9 = vld [vmem:[%s27379_s9 + $0x3f8] ss:$168 sps:$4 sm:$0xff]  }
 0x394   :  { %v6601_v7 = vpop.f32.mrb[52].mxu0  ;;  %13143 = vmatpush1.bf16.msra.mxu1 %v19207_v10  ;;  %v19212_v10 = vld [vmem:[%s27379_s9 + $0x54c] ss:$168 sps:$4 sm:$0xff]  }
 0x395   :  { %v6602_v18 = vadd.f32 %v6601_v7, %v23584_v31  ;;  %v6642_v46 = vpop.f32.mrb[40].mxu1  ;;  %v6603_v39 = vpop.f32.mrb[53].mxu0  ;;  %13144 = vmatprep.subr.bf16.mxu1 %v19215_v48  ;;  %v19249_v48 = vld [vmem:[%s27379_s9 + $0xe70] ss:$168 sps:$4 sm:$0xff]   ;;  %v19263_v7 = vld [vmem:[%s27379_s9 + $0x1114] ss:$168 sps:$4 sm:$0xff]  }
 0x396   :  { %v6604_v19 = vadd.f32 %v6603_v39, %v23592_v13  ;;  %v6644_v47 = vpop.f32.mrb[41].mxu1  ;;  %v6605_v28 = vpop.f32.mrb[54].mxu0  ;;  %18021 = vmatpush3.bf16.msra.mxu0 %v19178_v37  ;;  %v19219_v13 = vld [vmem:[%s27379_s9 + $0x7e0] ss:$168 sps:$4 sm:$0xff]   ;;  %v19257_v37 = vld [vmem:[%s27379_s9 + $0xfc4] ss:$168 sps:$4 sm:$0xff]  }
 0x397   :  { %v23789_v61 = vadd.f32 %v6642_v46, %v6602_v18  ;;  %v6646_v15 = vpop.f32.mrb[42].mxu1  ;;  %v6606_v32 = vpop.f32.mrb[55].mxu0  ;;  %18022 = vmatprep.subr.bf16.mxu0 %v19179_v62  ;;  %v19210_v62 = vld [vmem:[%s27379_s9 + $0x548] ss:$168 sps:$4 sm:$0xff]   ;;  %v19224_v18 = vld [vmem:[%s27379_s9 + $0x7ec] ss:$168 sps:$4 sm:$0xff]  }
 0x398   :  { %v23794_v55 = vadd.f32 %v6644_v47, %v6604_v19  ;;  %v6647_v31 = vpop.f32.mrb[43].mxu1  ;;  %13145 = vmatpush1.bf16.msra.mxu1 %v19213_v52  ;;  %v19218_v52 = vld [vmem:[%s27379_s9 + $0x69c] ss:$168 sps:$4 sm:$0xff]   ;;  %v19261_v46 = vld [vmem:[%s27379_s9 + $0x1110] ss:$168 sps:$4 sm:$0xff]  }
 0x399   :  { %13146 = vmatprep.subr.bf16.mxu1 %v19221_v8  ;;  %v19255_v8 = vld [vmem:[%s27379_s9 + $0xfc0] ss:$168 sps:$4 sm:$0xff]   ;;  %v19269_v39 = vld [vmem:[%s27379_s9 + $0x1264] ss:$168 sps:$4 sm:$0xff]   ;;  %v19275_v15 = vld [vmem:[%s27379_s9 + $0x13b4] ss:$168 sps:$4 sm:$0xff]  }
 0x39a   :  { %18023 = vmatpush3.bf16.msra.mxu0 %v19180_v29  ;;  %v19216_v29 = vld [vmem:[%s27379_s9 + $0x698] ss:$168 sps:$4 sm:$0xff]   ;;  %v19222_v19 = vld [vmem:[%s27379_s9 + $0x7e8] ss:$168 sps:$4 sm:$0xff]   ;;  %v19230_v47 = vld [vmem:[%s27379_s9 + $0x93c] ss:$168 sps:$4 sm:$0xff]  }
 0x39b   :  { %18024 = vmatprep.subr.bf16.mxu0 %v19181_v41  ;;  %v19267_v28 = vld [vmem:[%s27379_s9 + $0x1260] ss:$168 sps:$4 sm:$0xff]   ;;  %v19236_v41 = vld [vmem:[%s27379_s9 + $0xa8c] ss:$168 sps:$4 sm:$0xff]   ;;  %v19273_v31 = vld [vmem:[%s27379_s9 + $0x13b0] ss:$168 sps:$4 sm:$0xff]  }
 0x39c   :  { %13147 = vmatpush1.bf16.msra.mxu1 %v19219_v13  ;;  %v19228_v32 = vld [vmem:[%s27379_s9 + $0x938] ss:$168 sps:$4 sm:$0xff]   ;;  %v19234_v13 = vld [vmem:[%s27379_s9 + $0xa88] ss:$168 sps:$4 sm:$0xff]  }
 0x39d   :  { %13148 = vmatprep.subr.bf16.mxu1 %v19227_v24  ;;  %v19242_v24 = vld [vmem:[%s27379_s9 + $0xbdc] ss:$168 sps:$4 sm:$0xff]  }
 0x39e   :  { %18025 = vmatpush3.bf16.msra.mxu0 %v19182_v36  ;;  %v19240_v36 = vld [vmem:[%s27379_s9 + $0xbd8] ss:$168 sps:$4 sm:$0xff]  }
 0x39f   :  { %13216 = vmatprep.subr.bf16.mxu0 %v19188_v26  ;;  %v19248_v26 = vld [vmem:[%s27379_s9 + $0xd2c] ss:$168 sps:$4 sm:$0xff]  }
 0x3a0   :  { %13149 = vmatpush1.bf16.msra.mxu1 %v19225_v5  ;;  %v19254_v5 = vld [vmem:[%s27379_s9 + $0xe7c] ss:$168 sps:$4 sm:$0xff]  }
 0x3a1   :  { %7045 = vmatmul.mubr.bf16.vlgmr.msra.gmra.mrb[72].mxu0 %v22340_v51  ;;  %13150 = vmatprep.subr.bf16.mxu1 %v19233_v43  ;;  %v19206_v51 = vld [vmem:[%s27379_s9 + $0x3fc] ss:$168 sps:$4 sm:$0xff]   ;;  %v19252_v43 = vld [vmem:[%s27379_s9 + $0xe78] ss:$168 sps:$4 sm:$0xff]  }
 0x3a2   :  { %13217 = vmatpush1.bf16.msra.mxu0 %v19186_v58  ;;  %v19246_v58 = vld [vmem:[%s27379_s9 + $0xd28] ss:$168 sps:$4 sm:$0xff]  }
 0x3a3   :  { %13218 = vmatprep.subr.bf16.mxu0 %v19194_v35  ;;  %v19260_v35 = vld [vmem:[%s27379_s9 + $0xfcc] ss:$168 sps:$4 sm:$0xff]  }
 0x3a4   :  { %13151 = vmatpush1.bf16.msra.mxu1 %v19231_v34  ;;  %v19258_v34 = vld [vmem:[%s27379_s9 + $0xfc8] ss:$168 sps:$4 sm:$0xff]  }
 0x3a5   :  { %13152 = vmatprep.subr.bf16.mxu1 %v19239_v54  ;;  %v19266_v54 = vld [vmem:[%s27379_s9 + $0x111c] ss:$168 sps:$4 sm:$0xff]  }
 0x3a6   :  { %13219 = vmatpush1.bf16.msra.mxu0 %v19192_v21  ;;  %v19264_v21 = vld [vmem:[%s27379_s9 + $0x1118] ss:$168 sps:$4 sm:$0xff]  }
 0x3a7   :  { %13220 = vmatprep.subr.bf16.mxu0 %v19200_v3  ;;  %v19272_v3 = vld [vmem:[%s27379_s9 + $0x126c] ss:$168 sps:$4 sm:$0xff]  }
 0x3a8   :  { %13153 = vmatpush1.bf16.msra.mxu1 %v19237_v53 }
 0x3a9   :  { %13154 = vmatprep.subr.bf16.mxu1 %v19245_v63  ;;  %v19270_v63 = vld [vmem:[%s27379_s9 + $0x1268] ss:$168 sps:$4 sm:$0xff]  }
 0x3aa   :  { %13221 = vmatpush1.bf16.msra.mxu0 %v19198_v56 }
 0x3ab   :  { %13222 = vmatprep.subr.bf16.mxu0 %v19206_v51 }
 0x3ac   :  { %13155 = vmatpush1.bf16.msra.mxu1 %v19243_v38 }
 0x3ad   :  { %13156 = vmatprep.subr.bf16.mxu1 %v19251_v44  ;;  %v19278_v44 = vld [vmem:[%s27379_s9 + $0x13bc] ss:$168 sps:$4 sm:$0xff]  }
 0x3ae   :  { %13223 = vmatpush1.bf16.msra.mxu0 %v19204_v9 }
 0x3af   :  { %13224 = vmatprep.subr.bf16.mxu0 %v19212_v10 }
 0x3b0   :  { %13157 = vmatpush1.bf16.msra.mxu1 %v19249_v48 }
 0x3b1   :  { %13158 = vmatprep.subr.bf16.mxu1 %v19257_v37 }
 0x3b2   :  { %13225 = vmatpush1.bf16.msra.mxu0 %v19210_v62 }
 0x3b3   :  { %13226 = vmatprep.subr.bf16.mxu0 %v19218_v52 }
 0x3b4   :  { %13159 = vmatpush1.bf16.msra.mxu1 %v19255_v8 }
 0x3b5   :  { %13160 = vmatprep.subr.bf16.mxu1 %v19263_v7 }
 0x3b6   :  { %13227 = vmatpush1.bf16.msra.mxu0 %v19216_v29  ;;  %v19281_v29 = vld [vmem:[%s27379_s9 + $0x1504] ss:$168 sps:$4 sm:$0xff]  }
 0x3b7   :  { %13228 = vmatprep.subr.bf16.mxu0 %v19224_v18 }
 0x3b8   :  { %13161 = vmatpush1.bf16.msra.mxu1 %v19261_v46 }
 0x3b9   :  { %13162 = vmatprep.subr.bf16.mxu1 %v19269_v39 }
 0x3ba   :  { %13229 = vmatpush1.bf16.msra.mxu0 %v19222_v19 }
 0x3bb   :  { %13230 = vmatprep.subr.bf16.mxu0 %v19230_v47 }
 0x3bc   :  { %13163 = vmatpush1.bf16.msra.mxu1 %v19267_v28 }
 0x3bd   :  { %13164 = vmatprep.subr.bf16.mxu1 %v19275_v15  ;;  %v23965_v15 = vld [vmem:[%s27380_s8] sm:$0x7] }
 0x3be   :  { %13231 = vmatpush1.bf16.msra.mxu0 %v19228_v32  ;;  %v7062_v32 = vrot.slane %v23965_v15, %v21590_v59 }
 0x3bf   :  { %13232 = vmatprep.subr.bf16.mxu0 %v19236_v41  ;;  %v7066_v41 = vrot.slane %v23965_v15, %v21593_v60 }
 0x3c0   :  { %13165 = vmatpush1.bf16.msra.mxu1 %v19273_v31  ;;  %v23971_v31 = vpop.permute.xlu0 %7055 }
 0x3c1   :  { %13175 = vmatprep.subr.bf16.mxu1 %v19281_v29  ;;  %v19290_v29 = vld [vmem:[%s27379_s9 + $0x165c] ss:$168 sps:$4 sm:$0xff]  }
 0x3c2   :  { %13233 = vmatpush1.bf16.msra.mxu0 %v19234_v13  ;;  %v23976_v13 = vld [vmem:[%s27381_s10] sm:$0x7] }
 0x3c3   :  { %13234 = vmatprep.subr.bf16.mxu0 %v19242_v24  ;;  %v7075_v24 = vmul.f32 %v7066_v41, %v23971_v31  ;;  %v19294_v41 = vld [vmem:[%s27379_s9 + $0x17a8] ss:$168 sps:$4 sm:$0xff]  }
 0x3c6   :  { %13235 = vmatpush1.bf16.msra.mxu0 %v19240_v36 }
 0x3c7   :  { %13236 = vmatprep.subr.bf16.mxu0 %v19248_v26 }
 0x3ca   :  { %13237 = vmatpush1.bf16.msra.mxu0 %v19246_v58 }
 0x3cb   :  { %13238 = vmatprep.subr.bf16.mxu0 %v19254_v5 }
 0x3ce   :  { %13239 = vmatpush1.bf16.msra.mxu0 %v19252_v43 }
 0x3cf   :  { %13240 = vmatprep.subr.bf16.mxu0 %v19260_v35 }
 0x3d2   :  { %13241 = vmatpush1.bf16.msra.mxu0 %v19258_v34 }
 0x3d3   :  { %13242 = vmatprep.subr.bf16.mxu0 %v19266_v54 }
 0x3d4   :  { %v6683_v53 = vpop.f32.mrb[56].mxu0 }
 0x3d5   :  { %v6684_v56 = vadd.f32 %v6683_v53, %v23789_v61  ;;  %v6724_v51 = vpop.f32.mrb[44].mxu1  ;;  %v6685_v38 = vpop.f32.mrb[57].mxu0  ;;  %v19276_v61 = vld [vmem:[%s27379_s9 + $0x13b8] ss:$168 sps:$4 sm:$0xff]  }
 0x3d6   :  { %v6686_v9 = vadd.f32 %v6685_v38, %v23794_v55  ;;  %v6726_v10 = vpop.f32.mrb[45].mxu1  ;;  %v6687_v48 = vpop.f32.mrb[58].mxu0  ;;  %13243 = vmatpush1.bf16.msra.mxu0 %v19264_v21  ;;  %v19284_v55 = vld [vmem:[%s27379_s9 + $0x150c] ss:$168 sps:$4 sm:$0xff]   ;;  %v15113_v21 = vrot.slane %v23976_v13, %v21590_v59 }
 0x3d7   :  { %v6725_v37 = vadd.f32 %v6724_v51, %v6684_v56  ;;  %v6728_v62 = vpop.f32.mrb[46].mxu1  ;;  %v6688_v52 = vpop.f32.mrb[59].mxu0  ;;  %13244 = vmatprep.subr.bf16.mxu0 %v19272_v3  ;;  %v15117_v51 = vrot.slane %v23976_v13, %v21593_v60  ;;  %v19279_v48 = vld [vmem:[%s27379_s9 + $0x1500] ss:$168 sps:$4 sm:$0xff]  }
 0x3d8   :  { %v6727_v8 = vadd.f32 %v6726_v10, %v6686_v9  ;;  %v6729_v7 = vpop.f32.mrb[47].mxu1 }
 0x3da   :  { %13245 = vmatpush1.bf16.msra.mxu0 %v19270_v63 }
 0x3db   :  { %13246 = vmatprep.subr.bf16.mxu0 %v19278_v44 }
 0x3de   :  { %13247 = vmatpush1.bf16.msra.mxu0 %v19276_v61  ;;  %v19287_v61 = vld [vmem:[%s27379_s9 + $0x1654] ss:$168 sps:$4 sm:$0xff]  }
 0x3df   :  { %13257 = vmatprep.subr.bf16.mxu0 %v19284_v55 }
 0x3f5   :  { %v17894_v18 = vpop.f32.mrb[48].mxu1 }
 0x3f6   :  { %v17895_v46 = vpop.f32.mrb[49].mxu1 }
 0x3f7   :  { %v17896_v39 = vadd.f32 %v17895_v46, %v17894_v18  ;;  %v17897_v19 = vpop.f32.mrb[50].mxu1  ;;  %v19285_v18 = vld [vmem:[%s27379_s9 + $0x1650] ss:$168 sps:$4 sm:$0xff]  }
 0x3f8   :  { %v17898_v47 = vpop.f32.mrb[51].mxu1  ;;  %v19288_v46 = vld [vmem:[%s27379_s9 + $0x1658] ss:$168 sps:$4 sm:$0xff]  }
 0x3f9   :  { %v6807_v28 = vadd.f32 %v17896_v39, %v23391_v30  ;;  %v7074_v30 = vmul.f32 %v7062_v32, %v23971_v31  ;;  %v19293_v47 = vld [vmem:[%s27379_s9 + $0x17a4] ss:$168 sps:$4 sm:$0xff]   ;;  %v19291_v32 = vld [vmem:[%s27379_s9 + $0x17a0] ss:$168 sps:$4 sm:$0xff]  }
 0x414   :  { %v6765_v36 = vpop.f32.mrb[60].mxu0 }
 0x415   :  { %v6766_v26 = vadd.f32 %v6765_v36, %v6725_v37  ;;  %v17916_v58 = vpop.f32.mrb[52].mxu1  ;;  %v6767_v5 = vpop.f32.mrb[61].mxu0  ;;  %v19282_v37 = vld [vmem:[%s27379_s9 + $0x1508] ss:$168 sps:$4 sm:$0xff]  }
 0x416   :  { %v6768_v43 = vadd.f32 %v6767_v5, %v6727_v8  ;;  %v17917_v35 = vpop.f32.mrb[53].mxu1  ;;  %v6769_v34 = vpop.f32.mrb[62].mxu0  ;;  %v19297_v36 = vld [vmem:[%s27379_s9 + $0x18f0] ss:$168 sps:$4 sm:$0xff]   ;;  %v19308_v5 = vld [vmem:[%s27379_s9 + $0x1a4c] ss:$168 sps:$4 sm:$0xff]  }
 0x417   :  { %v7077_v54 = vadd.f32 %v7074_v30, %v6766_v26  ;;  %v17918_v3 = vadd.f32 %v17917_v35, %v17916_v58  ;;  %v17919_v53 = vpop.f32.mrb[54].mxu1  ;;  %v6770_v63 = vpop.f32.mrb[63].mxu0  ;;  %v19299_v30 = vld [vmem:[%s27379_s9 + $0x18f4] ss:$168 sps:$4 sm:$0xff]   ;;  %v19300_v26 = vld [vmem:[%s27379_s9 + $0x18f8] ss:$168 sps:$4 sm:$0xff]  }
 0x418   :  { %v7078_v56 = vadd.f32 %v7075_v24, %v6768_v43  ;;  %v17920_v38 = vpop.f32.mrb[55].mxu1  ;;  %v19302_v24 = vld [vmem:[%s27379_s9 + $0x18fc] ss:$168 sps:$4 sm:$0xff]   ;;  %v19303_v43 = vld [vmem:[%s27379_s9 + $0x1a40] ss:$168 sps:$4 sm:$0xff]  }
 0x419   :  { %v7080_v44 = vmax.f32 %v7077_v54, 0.0  ;;  %v23984_v9 = vadd.f32 %v17918_v3, %v6807_v28  ;;  %v19296_v28 = vld [vmem:[%s27379_s9 + $0x17ac] ss:$168 sps:$4 sm:$0xff]   ;;  %v19306_v35 = vld [vmem:[%s27379_s9 + $0x1a48] ss:$168 sps:$4 sm:$0xff]  }
 0x41a   :  { %v7081_v10 = vmax.f32 %v7078_v56, 0.0  ;;  %v19305_v58 = vld [vmem:[%s27379_s9 + $0x1a44] ss:$168 sps:$4 sm:$0xff]   ;;  %v19311_v34 = vld [vmem:[%s27379_s9 + $0x1b94] ss:$168 sps:$4 sm:$0xff]  }
 0x41b   :  { %v15125_v62 = vmul.f32 %v15113_v21, %v7080_v44  ;;  %v23994_v7 = vpack.c.bf16 %v7080_v44, %v7080_v44  ;;  %v19314_v54 = vld [vmem:[%s27379_s9 + $0x1b9c] ss:$168 sps:$4 sm:$0xff]   ;;  %v19309_v21 = vld [vmem:[%s27379_s9 + $0x1b90] ss:$168 sps:$4 sm:$0xff]   ;;  %v19320_v63 = vld [vmem:[%s27379_s9 + $0x1cec] ss:$168 sps:$4 sm:$0xff]  }
 0x41c   :  { %v23992_v52 = vpack.c.bf16 %v7081_v10, %v7081_v10  ;;  %v15126_v8 = vmul.f32 %v15117_v51, %v7081_v10  ;;  %v19312_v3 = vld [vmem:[%s27379_s9 + $0x1b98] ss:$168 sps:$4 sm:$0xff]   ;;  %v19317_v53 = vld [vmem:[%s27379_s9 + $0x1ce4] ss:$168 sps:$4 sm:$0xff]   ;;  %v19318_v51 = vld [vmem:[%s27379_s9 + $0x1ce8] ss:$168 sps:$4 sm:$0xff]  }
 0x41d   :  { %v15129_v55 = vsel %vm15128_vm0, %v15125_v62, 0.0  ;;  %v19315_v56 = vld [vmem:[%s27379_s9 + $0x1ce0] ss:$168 sps:$4 sm:$0xff]  }
 0x41e   :  { %13166 = vmatprep.mubr.bf16.mxu1 %v23992_v52  ;;  %13248 = vmatprep.mubr.bf16.mxu0 %v23992_v52  ;;  %v15130_v39 = vsel %vm15128_vm0, %v15126_v8, 0.0 }
 0x41f   :  { %13167 = vmatmul.mubr.bf16.vlgmr.msra.gmra.mrb[64].mxu1 %v23994_v7  ;;  %13249 = vmatmul.mubr.bf16.vlgmr.msra.gmra.mrb[76].mxu0 %v23994_v7  ;;  %v24014_v19 = vadd.f32 %v15130_v39, %v15129_v55  ;;  %v19324_v55 = vld [vmem:[%s27379_s9 + $0x1e38] ss:$168 sps:$4 sm:$0xff]  }
 0x420   :  { %13176 = vmatpush1.bf16.msra.mxu1 %v19279_v48  ;;  %13258 = vmatpush1.bf16.msra.mxu0 %v19282_v37  ;;  %v19323_v48 = vld [vmem:[%s27379_s9 + $0x1e34] ss:$168 sps:$4 sm:$0xff]  }
 0x421   :  { %13177 = vmatprep.subr.bf16.mxu1 %v19287_v61  ;;  %13259 = vmatprep.subr.bf16.mxu0 %v19290_v29  ;;  %v19326_v37 = vld [vmem:[%s27379_s9 + $0x1e3c] ss:$168 sps:$4 sm:$0xff]   ;;  %v19321_v29 = vld [vmem:[%s27379_s9 + $0x1e30] ss:$168 sps:$4 sm:$0xff]  }
 0x422   :  { %13207 = vmatprep.mubr.bf16.mxu1 %v27396_v1  ;;  %13289 = vmatprep.mubr.bf16.mxu0 %v27396_v1 }
 0x424   :  { %13178 = vmatpush1.bf16.msra.mxu1 %v19285_v18  ;;  %13260 = vmatpush1.bf16.msra.mxu0 %v19288_v46 }
 0x425   :  { %13179 = vmatprep.subr.bf16.mxu1 %v19293_v47  ;;  %13261 = vmatprep.subr.bf16.mxu0 %v19296_v28 }
 0x428   :  { %13180 = vmatpush1.bf16.msra.mxu1 %v19291_v32  ;;  %13262 = vmatpush1.bf16.msra.mxu0 %v19294_v41  ;;  %v19329_v32 = vld [vmem:[%s27379_s9 + $0x14] ss:$168 sps:$4 sm:$0xff]  }
 0x429   :  { %13181 = vmatprep.subr.bf16.mxu1 %v19299_v30  ;;  %13263 = vmatprep.subr.bf16.mxu0 %v19302_v24  ;;  %v19332_v41 = vld [vmem:[%s27379_s9 + $0x1c] ss:$168 sps:$4 sm:$0xff]  }
 0x42c   :  { %13182 = vmatpush1.bf16.msra.mxu1 %v19297_v36  ;;  %13264 = vmatpush1.bf16.msra.mxu0 %v19300_v26 }
 0x42d   :  { %13183 = vmatprep.subr.bf16.mxu1 %v19305_v58  ;;  %13265 = vmatprep.subr.bf16.mxu0 %v19308_v5 }
 0x430   :  { %13184 = vmatpush1.bf16.msra.mxu1 %v19303_v43  ;;  %13266 = vmatpush1.bf16.msra.mxu0 %v19306_v35 }
 0x431   :  { %13185 = vmatprep.subr.bf16.mxu1 %v19311_v34  ;;  %13267 = vmatprep.subr.bf16.mxu0 %v19314_v54 }
 0x434   :  { %v17938_v38 = vpop.f32.mrb[64].mxu0  ;;  %13186 = vmatpush1.bf16.msra.mxu1 %v19309_v21  ;;  %13268 = vmatpush1.bf16.msra.mxu0 %v19312_v3 }
 0x435   :  { %v17960_v44 = vpop.f32.mrb[56].mxu1  ;;  %v17939_v10 = vpop.f32.mrb[65].mxu0  ;;  %13187 = vmatprep.subr.bf16.mxu1 %v19317_v53  ;;  %13269 = vmatprep.subr.bf16.mxu0 %v19320_v63  ;;  %v7070_v53 = vrot.slane %v23965_v15, %v21605_v14  ;;  %v19330_v15 = vld [vmem:[%s27379_s9 + $0x18] ss:$168 sps:$4 sm:$0xff]  }
 0x436   :  { %v17940_v62 = vadd.f32 %v17939_v10, %v17938_v38  ;;  %v17961_v8 = vpop.f32.mrb[57].mxu1  ;;  %v17941_v61 = vpop.f32.mrb[66].mxu0 }
 0x437   :  { %v17962_v18 = vadd.f32 %v17961_v8, %v17960_v44  ;;  %v17963_v46 = vpop.f32.mrb[58].mxu1  ;;  %v17942_v39 = vpop.f32.mrb[67].mxu0  ;;  %v7076_v10 = vmul.f32 %v7070_v53, %v23971_v31  ;;  %v19327_v8 = vld [vmem:[%s27379_s9 + $0x10] ss:$168 sps:$4 sm:$0xff]   ;;  %v19335_v31 = vld [vmem:[%s27379_s9 + $0x164] ss:$168 sps:$4 sm:$0xff]  }
 0x438   :  { %v6887_v47 = vadd.f32 %v17940_v62, %v23984_v9  ;;  %v17964_v28 = vpop.f32.mrb[59].mxu1  ;;  %13188 = vmatpush1.bf16.msra.mxu1 %v19315_v56  ;;  %13270 = vmatpush1.bf16.msra.mxu0 %v19318_v51  ;;  %v15121_v62 = vrot.slane %v23976_v13, %v21605_v14  ;;  %v19333_v13 = vld [vmem:[%s27379_s9 + $0x160] ss:$168 sps:$4 sm:$0xff]   ;;  %v19338_v46 = vld [vmem:[%s27379_s9 + $0x16c] ss:$168 sps:$4 sm:$0xff]  }
 0x439   :  { %13189 = vmatprep.subr.bf16.mxu1 %v19323_v48  ;;  %13271 = vmatprep.subr.bf16.mxu0 %v19326_v37  ;;  %v19341_v28 = vld [vmem:[%s27379_s9 + $0x2b4] ss:$168 sps:$4 sm:$0xff]  }
 0x43a   :  { %v6927_v30 = vadd.f32 %v17962_v18, %v6887_v47  ;;  %v19336_v18 = vld [vmem:[%s27379_s9 + $0x168] ss:$168 sps:$4 sm:$0xff]   ;;  %v19368_v53 = vld [vmem:[%s27379_s9 + $0x7fc] ss:$168 sps:$4 sm:$0xff]  }
 0x43c   :  { %13190 = vmatpush1.bf16.msra.mxu1 %v19321_v29  ;;  %13272 = vmatpush1.bf16.msra.mxu0 %v19324_v55 }
 0x43d   :  { %13298 = vmatprep.subr.bf16.mxu1 %v19329_v32  ;;  %13380 = vmatprep.subr.bf16.mxu0 %v19332_v41  ;;  %v19344_v32 = vld [vmem:[%s27379_s9 + $0x2bc] ss:$168 sps:$4 sm:$0xff]   ;;  %v19339_v41 = vld [vmem:[%s27379_s9 + $0x2b0] ss:$168 sps:$4 sm:$0xff]  }
 0x454   :  { %v17982_v24 = vpop.f32.mrb[68].mxu0 }
 0x455   :  { %v18004_v9 = vpop.f32.mrb[60].mxu1  ;;  %v17983_v36 = vpop.f32.mrb[69].mxu0 }
 0x456   :  { %v17984_v26 = vadd.f32 %v17983_v36, %v17982_v24  ;;  %v18005_v58 = vpop.f32.mrb[61].mxu1  ;;  %v17985_v5 = vpop.f32.mrb[70].mxu0  ;;  %v19350_v24 = vld [vmem:[%s27379_s9 + $0x40c] ss:$168 sps:$4 sm:$0xff]   ;;  %v19348_v36 = vld [vmem:[%s27379_s9 + $0x408] ss:$168 sps:$4 sm:$0xff]  }
 0x457   :  { %v18006_v43 = vadd.f32 %v18005_v58, %v18004_v9  ;;  %v18007_v35 = vpop.f32.mrb[62].mxu1  ;;  %v17986_v34 = vpop.f32.mrb[71].mxu0  ;;  %v19345_v9 = vld [vmem:[%s27379_s9 + $0x400] ss:$168 sps:$4 sm:$0xff]   ;;  %v19356_v58 = vld [vmem:[%s27379_s9 + $0x55c] ss:$168 sps:$4 sm:$0xff]  }
 0x458   :  { %v6967_v54 = vadd.f32 %v17984_v26, %v6927_v30  ;;  %v18008_v21 = vpop.f32.mrb[63].mxu1  ;;  %v19347_v30 = vld [vmem:[%s27379_s9 + $0x404] ss:$168 sps:$4 sm:$0xff]   ;;  %v19353_v26 = vld [vmem:[%s27379_s9 + $0x554] ss:$168 sps:$4 sm:$0xff]  }
 0x459   :  { %v19351_v5 = vld [vmem:[%s27379_s9 + $0x550] ss:$168 sps:$4 sm:$0xff]   ;;  %v19359_v35 = vld [vmem:[%s27379_s9 + $0x6a4] ss:$168 sps:$4 sm:$0xff]  }
 0x45a   :  { %v7007_v3 = vadd.f32 %v18006_v43, %v6967_v54  ;;  %v19354_v43 = vld [vmem:[%s27379_s9 + $0x558] ss:$168 sps:$4 sm:$0xff]   ;;  %v19362_v34 = vld [vmem:[%s27379_s9 + $0x6ac] ss:$168 sps:$4 sm:$0xff]   ;;  %v19360_v21 = vld [vmem:[%s27379_s9 + $0x6a8] ss:$168 sps:$4 sm:$0xff]  }
 0x45b   :  { %v19357_v54 = vld [vmem:[%s27379_s9 + $0x6a0] ss:$168 sps:$4 sm:$0xff]  }
 0x474   :  { %v18026_v63 = vpop.f32.mrb[72].mxu0 }
 0x475   :  { %v18027_v56 = vpop.f32.mrb[73].mxu0 }
 0x476   :  { %v18028_v51 = vadd.f32 %v18027_v56, %v18026_v63  ;;  %v18029_v38 = vpop.f32.mrb[74].mxu0  ;;  %v19363_v63 = vld [vmem:[%s27379_s9 + $0x7f0] ss:$168 sps:$4 sm:$0xff]  }
 0x477   :  { %v18030_v44 = vpop.f32.mrb[75].mxu0  ;;  %v19366_v56 = vld [vmem:[%s27379_s9 + $0x7f8] ss:$168 sps:$4 sm:$0xff]   ;;  %v19374_v38 = vld [vmem:[%s27379_s9 + $0x94c] ss:$168 sps:$4 sm:$0xff]  }
 0x478   :  { %v7047_v48 = vadd.f32 %v18028_v51, %v7007_v3  ;;  %v19365_v3 = vld [vmem:[%s27379_s9 + $0x7f4] ss:$168 sps:$4 sm:$0xff]   ;;  %v19371_v51 = vld [vmem:[%s27379_s9 + $0x944] ss:$168 sps:$4 sm:$0xff]   ;;  %v19369_v44 = vld [vmem:[%s27379_s9 + $0x940] ss:$168 sps:$4 sm:$0xff]  }
 0x47a   :  { %v7079_v37 = vadd.f32 %v7076_v10, %v7047_v48  ;;  %v19372_v10 = vld [vmem:[%s27379_s9 + $0x948] ss:$168 sps:$4 sm:$0xff]   ;;  %v19377_v48 = vld [vmem:[%s27379_s9 + $0xa94] ss:$168 sps:$4 sm:$0xff]  }
 0x47c   :  { %v7082_v61 = vmax.f32 %v7079_v37, 0.0  ;;  %v19380_v37 = vld [vmem:[%s27379_s9 + $0xa9c] ss:$168 sps:$4 sm:$0xff]  }
 0x47e   :  { %v24108_v29 = vpack.c.bf16 %v7082_v61, %v7082_v61  ;;  %v15127_v55 = vmul.f32 %v15121_v62, %v7082_v61  ;;  %v19375_v62 = vld [vmem:[%s27379_s9 + $0xa90] ss:$168 sps:$4 sm:$0xff]   ;;  %v19386_v61 = vld [vmem:[%s27379_s9 + $0xbec] ss:$168 sps:$4 sm:$0xff]  }
 0x480   :  { %13208 = vmatmul.mubr.bf16.vlgmr.msra.gmra.mrb[64].mxu1 %v24108_v29  ;;  %13290 = vmatmul.mubr.bf16.vlgmr.msra.gmra.mrb[76].mxu0 %v24108_v29  ;;  %v15132_v39 = vsel %vm15128_vm0, %v15127_v55, 0.0  ;;  %v19381_v55 = vld [vmem:[%s27379_s9 + $0xbe0] ss:$168 sps:$4 sm:$0xff]  }
 0x481   :  { %13299 = vmatpush1.bf16.msra.mxu1 %v19327_v8  ;;  %13381 = vmatpush1.bf16.msra.mxu0 %v19330_v15  ;;  %v15133_v47 = vadd.f32 %v15132_v39, %v24014_v19  ;;  %v19342_v19 = vld [vmem:[%s27379_s9 + $0x2b8] ss:$168 sps:$4 sm:$0xff]   ;;  %v19383_v15 = vld [vmem:[%s27379_s9 + $0xbe4] ss:$168 sps:$4 sm:$0xff]  }
 0x482   :  { %13330 = vmatprep.mubr.bf16.mxu1 %v23992_v52  ;;  %13412 = vmatprep.mubr.bf16.mxu0 %v23992_v52  ;;  %v19378_v8 = vld [vmem:[%s27379_s9 + $0xa98] ss:$168 sps:$4 sm:$0xff]  }
 0x483   :  { %15134 = vadd.xlane.f32.xlu0 %v15133_v47  ;;  %13300 = vmatprep.subr.bf16.mxu1 %v19335_v31  ;;  %v19384_v31 = vld [vmem:[%s27379_s9 + $0xbe8] ss:$168 sps:$4 sm:$0xff]   ;;  %v19390_v39 = vld [vmem:[%s27379_s9 + $0xd38] ss:$168 sps:$4 sm:$0xff]   ;;  %v19395_v47 = vld [vmem:[%s27379_s9 + $0xe84] ss:$168 sps:$4 sm:$0xff]  }
 0x484   :  { %13382 = vmatprep.subr.bf16.mxu0 %v19338_v46  ;;  %v19387_v46 = vld [vmem:[%s27379_s9 + $0xd30] ss:$168 sps:$4 sm:$0xff]  }
 0x485   :  { %13301 = vmatpush1.bf16.msra.mxu1 %v19333_v13  ;;  %13383 = vmatpush1.bf16.msra.mxu0 %v19336_v18  ;;  %v19389_v13 = vld [vmem:[%s27379_s9 + $0xd34] ss:$168 sps:$4 sm:$0xff]  }
 0x486   :  { %13302 = vmatprep.subr.bf16.mxu1 %v19341_v28  ;;  %13384 = vmatprep.subr.bf16.mxu0 %v19344_v32  ;;  %v19392_v18 = vld [vmem:[%s27379_s9 + $0xd3c] ss:$168 sps:$4 sm:$0xff]   ;;  %v19398_v28 = vld [vmem:[%s27379_s9 + $0xe8c] ss:$168 sps:$4 sm:$0xff]   ;;  %v19393_v32 = vld [vmem:[%s27379_s9 + $0xe80] ss:$168 sps:$4 sm:$0xff]  }
 0x489   :  { %13303 = vmatpush1.bf16.msra.mxu1 %v19339_v41  ;;  %13385 = vmatpush1.bf16.msra.mxu0 %v19342_v19  ;;  %v19396_v41 = vld [vmem:[%s27379_s9 + $0xe88] ss:$168 sps:$4 sm:$0xff]   ;;  %v19401_v19 = vld [vmem:[%s27379_s9 + $0xfd4] ss:$168 sps:$4 sm:$0xff]  }
 0x48a   :  { %13304 = vmatprep.subr.bf16.mxu1 %v19347_v30  ;;  %13386 = vmatprep.subr.bf16.mxu0 %v19350_v24  ;;  %v19404_v30 = vld [vmem:[%s27379_s9 + $0xfdc] ss:$168 sps:$4 sm:$0xff]   ;;  %v19399_v24 = vld [vmem:[%s27379_s9 + $0xfd0] ss:$168 sps:$4 sm:$0xff]  }
 0x48d   :  { %13305 = vmatpush1.bf16.msra.mxu1 %v19345_v9  ;;  %13387 = vmatpush1.bf16.msra.mxu0 %v19348_v36  ;;  %v19402_v9 = vld [vmem:[%s27379_s9 + $0xfd8] ss:$168 sps:$4 sm:$0xff]   ;;  %v27_v36 = vstv %s27382_s14 }
 0x48e   :  { %13306 = vmatprep.subr.bf16.mxu1 %v19353_v26  ;;  %13388 = vmatprep.subr.bf16.mxu0 %v19356_v58  ;;  %28 = vst [vmem:[#allocation3] sm:$0x1] %v27_v36  ;;  %v19407_v26 = vld [vmem:[%s27379_s9 + $0x1124] ss:$168 sps:$4 sm:$0xff]   ;;  %v19461_v36 = vld [vmem:[%s27379_s9 + $0x1cf4] ss:$168 sps:$4 sm:$0xff]  }
 0x48f   :  { %v19410_v58 = vld [vmem:[%s27379_s9 + $0x112c] ss:$168 sps:$4 sm:$0xff]  }
 0x491   :  { %13307 = vmatpush1.bf16.msra.mxu1 %v19351_v5  ;;  %13389 = vmatpush1.bf16.msra.mxu0 %v19354_v43  ;;  %v19405_v5 = vld [vmem:[%s27379_s9 + $0x1120] ss:$168 sps:$4 sm:$0xff]  }
 0x492   :  { %13308 = vmatprep.subr.bf16.mxu1 %v19359_v35  ;;  %13390 = vmatprep.subr.bf16.mxu0 %v19362_v34  ;;  %v19408_v43 = vld [vmem:[%s27379_s9 + $0x1128] ss:$168 sps:$4 sm:$0xff]   ;;  %v19413_v35 = vld [vmem:[%s27379_s9 + $0x1274] ss:$168 sps:$4 sm:$0xff]  }
 0x493   :  { %v19416_v34 = vld [vmem:[%s27379_s9 + $0x127c] ss:$168 sps:$4 sm:$0xff]  }
 0x495   :  { %13309 = vmatpush1.bf16.msra.mxu1 %v19357_v54  ;;  %13391 = vmatpush1.bf16.msra.mxu0 %v19360_v21  ;;  %v19411_v54 = vld [vmem:[%s27379_s9 + $0x1270] ss:$168 sps:$4 sm:$0xff]  }
 0x496   :  { %13310 = vmatprep.subr.bf16.mxu1 %v19365_v3  ;;  %13392 = vmatprep.subr.bf16.mxu0 %v19368_v53  ;;  %v19414_v21 = vld [vmem:[%s27379_s9 + $0x1278] ss:$168 sps:$4 sm:$0xff]   ;;  %v19419_v3 = vld [vmem:[%s27379_s9 + $0x13c4] ss:$168 sps:$4 sm:$0xff]  }
 0x497   :  { %v19422_v53 = vld [vmem:[%s27379_s9 + $0x13cc] ss:$168 sps:$4 sm:$0xff]  }
 0x499   :  { %13311 = vmatpush1.bf16.msra.mxu1 %v19363_v63  ;;  %13393 = vmatpush1.bf16.msra.mxu0 %v19366_v56  ;;  %v19417_v63 = vld [vmem:[%s27379_s9 + $0x13c0] ss:$168 sps:$4 sm:$0xff]  }
 0x49a   :  { %13312 = vmatprep.subr.bf16.mxu1 %v19371_v51  ;;  %13394 = vmatprep.subr.bf16.mxu0 %v19374_v38  ;;  %v19420_v56 = vld [vmem:[%s27379_s9 + $0x13c8] ss:$168 sps:$4 sm:$0xff]   ;;  %v19425_v51 = vld [vmem:[%s27379_s9 + $0x1514] ss:$168 sps:$4 sm:$0xff]  }
 0x49b   :  { %v19428_v38 = vld [vmem:[%s27379_s9 + $0x151c] ss:$168 sps:$4 sm:$0xff]  }
 0x49d   :  { %13313 = vmatpush1.bf16.msra.mxu1 %v19369_v44  ;;  %13395 = vmatpush1.bf16.msra.mxu0 %v19372_v10  ;;  %v19423_v44 = vld [vmem:[%s27379_s9 + $0x1510] ss:$168 sps:$4 sm:$0xff]  }
 0x49e   :  { %13314 = vmatprep.subr.bf16.mxu1 %v19377_v48  ;;  %13396 = vmatprep.subr.bf16.mxu0 %v19380_v37  ;;  %v19426_v10 = vld [vmem:[%s27379_s9 + $0x1518] ss:$168 sps:$4 sm:$0xff]   ;;  %v19431_v48 = vld [vmem:[%s27379_s9 + $0x1664] ss:$168 sps:$4 sm:$0xff]  }
 0x49f   :  { %v19434_v37 = vld [vmem:[%s27379_s9 + $0x166c] ss:$168 sps:$4 sm:$0xff]  }
 0x4a1   :  { %13315 = vmatpush1.bf16.msra.mxu1 %v19375_v62  ;;  %13397 = vmatpush1.bf16.msra.mxu0 %v19378_v8  ;;  %v19429_v62 = vld [vmem:[%s27379_s9 + $0x1660] ss:$168 sps:$4 sm:$0xff]  }
 0x4a2   :  { %13316 = vmatprep.subr.bf16.mxu1 %v19383_v15  ;;  %13398 = vmatprep.subr.bf16.mxu0 %v19386_v61  ;;  %v19432_v8 = vld [vmem:[%s27379_s9 + $0x1668] ss:$168 sps:$4 sm:$0xff]   ;;  %v19437_v15 = vld [vmem:[%s27379_s9 + $0x17b4] ss:$168 sps:$4 sm:$0xff]  }
 0x4a3   :  { %v19440_v61 = vld [vmem:[%s27379_s9 + $0x17bc] ss:$168 sps:$4 sm:$0xff]  }
 0x4a5   :  { %13317 = vmatpush1.bf16.msra.mxu1 %v19381_v55  ;;  %13399 = vmatpush1.bf16.msra.mxu0 %v19384_v31  ;;  %v19435_v55 = vld [vmem:[%s27379_s9 + $0x17b0] ss:$168 sps:$4 sm:$0xff]  }
 0x4a6   :  { %13318 = vmatprep.subr.bf16.mxu1 %v19389_v13  ;;  %13400 = vmatprep.subr.bf16.mxu0 %v19392_v18  ;;  %v19438_v31 = vld [vmem:[%s27379_s9 + $0x17b8] ss:$168 sps:$4 sm:$0xff]   ;;  %v19443_v13 = vld [vmem:[%s27379_s9 + $0x1904] ss:$168 sps:$4 sm:$0xff]  }
 0x4a7   :  { %v19446_v18 = vld [vmem:[%s27379_s9 + $0x190c] ss:$168 sps:$4 sm:$0xff]  }
 0x4a9   :  { %13319 = vmatpush1.bf16.msra.mxu1 %v19387_v46  ;;  %13401 = vmatpush1.bf16.msra.mxu0 %v19390_v39  ;;  %v19441_v46 = vld [vmem:[%s27379_s9 + $0x1900] ss:$168 sps:$4 sm:$0xff]  }
 0x4aa   :  { %13320 = vmatprep.subr.bf16.mxu1 %v19395_v47  ;;  %13402 = vmatprep.subr.bf16.mxu0 %v19398_v28  ;;  %v19444_v39 = vld [vmem:[%s27379_s9 + $0x1908] ss:$168 sps:$4 sm:$0xff]   ;;  %v19449_v47 = vld [vmem:[%s27379_s9 + $0x1a54] ss:$168 sps:$4 sm:$0xff]  }
 0x4ab   :  { %v19452_v28 = vld [vmem:[%s27379_s9 + $0x1a5c] ss:$168 sps:$4 sm:$0xff]  }
 0x4ad   :  { %13321 = vmatpush1.bf16.msra.mxu1 %v19393_v32  ;;  %13403 = vmatpush1.bf16.msra.mxu0 %v19396_v41  ;;  %v19447_v32 = vld [vmem:[%s27379_s9 + $0x1a50] ss:$168 sps:$4 sm:$0xff]  }
 0x4ae   :  { %13322 = vmatprep.subr.bf16.mxu1 %v19401_v19  ;;  %13404 = vmatprep.subr.bf16.mxu0 %v19404_v30  ;;  %v19450_v41 = vld [vmem:[%s27379_s9 + $0x1a58] ss:$168 sps:$4 sm:$0xff]   ;;  %v19455_v19 = vld [vmem:[%s27379_s9 + $0x1ba4] ss:$168 sps:$4 sm:$0xff]  }
 0x4af   :  { %v19458_v30 = vld [vmem:[%s27379_s9 + $0x1bac] ss:$168 sps:$4 sm:$0xff]  }
 0x4b1   :  { %13323 = vmatpush1.bf16.msra.mxu1 %v19399_v24  ;;  %13405 = vmatpush1.bf16.msra.mxu0 %v19402_v9  ;;  %v19453_v24 = vld [vmem:[%s27379_s9 + $0x1ba0] ss:$168 sps:$4 sm:$0xff]  }
 0x4b2   :  { %13324 = vmatprep.subr.bf16.mxu1 %v19407_v26  ;;  %13406 = vmatprep.subr.bf16.mxu0 %v19410_v58  ;;  %v19456_v9 = vld [vmem:[%s27379_s9 + $0x1ba8] ss:$168 sps:$4 sm:$0xff]   ;;  %v19464_v26 = vld [vmem:[%s27379_s9 + $0x1cfc] ss:$168 sps:$4 sm:$0xff]  }
 0x4b3   :  { %v19459_v58 = vld [vmem:[%s27379_s9 + $0x1cf0] ss:$168 sps:$4 sm:$0xff]  }
 0x4b5   :  { %13325 = vmatpush1.bf16.msra.mxu1 %v19405_v5  ;;  %13407 = vmatpush1.bf16.msra.mxu0 %v19408_v43  ;;  %v19462_v5 = vld [vmem:[%s27379_s9 + $0x1cf8] ss:$168 sps:$4 sm:$0xff]   ;;  %v19467_v43 = vld [vmem:[%s27379_s9 + $0x1e44] ss:$168 sps:$4 sm:$0xff]  }
 0x4b6   :  { %13326 = vmatprep.subr.bf16.mxu1 %v19413_v35  ;;  %13408 = vmatprep.subr.bf16.mxu0 %v19416_v34  ;;  %v19470_v35 = vld [vmem:[%s27379_s9 + $0x1e4c] ss:$168 sps:$4 sm:$0xff]   ;;  %v19465_v34 = vld [vmem:[%s27379_s9 + $0x1e40] ss:$168 sps:$4 sm:$0xff]  }
 0x4b9   :  { %13327 = vmatpush1.bf16.msra.mxu1 %v19411_v54  ;;  %13409 = vmatpush1.bf16.msra.mxu0 %v19414_v21  ;;  %v19468_v54 = vld [vmem:[%s27379_s9 + $0x1e48] ss:$168 sps:$4 sm:$0xff]   ;;  %v19473_v21 = vld [vmem:[%s27379_s9 + $0x24] ss:$168 sps:$4 sm:$0xff]  }
 0x4ba   :  { %13328 = vmatprep.subr.bf16.mxu1 %v19419_v3  ;;  %13410 = vmatprep.subr.bf16.mxu0 %v19422_v53  ;;  %v19476_v3 = vld [vmem:[%s27379_s9 + $0x2c] ss:$168 sps:$4 sm:$0xff]   ;;  %v19471_v53 = vld [vmem:[%s27379_s9 + $0x20] ss:$168 sps:$4 sm:$0xff]  }
 0x4bd   :  { %13329 = vmatpush1.bf16.msra.mxu1 %v19417_v63  ;;  %13411 = vmatpush1.bf16.msra.mxu0 %v19420_v56  ;;  %v19474_v63 = vld [vmem:[%s27379_s9 + $0x28] ss:$168 sps:$4 sm:$0xff]   ;;  %v19479_v56 = vld [vmem:[%s27379_s9 + $0x174] ss:$168 sps:$4 sm:$0xff]  }
 0x4be   :  { %13339 = vmatprep.subr.bf16.mxu1 %v19425_v51  ;;  %13421 = vmatprep.subr.bf16.mxu0 %v19428_v38  ;;  %v19482_v51 = vld [vmem:[%s27379_s9 + $0x17c] ss:$168 sps:$4 sm:$0xff]   ;;  %v19477_v38 = vld [vmem:[%s27379_s9 + $0x170] ss:$168 sps:$4 sm:$0xff]  }
 0x4c0   :  { %13331 = vmatmul.mubr.bf16.vlgmr.msra.gmra.mrb[68].mxu1 %v23994_v7  ;;  %13413 = vmatmul.mubr.bf16.vlgmr.msra.gmra.mrb[80].mxu0 %v23994_v7 }
 0x4c1   :  { %13340 = vmatpush1.bf16.msra.mxu1 %v19423_v44  ;;  %13422 = vmatpush1.bf16.msra.mxu0 %v19426_v10  ;;  %v19480_v44 = vld [vmem:[%s27379_s9 + $0x178] ss:$168 sps:$4 sm:$0xff]   ;;  %v19485_v10 = vld [vmem:[%s27379_s9 + $0x2c4] ss:$168 sps:$4 sm:$0xff]  }
 0x4c2   :  { %13341 = vmatprep.subr.bf16.mxu1 %v19431_v48  ;;  %13423 = vmatprep.subr.bf16.mxu0 %v19434_v37  ;;  %v19488_v48 = vld [vmem:[%s27379_s9 + $0x2cc] ss:$168 sps:$4 sm:$0xff]   ;;  %v19483_v37 = vld [vmem:[%s27379_s9 + $0x2c0] ss:$168 sps:$4 sm:$0xff]  }
 0x4c3   :  { %13371 = vmatprep.mubr.bf16.mxu1 %v27396_v1  ;;  %13453 = vmatprep.mubr.bf16.mxu0 %v27396_v1 }
 0x4c5   :  { %13342 = vmatpush1.bf16.msra.mxu1 %v19429_v62  ;;  %13424 = vmatpush1.bf16.msra.mxu0 %v19432_v8  ;;  %v19486_v62 = vld [vmem:[%s27379_s9 + $0x2c8] ss:$168 sps:$4 sm:$0xff]   ;;  %v19491_v8 = vld [vmem:[%s27379_s9 + $0x414] ss:$168 sps:$4 sm:$0xff]  }
 0x4c6   :  { %13343 = vmatprep.subr.bf16.mxu1 %v19437_v15  ;;  %13425 = vmatprep.subr.bf16.mxu0 %v19440_v61  ;;  %v19494_v15 = vld [vmem:[%s27379_s9 + $0x41c] ss:$168 sps:$4 sm:$0xff]   ;;  %v19489_v61 = vld [vmem:[%s27379_s9 + $0x410] ss:$168 sps:$4 sm:$0xff]  }
 0x4c9   :  { %13344 = vmatpush1.bf16.msra.mxu1 %v19435_v55  ;;  %13426 = vmatpush1.bf16.msra.mxu0 %v19438_v31  ;;  %v19492_v55 = vld [vmem:[%s27379_s9 + $0x418] ss:$168 sps:$4 sm:$0xff]   ;;  %v19497_v31 = vld [vmem:[%s27379_s9 + $0x564] ss:$168 sps:$4 sm:$0xff]  }
 0x4ca   :  { %13345 = vmatprep.subr.bf16.mxu1 %v19443_v13  ;;  %13427 = vmatprep.subr.bf16.mxu0 %v19446_v18  ;;  %v19500_v13 = vld [vmem:[%s27379_s9 + $0x56c] ss:$168 sps:$4 sm:$0xff]   ;;  %v19495_v18 = vld [vmem:[%s27379_s9 + $0x560] ss:$168 sps:$4 sm:$0xff]  }
 0x4cd   :  { %13346 = vmatpush1.bf16.msra.mxu1 %v19441_v46  ;;  %13428 = vmatpush1.bf16.msra.mxu0 %v19444_v39  ;;  %v19498_v46 = vld [vmem:[%s27379_s9 + $0x568] ss:$168 sps:$4 sm:$0xff]   ;;  %v19503_v39 = vld [vmem:[%s27379_s9 + $0x6b4] ss:$168 sps:$4 sm:$0xff]  }
 0x4ce   :  { %13347 = vmatprep.subr.bf16.mxu1 %v19449_v47  ;;  %13429 = vmatprep.subr.bf16.mxu0 %v19452_v28  ;;  %v19506_v47 = vld [vmem:[%s27379_s9 + $0x6bc] ss:$168 sps:$4 sm:$0xff]   ;;  %v19501_v28 = vld [vmem:[%s27379_s9 + $0x6b0] ss:$168 sps:$4 sm:$0xff]  }
 0x4d1   :  { %13348 = vmatpush1.bf16.msra.mxu1 %v19447_v32  ;;  %13430 = vmatpush1.bf16.msra.mxu0 %v19450_v41  ;;  %v19504_v32 = vld [vmem:[%s27379_s9 + $0x6b8] ss:$168 sps:$4 sm:$0xff]   ;;  %v19509_v41 = vld [vmem:[%s27379_s9 + $0x804] ss:$168 sps:$4 sm:$0xff]  }
 0x4d2   :  { %13349 = vmatprep.subr.bf16.mxu1 %v19455_v19  ;;  %13431 = vmatprep.subr.bf16.mxu0 %v19458_v30  ;;  %v19512_v19 = vld [vmem:[%s27379_s9 + $0x80c] ss:$168 sps:$4 sm:$0xff]   ;;  %v19507_v30 = vld [vmem:[%s27379_s9 + $0x800] ss:$168 sps:$4 sm:$0xff]  }
 0x4d5   :  { %13350 = vmatpush1.bf16.msra.mxu1 %v19453_v24  ;;  %13432 = vmatpush1.bf16.msra.mxu0 %v19456_v9  ;;  %v19510_v24 = vld [vmem:[%s27379_s9 + $0x808] ss:$168 sps:$4 sm:$0xff]   ;;  %v19515_v9 = vld [vmem:[%s27379_s9 + $0x954] ss:$168 sps:$4 sm:$0xff]  }
 0x4d6   :  { %13351 = vmatprep.subr.bf16.mxu1 %v19461_v36  ;;  %13433 = vmatprep.subr.bf16.mxu0 %v19464_v26  ;;  %v19518_v36 = vld [vmem:[%s27379_s9 + $0x95c] ss:$168 sps:$4 sm:$0xff]   ;;  %v19513_v26 = vld [vmem:[%s27379_s9 + $0x950] ss:$168 sps:$4 sm:$0xff]  }
 0x4d9   :  { %13352 = vmatpush1.bf16.msra.mxu1 %v19459_v58  ;;  %13434 = vmatpush1.bf16.msra.mxu0 %v19462_v5  ;;  %v19516_v58 = vld [vmem:[%s27379_s9 + $0x958] ss:$168 sps:$4 sm:$0xff]   ;;  %v19521_v5 = vld [vmem:[%s27379_s9 + $0xaa4] ss:$168 sps:$4 sm:$0xff]  }
 0x4da   :  { %13353 = vmatprep.subr.bf16.mxu1 %v19467_v43  ;;  %13435 = vmatprep.subr.bf16.mxu0 %v19470_v35  ;;  %v19519_v43 = vld [vmem:[%s27379_s9 + $0xaa0] ss:$168 sps:$4 sm:$0xff]   ;;  %v19524_v35 = vld [vmem:[%s27379_s9 + $0xaac] ss:$168 sps:$4 sm:$0xff]  }
 0x4dd   :  { %13354 = vmatpush1.bf16.msra.mxu1 %v19465_v34  ;;  %13436 = vmatpush1.bf16.msra.mxu0 %v19468_v54  ;;  %v19522_v34 = vld [vmem:[%s27379_s9 + $0xaa8] ss:$168 sps:$4 sm:$0xff]   ;;  %v19527_v54 = vld [vmem:[%s27379_s9 + $0xbf4] ss:$168 sps:$4 sm:$0xff]  }
 0x4de   :  { %13462 = vmatprep.subr.bf16.mxu1 %v19473_v21  ;;  %13544 = vmatprep.subr.bf16.mxu0 %v19476_v3  ;;  %v19530_v21 = vld [vmem:[%s27379_s9 + $0xbfc] ss:$168 sps:$4 sm:$0xff]   ;;  %v19525_v3 = vld [vmem:[%s27379_s9 + $0xbf0] ss:$168 sps:$4 sm:$0xff]  }
 0x4e0   :  { %13372 = vmatmul.mubr.bf16.vlgmr.msra.gmra.mrb[68].mxu1 %v24108_v29  ;;  %13454 = vmatmul.mubr.bf16.vlgmr.msra.gmra.mrb[80].mxu0 %v24108_v29 }
 0x4e1   :  { %13463 = vmatpush1.bf16.msra.mxu1 %v19471_v53  ;;  %13494 = vmatprep.mubr.bf16.mxu1 %v23992_v52  ;;  %v19528_v53 = vld [vmem:[%s27379_s9 + $0xbf8] ss:$168 sps:$4 sm:$0xff]  }
 0x4e2   :  { %13545 = vmatpush1.bf16.msra.mxu0 %v19474_v63  ;;  %13576 = vmatprep.mubr.bf16.mxu0 %v23992_v52  ;;  %v19533_v63 = vld [vmem:[%s27379_s9 + $0xd44] ss:$168 sps:$4 sm:$0xff]  }
 0x4e3   :  { %13464 = vmatprep.subr.bf16.mxu1 %v19479_v56  ;;  %13546 = vmatprep.subr.bf16.mxu0 %v19482_v51  ;;  %v19531_v56 = vld [vmem:[%s27379_s9 + $0xd40] ss:$168 sps:$4 sm:$0xff]   ;;  %v19536_v51 = vld [vmem:[%s27379_s9 + $0xd4c] ss:$168 sps:$4 sm:$0xff]  }
 0x4e5   :  { %13465 = vmatpush1.bf16.msra.mxu1 %v19477_v38  ;;  %v19534_v38 = vld [vmem:[%s27379_s9 + $0xd48] ss:$168 sps:$4 sm:$0xff]  }
 0x4e6   :  { %13547 = vmatpush1.bf16.msra.mxu0 %v19480_v44  ;;  %13466 = vmatprep.subr.bf16.mxu1 %v19485_v10  ;;  %v19539_v44 = vld [vmem:[%s27379_s9 + $0xe94] ss:$168 sps:$4 sm:$0xff]   ;;  %v19537_v10 = vld [vmem:[%s27379_s9 + $0xe90] ss:$168 sps:$4 sm:$0xff]  }
 0x4e7   :  { %13548 = vmatprep.subr.bf16.mxu0 %v19488_v48  ;;  %v19542_v48 = vld [vmem:[%s27379_s9 + $0xe9c] ss:$168 sps:$4 sm:$0xff]  }
 0x4e9   :  { %13467 = vmatpush1.bf16.msra.mxu1 %v19483_v37  ;;  %v19540_v37 = vld [vmem:[%s27379_s9 + $0xe98] ss:$168 sps:$4 sm:$0xff]  }
 0x4ea   :  { %13549 = vmatpush1.bf16.msra.mxu0 %v19486_v62  ;;  %13468 = vmatprep.subr.bf16.mxu1 %v19491_v8  ;;  %v19545_v62 = vld [vmem:[%s27379_s9 + $0xfe4] ss:$168 sps:$4 sm:$0xff]   ;;  %v19543_v8 = vld [vmem:[%s27379_s9 + $0xfe0] ss:$168 sps:$4 sm:$0xff]  }
 0x4eb   :  { %13550 = vmatprep.subr.bf16.mxu0 %v19494_v15  ;;  %v19548_v15 = vld [vmem:[%s27379_s9 + $0xfec] ss:$168 sps:$4 sm:$0xff]  }
 0x4ed   :  { %13469 = vmatpush1.bf16.msra.mxu1 %v19489_v61  ;;  %v19546_v61 = vld [vmem:[%s27379_s9 + $0xfe8] ss:$168 sps:$4 sm:$0xff]  }
 0x4ee   :  { %13551 = vmatpush1.bf16.msra.mxu0 %v19492_v55  ;;  %13470 = vmatprep.subr.bf16.mxu1 %v19497_v31  ;;  %v19551_v55 = vld [vmem:[%s27379_s9 + $0x1134] ss:$168 sps:$4 sm:$0xff]  }
 0x4ef   :  { %13552 = vmatprep.subr.bf16.mxu0 %v19500_v13  ;;  %v19554_v31 = vld [vmem:[%s27379_s9 + $0x113c] ss:$168 sps:$4 sm:$0xff]   ;;  %v19549_v13 = vld [vmem:[%s27379_s9 + $0x1130] ss:$168 sps:$4 sm:$0xff]  }
 0x4f1   :  { %13471 = vmatpush1.bf16.msra.mxu1 %v19495_v18 }
 0x4f2   :  { %13553 = vmatpush1.bf16.msra.mxu0 %v19498_v46  ;;  %13472 = vmatprep.subr.bf16.mxu1 %v19503_v39  ;;  %v19552_v39 = vld [vmem:[%s27379_s9 + $0x1138] ss:$168 sps:$4 sm:$0xff]  }
 0x4f3   :  { %13554 = vmatprep.subr.bf16.mxu0 %v19506_v47  ;;  %v19557_v47 = vld [vmem:[%s27379_s9 + $0x1284] ss:$168 sps:$4 sm:$0xff]  }
 0x4f5   :  { %13473 = vmatpush1.bf16.msra.mxu1 %v19501_v28  ;;  %v19560_v28 = vld [vmem:[%s27379_s9 + $0x128c] ss:$168 sps:$4 sm:$0xff]  }
 0x4f6   :  { %13555 = vmatpush1.bf16.msra.mxu0 %v19504_v32  ;;  %13474 = vmatprep.subr.bf16.mxu1 %v19509_v41  ;;  %v19555_v32 = vld [vmem:[%s27379_s9 + $0x1280] ss:$168 sps:$4 sm:$0xff]  }
 0x4f7   :  { %13556 = vmatprep.subr.bf16.mxu0 %v19512_v19  ;;  %v19558_v41 = vld [vmem:[%s27379_s9 + $0x1288] ss:$168 sps:$4 sm:$0xff]   ;;  %v19563_v19 = vld [vmem:[%s27379_s9 + $0x13d4] ss:$168 sps:$4 sm:$0xff]  }
 0x4f9   :  { %13475 = vmatpush1.bf16.msra.mxu1 %v19507_v30  ;;  %v19566_v30 = vld [vmem:[%s27379_s9 + $0x13dc] ss:$168 sps:$4 sm:$0xff]  }
 0x4fa   :  { %13557 = vmatpush1.bf16.msra.mxu0 %v19510_v24  ;;  %13476 = vmatprep.subr.bf16.mxu1 %v19515_v9  ;;  %v19561_v24 = vld [vmem:[%s27379_s9 + $0x13d0] ss:$168 sps:$4 sm:$0xff]  }
 0x4fb   :  { %13558 = vmatprep.subr.bf16.mxu0 %v19518_v36  ;;  %v19564_v9 = vld [vmem:[%s27379_s9 + $0x13d8] ss:$168 sps:$4 sm:$0xff]   ;;  %v19569_v36 = vld [vmem:[%s27379_s9 + $0x1524] ss:$168 sps:$4 sm:$0xff]  }
 0x4fd   :  { %13477 = vmatpush1.bf16.msra.mxu1 %v19513_v26  ;;  %v19572_v26 = vld [vmem:[%s27379_s9 + $0x152c] ss:$168 sps:$4 sm:$0xff]  }
 0x4fe   :  { %13559 = vmatpush1.bf16.msra.mxu0 %v19516_v58  ;;  %13478 = vmatprep.subr.bf16.mxu1 %v19521_v5  ;;  %v19567_v58 = vld [vmem:[%s27379_s9 + $0x1520] ss:$168 sps:$4 sm:$0xff]  }
 0x4ff   :  { %13560 = vmatprep.subr.bf16.mxu0 %v19524_v35  ;;  %v19570_v5 = vld [vmem:[%s27379_s9 + $0x1528] ss:$168 sps:$4 sm:$0xff]  }
 0x501   :  { %13479 = vmatpush1.bf16.msra.mxu1 %v19519_v43  ;;  %v19575_v43 = vld [vmem:[%s27379_s9 + $0x1674] ss:$168 sps:$4 sm:$0xff]  }
 0x502   :  { %13561 = vmatpush1.bf16.msra.mxu0 %v19522_v34  ;;  %13480 = vmatprep.subr.bf16.mxu1 %v19527_v54  ;;  %v19578_v34 = vld [vmem:[%s27379_s9 + $0x167c] ss:$168 sps:$4 sm:$0xff]  }
 0x503   :  { %13562 = vmatprep.subr.bf16.mxu0 %v19530_v21  ;;  %v19573_v21 = vld [vmem:[%s27379_s9 + $0x1670] ss:$168 sps:$4 sm:$0xff]  }
 0x505   :  { %13481 = vmatpush1.bf16.msra.mxu1 %v19525_v3  ;;  %v19576_v3 = vld [vmem:[%s27379_s9 + $0x1678] ss:$168 sps:$4 sm:$0xff]  }
 0x506   :  { %13563 = vmatpush1.bf16.msra.mxu0 %v19528_v53  ;;  %13482 = vmatprep.subr.bf16.mxu1 %v19533_v63  ;;  %v19581_v53 = vld [vmem:[%s27379_s9 + $0x17c4] ss:$168 sps:$4 sm:$0xff]  }
 0x507   :  { %13564 = vmatprep.subr.bf16.mxu0 %v19536_v51  ;;  %v19584_v63 = vld [vmem:[%s27379_s9 + $0x17cc] ss:$168 sps:$4 sm:$0xff]   ;;  %v19582_v51 = vld [vmem:[%s27379_s9 + $0x17c8] ss:$168 sps:$4 sm:$0xff]  }
 0x509   :  { %13483 = vmatpush1.bf16.msra.mxu1 %v19531_v56  ;;  %v19579_v56 = vld [vmem:[%s27379_s9 + $0x17c0] ss:$168 sps:$4 sm:$0xff]  }
 0x50a   :  { %13565 = vmatpush1.bf16.msra.mxu0 %v19534_v38  ;;  %13484 = vmatprep.subr.bf16.mxu1 %v19539_v44  ;;  %v19587_v38 = vld [vmem:[%s27379_s9 + $0x1914] ss:$168 sps:$4 sm:$0xff]   ;;  %v19585_v44 = vld [vmem:[%s27379_s9 + $0x1910] ss:$168 sps:$4 sm:$0xff]  }
 0x50b   :  { %13566 = vmatprep.subr.bf16.mxu0 %v19542_v48 }
 0x50d   :  { %13485 = vmatpush1.bf16.msra.mxu1 %v19537_v10  ;;  %v19590_v10 = vld [vmem:[%s27379_s9 + $0x191c] ss:$168 sps:$4 sm:$0xff]  }
 0x50e   :  { %13567 = vmatpush1.bf16.msra.mxu0 %v19540_v37  ;;  %13486 = vmatprep.subr.bf16.mxu1 %v19545_v62  ;;  %v19588_v37 = vld [vmem:[%s27379_s9 + $0x1918] ss:$168 sps:$4 sm:$0xff]   ;;  %v19593_v62 = vld [vmem:[%s27379_s9 + $0x1a64] ss:$168 sps:$4 sm:$0xff]  }
 0x50f   :  { %13568 = vmatprep.subr.bf16.mxu0 %v19548_v15  ;;  %v19596_v15 = vld [vmem:[%s27379_s9 + $0x1a6c] ss:$168 sps:$4 sm:$0xff]  }
 0x510   :  { %v15135_v18 = vpop.xlane.xlu0 %15134 }
 0x511   :  { %v17719_v46 = vmul.f32 -1.442695, %v15135_v18  ;;  %13487 = vmatpush1.bf16.msra.mxu1 %v19543_v8  ;;  %v19591_v8 = vld [vmem:[%s27379_s9 + $0x1a60] ss:$168 sps:$4 sm:$0xff]   ;;  %v19597_v18 = vld [vmem:[%s27379_s9 + $0x1bb0] ss:$168 sps:$4 sm:$0xff]  }
 0x512   :  { %13569 = vmatpush1.bf16.msra.mxu0 %v19546_v61  ;;  %13488 = vmatprep.subr.bf16.mxu1 %v19551_v55  ;;  %v20923_v61 = vld [vmem:[%s27378_s1] sm:$0x3] }
 0x513   :  { %20751 = vpow2.f32 %v17719_v46  ;;  %13570 = vmatprep.subr.bf16.mxu0 %v19554_v31  ;;  %v19594_v31 = vld [vmem:[%s27379_s9 + $0x1a68] ss:$168 sps:$4 sm:$0xff]   ;;  %v19602_v46 = vld [vmem:[%s27379_s9 + $0x1bbc] ss:$168 sps:$4 sm:$0xff]  }
 0x515   :  { %13489 = vmatpush1.bf16.msra.mxu1 %v19549_v13  ;;  %v19599_v13 = vld [vmem:[%s27379_s9 + $0x1bb4] ss:$168 sps:$4 sm:$0xff]  }
 0x516   :  { %13571 = vmatpush1.bf16.msra.mxu0 %v19552_v39  ;;  %13490 = vmatprep.subr.bf16.mxu1 %v19557_v47  ;;  %v19600_v39 = vld [vmem:[%s27379_s9 + $0x1bb8] ss:$168 sps:$4 sm:$0xff]   ;;  %v19605_v47 = vld [vmem:[%s27379_s9 + $0x1d04] ss:$168 sps:$4 sm:$0xff]  }
 0x517   :  { %13572 = vmatprep.subr.bf16.mxu0 %v19560_v28  ;;  %v19608_v28 = vld [vmem:[%s27379_s9 + $0x1d0c] ss:$168 sps:$4 sm:$0xff]  }
 0x519   :  { %13491 = vmatpush1.bf16.msra.mxu1 %v19555_v32  ;;  %v19603_v32 = vld [vmem:[%s27379_s9 + $0x1d00] ss:$168 sps:$4 sm:$0xff]  }
 0x51a   :  { %13573 = vmatpush1.bf16.msra.mxu0 %v19558_v41  ;;  %13492 = vmatprep.subr.bf16.mxu1 %v19563_v19  ;;  %v19606_v41 = vld [vmem:[%s27379_s9 + $0x1d08] ss:$168 sps:$4 sm:$0xff]   ;;  %v19611_v19 = vld [vmem:[%s27379_s9 + $0x1e54] ss:$168 sps:$4 sm:$0xff]  }
 0x51b   :  { %13574 = vmatprep.subr.bf16.mxu0 %v19566_v30  ;;  %v19614_v30 = vld [vmem:[%s27379_s9 + $0x1e5c] ss:$168 sps:$4 sm:$0xff]  }
 0x51d   :  { %v20752_v35 = vpop.eup %20751  ;;  %13493 = vmatpush1.bf16.msra.mxu1 %v19561_v24  ;;  %v19609_v24 = vld [vmem:[%s27379_s9 + $0x1e50] ss:$168 sps:$4 sm:$0xff]  }
 0x51e   :  { %v15139_v54 = vadd.f32 1.0, %v20752_v35  ;;  %13575 = vmatpush1.bf16.msra.mxu0 %v19564_v9  ;;  %13503 = vmatprep.subr.bf16.mxu1 %v19569_v36  ;;  %v19612_v9 = vld [vmem:[%s27379_s9 + $0x1e58] ss:$168 sps:$4 sm:$0xff]   ;;  %v19617_v36 = vld [vmem:[%s27379_s9 + $0x34] ss:$168 sps:$4 sm:$0xff]  }
 0x51f   :  { %13585 = vmatprep.subr.bf16.mxu0 %v19572_v26  ;;  %v19620_v26 = vld [vmem:[%s27379_s9 + $0x3c] ss:$168 sps:$4 sm:$0xff]   ;;  %v19626_v35 = vld [vmem:[%s27379_s9 + $0x18c] ss:$168 sps:$4 sm:$0xff]  }
 0x520   :  { %20753 = vrcp.f32 %v15139_v54  ;;  %13495 = vmatmul.mubr.bf16.vlgmr.msra.gmra.mrb[72].mxu1 %v23994_v7  ;;  %v19624_v54 = vld [vmem:[%s27379_s9 + $0x188] ss:$168 sps:$4 sm:$0xff]  }
 0x521   :  { %13577 = vmatmul.mubr.bf16.vlgmr.msra.gmra.mrb[84].mxu0 %v23994_v7  ;;  %13504 = vmatpush1.bf16.msra.mxu1 %v19567_v58  ;;  %v19615_v58 = vld [vmem:[%s27379_s9 + $0x30] ss:$168 sps:$4 sm:$0xff]  }
 0x522   :  { %13586 = vmatpush1.bf16.msra.mxu0 %v19570_v5  ;;  %13505 = vmatprep.subr.bf16.mxu1 %v19575_v43  ;;  %v19618_v5 = vld [vmem:[%s27379_s9 + $0x38] ss:$168 sps:$4 sm:$0xff]   ;;  %v19623_v43 = vld [vmem:[%s27379_s9 + $0x184] ss:$168 sps:$4 sm:$0xff]  }
 0x523   :  { %13587 = vmatprep.subr.bf16.mxu0 %v19578_v34  ;;  %13535 = vmatprep.mubr.bf16.mxu1 %v27396_v1  ;;  %v19621_v34 = vld [vmem:[%s27379_s9 + $0x180] ss:$168 sps:$4 sm:$0xff]  }
 0x524   :  { %13617 = vmatprep.mubr.bf16.mxu0 %v27396_v1 }
 0x525   :  { %13506 = vmatpush1.bf16.msra.mxu1 %v19573_v21  ;;  %v19629_v21 = vld [vmem:[%s27379_s9 + $0x2d4] ss:$168 sps:$4 sm:$0xff]  }
 0x526   :  { %13588 = vmatpush1.bf16.msra.mxu0 %v19576_v3  ;;  %13507 = vmatprep.subr.bf16.mxu1 %v19581_v53  ;;  %v19632_v3 = vld [vmem:[%s27379_s9 + $0x2dc] ss:$168 sps:$4 sm:$0xff]   ;;  %v19627_v53 = vld [vmem:[%s27379_s9 + $0x2d0] ss:$168 sps:$4 sm:$0xff]  }
 0x527   :  { %13589 = vmatprep.subr.bf16.mxu0 %v19584_v63  ;;  %v19630_v63 = vld [vmem:[%s27379_s9 + $0x2d8] ss:$168 sps:$4 sm:$0xff]  }
 0x529   :  { %13508 = vmatpush1.bf16.msra.mxu1 %v19579_v56  ;;  %v19635_v56 = vld [vmem:[%s27379_s9 + $0x424] ss:$168 sps:$4 sm:$0xff]  }
 0x52a   :  { %v20754_v48 = vpop.eup %20753  ;;  %13590 = vmatpush1.bf16.msra.mxu0 %v19582_v51  ;;  %13509 = vmatprep.subr.bf16.mxu1 %v19587_v38  ;;  %v19638_v51 = vld [vmem:[%s27379_s9 + $0x42c] ss:$168 sps:$4 sm:$0xff]   ;;  %v19633_v38 = vld [vmem:[%s27379_s9 + $0x420] ss:$168 sps:$4 sm:$0xff]  }
 0x52b   :  { %13591 = vmatprep.subr.bf16.mxu0 %v19590_v10  ;;  %v24659_v55 = vmul.f32 %v20923_v61, %v20754_v48  ;;  %v19641_v10 = vld [vmem:[%s27379_s9 + $0x574] ss:$168 sps:$4 sm:$0xff]   ;;  %v19645_v61 = vld [vmem:[%s27379_s9 + $0x6c0] ss:$168 sps:$4 sm:$0xff]  }
 0x52c   :  { %v19644_v48 = vld [vmem:[%s27379_s9 + $0x57c] ss:$168 sps:$4 sm:$0xff]  }
 0x52d   :  { %27419 = vst [vmem:[#allocation9_spill] sm:$0xff] %v24659_v55  ;;  %13510 = vmatpush1.bf16.msra.mxu1 %v19585_v44  ;;  %15472 = vst.msk [vmem:[%s27383_s18] sm:$0x3] %vm15471_vm1, %v24659_v55  ;;  %v19636_v44 = vld [vmem:[%s27379_s9 + $0x428] ss:$168 sps:$4 sm:$0xff]  }
 0x52e   :  { %13592 = vmatpush1.bf16.msra.mxu0 %v19588_v37  ;;  %13511 = vmatprep.subr.bf16.mxu1 %v19593_v62  ;;  %v19639_v37 = vld [vmem:[%s27379_s9 + $0x570] ss:$168 sps:$4 sm:$0xff]  }
 0x52f   :  { %13593 = vmatprep.subr.bf16.mxu0 %v19596_v15  ;;  %v19642_v62 = vld [vmem:[%s27379_s9 + $0x578] ss:$168 sps:$4 sm:$0xff]   ;;  %v19650_v15 = vld [vmem:[%s27379_s9 + $0x6cc] ss:$168 sps:$4 sm:$0xff]  }
 0x531   :  { %13512 = vmatpush1.bf16.msra.mxu1 %v19591_v8  ;;  %v19647_v8 = vld [vmem:[%s27379_s9 + $0x6c4] ss:$168 sps:$4 sm:$0xff]  }
 0x532   :  { %13594 = vmatpush1.bf16.msra.mxu0 %v19594_v31  ;;  %13513 = vmatprep.subr.bf16.mxu1 %v19599_v13  ;;  %v19648_v31 = vld [vmem:[%s27379_s9 + $0x6c8] ss:$168 sps:$4 sm:$0xff]   ;;  %v19653_v13 = vld [vmem:[%s27379_s9 + $0x814] ss:$168 sps:$4 sm:$0xff]  }
 0x533   :  { %13595 = vmatprep.subr.bf16.mxu0 %v19602_v46 }
 0x535   :  { %13514 = vmatpush1.bf16.msra.mxu1 %v19597_v18 }
 0x536   :  { %13596 = vmatpush1.bf16.msra.mxu0 %v19600_v39  ;;  %13515 = vmatprep.subr.bf16.mxu1 %v19605_v47  ;;  %v19651_v39 = vld [vmem:[%s27379_s9 + $0x810] ss:$168 sps:$4 sm:$0xff]   ;;  %v19656_v47 = vld [vmem:[%s27379_s9 + $0x81c] ss:$168 sps:$4 sm:$0xff]  }
 0x537   :  { %13597 = vmatprep.subr.bf16.mxu0 %v19608_v28 }
 0x539   :  { %13516 = vmatpush1.bf16.msra.mxu1 %v19603_v32 }
 0x53a   :  { %13598 = vmatpush1.bf16.msra.mxu0 %v19606_v41  ;;  %13517 = vmatprep.subr.bf16.mxu1 %v19611_v19 }
 0x53b   :  { %13599 = vmatprep.subr.bf16.mxu0 %v19614_v30 }
 0x53d   :  { %13518 = vmatpush1.bf16.msra.mxu1 %v19609_v24 }
 0x53e   :  { %13600 = vmatpush1.bf16.msra.mxu0 %v19612_v9  ;;  %13626 = vmatprep.subr.bf16.mxu1 %v19617_v36 }
 0x53f   :  { %13708 = vmatprep.subr.bf16.mxu0 %v19620_v26 }
 0x540   :  { %13536 = vmatmul.mubr.bf16.vlgmr.msra.gmra.mrb[72].mxu1 %v24108_v29 }
 0x541   :  { %13618 = vmatmul.mubr.bf16.vlgmr.msra.gmra.mrb[84].mxu0 %v24108_v29  ;;  %13627 = vmatpush1.bf16.msra.mxu1 %v19615_v58 }
 0x542   :  { %13658 = vmatprep.mubr.bf16.mxu1 %v23992_v52  ;;  %13709 = vmatpush1.bf16.msra.mxu0 %v19618_v5  ;;  %v19654_v5 = vld [vmem:[%s27379_s9 + $0x818] ss:$168 sps:$4 sm:$0xff]  }
 0x543   :  { %13740 = vmatprep.mubr.bf16.mxu0 %v23992_v52  ;;  %13628 = vmatprep.subr.bf16.mxu1 %v19623_v43  ;;  %v19659_v43 = vld [vmem:[%s27379_s9 + $0x964] ss:$168 sps:$4 sm:$0xff]  }
 0x544   :  { %13710 = vmatprep.subr.bf16.mxu0 %v19626_v35  ;;  %v19662_v35 = vld [vmem:[%s27379_s9 + $0x96c] ss:$168 sps:$4 sm:$0xff]  }
 0x545   :  { %13629 = vmatpush1.bf16.msra.mxu1 %v19621_v34  ;;  %v19657_v34 = vld [vmem:[%s27379_s9 + $0x960] ss:$168 sps:$4 sm:$0xff]  }
 0x546   :  { %13711 = vmatpush1.bf16.msra.mxu0 %v19624_v54  ;;  %13630 = vmatprep.subr.bf16.mxu1 %v19629_v21  ;;  %v19660_v54 = vld [vmem:[%s27379_s9 + $0x968] ss:$168 sps:$4 sm:$0xff]   ;;  %v19665_v21 = vld [vmem:[%s27379_s9 + $0xab4] ss:$168 sps:$4 sm:$0xff]  }
 0x547   :  { %13712 = vmatprep.subr.bf16.mxu0 %v19632_v3  ;;  %v19668_v3 = vld [vmem:[%s27379_s9 + $0xabc] ss:$168 sps:$4 sm:$0xff]  }
 0x549   :  { %13631 = vmatpush1.bf16.msra.mxu1 %v19627_v53  ;;  %v19663_v53 = vld [vmem:[%s27379_s9 + $0xab0] ss:$168 sps:$4 sm:$0xff]  }
 0x54a   :  { %13713 = vmatpush1.bf16.msra.mxu0 %v19630_v63  ;;  %13632 = vmatprep.subr.bf16.mxu1 %v19635_v56  ;;  %v19666_v63 = vld [vmem:[%s27379_s9 + $0xab8] ss:$168 sps:$4 sm:$0xff]   ;;  %v19671_v56 = vld [vmem:[%s27379_s9 + $0xc04] ss:$168 sps:$4 sm:$0xff]  }
 0x54b   :  { %13714 = vmatprep.subr.bf16.mxu0 %v19638_v51  ;;  %v19674_v51 = vld [vmem:[%s27379_s9 + $0xc0c] ss:$168 sps:$4 sm:$0xff]  }
 0x54d   :  { %13633 = vmatpush1.bf16.msra.mxu1 %v19633_v38 }
 0x54e   :  { %13715 = vmatpush1.bf16.msra.mxu0 %v19636_v44  ;;  %13634 = vmatprep.subr.bf16.mxu1 %v19641_v10 }
 0x54f   :  { %13716 = vmatprep.subr.bf16.mxu0 %v19644_v48  ;;  %v19669_v48 = vld [vmem:[%s27379_s9 + $0xc00] ss:$168 sps:$4 sm:$0xff]  }
 0x551   :  { %13635 = vmatpush1.bf16.msra.mxu1 %v19639_v37 }
 0x552   :  { %13717 = vmatpush1.bf16.msra.mxu0 %v19642_v62  ;;  %13636 = vmatprep.subr.bf16.mxu1 %v19647_v8  ;;  %v19672_v8 = vld [vmem:[%s27379_s9 + $0xc08] ss:$168 sps:$4 sm:$0xff]  }
 0x553   :  { %v13209_v18 = vpop.f32.mrb[64].mxu1  ;;  %v13291_v46 = vpop.f32.mrb[76].mxu0  ;;  %13718 = vmatprep.subr.bf16.mxu0 %v19650_v15  ;;  %v19677_v15 = vld [vmem:[%s27379_s9 + $0xd54] ss:$168 sps:$4 sm:$0xff]  }
 0x554   :  { %v17677_v28 = vmul.f32 -1.442695, %v13209_v18  ;;  %v17679_v32 = vmul.f32 -1.442695, %v13291_v46  ;;  %v13211_v41 = vpop.f32.mrb[65].mxu1  ;;  %v13293_v19 = vpop.f32.mrb[77].mxu0 }
 0x555   :  { %v17678_v30 = vmul.f32 -1.442695, %v13211_v41  ;;  %v17680_v24 = vmul.f32 -1.442695, %v13293_v19  ;;  %13637 = vmatpush1.bf16.msra.mxu1 %v19645_v61  ;;  %v13213_v9 = vpop.f32.mrb[66].mxu1  ;;  %v13295_v36 = vpop.f32.mrb[78].mxu0 }
 0x556   :  { %20755 = vpow2.f32 %v17677_v28  ;;  %13719 = vmatpush1.bf16.msra.mxu0 %v19648_v31  ;;  %v13214_v26 = vpop.f32.mrb[67].mxu1  ;;  %v13296_v58 = vpop.f32.mrb[79].mxu0  ;;  %13638 = vmatprep.subr.bf16.mxu1 %v19653_v13  ;;  %v19680_v13 = vld [vmem:[%s27379_s9 + $0xd5c] ss:$168 sps:$4 sm:$0xff]   ;;  %v19675_v46 = vld [vmem:[%s27379_s9 + $0xd50] ss:$168 sps:$4 sm:$0xff]  }
 0x557   :  { %20757 = vpow2.f32 %v17679_v32  ;;  %13720 = vmatprep.subr.bf16.mxu0 %v19656_v47  ;;  %v19683_v47 = vld [vmem:[%s27379_s9 + $0xea4] ss:$168 sps:$4 sm:$0xff]   ;;  %v20927_v32 = vmov 1983009808   ;;  %v19681_v19 = vld [vmem:[%s27379_s9 + $0xea0] ss:$168 sps:$4 sm:$0xff]  }
 0x558   :  { %20759 = vpow2.f32 %v17678_v30  ;;  %v19686_v28 = vld [vmem:[%s27379_s9 + $0xeac] ss:$168 sps:$4 sm:$0xff]   ;;  %v15244_v41 = vunpack.c.l.s4 %v20927_v32  ;;  %v19684_v30 = vld [vmem:[%s27379_s9 + $0xea8] ss:$168 sps:$4 sm:$0xff]   ;;  %v19692_v9 = vld [vmem:[%s27379_s9 + $0xffc] ss:$168 sps:$4 sm:$0xff]  }
 0x559   :  { %20761 = vpow2.f32 %v17680_v24  ;;  %13639 = vmatpush1.bf16.msra.mxu1 %v19651_v39  ;;  %v19678_v39 = vld [vmem:[%s27379_s9 + $0xd58] ss:$168 sps:$4 sm:$0xff]   ;;  %v19689_v24 = vld [vmem:[%s27379_s9 + $0xff4] ss:$168 sps:$4 sm:$0xff]  }
 0x55a   :  { %13721 = vmatpush1.bf16.msra.mxu0 %v19654_v5  ;;  %13640 = vmatprep.subr.bf16.mxu1 %v19659_v43  ;;  %v15245_v36 = vunpack.c.0.s8 %v15244_v41  ;;  %v19687_v58 = vld [vmem:[%s27379_s9 + $0xff0] ss:$168 sps:$4 sm:$0xff]  }
 0x55b   :  { %13722 = vmatprep.subr.bf16.mxu0 %v19662_v35  ;;  %v19690_v35 = vld [vmem:[%s27379_s9 + $0xff8] ss:$168 sps:$4 sm:$0xff]  }
 0x55c   :  { %v19711_v32 = vld [vmem:[%s27379_s9 + $0x1530] ss:$168 sps:$4 sm:$0xff]  }
 0x55d   :  { %13641 = vmatpush1.bf16.msra.mxu1 %v19657_v34  ;;  %v19695_v34 = vld [vmem:[%s27379_s9 + $0x1144] ss:$168 sps:$4 sm:$0xff]   ;;  %v19714_v41 = vld [vmem:[%s27379_s9 + $0x1538] ss:$168 sps:$4 sm:$0xff]  }
 0x55e   :  { %13723 = vmatpush1.bf16.msra.mxu0 %v19660_v54  ;;  %13642 = vmatprep.subr.bf16.mxu1 %v19665_v21 }
 0x55f   :  { %13724 = vmatprep.subr.bf16.mxu0 %v19668_v3  ;;  %v19698_v3 = vld [vmem:[%s27379_s9 + $0x114c] ss:$168 sps:$4 sm:$0xff]  }
 0x560   :  { %v20756_v38 = vpop.eup %20755 }
 0x561   :  { %v20758_v44 = vpop.eup %20757  ;;  %v14982_v10 = vadd.f32 1.0, %v20756_v38  ;;  %13643 = vmatpush1.bf16.msra.mxu1 %v19663_v53  ;;  %v19693_v38 = vld [vmem:[%s27379_s9 + $0x1140] ss:$168 sps:$4 sm:$0xff]  }
 0x562   :  { %v20760_v37 = vpop.eup %20759  ;;  %v14984_v62 = vadd.f32 1.0, %v20758_v44  ;;  %13725 = vmatpush1.bf16.msra.mxu0 %v19666_v63  ;;  %13644 = vmatprep.subr.bf16.mxu1 %v19671_v56  ;;  %v24878_v63 = vsub.s32 %v15245_v36, %v21582_v57  ;;  %v19696_v57 = vld [vmem:[%s27379_s9 + $0x1148] ss:$168 sps:$4 sm:$0xff]   ;;  %v19725_v36 = vld [vmem:[%s27379_s9 + $0x17d4] ss:$168 sps:$4 sm:$0xff]  }
 0x563   :  { %v20762_v61 = vpop.eup %20761  ;;  %20763 = vrcp.f32 %v14982_v10  ;;  %v14983_v31 = vadd.f32 1.0, %v20760_v37  ;;  %13726 = vmatprep.subr.bf16.mxu0 %v19674_v51  ;;  %v19701_v10 = vld [vmem:[%s27379_s9 + $0x1294] ss:$168 sps:$4 sm:$0xff]  }
 0x564   :  { %20765 = vrcp.f32 %v14984_v62  ;;  %v14985_v18 = vadd.f32 1.0, %v20762_v61  ;;  %v19704_v37 = vld [vmem:[%s27379_s9 + $0x129c] ss:$168 sps:$4 sm:$0xff]   ;;  %v19702_v61 = vld [vmem:[%s27379_s9 + $0x1298] ss:$168 sps:$4 sm:$0xff]  }
 0x565   :  { %20767 = vrcp.f32 %v14983_v31  ;;  %13645 = vmatpush1.bf16.msra.mxu1 %v19669_v48  ;;  %v19707_v31 = vld [vmem:[%s27379_s9 + $0x13e4] ss:$168 sps:$4 sm:$0xff]  }
 0x566   :  { %20769 = vrcp.f32 %v14985_v18  ;;  %13727 = vmatpush1.bf16.msra.mxu0 %v19672_v8  ;;  %13646 = vmatprep.subr.bf16.mxu1 %v19677_v15  ;;  %v19699_v15 = vld [vmem:[%s27379_s9 + $0x1290] ss:$168 sps:$4 sm:$0xff]   ;;  %v19710_v18 = vld [vmem:[%s27379_s9 + $0x13ec] ss:$168 sps:$4 sm:$0xff]  }
 0x567   :  { %13728 = vmatprep.subr.bf16.mxu0 %v19680_v13 }
 0x569   :  { %13647 = vmatpush1.bf16.msra.mxu1 %v19675_v46  ;;  %v19705_v46 = vld [vmem:[%s27379_s9 + $0x13e0] ss:$168 sps:$4 sm:$0xff]  }
 0x56a   :  { %13729 = vmatpush1.bf16.msra.mxu0 %v19678_v39  ;;  %13648 = vmatprep.subr.bf16.mxu1 %v19683_v47  ;;  %v19708_v39 = vld [vmem:[%s27379_s9 + $0x13e8] ss:$168 sps:$4 sm:$0xff]   ;;  %v19713_v47 = vld [vmem:[%s27379_s9 + $0x1534] ss:$168 sps:$4 sm:$0xff]  }
 0x56b   :  { %13730 = vmatprep.subr.bf16.mxu0 %v19686_v28  ;;  %v19716_v28 = vld [vmem:[%s27379_s9 + $0x153c] ss:$168 sps:$4 sm:$0xff]  }
 0x56d   :  { %v20764_v26 = vpop.eup %20763  ;;  %13649 = vmatpush1.bf16.msra.mxu1 %v19681_v19  ;;  %v19719_v19 = vld [vmem:[%s27379_s9 + $0x1684] ss:$168 sps:$4 sm:$0xff]  }
 0x56e   :  { %v20766_v5 = vpop.eup %20765  ;;  %v24863_v43 = vmul.f32 %v20764_v26, %v21614_v23  ;;  %13731 = vmatpush1.bf16.msra.mxu0 %v19684_v30  ;;  %13650 = vmatprep.subr.bf16.mxu1 %v19689_v24  ;;  %v19722_v30 = vld [vmem:[%s27379_s9 + $0x168c] ss:$168 sps:$4 sm:$0xff]   ;;  %v19717_v24 = vld [vmem:[%s27379_s9 + $0x1680] ss:$168 sps:$4 sm:$0xff]   ;;  %v19728_v26 = vld [vmem:[%s27379_s9 + $0x17dc] ss:$168 sps:$4 sm:$0xff]  }
 0x56f   :  { %v20768_v54 = vpop.eup %20767  ;;  %v24872_v21 = vmul.f32 %v20766_v5, %v21696_v17  ;;  %13732 = vmatprep.subr.bf16.mxu0 %v19692_v9  ;;  %v19720_v9 = vld [vmem:[%s27379_s9 + $0x1688] ss:$168 sps:$4 sm:$0xff]   ;;  %v19726_v5 = vld [vmem:[%s27379_s9 + $0x17d8] ss:$168 sps:$4 sm:$0xff]  }
 0x570   :  { %v20770_v53 = vpop.eup %20769  ;;  %v24881_v56 = vmul.f32 %v20768_v54, %v21619_v27  ;;  %v19729_v54 = vld [vmem:[%s27379_s9 + $0x1920] ss:$168 sps:$4 sm:$0xff]  }
 0x571   :  { %v24884_v51 = vmul.f32 %v20770_v53, %v21700_v20  ;;  %13651 = vmatpush1.bf16.msra.mxu1 %v19687_v58  ;;  %v19723_v58 = vld [vmem:[%s27379_s9 + $0x17d0] ss:$168 sps:$4 sm:$0xff]   ;;  %v19737_v53 = vld [vmem:[%s27379_s9 + $0x1a74] ss:$168 sps:$4 sm:$0xff]  }
 0x572   :  { %v15241_v44 = vcombine.low %v24863_v43, %v24881_v56  ;;  %13733 = vmatpush1.bf16.msra.mxu0 %v19690_v35  ;;  %13652 = vmatprep.subr.bf16.mxu1 %v19695_v34  ;;  %v19731_v35 = vld [vmem:[%s27379_s9 + $0x1924] ss:$168 sps:$4 sm:$0xff]  }
 0x573   :  { %v15242_v48 = vcombine.low %v24872_v21, %v24884_v51  ;;  %13734 = vmatprep.subr.bf16.mxu0 %v19698_v3  ;;  %v19734_v34 = vld [vmem:[%s27379_s9 + $0x192c] ss:$168 sps:$4 sm:$0xff]   ;;  %v19732_v3 = vld [vmem:[%s27379_s9 + $0x1928] ss:$168 sps:$4 sm:$0xff]  }
 0x574   :  { %v15249_v62 = vrot.slane %v15241_v44, %v24878_v63  ;;  %v19735_v44 = vld [vmem:[%s27379_s9 + $0x1a70] ss:$168 sps:$4 sm:$0xff]  }
 0x575   :  { %v15256_v8 = vrot.slane %v15242_v48, %v24878_v63  ;;  %13653 = vmatpush1.bf16.msra.mxu1 %v19693_v38  ;;  %v19740_v38 = vld [vmem:[%s27379_s9 + $0x1a7c] ss:$168 sps:$4 sm:$0xff]   ;;  %v19746_v48 = vld [vmem:[%s27379_s9 + $0x1bcc] ss:$168 sps:$4 sm:$0xff]  }
 0x576   :  { %13735 = vmatpush1.bf16.msra.mxu0 %v19696_v57  ;;  %13654 = vmatprep.subr.bf16.mxu1 %v19701_v10  ;;  %v19738_v57 = vld [vmem:[%s27379_s9 + $0x1a78] ss:$168 sps:$4 sm:$0xff]   ;;  %v19743_v10 = vld [vmem:[%s27379_s9 + $0x1bc4] ss:$168 sps:$4 sm:$0xff]  }
 0x577   :  { %v15257_v13 = vcombine.low %v15249_v62, %v15256_v8  ;;  %13736 = vmatprep.subr.bf16.mxu0 %v19704_v37  ;;  %v19741_v37 = vld [vmem:[%s27379_s9 + $0x1bc0] ss:$168 sps:$4 sm:$0xff]   ;;  %v19749_v8 = vld [vmem:[%s27379_s9 + $0x1d14] ss:$168 sps:$4 sm:$0xff]  }
 0x578   :  { %v19744_v62 = vld [vmem:[%s27379_s9 + $0x1bc8] ss:$168 sps:$4 sm:$0xff]  }
 0x579   :  { %15304 = vst [vmem:[%s27384_s17] sm:$0xff] %v15257_v13  ;;  %13655 = vmatpush1.bf16.msra.mxu1 %v19699_v15  ;;  %v19752_v15 = vld [vmem:[%s27379_s9 + $0x1d1c] ss:$168 sps:$4 sm:$0xff]  }
 0x57a   :  { %13737 = vmatpush1.bf16.msra.mxu0 %v19702_v61  ;;  %13656 = vmatprep.subr.bf16.mxu1 %v19707_v31  ;;  %v19747_v61 = vld [vmem:[%s27379_s9 + $0x1d10] ss:$168 sps:$4 sm:$0xff]   ;;  %v19755_v13 = vld [vmem:[%s27379_s9 + $0x1e64] ss:$168 sps:$4 sm:$0xff]  }
 0x57b   :  { %13738 = vmatprep.subr.bf16.mxu0 %v19710_v18  ;;  %v19750_v31 = vld [vmem:[%s27379_s9 + $0x1d18] ss:$168 sps:$4 sm:$0xff]   ;;  %v19758_v18 = vld [vmem:[%s27379_s9 + $0x1e6c] ss:$168 sps:$4 sm:$0xff]  }
 0x57d   :  { %13657 = vmatpush1.bf16.msra.mxu1 %v19705_v46  ;;  %v19753_v46 = vld [vmem:[%s27379_s9 + $0x1e60] ss:$168 sps:$4 sm:$0xff]  }
 0x57e   :  { %13739 = vmatpush1.bf16.msra.mxu0 %v19708_v39  ;;  %13667 = vmatprep.subr.bf16.mxu1 %v19713_v47  ;;  %v19756_v39 = vld [vmem:[%s27379_s9 + $0x1e68] ss:$168 sps:$4 sm:$0xff]   ;;  %v19761_v47 = vld [vmem:[%s27379_s9 + $0x44] ss:$168 sps:$4 sm:$0xff]  }
 0x57f   :  { %13749 = vmatprep.subr.bf16.mxu0 %v19716_v28  ;;  %v19764_v28 = vld [vmem:[%s27379_s9 + $0x4c] ss:$168 sps:$4 sm:$0xff]  }
 0x580   :  { %13659 = vmatmul.mubr.bf16.vlgmr.msra.gmra.mrb[76].mxu1 %v23994_v7 }
 0x581   :  { %13741 = vmatmul.mubr.bf16.vlgmr.msra.gmra.mrb[88].mxu0 %v23994_v7  ;;  %13668 = vmatpush1.bf16.msra.mxu1 %v19711_v32  ;;  %v19759_v32 = vld [vmem:[%s27379_s9 + $0x40] ss:$168 sps:$4 sm:$0xff]  }
 0x582   :  { %13750 = vmatpush1.bf16.msra.mxu0 %v19714_v41  ;;  %13669 = vmatprep.subr.bf16.mxu1 %v19719_v19  ;;  %v19762_v41 = vld [vmem:[%s27379_s9 + $0x48] ss:$168 sps:$4 sm:$0xff]   ;;  %v19767_v19 = vld [vmem:[%s27379_s9 + $0x194] ss:$168 sps:$4 sm:$0xff]  }
 0x583   :  { %13751 = vmatprep.subr.bf16.mxu0 %v19722_v30  ;;  %13699 = vmatprep.mubr.bf16.mxu1 %v27396_v1  ;;  %v19770_v30 = vld [vmem:[%s27379_s9 + $0x19c] ss:$168 sps:$4 sm:$0xff]  }
 0x584   :  { %13781 = vmatprep.mubr.bf16.mxu0 %v27396_v1 }
 0x585   :  { %13670 = vmatpush1.bf16.msra.mxu1 %v19717_v24  ;;  %v19765_v24 = vld [vmem:[%s27379_s9 + $0x190] ss:$168 sps:$4 sm:$0xff]  }
 0x586   :  { %13752 = vmatpush1.bf16.msra.mxu0 %v19720_v9  ;;  %13671 = vmatprep.subr.bf16.mxu1 %v19725_v36  ;;  %v19768_v9 = vld [vmem:[%s27379_s9 + $0x198] ss:$168 sps:$4 sm:$0xff]   ;;  %v19773_v36 = vld [vmem:[%s27379_s9 + $0x2e4] ss:$168 sps:$4 sm:$0xff]  }
 0x587   :  { %13753 = vmatprep.subr.bf16.mxu0 %v19728_v26  ;;  %v19776_v26 = vld [vmem:[%s27379_s9 + $0x2ec] ss:$168 sps:$4 sm:$0xff]  }
 0x589   :  { %13672 = vmatpush1.bf16.msra.mxu1 %v19723_v58  ;;  %v19771_v58 = vld [vmem:[%s27379_s9 + $0x2e0] ss:$168 sps:$4 sm:$0xff]  }
 0x58a   :  { %13754 = vmatpush1.bf16.msra.mxu0 %v19726_v5  ;;  %13673 = vmatprep.subr.bf16.mxu1 %v19731_v35  ;;  %v19774_v5 = vld [vmem:[%s27379_s9 + $0x2e8] ss:$168 sps:$4 sm:$0xff]   ;;  %v19779_v35 = vld [vmem:[%s27379_s9 + $0x434] ss:$168 sps:$4 sm:$0xff]  }
 0x58b   :  { %13755 = vmatprep.subr.bf16.mxu0 %v19734_v34  ;;  %v19782_v34 = vld [vmem:[%s27379_s9 + $0x43c] ss:$168 sps:$4 sm:$0xff]  }
 0x58d   :  { %13674 = vmatpush1.bf16.msra.mxu1 %v19729_v54  ;;  %v19777_v54 = vld [vmem:[%s27379_s9 + $0x430] ss:$168 sps:$4 sm:$0xff]  }
 0x58e   :  { %13756 = vmatpush1.bf16.msra.mxu0 %v19732_v3  ;;  %13675 = vmatprep.subr.bf16.mxu1 %v19737_v53  ;;  %v19780_v3 = vld [vmem:[%s27379_s9 + $0x438] ss:$168 sps:$4 sm:$0xff]   ;;  %v19785_v53 = vld [vmem:[%s27379_s9 + $0x584] ss:$168 sps:$4 sm:$0xff]  }
 0x58f   :  { %13757 = vmatprep.subr.bf16.mxu0 %v19740_v38  ;;  %v19788_v38 = vld [vmem:[%s27379_s9 + $0x58c] ss:$168 sps:$4 sm:$0xff]  }
 0x591   :  { %13676 = vmatpush1.bf16.msra.mxu1 %v19735_v44  ;;  %v19783_v44 = vld [vmem:[%s27379_s9 + $0x580] ss:$168 sps:$4 sm:$0xff]  }
 0x592   :  { %13758 = vmatpush1.bf16.msra.mxu0 %v19738_v57  ;;  %13677 = vmatprep.subr.bf16.mxu1 %v19743_v10  ;;  %v19786_v57 = vld [vmem:[%s27379_s9 + $0x588] ss:$168 sps:$4 sm:$0xff]   ;;  %v19791_v10 = vld [vmem:[%s27379_s9 + $0x6d4] ss:$168 sps:$4 sm:$0xff]  }
 0x593   :  { %13759 = vmatprep.subr.bf16.mxu0 %v19746_v48  ;;  %v19794_v48 = vld [vmem:[%s27379_s9 + $0x6dc] ss:$168 sps:$4 sm:$0xff]  }
 0x595   :  { %13678 = vmatpush1.bf16.msra.mxu1 %v19741_v37  ;;  %v19789_v37 = vld [vmem:[%s27379_s9 + $0x6d0] ss:$168 sps:$4 sm:$0xff]  }
 0x596   :  { %13760 = vmatpush1.bf16.msra.mxu0 %v19744_v62  ;;  %13679 = vmatprep.subr.bf16.mxu1 %v19749_v8  ;;  %v19792_v62 = vld [vmem:[%s27379_s9 + $0x6d8] ss:$168 sps:$4 sm:$0xff]   ;;  %v19797_v8 = vld [vmem:[%s27379_s9 + $0x824] ss:$168 sps:$4 sm:$0xff]  }
 0x597   :  { %13761 = vmatprep.subr.bf16.mxu0 %v19752_v15 }
 0x599   :  { %13680 = vmatpush1.bf16.msra.mxu1 %v19747_v61 }
 0x59a   :  { %13762 = vmatpush1.bf16.msra.mxu0 %v19750_v31  ;;  %13681 = vmatprep.subr.bf16.mxu1 %v19755_v13  ;;  %v19795_v31 = vld [vmem:[%s27379_s9 + $0x820] ss:$168 sps:$4 sm:$0xff]   ;;  %v19800_v13 = vld [vmem:[%s27379_s9 + $0x82c] ss:$168 sps:$4 sm:$0xff]  }
 0x59b   :  { %13763 = vmatprep.subr.bf16.mxu0 %v19758_v18 }
 0x59d   :  { %13682 = vmatpush1.bf16.msra.mxu1 %v19753_v46 }
 0x59e   :  { %13764 = vmatpush1.bf16.msra.mxu0 %v19756_v39  ;;  %13790 = vmatprep.subr.bf16.mxu1 %v19761_v47 }
 0x59f   :  { %13872 = vmatprep.subr.bf16.mxu0 %v19764_v28 }
 0x5a0   :  { %13700 = vmatmul.mubr.bf16.vlgmr.msra.gmra.mrb[76].mxu1 %v24108_v29 }
 0x5a1   :  { %13782 = vmatmul.mubr.bf16.vlgmr.msra.gmra.mrb[88].mxu0 %v24108_v29  ;;  %13791 = vmatpush1.bf16.msra.mxu1 %v19759_v32 }
 0x5a2   :  { %13822 = vmatprep.mubr.bf16.mxu1 %v23992_v52  ;;  %13873 = vmatpush1.bf16.msra.mxu0 %v19762_v41 }
 0x5a3   :  { %13904 = vmatprep.mubr.bf16.mxu0 %v23992_v52  ;;  %13792 = vmatprep.subr.bf16.mxu1 %v19767_v19 }
 0x5a4   :  { %13874 = vmatprep.subr.bf16.mxu0 %v19770_v30 }
 0x5a5   :  { %13793 = vmatpush1.bf16.msra.mxu1 %v19765_v24 }
 0x5a6   :  { %13875 = vmatpush1.bf16.msra.mxu0 %v19768_v9  ;;  %13794 = vmatprep.subr.bf16.mxu1 %v19773_v36  ;;  %v19798_v9 = vld [vmem:[%s27379_s9 + $0x828] ss:$168 sps:$4 sm:$0xff]   ;;  %v19803_v36 = vld [vmem:[%s27379_s9 + $0x974] ss:$168 sps:$4 sm:$0xff]  }
 0x5a7   :  { %13876 = vmatprep.subr.bf16.mxu0 %v19776_v26  ;;  %v19806_v26 = vld [vmem:[%s27379_s9 + $0x97c] ss:$168 sps:$4 sm:$0xff]  }
 0x5a9   :  { %13795 = vmatpush1.bf16.msra.mxu1 %v19771_v58  ;;  %v19801_v58 = vld [vmem:[%s27379_s9 + $0x970] ss:$168 sps:$4 sm:$0xff]  }
 0x5aa   :  { %13877 = vmatpush1.bf16.msra.mxu0 %v19774_v5  ;;  %13796 = vmatprep.subr.bf16.mxu1 %v19779_v35  ;;  %v19804_v5 = vld [vmem:[%s27379_s9 + $0x978] ss:$168 sps:$4 sm:$0xff]   ;;  %v19809_v35 = vld [vmem:[%s27379_s9 + $0xac4] ss:$168 sps:$4 sm:$0xff]  }
 0x5ab   :  { %13878 = vmatprep.subr.bf16.mxu0 %v19782_v34  ;;  %v19812_v34 = vld [vmem:[%s27379_s9 + $0xacc] ss:$168 sps:$4 sm:$0xff]  }
 0x5ad   :  { %13797 = vmatpush1.bf16.msra.mxu1 %v19777_v54  ;;  %v19807_v54 = vld [vmem:[%s27379_s9 + $0xac0] ss:$168 sps:$4 sm:$0xff]  }
 0x5ae   :  { %13879 = vmatpush1.bf16.msra.mxu0 %v19780_v3  ;;  %13798 = vmatprep.subr.bf16.mxu1 %v19785_v53  ;;  %v19810_v3 = vld [vmem:[%s27379_s9 + $0xac8] ss:$168 sps:$4 sm:$0xff]   ;;  %v19815_v53 = vld [vmem:[%s27379_s9 + $0xc14] ss:$168 sps:$4 sm:$0xff]  }
 0x5af   :  { %13880 = vmatprep.subr.bf16.mxu0 %v19788_v38  ;;  %v19818_v38 = vld [vmem:[%s27379_s9 + $0xc1c] ss:$168 sps:$4 sm:$0xff]  }
 0x5b1   :  { %13799 = vmatpush1.bf16.msra.mxu1 %v19783_v44 }
 0x5b2   :  { %13881 = vmatpush1.bf16.msra.mxu0 %v19786_v57  ;;  %13800 = vmatprep.subr.bf16.mxu1 %v19791_v10 }
 0x5b3   :  { %v13373_v15 = vpop.f32.mrb[68].mxu1  ;;  %v13455_v61 = vpop.f32.mrb[80].mxu0  ;;  %13882 = vmatprep.subr.bf16.mxu0 %v19794_v48  ;;  %v19813_v48 = vld [vmem:[%s27379_s9 + $0xc10] ss:$168 sps:$4 sm:$0xff]  }
 0x5b4   :  { %v17681_v18 = vmul.f32 -1.442695, %v13373_v15  ;;  %v17683_v46 = vmul.f32 -1.442695, %v13455_v61  ;;  %v13375_v39 = vpop.f32.mrb[69].mxu1  ;;  %v13457_v47 = vpop.f32.mrb[81].mxu0 }
 0x5b5   :  { %v17682_v28 = vmul.f32 -1.442695, %v13375_v39  ;;  %v17684_v32 = vmul.f32 -1.442695, %v13457_v47  ;;  %v13377_v41 = vpop.f32.mrb[70].mxu1  ;;  %v13459_v19 = vpop.f32.mrb[82].mxu0  ;;  %13801 = vmatpush1.bf16.msra.mxu1 %v19789_v37 }
 0x5b6   :  { %20771 = vpow2.f32 %v17681_v18  ;;  %13883 = vmatpush1.bf16.msra.mxu0 %v19792_v62  ;;  %v13378_v30 = vpop.f32.mrb[71].mxu1  ;;  %v13460_v24 = vpop.f32.mrb[83].mxu0  ;;  %13802 = vmatprep.subr.bf16.mxu1 %v19797_v8  ;;  %v19816_v8 = vld [vmem:[%s27379_s9 + $0xc18] ss:$168 sps:$4 sm:$0xff]   ;;  %v19821_v15 = vld [vmem:[%s27379_s9 + $0xd64] ss:$168 sps:$4 sm:$0xff]  }
 0x5b7   :  { %20773 = vpow2.f32 %v17683_v46  ;;  %13884 = vmatprep.subr.bf16.mxu0 %v19800_v13  ;;  %v19824_v13 = vld [vmem:[%s27379_s9 + $0xd6c] ss:$168 sps:$4 sm:$0xff]   ;;  %v19819_v46 = vld [vmem:[%s27379_s9 + $0xd60] ss:$168 sps:$4 sm:$0xff]  }
 0x5b8   :  { %20775 = vpow2.f32 %v17682_v28  ;;  %v19822_v39 = vld [vmem:[%s27379_s9 + $0xd68] ss:$168 sps:$4 sm:$0xff]   ;;  %v19827_v47 = vld [vmem:[%s27379_s9 + $0xeb4] ss:$168 sps:$4 sm:$0xff]   ;;  %v19828_v41 = vld [vmem:[%s27379_s9 + $0xeb8] ss:$168 sps:$4 sm:$0xff]  }
 0x5b9   :  { %20777 = vpow2.f32 %v17684_v32  ;;  %13803 = vmatpush1.bf16.msra.mxu1 %v19795_v31  ;;  %v19830_v28 = vld [vmem:[%s27379_s9 + $0xebc] ss:$168 sps:$4 sm:$0xff]   ;;  %v19825_v32 = vld [vmem:[%s27379_s9 + $0xeb0] ss:$168 sps:$4 sm:$0xff]   ;;  %v19836_v30 = vld [vmem:[%s27379_s9 + $0x100c] ss:$168 sps:$4 sm:$0xff]  }
 0x5ba   :  { %13885 = vmatpush1.bf16.msra.mxu0 %v19798_v9  ;;  %13804 = vmatprep.subr.bf16.mxu1 %v19803_v36  ;;  %v19833_v19 = vld [vmem:[%s27379_s9 + $0x1004] ss:$168 sps:$4 sm:$0xff]   ;;  %v19831_v9 = vld [vmem:[%s27379_s9 + $0x1000] ss:$168 sps:$4 sm:$0xff]  }
 0x5bb   :  { %13886 = vmatprep.subr.bf16.mxu0 %v19806_v26 }
 0x5bd   :  { %13805 = vmatpush1.bf16.msra.mxu1 %v19801_v58  ;;  %v19834_v58 = vld [vmem:[%s27379_s9 + $0x1008] ss:$168 sps:$4 sm:$0xff]  }
 0x5be   :  { %13887 = vmatpush1.bf16.msra.mxu0 %v19804_v5  ;;  %13806 = vmatprep.subr.bf16.mxu1 %v19809_v35  ;;  %v19839_v5 = vld [vmem:[%s27379_s9 + $0x1154] ss:$168 sps:$4 sm:$0xff]  }
 0x5bf   :  { %13888 = vmatprep.subr.bf16.mxu0 %v19812_v34 }
 0x5c0   :  { %v20772_v44 = vpop.eup %20771 }
 0x5c1   :  { %v20774_v57 = vpop.eup %20773  ;;  %v14986_v10 = vadd.f32 1.0, %v20772_v44  ;;  %13807 = vmatpush1.bf16.msra.mxu1 %v19807_v54  ;;  %v19842_v54 = vld [vmem:[%s27379_s9 + $0x115c] ss:$168 sps:$4 sm:$0xff]   ;;  %v19837_v44 = vld [vmem:[%s27379_s9 + $0x1150] ss:$168 sps:$4 sm:$0xff]  }
 0x5c2   :  { %v20776_v37 = vpop.eup %20775  ;;  %v14988_v62 = vadd.f32 1.0, %v20774_v57  ;;  %13889 = vmatpush1.bf16.msra.mxu0 %v19810_v3  ;;  %13808 = vmatprep.subr.bf16.mxu1 %v19815_v53 }
 0x5c3   :  { %v20778_v61 = vpop.eup %20777  ;;  %20779 = vrcp.f32 %v14986_v10  ;;  %v14987_v31 = vadd.f32 1.0, %v20776_v37  ;;  %13890 = vmatprep.subr.bf16.mxu0 %v19818_v38  ;;  %v19840_v10 = vld [vmem:[%s27379_s9 + $0x1158] ss:$168 sps:$4 sm:$0xff]  }
 0x5c4   :  { %20781 = vrcp.f32 %v14988_v62  ;;  %v14989_v18 = vadd.f32 1.0, %v20778_v61  ;;  %v19848_v62 = vld [vmem:[%s27379_s9 + $0x12ac] ss:$168 sps:$4 sm:$0xff]   ;;  %v19843_v61 = vld [vmem:[%s27379_s9 + $0x12a0] ss:$168 sps:$4 sm:$0xff]  }
 0x5c5   :  { %20783 = vrcp.f32 %v14987_v31  ;;  %13809 = vmatpush1.bf16.msra.mxu1 %v19813_v48  ;;  %v19845_v48 = vld [vmem:[%s27379_s9 + $0x12a4] ss:$168 sps:$4 sm:$0xff]   ;;  %v19846_v31 = vld [vmem:[%s27379_s9 + $0x12a8] ss:$168 sps:$4 sm:$0xff]  }
 0x5c6   :  { %20785 = vrcp.f32 %v14989_v18  ;;  %13891 = vmatpush1.bf16.msra.mxu0 %v19816_v8  ;;  %13810 = vmatprep.subr.bf16.mxu1 %v19821_v15 }
 0x5c7   :  { %13892 = vmatprep.subr.bf16.mxu0 %v19824_v13  ;;  %v19851_v13 = vld [vmem:[%s27379_s9 + $0x13f4] ss:$168 sps:$4 sm:$0xff]  }
 0x5c9   :  { %13811 = vmatpush1.bf16.msra.mxu1 %v19819_v46  ;;  %v19854_v46 = vld [vmem:[%s27379_s9 + $0x13fc] ss:$168 sps:$4 sm:$0xff]  }
 0x5ca   :  { %13893 = vmatpush1.bf16.msra.mxu0 %v19822_v39  ;;  %13812 = vmatprep.subr.bf16.mxu1 %v19827_v47  ;;  %v19849_v39 = vld [vmem:[%s27379_s9 + $0x13f0] ss:$168 sps:$4 sm:$0xff]  }
 0x5cb   :  { %13894 = vmatprep.subr.bf16.mxu0 %v19830_v28  ;;  %v19852_v47 = vld [vmem:[%s27379_s9 + $0x13f8] ss:$168 sps:$4 sm:$0xff]   ;;  %v19857_v28 = vld [vmem:[%s27379_s9 + $0x1544] ss:$168 sps:$4 sm:$0xff]  }
 0x5cd   :  { %v20780_v24 = vpop.eup %20779  ;;  %13813 = vmatpush1.bf16.msra.mxu1 %v19825_v32  ;;  %v19860_v32 = vld [vmem:[%s27379_s9 + $0x154c] ss:$168 sps:$4 sm:$0xff]  }
 0x5ce   :  { %v20782_v36 = vpop.eup %20781  ;;  %v25183_v26 = vmul.f32 %v20780_v24, %v21840_v49  ;;  %13895 = vmatpush1.bf16.msra.mxu0 %v19828_v41  ;;  %13814 = vmatprep.subr.bf16.mxu1 %v19833_v19  ;;  %v19855_v41 = vld [vmem:[%s27379_s9 + $0x1540] ss:$168 sps:$4 sm:$0xff]   ;;  %v19866_v24 = vld [vmem:[%s27379_s9 + $0x169c] ss:$168 sps:$4 sm:$0xff]  }
 0x5cf   :  { %v20784_v35 = vpop.eup %20783  ;;  %v25192_v34 = vmul.f32 %v20782_v36, %v21969_v42  ;;  %13896 = vmatprep.subr.bf16.mxu0 %v19836_v30  ;;  %v19858_v19 = vld [vmem:[%s27379_s9 + $0x1548] ss:$168 sps:$4 sm:$0xff]   ;;  %v19863_v30 = vld [vmem:[%s27379_s9 + $0x1694] ss:$168 sps:$4 sm:$0xff]   ;;  %v19864_v36 = vld [vmem:[%s27379_s9 + $0x1698] ss:$168 sps:$4 sm:$0xff]  }
 0x5d0   :  { %v20786_v3 = vpop.eup %20785  ;;  %v25198_v53 = vmul.f32 %v20784_v35, %v21843_v50  ;;  %v19867_v35 = vld [vmem:[%s27379_s9 + $0x17e0] ss:$168 sps:$4 sm:$0xff]  }
 0x5d1   :  { %v25201_v38 = vmul.f32 %v20786_v3, %v21708_v25  ;;  %13815 = vmatpush1.bf16.msra.mxu1 %v19831_v9  ;;  %v19861_v9 = vld [vmem:[%s27379_s9 + $0x1690] ss:$168 sps:$4 sm:$0xff]   ;;  %v19875_v3 = vld [vmem:[%s27379_s9 + $0x1934] ss:$168 sps:$4 sm:$0xff]  }
 0x5d2   :  { %v15258_v57 = vcombine.low %v25183_v26, %v25198_v53  ;;  %13897 = vmatpush1.bf16.msra.mxu0 %v19834_v58  ;;  %13816 = vmatprep.subr.bf16.mxu1 %v19839_v5  ;;  %v19869_v58 = vld [vmem:[%s27379_s9 + $0x17e4] ss:$168 sps:$4 sm:$0xff]  }
 0x5d3   :  { %v15259_v37 = vcombine.low %v25192_v34, %v25201_v38  ;;  %13898 = vmatprep.subr.bf16.mxu0 %v19842_v54  ;;  %v19872_v5 = vld [vmem:[%s27379_s9 + $0x17ec] ss:$168 sps:$4 sm:$0xff]   ;;  %v19870_v54 = vld [vmem:[%s27379_s9 + $0x17e8] ss:$168 sps:$4 sm:$0xff]  }
 0x5d4   :  { %v15266_v8 = vrot.slane %v15258_v57, %v24878_v63  ;;  %v19873_v57 = vld [vmem:[%s27379_s9 + $0x1930] ss:$168 sps:$4 sm:$0xff]  }
 0x5d5   :  { %v15273_v15 = vrot.slane %v15259_v37, %v24878_v63  ;;  %13817 = vmatpush1.bf16.msra.mxu1 %v19837_v44  ;;  %v19878_v44 = vld [vmem:[%s27379_s9 + $0x193c] ss:$168 sps:$4 sm:$0xff]   ;;  %v19884_v37 = vld [vmem:[%s27379_s9 + $0x1a8c] ss:$168 sps:$4 sm:$0xff]  }
 0x5d6   :  { %13899 = vmatpush1.bf16.msra.mxu0 %v19840_v10  ;;  %13818 = vmatprep.subr.bf16.mxu1 %v19845_v48  ;;  %v19876_v10 = vld [vmem:[%s27379_s9 + $0x1938] ss:$168 sps:$4 sm:$0xff]   ;;  %v19881_v48 = vld [vmem:[%s27379_s9 + $0x1a84] ss:$168 sps:$4 sm:$0xff]  }
 0x5d7   :  { %v15274_v18 = vcombine.low %v15266_v8, %v15273_v15  ;;  %13900 = vmatprep.subr.bf16.mxu0 %v19848_v62  ;;  %v19879_v62 = vld [vmem:[%s27379_s9 + $0x1a80] ss:$168 sps:$4 sm:$0xff]   ;;  %v19887_v15 = vld [vmem:[%s27379_s9 + $0x1bd4] ss:$168 sps:$4 sm:$0xff]  }
 0x5d8   :  { %v19882_v8 = vld [vmem:[%s27379_s9 + $0x1a88] ss:$168 sps:$4 sm:$0xff]  }
 0x5d9   :  { %15305 = vst [vmem:[%s27384_s17 + $0x8] sm:$0xff] %v15274_v18  ;;  %13819 = vmatpush1.bf16.msra.mxu1 %v19843_v61  ;;  %v19890_v61 = vld [vmem:[%s27379_s9 + $0x1bdc] ss:$168 sps:$4 sm:$0xff]  }
 0x5da   :  { %13901 = vmatpush1.bf16.msra.mxu0 %v19846_v31  ;;  %13820 = vmatprep.subr.bf16.mxu1 %v19851_v13  ;;  %v19885_v31 = vld [vmem:[%s27379_s9 + $0x1bd0] ss:$168 sps:$4 sm:$0xff]   ;;  %v19893_v18 = vld [vmem:[%s27379_s9 + $0x1d24] ss:$168 sps:$4 sm:$0xff]  }
 0x5db   :  { %13902 = vmatprep.subr.bf16.mxu0 %v19854_v46  ;;  %v19888_v13 = vld [vmem:[%s27379_s9 + $0x1bd8] ss:$168 sps:$4 sm:$0xff]   ;;  %v19896_v46 = vld [vmem:[%s27379_s9 + $0x1d2c] ss:$168 sps:$4 sm:$0xff]  }
 0x5dd   :  { %13821 = vmatpush1.bf16.msra.mxu1 %v19849_v39  ;;  %v19891_v39 = vld [vmem:[%s27379_s9 + $0x1d20] ss:$168 sps:$4 sm:$0xff]  }
 0x5de   :  { %13903 = vmatpush1.bf16.msra.mxu0 %v19852_v47  ;;  %13831 = vmatprep.subr.bf16.mxu1 %v19857_v28  ;;  %v19894_v47 = vld [vmem:[%s27379_s9 + $0x1d28] ss:$168 sps:$4 sm:$0xff]   ;;  %v19899_v28 = vld [vmem:[%s27379_s9 + $0x1e74] ss:$168 sps:$4 sm:$0xff]  }
 0x5df   :  { %13913 = vmatprep.subr.bf16.mxu0 %v19860_v32  ;;  %v19902_v32 = vld [vmem:[%s27379_s9 + $0x1e7c] ss:$168 sps:$4 sm:$0xff]  }
 0x5e0   :  { %13823 = vmatmul.mubr.bf16.vlgmr.msra.gmra.mrb[80].mxu1 %v23994_v7 }
 0x5e1   :  { %13905 = vmatmul.mubr.bf16.vlgmr.msra.gmra.mrb[92].mxu0 %v23994_v7  ;;  %13832 = vmatpush1.bf16.msra.mxu1 %v19855_v41  ;;  %v19897_v41 = vld [vmem:[%s27379_s9 + $0x1e70] ss:$168 sps:$4 sm:$0xff]  }
 0x5e2   :  { %13914 = vmatpush1.bf16.msra.mxu0 %v19858_v19  ;;  %13833 = vmatprep.subr.bf16.mxu1 %v19863_v30  ;;  %v19900_v19 = vld [vmem:[%s27379_s9 + $0x1e78] ss:$168 sps:$4 sm:$0xff]   ;;  %v19905_v30 = vld [vmem:[%s27379_s9 + $0x54] ss:$168 sps:$4 sm:$0xff]  }
 0x5e3   :  { %13915 = vmatprep.subr.bf16.mxu0 %v19866_v24  ;;  %13863 = vmatprep.mubr.bf16.mxu1 %v27396_v1  ;;  %v19908_v24 = vld [vmem:[%s27379_s9 + $0x5c] ss:$168 sps:$4 sm:$0xff]  }
 0x5e4   :  { %13945 = vmatprep.mubr.bf16.mxu0 %v27396_v1 }
 0x5e5   :  { %13834 = vmatpush1.bf16.msra.mxu1 %v19861_v9  ;;  %v19903_v9 = vld [vmem:[%s27379_s9 + $0x50] ss:$168 sps:$4 sm:$0xff]  }
 0x5e6   :  { %13916 = vmatpush1.bf16.msra.mxu0 %v19864_v36  ;;  %13835 = vmatprep.subr.bf16.mxu1 %v19869_v58  ;;  %v19906_v36 = vld [vmem:[%s27379_s9 + $0x58] ss:$168 sps:$4 sm:$0xff]   ;;  %v19911_v58 = vld [vmem:[%s27379_s9 + $0x1a4] ss:$168 sps:$4 sm:$0xff]  }
 0x5e7   :  { %13917 = vmatprep.subr.bf16.mxu0 %v19872_v5  ;;  %v19914_v5 = vld [vmem:[%s27379_s9 + $0x1ac] ss:$168 sps:$4 sm:$0xff]  }
 0x5e9   :  { %13836 = vmatpush1.bf16.msra.mxu1 %v19867_v35  ;;  %v19909_v35 = vld [vmem:[%s27379_s9 + $0x1a0] ss:$168 sps:$4 sm:$0xff]  }
 0x5ea   :  { %13918 = vmatpush1.bf16.msra.mxu0 %v19870_v54  ;;  %13837 = vmatprep.subr.bf16.mxu1 %v19875_v3  ;;  %v19912_v54 = vld [vmem:[%s27379_s9 + $0x1a8] ss:$168 sps:$4 sm:$0xff]   ;;  %v19917_v3 = vld [vmem:[%s27379_s9 + $0x2f4] ss:$168 sps:$4 sm:$0xff]  }
 0x5eb   :  { %13919 = vmatprep.subr.bf16.mxu0 %v19878_v44  ;;  %v19920_v44 = vld [vmem:[%s27379_s9 + $0x2fc] ss:$168 sps:$4 sm:$0xff]  }
 0x5ed   :  { %13838 = vmatpush1.bf16.msra.mxu1 %v19873_v57  ;;  %v19915_v57 = vld [vmem:[%s27379_s9 + $0x2f0] ss:$168 sps:$4 sm:$0xff]  }
 0x5ee   :  { %13920 = vmatpush1.bf16.msra.mxu0 %v19876_v10  ;;  %13839 = vmatprep.subr.bf16.mxu1 %v19881_v48  ;;  %v19918_v10 = vld [vmem:[%s27379_s9 + $0x2f8] ss:$168 sps:$4 sm:$0xff]   ;;  %v19923_v48 = vld [vmem:[%s27379_s9 + $0x444] ss:$168 sps:$4 sm:$0xff]  }
 0x5ef   :  { %13921 = vmatprep.subr.bf16.mxu0 %v19884_v37  ;;  %v19926_v37 = vld [vmem:[%s27379_s9 + $0x44c] ss:$168 sps:$4 sm:$0xff]  }
 0x5f1   :  { %13840 = vmatpush1.bf16.msra.mxu1 %v19879_v62  ;;  %v19921_v62 = vld [vmem:[%s27379_s9 + $0x440] ss:$168 sps:$4 sm:$0xff]  }
 0x5f2   :  { %13922 = vmatpush1.bf16.msra.mxu0 %v19882_v8  ;;  %13841 = vmatprep.subr.bf16.mxu1 %v19887_v15  ;;  %v19924_v8 = vld [vmem:[%s27379_s9 + $0x448] ss:$168 sps:$4 sm:$0xff]   ;;  %v19929_v15 = vld [vmem:[%s27379_s9 + $0x594] ss:$168 sps:$4 sm:$0xff]  }
 0x5f3   :  { %13923 = vmatprep.subr.bf16.mxu0 %v19890_v61  ;;  %v19932_v61 = vld [vmem:[%s27379_s9 + $0x59c] ss:$168 sps:$4 sm:$0xff]  }
 0x5f5   :  { %13842 = vmatpush1.bf16.msra.mxu1 %v19885_v31  ;;  %v19927_v31 = vld [vmem:[%s27379_s9 + $0x590] ss:$168 sps:$4 sm:$0xff]  }
 0x5f6   :  { %13924 = vmatpush1.bf16.msra.mxu0 %v19888_v13  ;;  %13843 = vmatprep.subr.bf16.mxu1 %v19893_v18  ;;  %v19930_v13 = vld [vmem:[%s27379_s9 + $0x598] ss:$168 sps:$4 sm:$0xff]   ;;  %v19935_v18 = vld [vmem:[%s27379_s9 + $0x6e4] ss:$168 sps:$4 sm:$0xff]  }
 0x5f7   :  { %13925 = vmatprep.subr.bf16.mxu0 %v19896_v46  ;;  %v19938_v46 = vld [vmem:[%s27379_s9 + $0x6ec] ss:$168 sps:$4 sm:$0xff]  }
 0x5f9   :  { %13844 = vmatpush1.bf16.msra.mxu1 %v19891_v39  ;;  %v19933_v39 = vld [vmem:[%s27379_s9 + $0x6e0] ss:$168 sps:$4 sm:$0xff]  }
 0x5fa   :  { %13926 = vmatpush1.bf16.msra.mxu0 %v19894_v47  ;;  %13845 = vmatprep.subr.bf16.mxu1 %v19899_v28  ;;  %v19936_v47 = vld [vmem:[%s27379_s9 + $0x6e8] ss:$168 sps:$4 sm:$0xff]   ;;  %v19941_v28 = vld [vmem:[%s27379_s9 + $0x834] ss:$168 sps:$4 sm:$0xff]  }
 0x5fb   :  { %13927 = vmatprep.subr.bf16.mxu0 %v19902_v32 }
 0x5fd   :  { %13846 = vmatpush1.bf16.msra.mxu1 %v19897_v41  ;;  %v19939_v41 = vld [vmem:[%s27379_s9 + $0x830] ss:$168 sps:$4 sm:$0xff]  }
 0x5fe   :  { %13928 = vmatpush1.bf16.msra.mxu0 %v19900_v19  ;;  %13954 = vmatprep.subr.bf16.mxu1 %v19905_v30  ;;  %v19944_v19 = vld [vmem:[%s27379_s9 + $0x83c] ss:$168 sps:$4 sm:$0xff]  }
 0x5ff   :  { %14036 = vmatprep.subr.bf16.mxu0 %v19908_v24 }
 0x600   :  { %13864 = vmatmul.mubr.bf16.vlgmr.msra.gmra.mrb[80].mxu1 %v24108_v29 }
 0x601   :  { %13946 = vmatmul.mubr.bf16.vlgmr.msra.gmra.mrb[92].mxu0 %v24108_v29  ;;  %13955 = vmatpush1.bf16.msra.mxu1 %v19903_v9 }
 0x602   :  { %13986 = vmatprep.mubr.bf16.mxu1 %v23992_v52  ;;  %14037 = vmatpush1.bf16.msra.mxu0 %v19906_v36  ;;  %v19942_v36 = vld [vmem:[%s27379_s9 + $0x838] ss:$168 sps:$4 sm:$0xff]  }
 0x603   :  { %14068 = vmatprep.mubr.bf16.mxu0 %v23992_v52  ;;  %13956 = vmatprep.subr.bf16.mxu1 %v19911_v58 }
 0x604   :  { %14038 = vmatprep.subr.bf16.mxu0 %v19914_v5 }
 0x605   :  { %13957 = vmatpush1.bf16.msra.mxu1 %v19909_v35 }
 0x606   :  { %14039 = vmatpush1.bf16.msra.mxu0 %v19912_v54  ;;  %13958 = vmatprep.subr.bf16.mxu1 %v19917_v3 }
 0x607   :  { %14040 = vmatprep.subr.bf16.mxu0 %v19920_v44 }
 0x609   :  { %13959 = vmatpush1.bf16.msra.mxu1 %v19915_v57 }
 0x60a   :  { %14041 = vmatpush1.bf16.msra.mxu0 %v19918_v10  ;;  %13960 = vmatprep.subr.bf16.mxu1 %v19923_v48  ;;  %v19947_v10 = vld [vmem:[%s27379_s9 + $0x984] ss:$168 sps:$4 sm:$0xff]  }
 0x60b   :  { %14042 = vmatprep.subr.bf16.mxu0 %v19926_v37  ;;  %v19950_v37 = vld [vmem:[%s27379_s9 + $0x98c] ss:$168 sps:$4 sm:$0xff]  }
 0x60d   :  { %13961 = vmatpush1.bf16.msra.mxu1 %v19921_v62  ;;  %v19945_v62 = vld [vmem:[%s27379_s9 + $0x980] ss:$168 sps:$4 sm:$0xff]  }
 0x60e   :  { %14043 = vmatpush1.bf16.msra.mxu0 %v19924_v8  ;;  %13962 = vmatprep.subr.bf16.mxu1 %v19929_v15  ;;  %v19948_v8 = vld [vmem:[%s27379_s9 + $0x988] ss:$168 sps:$4 sm:$0xff]   ;;  %v19953_v15 = vld [vmem:[%s27379_s9 + $0xad4] ss:$168 sps:$4 sm:$0xff]  }
 0x60f   :  { %14044 = vmatprep.subr.bf16.mxu0 %v19932_v61  ;;  %v19956_v61 = vld [vmem:[%s27379_s9 + $0xadc] ss:$168 sps:$4 sm:$0xff]  }
 0x611   :  { %13963 = vmatpush1.bf16.msra.mxu1 %v19927_v31  ;;  %v19951_v31 = vld [vmem:[%s27379_s9 + $0xad0] ss:$168 sps:$4 sm:$0xff]  }
 0x612   :  { %14045 = vmatpush1.bf16.msra.mxu0 %v19930_v13  ;;  %13964 = vmatprep.subr.bf16.mxu1 %v19935_v18  ;;  %v19954_v13 = vld [vmem:[%s27379_s9 + $0xad8] ss:$168 sps:$4 sm:$0xff]   ;;  %v19959_v18 = vld [vmem:[%s27379_s9 + $0xc24] ss:$168 sps:$4 sm:$0xff]  }
 0x613   :  { %v13537_v32 = vpop.f32.mrb[72].mxu1  ;;  %14046 = vmatprep.subr.bf16.mxu0 %v19938_v46  ;;  %v19962_v46 = vld [vmem:[%s27379_s9 + $0xc2c] ss:$168 sps:$4 sm:$0xff]  }
 0x614   :  { %v17685_v30 = vmul.f32 -1.442695, %v13537_v32  ;;  %v13619_v24 = vpop.f32.mrb[84].mxu0  ;;  %v13539_v9 = vpop.f32.mrb[73].mxu1  ;;  %v19957_v32 = vld [vmem:[%s27379_s9 + $0xc20] ss:$168 sps:$4 sm:$0xff]  }
 0x615   :  { %v17687_v58 = vmul.f32 -1.442695, %v13619_v24  ;;  %v17686_v5 = vmul.f32 -1.442695, %v13539_v9  ;;  %v13621_v35 = vpop.f32.mrb[85].mxu0  ;;  %v13541_v54 = vpop.f32.mrb[74].mxu1  ;;  %13965 = vmatpush1.bf16.msra.mxu1 %v19933_v39 }
 0x616   :  { %20787 = vpow2.f32 %v17685_v30  ;;  %v17688_v3 = vmul.f32 -1.442695, %v13621_v35  ;;  %v13623_v44 = vpop.f32.mrb[86].mxu0  ;;  %14047 = vmatpush1.bf16.msra.mxu0 %v19936_v47  ;;  %v13542_v57 = vpop.f32.mrb[75].mxu1  ;;  %13966 = vmatprep.subr.bf16.mxu1 %v19941_v28  ;;  %v19960_v30 = vld [vmem:[%s27379_s9 + $0xc28] ss:$168 sps:$4 sm:$0xff]  }
 0x617   :  { %20789 = vpow2.f32 %v17687_v58  ;;  %v13624_v48 = vpop.f32.mrb[87].mxu0  ;;  %14048 = vmatprep.subr.bf16.mxu0 %v19944_v19  ;;  %v19965_v24 = vld [vmem:[%s27379_s9 + $0xd74] ss:$168 sps:$4 sm:$0xff]   ;;  %v19963_v35 = vld [vmem:[%s27379_s9 + $0xd70] ss:$168 sps:$4 sm:$0xff]  }
 0x618   :  { %20791 = vpow2.f32 %v17686_v5  ;;  %v19968_v58 = vld [vmem:[%s27379_s9 + $0xd7c] ss:$168 sps:$4 sm:$0xff]   ;;  %v19966_v54 = vld [vmem:[%s27379_s9 + $0xd78] ss:$168 sps:$4 sm:$0xff]   ;;  %v19974_v44 = vld [vmem:[%s27379_s9 + $0xecc] ss:$168 sps:$4 sm:$0xff]  }
 0x619   :  { %20793 = vpow2.f32 %v17688_v3  ;;  %13967 = vmatpush1.bf16.msra.mxu1 %v19939_v41  ;;  %v19971_v3 = vld [vmem:[%s27379_s9 + $0xec4] ss:$168 sps:$4 sm:$0xff]   ;;  %v19969_v57 = vld [vmem:[%s27379_s9 + $0xec0] ss:$168 sps:$4 sm:$0xff]   ;;  %v19977_v48 = vld [vmem:[%s27379_s9 + $0x1014] ss:$168 sps:$4 sm:$0xff]  }
 0x61a   :  { %14049 = vmatpush1.bf16.msra.mxu0 %v19942_v36  ;;  %13968 = vmatprep.subr.bf16.mxu1 %v19947_v10  ;;  %v19972_v10 = vld [vmem:[%s27379_s9 + $0xec8] ss:$168 sps:$4 sm:$0xff]  }
 0x61b   :  { %14050 = vmatprep.subr.bf16.mxu0 %v19950_v37  ;;  %v19980_v37 = vld [vmem:[%s27379_s9 + $0x101c] ss:$168 sps:$4 sm:$0xff]  }
 0x61d   :  { %13969 = vmatpush1.bf16.msra.mxu1 %v19945_v62 }
 0x61e   :  { %14051 = vmatpush1.bf16.msra.mxu0 %v19948_v8  ;;  %13970 = vmatprep.subr.bf16.mxu1 %v19953_v15  ;;  %v19975_v8 = vld [vmem:[%s27379_s9 + $0x1010] ss:$168 sps:$4 sm:$0xff]  }
 0x61f   :  { %14052 = vmatprep.subr.bf16.mxu0 %v19956_v61 }
 0x620   :  { %v20788_v39 = vpop.eup %20787 }
 0x621   :  { %v20790_v47 = vpop.eup %20789  ;;  %v14990_v28 = vadd.f32 1.0, %v20788_v39  ;;  %13971 = vmatpush1.bf16.msra.mxu1 %v19951_v31  ;;  %v19978_v31 = vld [vmem:[%s27379_s9 + $0x1018] ss:$168 sps:$4 sm:$0xff]  }
 0x622   :  { %v20792_v41 = vpop.eup %20791  ;;  %v14992_v19 = vadd.f32 1.0, %v20790_v47  ;;  %14053 = vmatpush1.bf16.msra.mxu0 %v19954_v13  ;;  %13972 = vmatprep.subr.bf16.mxu1 %v19959_v18  ;;  %v19983_v13 = vld [vmem:[%s27379_s9 + $0x1164] ss:$168 sps:$4 sm:$0xff]  }
 0x623   :  { %v20794_v9 = vpop.eup %20793  ;;  %20795 = vrcp.f32 %v14990_v28  ;;  %v14991_v36 = vadd.f32 1.0, %v20792_v41  ;;  %14054 = vmatprep.subr.bf16.mxu0 %v19962_v46  ;;  %v19986_v46 = vld [vmem:[%s27379_s9 + $0x116c] ss:$168 sps:$4 sm:$0xff]  }
 0x624   :  { %20797 = vrcp.f32 %v14992_v19  ;;  %v14993_v5 = vadd.f32 1.0, %v20794_v9  ;;  %v19992_v9 = vld [vmem:[%s27379_s9 + $0x12bc] ss:$168 sps:$4 sm:$0xff]  }
 0x625   :  { %20799 = vrcp.f32 %v14991_v36  ;;  %13973 = vmatpush1.bf16.msra.mxu1 %v19957_v32  ;;  %v19981_v32 = vld [vmem:[%s27379_s9 + $0x1160] ss:$168 sps:$4 sm:$0xff]  }
 0x626   :  { %20801 = vrcp.f32 %v14993_v5  ;;  %14055 = vmatpush1.bf16.msra.mxu0 %v19960_v30  ;;  %13974 = vmatprep.subr.bf16.mxu1 %v19965_v24  ;;  %v19984_v30 = vld [vmem:[%s27379_s9 + $0x1168] ss:$168 sps:$4 sm:$0xff]   ;;  %v19989_v24 = vld [vmem:[%s27379_s9 + $0x12b4] ss:$168 sps:$4 sm:$0xff]  }
 0x627   :  { %14056 = vmatprep.subr.bf16.mxu0 %v19968_v58  ;;  %v19987_v5 = vld [vmem:[%s27379_s9 + $0x12b0] ss:$168 sps:$4 sm:$0xff]  }
 0x629   :  { %13975 = vmatpush1.bf16.msra.mxu1 %v19963_v35 }
 0x62a   :  { %14057 = vmatpush1.bf16.msra.mxu0 %v19966_v54  ;;  %13976 = vmatprep.subr.bf16.mxu1 %v19971_v3  ;;  %v19990_v54 = vld [vmem:[%s27379_s9 + $0x12b8] ss:$168 sps:$4 sm:$0xff]   ;;  %v19995_v3 = vld [vmem:[%s27379_s9 + $0x1404] ss:$168 sps:$4 sm:$0xff]  }
 0x62b   :  { %14058 = vmatprep.subr.bf16.mxu0 %v19974_v44  ;;  %v19998_v44 = vld [vmem:[%s27379_s9 + $0x140c] ss:$168 sps:$4 sm:$0xff]  }
 0x62d   :  { %v20796_v62 = vpop.eup %20795  ;;  %13977 = vmatpush1.bf16.msra.mxu1 %v19969_v57 }
 0x62e   :  { %v20798_v15 = vpop.eup %20797  ;;  %v25500_v61 = vmul.f32 %v20796_v62, %v22098_v33  ;;  %14059 = vmatpush1.bf16.msra.mxu0 %v19972_v10  ;;  %13978 = vmatprep.subr.bf16.mxu1 %v19977_v48  ;;  %v19993_v10 = vld [vmem:[%s27379_s9 + $0x1400] ss:$168 sps:$4 sm:$0xff]   ;;  %v20004_v62 = vld [vmem:[%s27379_s9 + $0x155c] ss:$168 sps:$4 sm:$0xff]  }
 0x62f   :  { %v20800_v18 = vpop.eup %20799  ;;  %14060 = vmatprep.subr.bf16.mxu0 %v19980_v37  ;;  %v25512_v39 = vmul.f32 %v20798_v15, %v22222_v22  ;;  %v19996_v48 = vld [vmem:[%s27379_s9 + $0x1408] ss:$168 sps:$4 sm:$0xff]   ;;  %v20001_v37 = vld [vmem:[%s27379_s9 + $0x1554] ss:$168 sps:$4 sm:$0xff]   ;;  %v20002_v15 = vld [vmem:[%s27379_s9 + $0x1558] ss:$168 sps:$4 sm:$0xff]  }
 0x630   :  { %v20802_v47 = vpop.eup %20801  ;;  %v25515_v28 = vmul.f32 %v20800_v18, %v21974_v6  ;;  %v20005_v18 = vld [vmem:[%s27379_s9 + $0x16a0] ss:$168 sps:$4 sm:$0xff]  }
 0x631   :  { %13979 = vmatpush1.bf16.msra.mxu1 %v19975_v8  ;;  %v25521_v41 = vmul.f32 %v20802_v47, %v21977_v45  ;;  %v19999_v8 = vld [vmem:[%s27379_s9 + $0x1550] ss:$168 sps:$4 sm:$0xff]   ;;  %v20013_v47 = vld [vmem:[%s27379_s9 + $0x17f4] ss:$168 sps:$4 sm:$0xff]  }
 0x632   :  { %v15275_v19 = vcombine.low %v25500_v61, %v25515_v28  ;;  %14061 = vmatpush1.bf16.msra.mxu0 %v19978_v31  ;;  %13980 = vmatprep.subr.bf16.mxu1 %v19983_v13  ;;  %v20007_v31 = vld [vmem:[%s27379_s9 + $0x16a4] ss:$168 sps:$4 sm:$0xff]  }
 0x633   :  { %14062 = vmatprep.subr.bf16.mxu0 %v19986_v46  ;;  %v15276_v36 = vcombine.low %v25512_v39, %v25521_v41  ;;  %v20010_v13 = vld [vmem:[%s27379_s9 + $0x16ac] ss:$168 sps:$4 sm:$0xff]   ;;  %v20008_v46 = vld [vmem:[%s27379_s9 + $0x16a8] ss:$168 sps:$4 sm:$0xff]  }
 0x634   :  { %v15283_v58 = vrot.slane %v15275_v19, %v24878_v63  ;;  %v20011_v19 = vld [vmem:[%s27379_s9 + $0x17f0] ss:$168 sps:$4 sm:$0xff]  }
 0x635   :  { %13981 = vmatpush1.bf16.msra.mxu1 %v19981_v32  ;;  %v15290_v35 = vrot.slane %v15276_v36, %v24878_v63  ;;  %v20016_v32 = vld [vmem:[%s27379_s9 + $0x17fc] ss:$168 sps:$4 sm:$0xff]   ;;  %v20017_v36 = vld [vmem:[%s27379_s9 + $0x1940] ss:$168 sps:$4 sm:$0xff]  }
 0x636   :  { %14063 = vmatpush1.bf16.msra.mxu0 %v19984_v30  ;;  %13982 = vmatprep.subr.bf16.mxu1 %v19989_v24  ;;  %v20014_v30 = vld [vmem:[%s27379_s9 + $0x17f8] ss:$168 sps:$4 sm:$0xff]   ;;  %v20019_v24 = vld [vmem:[%s27379_s9 + $0x1944] ss:$168 sps:$4 sm:$0xff]  }
 0x637   :  { %14064 = vmatprep.subr.bf16.mxu0 %v19992_v9  ;;  %v15291_v57 = vcombine.low %v15283_v58, %v15290_v35  ;;  %v20022_v9 = vld [vmem:[%s27379_s9 + $0x194c] ss:$168 sps:$4 sm:$0xff]   ;;  %v20020_v58 = vld [vmem:[%s27379_s9 + $0x1948] ss:$168 sps:$4 sm:$0xff]   ;;  %v20028_v35 = vld [vmem:[%s27379_s9 + $0x1a9c] ss:$168 sps:$4 sm:$0xff]  }
 0x639   :  { %13983 = vmatpush1.bf16.msra.mxu1 %v19987_v5  ;;  %15306 = vst [vmem:[%s27384_s17 + $0x10] sm:$0xff] %v15291_v57  ;;  %v20025_v5 = vld [vmem:[%s27379_s9 + $0x1a94] ss:$168 sps:$4 sm:$0xff]  }
 0x63a   :  { %14065 = vmatpush1.bf16.msra.mxu0 %v19990_v54  ;;  %13984 = vmatprep.subr.bf16.mxu1 %v19995_v3  ;;  %v20023_v54 = vld [vmem:[%s27379_s9 + $0x1a90] ss:$168 sps:$4 sm:$0xff]   ;;  %v20034_v57 = vld [vmem:[%s27379_s9 + $0x1bec] ss:$168 sps:$4 sm:$0xff]  }
 0x63b   :  { %14066 = vmatprep.subr.bf16.mxu0 %v19998_v44  ;;  %v20026_v3 = vld [vmem:[%s27379_s9 + $0x1a98] ss:$168 sps:$4 sm:$0xff]   ;;  %v20031_v44 = vld [vmem:[%s27379_s9 + $0x1be4] ss:$168 sps:$4 sm:$0xff]  }
 0x63d   :  { %13985 = vmatpush1.bf16.msra.mxu1 %v19993_v10  ;;  %v20029_v10 = vld [vmem:[%s27379_s9 + $0x1be0] ss:$168 sps:$4 sm:$0xff]  }
 0x63e   :  { %14067 = vmatpush1.bf16.msra.mxu0 %v19996_v48  ;;  %13995 = vmatprep.subr.bf16.mxu1 %v20001_v37  ;;  %v20032_v48 = vld [vmem:[%s27379_s9 + $0x1be8] ss:$168 sps:$4 sm:$0xff]   ;;  %v20037_v37 = vld [vmem:[%s27379_s9 + $0x1d34] ss:$168 sps:$4 sm:$0xff]  }
 0x63f   :  { %14077 = vmatprep.subr.bf16.mxu0 %v20004_v62  ;;  %v20040_v62 = vld [vmem:[%s27379_s9 + $0x1d3c] ss:$168 sps:$4 sm:$0xff]  }
 0x640   :  { %13987 = vmatmul.mubr.bf16.vlgmr.msra.gmra.mrb[84].mxu1 %v23994_v7 }
 0x641   :  { %14069 = vmatmul.mubr.bf16.vlgmr.msra.gmra.mrb[96].mxu0 %v23994_v7  ;;  %13996 = vmatpush1.bf16.msra.mxu1 %v19999_v8  ;;  %v20035_v8 = vld [vmem:[%s27379_s9 + $0x1d30] ss:$168 sps:$4 sm:$0xff]  }
 0x642   :  { %14078 = vmatpush1.bf16.msra.mxu0 %v20002_v15  ;;  %13997 = vmatprep.subr.bf16.mxu1 %v20007_v31  ;;  %v20038_v15 = vld [vmem:[%s27379_s9 + $0x1d38] ss:$168 sps:$4 sm:$0xff]   ;;  %v20043_v31 = vld [vmem:[%s27379_s9 + $0x1e84] ss:$168 sps:$4 sm:$0xff]  }
 0x643   :  { %14079 = vmatprep.subr.bf16.mxu0 %v20010_v13  ;;  %14027 = vmatprep.mubr.bf16.mxu1 %v27396_v1  ;;  %v20046_v13 = vld [vmem:[%s27379_s9 + $0x1e8c] ss:$168 sps:$4 sm:$0xff]  }
 0x644   :  { %14109 = vmatprep.mubr.bf16.mxu0 %v27396_v1 }
 0x645   :  { %13998 = vmatpush1.bf16.msra.mxu1 %v20005_v18  ;;  %v20041_v18 = vld [vmem:[%s27379_s9 + $0x1e80] ss:$168 sps:$4 sm:$0xff]  }
 0x646   :  { %14080 = vmatpush1.bf16.msra.mxu0 %v20008_v46  ;;  %13999 = vmatprep.subr.bf16.mxu1 %v20013_v47  ;;  %v20044_v46 = vld [vmem:[%s27379_s9 + $0x1e88] ss:$168 sps:$4 sm:$0xff]   ;;  %v20049_v47 = vld [vmem:[%s27379_s9 + $0x64] ss:$168 sps:$4 sm:$0xff]  }
 0x647   :  { %14081 = vmatprep.subr.bf16.mxu0 %v20016_v32  ;;  %v20052_v32 = vld [vmem:[%s27379_s9 + $0x6c] ss:$168 sps:$4 sm:$0xff]  }
 0x649   :  { %14000 = vmatpush1.bf16.msra.mxu1 %v20011_v19  ;;  %v20047_v19 = vld [vmem:[%s27379_s9 + $0x60] ss:$168 sps:$4 sm:$0xff]  }
 0x64a   :  { %14082 = vmatpush1.bf16.msra.mxu0 %v20014_v30  ;;  %14001 = vmatprep.subr.bf16.mxu1 %v20019_v24  ;;  %v20050_v30 = vld [vmem:[%s27379_s9 + $0x68] ss:$168 sps:$4 sm:$0xff]   ;;  %v20055_v24 = vld [vmem:[%s27379_s9 + $0x1b4] ss:$168 sps:$4 sm:$0xff]  }
 0x64b   :  { %14083 = vmatprep.subr.bf16.mxu0 %v20022_v9  ;;  %v20058_v9 = vld [vmem:[%s27379_s9 + $0x1bc] ss:$168 sps:$4 sm:$0xff]  }
 0x64d   :  { %14002 = vmatpush1.bf16.msra.mxu1 %v20017_v36  ;;  %v20053_v36 = vld [vmem:[%s27379_s9 + $0x1b0] ss:$168 sps:$4 sm:$0xff]  }
 0x64e   :  { %14084 = vmatpush1.bf16.msra.mxu0 %v20020_v58  ;;  %14003 = vmatprep.subr.bf16.mxu1 %v20025_v5  ;;  %v20056_v58 = vld [vmem:[%s27379_s9 + $0x1b8] ss:$168 sps:$4 sm:$0xff]   ;;  %v20061_v5 = vld [vmem:[%s27379_s9 + $0x304] ss:$168 sps:$4 sm:$0xff]  }
 0x64f   :  { %14085 = vmatprep.subr.bf16.mxu0 %v20028_v35  ;;  %v20064_v35 = vld [vmem:[%s27379_s9 + $0x30c] ss:$168 sps:$4 sm:$0xff]  }
 0x651   :  { %14004 = vmatpush1.bf16.msra.mxu1 %v20023_v54  ;;  %v20059_v54 = vld [vmem:[%s27379_s9 + $0x300] ss:$168 sps:$4 sm:$0xff]  }
 0x652   :  { %14086 = vmatpush1.bf16.msra.mxu0 %v20026_v3  ;;  %14005 = vmatprep.subr.bf16.mxu1 %v20031_v44  ;;  %v20062_v3 = vld [vmem:[%s27379_s9 + $0x308] ss:$168 sps:$4 sm:$0xff]   ;;  %v20067_v44 = vld [vmem:[%s27379_s9 + $0x454] ss:$168 sps:$4 sm:$0xff]  }
 0x653   :  { %14087 = vmatprep.subr.bf16.mxu0 %v20034_v57  ;;  %v20070_v57 = vld [vmem:[%s27379_s9 + $0x45c] ss:$168 sps:$4 sm:$0xff]  }
 0x655   :  { %14006 = vmatpush1.bf16.msra.mxu1 %v20029_v10  ;;  %v20065_v10 = vld [vmem:[%s27379_s9 + $0x450] ss:$168 sps:$4 sm:$0xff]  }
 0x656   :  { %14088 = vmatpush1.bf16.msra.mxu0 %v20032_v48  ;;  %14007 = vmatprep.subr.bf16.mxu1 %v20037_v37  ;;  %v20068_v48 = vld [vmem:[%s27379_s9 + $0x458] ss:$168 sps:$4 sm:$0xff]   ;;  %v20073_v37 = vld [vmem:[%s27379_s9 + $0x5a4] ss:$168 sps:$4 sm:$0xff]  }
 0x657   :  { %14089 = vmatprep.subr.bf16.mxu0 %v20040_v62  ;;  %v20076_v62 = vld [vmem:[%s27379_s9 + $0x5ac] ss:$168 sps:$4 sm:$0xff]  }
 0x659   :  { %14008 = vmatpush1.bf16.msra.mxu1 %v20035_v8  ;;  %v20071_v8 = vld [vmem:[%s27379_s9 + $0x5a0] ss:$168 sps:$4 sm:$0xff]  }
 0x65a   :  { %14090 = vmatpush1.bf16.msra.mxu0 %v20038_v15  ;;  %14009 = vmatprep.subr.bf16.mxu1 %v20043_v31  ;;  %v20074_v15 = vld [vmem:[%s27379_s9 + $0x5a8] ss:$168 sps:$4 sm:$0xff]   ;;  %v20079_v31 = vld [vmem:[%s27379_s9 + $0x6f4] ss:$168 sps:$4 sm:$0xff]  }
 0x65b   :  { %14091 = vmatprep.subr.bf16.mxu0 %v20046_v13  ;;  %v20082_v13 = vld [vmem:[%s27379_s9 + $0x6fc] ss:$168 sps:$4 sm:$0xff]  }
 0x65d   :  { %14010 = vmatpush1.bf16.msra.mxu1 %v20041_v18  ;;  %v20077_v18 = vld [vmem:[%s27379_s9 + $0x6f0] ss:$168 sps:$4 sm:$0xff]  }
 0x65e   :  { %14092 = vmatpush1.bf16.msra.mxu0 %v20044_v46  ;;  %14118 = vmatprep.subr.bf16.mxu1 %v20049_v47  ;;  %v20080_v46 = vld [vmem:[%s27379_s9 + $0x6f8] ss:$168 sps:$4 sm:$0xff]   ;;  %v20085_v47 = vld [vmem:[%s27379_s9 + $0x844] ss:$168 sps:$4 sm:$0xff]  }
 0x65f   :  { %14200 = vmatprep.subr.bf16.mxu0 %v20052_v32 }
 0x660   :  { %14028 = vmatmul.mubr.bf16.vlgmr.msra.gmra.mrb[84].mxu1 %v24108_v29 }
 0x661   :  { %14110 = vmatmul.mubr.bf16.vlgmr.msra.gmra.mrb[96].mxu0 %v24108_v29  ;;  %14119 = vmatpush1.bf16.msra.mxu1 %v20047_v19  ;;  %v20083_v19 = vld [vmem:[%s27379_s9 + $0x840] ss:$168 sps:$4 sm:$0xff]  }
 0x662   :  { %14150 = vmatprep.mubr.bf16.mxu1 %v23992_v52  ;;  %14201 = vmatpush1.bf16.msra.mxu0 %v20050_v30  ;;  %v20088_v30 = vld [vmem:[%s27379_s9 + $0x84c] ss:$168 sps:$4 sm:$0xff]  }
 0x663   :  { %14232 = vmatprep.mubr.bf16.mxu0 %v23992_v52  ;;  %14120 = vmatprep.subr.bf16.mxu1 %v20055_v24 }
 0x664   :  { %14202 = vmatprep.subr.bf16.mxu0 %v20058_v9 }
 0x665   :  { %14121 = vmatpush1.bf16.msra.mxu1 %v20053_v36 }
 0x666   :  { %14203 = vmatpush1.bf16.msra.mxu0 %v20056_v58  ;;  %14122 = vmatprep.subr.bf16.mxu1 %v20061_v5  ;;  %v20086_v58 = vld [vmem:[%s27379_s9 + $0x848] ss:$168 sps:$4 sm:$0xff]  }
 0x667   :  { %14204 = vmatprep.subr.bf16.mxu0 %v20064_v35 }
 0x669   :  { %14123 = vmatpush1.bf16.msra.mxu1 %v20059_v54 }
 0x66a   :  { %14205 = vmatpush1.bf16.msra.mxu0 %v20062_v3  ;;  %14124 = vmatprep.subr.bf16.mxu1 %v20067_v44 }
 0x66b   :  { %14206 = vmatprep.subr.bf16.mxu0 %v20070_v57 }
 0x66d   :  { %14125 = vmatpush1.bf16.msra.mxu1 %v20065_v10 }
 0x66e   :  { %14207 = vmatpush1.bf16.msra.mxu0 %v20068_v48  ;;  %14126 = vmatprep.subr.bf16.mxu1 %v20073_v37  ;;  %v20091_v48 = vld [vmem:[%s27379_s9 + $0x994] ss:$168 sps:$4 sm:$0xff]  }
 0x66f   :  { %14208 = vmatprep.subr.bf16.mxu0 %v20076_v62  ;;  %v20094_v62 = vld [vmem:[%s27379_s9 + $0x99c] ss:$168 sps:$4 sm:$0xff]  }
 0x671   :  { %14127 = vmatpush1.bf16.msra.mxu1 %v20071_v8  ;;  %v20089_v8 = vld [vmem:[%s27379_s9 + $0x990] ss:$168 sps:$4 sm:$0xff]  }
 0x672   :  { %14209 = vmatpush1.bf16.msra.mxu0 %v20074_v15  ;;  %14128 = vmatprep.subr.bf16.mxu1 %v20079_v31  ;;  %v20092_v15 = vld [vmem:[%s27379_s9 + $0x998] ss:$168 sps:$4 sm:$0xff]   ;;  %v20097_v31 = vld [vmem:[%s27379_s9 + $0xae4] ss:$168 sps:$4 sm:$0xff]  }
 0x673   :  { %v13701_v32 = vpop.f32.mrb[76].mxu1  ;;  %14210 = vmatprep.subr.bf16.mxu0 %v20082_v13  ;;  %v20100_v13 = vld [vmem:[%s27379_s9 + $0xaec] ss:$168 sps:$4 sm:$0xff]  }
 0x674   :  { %v17689_v24 = vmul.f32 -1.442695, %v13701_v32  ;;  %v13783_v9 = vpop.f32.mrb[88].mxu0  ;;  %v13703_v36 = vpop.f32.mrb[77].mxu1  ;;  %v20106_v32 = vld [vmem:[%s27379_s9 + $0xc3c] ss:$168 sps:$4 sm:$0xff]  }
 0x675   :  { %v17691_v5 = vmul.f32 -1.442695, %v13783_v9  ;;  %v17690_v35 = vmul.f32 -1.442695, %v13703_v36  ;;  %v13785_v54 = vpop.f32.mrb[89].mxu0  ;;  %v13705_v3 = vpop.f32.mrb[78].mxu1  ;;  %14129 = vmatpush1.bf16.msra.mxu1 %v20077_v18 }
 0x676   :  { %20803 = vpow2.f32 %v17689_v24  ;;  %v17692_v44 = vmul.f32 -1.442695, %v13785_v54  ;;  %v13787_v57 = vpop.f32.mrb[90].mxu0  ;;  %14211 = vmatpush1.bf16.msra.mxu0 %v20080_v46  ;;  %v13706_v10 = vpop.f32.mrb[79].mxu1  ;;  %14130 = vmatprep.subr.bf16.mxu1 %v20085_v47  ;;  %v20095_v18 = vld [vmem:[%s27379_s9 + $0xae0] ss:$168 sps:$4 sm:$0xff]  }
 0x677   :  { %20805 = vpow2.f32 %v17691_v5  ;;  %v13788_v37 = vpop.f32.mrb[91].mxu0  ;;  %14212 = vmatprep.subr.bf16.mxu0 %v20088_v30  ;;  %v20098_v46 = vld [vmem:[%s27379_s9 + $0xae8] ss:$168 sps:$4 sm:$0xff]   ;;  %v20103_v47 = vld [vmem:[%s27379_s9 + $0xc34] ss:$168 sps:$4 sm:$0xff]  }
 0x678   :  { %20807 = vpow2.f32 %v17690_v35  ;;  %v20101_v9 = vld [vmem:[%s27379_s9 + $0xc30] ss:$168 sps:$4 sm:$0xff]   ;;  %v20109_v35 = vld [vmem:[%s27379_s9 + $0xd84] ss:$168 sps:$4 sm:$0xff]   ;;  %v20107_v10 = vld [vmem:[%s27379_s9 + $0xd80] ss:$168 sps:$4 sm:$0xff]  }
 0x679   :  { %20809 = vpow2.f32 %v17692_v44  ;;  %14131 = vmatpush1.bf16.msra.mxu1 %v20083_v19  ;;  %v20104_v5 = vld [vmem:[%s27379_s9 + $0xc38] ss:$168 sps:$4 sm:$0xff]   ;;  %v20112_v44 = vld [vmem:[%s27379_s9 + $0xd8c] ss:$168 sps:$4 sm:$0xff]  }
 0x67a   :  { %14213 = vmatpush1.bf16.msra.mxu0 %v20086_v58  ;;  %14132 = vmatprep.subr.bf16.mxu1 %v20091_v48  ;;  %v20110_v48 = vld [vmem:[%s27379_s9 + $0xd88] ss:$168 sps:$4 sm:$0xff]   ;;  %v20115_v37 = vld [vmem:[%s27379_s9 + $0xed4] ss:$168 sps:$4 sm:$0xff]  }
 0x67b   :  { %14214 = vmatprep.subr.bf16.mxu0 %v20094_v62  ;;  %v20118_v62 = vld [vmem:[%s27379_s9 + $0xedc] ss:$168 sps:$4 sm:$0xff]  }
 0x67d   :  { %14133 = vmatpush1.bf16.msra.mxu1 %v20089_v8  ;;  %v20113_v8 = vld [vmem:[%s27379_s9 + $0xed0] ss:$168 sps:$4 sm:$0xff]  }
 0x67e   :  { %14215 = vmatpush1.bf16.msra.mxu0 %v20092_v15  ;;  %14134 = vmatprep.subr.bf16.mxu1 %v20097_v31  ;;  %v20116_v15 = vld [vmem:[%s27379_s9 + $0xed8] ss:$168 sps:$4 sm:$0xff]   ;;  %v20121_v31 = vld [vmem:[%s27379_s9 + $0x1024] ss:$168 sps:$4 sm:$0xff]  }
 0x67f   :  { %14216 = vmatprep.subr.bf16.mxu0 %v20100_v13  ;;  %v20124_v13 = vld [vmem:[%s27379_s9 + $0x102c] ss:$168 sps:$4 sm:$0xff]  }
 0x680   :  { %v20804_v19 = vpop.eup %20803 }
 0x681   :  { %v20806_v30 = vpop.eup %20805  ;;  %v14994_v24 = vadd.f32 1.0, %v20804_v19  ;;  %14135 = vmatpush1.bf16.msra.mxu1 %v20095_v18  ;;  %v25816_v18 = vld [vmem:[%s27385_s12] sm:$0xff] }
 0x682   :  { %v20808_v36 = vpop.eup %20807  ;;  %v14996_v58 = vadd.f32 1.0, %v20806_v30  ;;  %14217 = vmatpush1.bf16.msra.mxu0 %v20098_v46  ;;  %14136 = vmatprep.subr.bf16.mxu1 %v20103_v47  ;;  %v20119_v47 = vld [vmem:[%s27379_s9 + $0x1020] ss:$168 sps:$4 sm:$0xff]  }
 0x683   :  { %v20810_v54 = vpop.eup %20809  ;;  %20811 = vrcp.f32 %v14994_v24  ;;  %v14995_v3 = vadd.f32 1.0, %v20808_v36  ;;  %14218 = vmatprep.subr.bf16.mxu0 %v20106_v32  ;;  %v25824_v19 = vld [vmem:[%s27386_s11] sm:$0xff]  ;;  %v20122_v30 = vld [vmem:[%s27379_s9 + $0x1028] ss:$168 sps:$4 sm:$0xff]   ;;  %v20127_v24 = vld [vmem:[%s27379_s9 + $0x1174] ss:$168 sps:$4 sm:$0xff]  }
 0x684   :  { %20813 = vrcp.f32 %v14996_v58  ;;  %v14997_v57 = vadd.f32 1.0, %v20810_v54 }
 0x685   :  { %20815 = vrcp.f32 %v14995_v3  ;;  %14137 = vmatpush1.bf16.msra.mxu1 %v20101_v9 }
 0x686   :  { %20817 = vrcp.f32 %v14997_v57  ;;  %14219 = vmatpush1.bf16.msra.mxu0 %v20104_v5  ;;  %14138 = vmatprep.subr.bf16.mxu1 %v20109_v35  ;;  %v15568_v5 = vrot.slane %v25816_v18, %v21590_v59  ;;  %v20130_v35 = vld [vmem:[%s27379_s9 + $0x117c] ss:$168 sps:$4 sm:$0xff]   ;;  %v15480_v57 = vrot.slane %v25824_v19, %v21590_v59 }
 0x687   :  { %14220 = vmatprep.subr.bf16.mxu0 %v20112_v44 }
 0x689   :  { %14139 = vmatpush1.bf16.msra.mxu1 %v20107_v10 }
 0x68a   :  { %14221 = vmatpush1.bf16.msra.mxu0 %v20110_v48  ;;  %14140 = vmatprep.subr.bf16.mxu1 %v20115_v37  ;;  %v15572_v48 = vrot.slane %v25816_v18, %v21593_v60  ;;  %v20125_v37 = vld [vmem:[%s27379_s9 + $0x1170] ss:$168 sps:$4 sm:$0xff]  }
 0x68b   :  { %14222 = vmatprep.subr.bf16.mxu0 %v20118_v62  ;;  %v20128_v62 = vld [vmem:[%s27379_s9 + $0x1178] ss:$168 sps:$4 sm:$0xff]  }
 0x68d   :  { %v20812_v46 = vpop.eup %20811  ;;  %14141 = vmatpush1.bf16.msra.mxu1 %v20113_v8  ;;  %v20133_v8 = vld [vmem:[%s27379_s9 + $0x12c4] ss:$168 sps:$4 sm:$0xff]  }
 0x68e   :  { %v20814_v32 = vpop.eup %20813  ;;  %14223 = vmatpush1.bf16.msra.mxu0 %v20116_v15  ;;  %14142 = vmatprep.subr.bf16.mxu1 %v20121_v31  ;;  %v25833_v9 = vmul.f32 %v20812_v46, %v22336_v40  ;;  %v15484_v46 = vrot.slane %v25824_v19, %v21593_v60 }
 0x68f   :  { %v20816_v36 = vpop.eup %20815  ;;  %v15170_v58 = vrot.slane %v20814_v32, 6  ;;  %14224 = vmatprep.subr.bf16.mxu0 %v20124_v13  ;;  %v15547_v32 = vmul.f32 %v15480_v57, %v24863_v43  ;;  %v20139_v43 = vld [vmem:[%s27379_s9 + $0x1414] ss:$168 sps:$4 sm:$0xff]  }
 0x690   :  { %v20818_v54 = vpop.eup %20817  ;;  %v25841_v3 = vmul.f32 %v20816_v36, %v22112_v11 }
 0x691   :  { %v25844_v44 = vmul.f32 %v15170_v58, %v21614_v23  ;;  %v15171_v10 = vrot.slane %v20818_v54, 6  ;;  %14143 = vmatpush1.bf16.msra.mxu1 %v20119_v47  ;;  %v20136_v47 = vld [vmem:[%s27379_s9 + $0x12cc] ss:$168 sps:$4 sm:$0xff]   ;;  %v20131_v58 = vld [vmem:[%s27379_s9 + $0x12c0] ss:$168 sps:$4 sm:$0xff]   ;;  %v15548_v54 = vmul.f32 %v15484_v46, %v24881_v56 }
 0x692   :  { %14225 = vmatpush1.bf16.msra.mxu0 %v20122_v30  ;;  %14144 = vmatprep.subr.bf16.mxu1 %v20127_v24  ;;  %v15292_v15 = vcombine.low %v25833_v9, %v25841_v3  ;;  %v20145_v56 = vld [vmem:[%s27379_s9 + $0x1564] ss:$168 sps:$4 sm:$0xff]   ;;  %v20151_v46 = vld [vmem:[%s27379_s9 + $0x16b4] ss:$168 sps:$4 sm:$0xff]   ;;  %v15588_v24 = vrot.slane %v25816_v18, %v21687_v4 }
 0x693   :  { %v15635_v31 = vmul.f32 %v15568_v5, %v25844_v44  ;;  %v25863_v13 = vmul.f32 %v15171_v10, %v21619_v27  ;;  %14226 = vmatprep.subr.bf16.mxu0 %v20130_v35  ;;  %v20134_v5 = vld [vmem:[%s27379_s9 + $0x12c8] ss:$168 sps:$4 sm:$0xff]   ;;  %v20142_v10 = vld [vmem:[%s27379_s9 + $0x141c] ss:$168 sps:$4 sm:$0xff]  }
 0x694   :  { %17720 = vst.sshfl [vmem:[%s27384_s17 + $0x18] sm:$0x33 pattern:$0x76325410] %v15292_v15  ;;  %v20143_v15 = vld [vmem:[%s27379_s9 + $0x1560] ss:$168 sps:$4 sm:$0xff]  }
 0x695   :  { %v15663_v30 = vrot.slane %v15635_v31, 2  ;;  %v15636_v36 = vmul.f32 %v15572_v48, %v25863_v13  ;;  %14145 = vmatpush1.bf16.msra.mxu1 %v20125_v37  ;;  %v20137_v37 = vld [vmem:[%s27379_s9 + $0x1410] ss:$168 sps:$4 sm:$0xff]  }
 0x696   :  { %14227 = vmatpush1.bf16.msra.mxu0 %v20128_v62  ;;  %14146 = vmatprep.subr.bf16.mxu1 %v20133_v8  ;;  %v20140_v62 = vld [vmem:[%s27379_s9 + $0x1418] ss:$168 sps:$4 sm:$0xff]   ;;  %v20148_v8 = vld [vmem:[%s27379_s9 + $0x156c] ss:$168 sps:$4 sm:$0xff]   ;;  %v20146_v31 = vld [vmem:[%s27379_s9 + $0x1568] ss:$168 sps:$4 sm:$0xff]  }
 0x697   :  { %v25886_v35 = vadd.f32 %v15663_v30, %v15547_v32  ;;  %v15664_v57 = vrot.slane %v15636_v36, 2  ;;  %14228 = vmatprep.subr.bf16.mxu0 %v20136_v47  ;;  %v20154_v47 = vld [vmem:[%s27379_s9 + $0x16bc] ss:$168 sps:$4 sm:$0xff]   ;;  %v20149_v32 = vld [vmem:[%s27379_s9 + $0x16b0] ss:$168 sps:$4 sm:$0xff]  }
 0x698   :  { %v20152_v30 = vld [vmem:[%s27379_s9 + $0x16b8] ss:$168 sps:$4 sm:$0xff]   ;;  %v20157_v36 = vld [vmem:[%s27379_s9 + $0x1804] ss:$168 sps:$4 sm:$0xff]  }
 0x699   :  { %27420 = vst [vmem:[#allocation10_spill] sm:$0xff] %v25886_v35  ;;  %v25892_v48 = vadd.f32 %v15664_v57, %v15548_v54  ;;  %14147 = vmatpush1.bf16.msra.mxu1 %v20131_v58  ;;  %v20160_v58 = vld [vmem:[%s27379_s9 + $0x180c] ss:$168 sps:$4 sm:$0xff]   ;;  %v20166_v57 = vld [vmem:[%s27379_s9 + $0x195c] ss:$168 sps:$4 sm:$0xff]  }
 0x69a   :  { %14229 = vmatpush1.bf16.msra.mxu0 %v20134_v5  ;;  %14148 = vmatprep.subr.bf16.mxu1 %v20139_v43  ;;  %v20155_v5 = vld [vmem:[%s27379_s9 + $0x1800] ss:$168 sps:$4 sm:$0xff]   ;;  %v20163_v54 = vld [vmem:[%s27379_s9 + $0x1954] ss:$168 sps:$4 sm:$0xff]  }
 0x69b   :  { %27421 = vst [vmem:[#allocation11_spill] sm:$0xff] %v25892_v48  ;;  %14230 = vmatprep.subr.bf16.mxu0 %v20142_v10  ;;  %v20158_v43 = vld [vmem:[%s27379_s9 + $0x1808] ss:$168 sps:$4 sm:$0xff]  }
 0x69c   :  { %v20161_v10 = vld [vmem:[%s27379_s9 + $0x1950] ss:$168 sps:$4 sm:$0xff]  }
 0x69d   :  { %14149 = vmatpush1.bf16.msra.mxu1 %v20137_v37  ;;  %v20164_v37 = vld [vmem:[%s27379_s9 + $0x1958] ss:$168 sps:$4 sm:$0xff]  }
 0x69e   :  { %14231 = vmatpush1.bf16.msra.mxu0 %v20140_v62  ;;  %14159 = vmatprep.subr.bf16.mxu1 %v20145_v56  ;;  %v20169_v62 = vld [vmem:[%s27379_s9 + $0x1aa4] ss:$168 sps:$4 sm:$0xff]  }
 0x69f   :  { %14241 = vmatprep.subr.bf16.mxu0 %v20148_v8  ;;  %v20172_v56 = vld [vmem:[%s27379_s9 + $0x1aac] ss:$168 sps:$4 sm:$0xff]   ;;  %v20167_v8 = vld [vmem:[%s27379_s9 + $0x1aa0] ss:$168 sps:$4 sm:$0xff]  }
 0x6a0   :  { %14151 = vmatmul.mubr.bf16.vlgmr.msra.gmra.mrb[88].mxu1 %v23994_v7 }
 0x6a1   :  { %14233 = vmatmul.mubr.bf16.vlgmr.msra.gmra.mrb[100].mxu0 %v23994_v7  ;;  %14160 = vmatpush1.bf16.msra.mxu1 %v20143_v15  ;;  %v20170_v15 = vld [vmem:[%s27379_s9 + $0x1aa8] ss:$168 sps:$4 sm:$0xff]  }
 0x6a2   :  { %14242 = vmatpush1.bf16.msra.mxu0 %v20146_v31  ;;  %14161 = vmatprep.subr.bf16.mxu1 %v20151_v46  ;;  %v20175_v31 = vld [vmem:[%s27379_s9 + $0x1bf4] ss:$168 sps:$4 sm:$0xff]  }
 0x6a3   :  { %14243 = vmatprep.subr.bf16.mxu0 %v20154_v47  ;;  %14191 = vmatprep.mubr.bf16.mxu1 %v27396_v1  ;;  %v20178_v46 = vld [vmem:[%s27379_s9 + $0x1bfc] ss:$168 sps:$4 sm:$0xff]   ;;  %v20173_v47 = vld [vmem:[%s27379_s9 + $0x1bf0] ss:$168 sps:$4 sm:$0xff]  }
 0x6a4   :  { %14273 = vmatprep.mubr.bf16.mxu0 %v27396_v1 }
 0x6a5   :  { %14162 = vmatpush1.bf16.msra.mxu1 %v20149_v32  ;;  %v20176_v32 = vld [vmem:[%s27379_s9 + $0x1bf8] ss:$168 sps:$4 sm:$0xff]  }
 0x6a6   :  { %14244 = vmatpush1.bf16.msra.mxu0 %v20152_v30  ;;  %14163 = vmatprep.subr.bf16.mxu1 %v20157_v36  ;;  %v20181_v30 = vld [vmem:[%s27379_s9 + $0x1d44] ss:$168 sps:$4 sm:$0xff]  }
 0x6a7   :  { %14245 = vmatprep.subr.bf16.mxu0 %v20160_v58  ;;  %v20184_v36 = vld [vmem:[%s27379_s9 + $0x1d4c] ss:$168 sps:$4 sm:$0xff]   ;;  %v20179_v58 = vld [vmem:[%s27379_s9 + $0x1d40] ss:$168 sps:$4 sm:$0xff]  }
 0x6a9   :  { %14164 = vmatpush1.bf16.msra.mxu1 %v20155_v5  ;;  %v20182_v5 = vld [vmem:[%s27379_s9 + $0x1d48] ss:$168 sps:$4 sm:$0xff]  }
 0x6aa   :  { %14246 = vmatpush1.bf16.msra.mxu0 %v20158_v43  ;;  %14165 = vmatprep.subr.bf16.mxu1 %v20163_v54  ;;  %v20187_v43 = vld [vmem:[%s27379_s9 + $0x1e94] ss:$168 sps:$4 sm:$0xff]  }
 0x6ab   :  { %14247 = vmatprep.subr.bf16.mxu0 %v20166_v57  ;;  %v20190_v54 = vld [vmem:[%s27379_s9 + $0x1e9c] ss:$168 sps:$4 sm:$0xff]   ;;  %v20185_v57 = vld [vmem:[%s27379_s9 + $0x1e90] ss:$168 sps:$4 sm:$0xff]  }
 0x6ad   :  { %14166 = vmatpush1.bf16.msra.mxu1 %v20161_v10  ;;  %v20188_v10 = vld [vmem:[%s27379_s9 + $0x1e98] ss:$168 sps:$4 sm:$0xff]  }
 0x6ae   :  { %14248 = vmatpush1.bf16.msra.mxu0 %v20164_v37  ;;  %14167 = vmatprep.subr.bf16.mxu1 %v20169_v62  ;;  %v20193_v37 = vld [vmem:[%s27379_s9 + $0x74] ss:$168 sps:$4 sm:$0xff]  }
 0x6af   :  { %14249 = vmatprep.subr.bf16.mxu0 %v20172_v56  ;;  %v20196_v62 = vld [vmem:[%s27379_s9 + $0x7c] ss:$168 sps:$4 sm:$0xff]   ;;  %v20191_v56 = vld [vmem:[%s27379_s9 + $0x70] ss:$168 sps:$4 sm:$0xff]  }
 0x6b1   :  { %14168 = vmatpush1.bf16.msra.mxu1 %v20167_v8  ;;  %v20194_v8 = vld [vmem:[%s27379_s9 + $0x78] ss:$168 sps:$4 sm:$0xff]  }
 0x6b2   :  { %14250 = vmatpush1.bf16.msra.mxu0 %v20170_v15  ;;  %14169 = vmatprep.subr.bf16.mxu1 %v20175_v31  ;;  %v20199_v15 = vld [vmem:[%s27379_s9 + $0x1c4] ss:$168 sps:$4 sm:$0xff]  }
 0x6b3   :  { %14251 = vmatprep.subr.bf16.mxu0 %v20178_v46  ;;  %v20202_v31 = vld [vmem:[%s27379_s9 + $0x1cc] ss:$168 sps:$4 sm:$0xff]   ;;  %v20197_v46 = vld [vmem:[%s27379_s9 + $0x1c0] ss:$168 sps:$4 sm:$0xff]  }
 0x6b5   :  { %14170 = vmatpush1.bf16.msra.mxu1 %v20173_v47  ;;  %v20200_v47 = vld [vmem:[%s27379_s9 + $0x1c8] ss:$168 sps:$4 sm:$0xff]  }
 0x6b6   :  { %14252 = vmatpush1.bf16.msra.mxu0 %v20176_v32  ;;  %14171 = vmatprep.subr.bf16.mxu1 %v20181_v30  ;;  %v20205_v32 = vld [vmem:[%s27379_s9 + $0x314] ss:$168 sps:$4 sm:$0xff]  }
 0x6b7   :  { %14253 = vmatprep.subr.bf16.mxu0 %v20184_v36  ;;  %v20208_v30 = vld [vmem:[%s27379_s9 + $0x31c] ss:$168 sps:$4 sm:$0xff]   ;;  %v20203_v36 = vld [vmem:[%s27379_s9 + $0x310] ss:$168 sps:$4 sm:$0xff]  }
 0x6b9   :  { %14172 = vmatpush1.bf16.msra.mxu1 %v20179_v58  ;;  %v20206_v58 = vld [vmem:[%s27379_s9 + $0x318] ss:$168 sps:$4 sm:$0xff]  }
 0x6ba   :  { %14254 = vmatpush1.bf16.msra.mxu0 %v20182_v5  ;;  %14173 = vmatprep.subr.bf16.mxu1 %v20187_v43  ;;  %v20211_v5 = vld [vmem:[%s27379_s9 + $0x464] ss:$168 sps:$4 sm:$0xff]  }
 0x6bb   :  { %14255 = vmatprep.subr.bf16.mxu0 %v20190_v54  ;;  %v20214_v43 = vld [vmem:[%s27379_s9 + $0x46c] ss:$168 sps:$4 sm:$0xff]   ;;  %v20209_v54 = vld [vmem:[%s27379_s9 + $0x460] ss:$168 sps:$4 sm:$0xff]  }
 0x6bd   :  { %14174 = vmatpush1.bf16.msra.mxu1 %v20185_v57  ;;  %v20212_v57 = vld [vmem:[%s27379_s9 + $0x468] ss:$168 sps:$4 sm:$0xff]  }
 0x6be   :  { %14256 = vmatpush1.bf16.msra.mxu0 %v20188_v10  ;;  %14282 = vmatprep.subr.bf16.mxu1 %v20193_v37  ;;  %v20217_v10 = vld [vmem:[%s27379_s9 + $0x5b4] ss:$168 sps:$4 sm:$0xff]  }
 0x6bf   :  { %14364 = vmatprep.subr.bf16.mxu0 %v20196_v62  ;;  %v20220_v37 = vld [vmem:[%s27379_s9 + $0x5bc] ss:$168 sps:$4 sm:$0xff]   ;;  %v20215_v62 = vld [vmem:[%s27379_s9 + $0x5b0] ss:$168 sps:$4 sm:$0xff]  }
 0x6c0   :  { %14192 = vmatmul.mubr.bf16.vlgmr.msra.gmra.mrb[88].mxu1 %v24108_v29 }
 0x6c1   :  { %14274 = vmatmul.mubr.bf16.vlgmr.msra.gmra.mrb[100].mxu0 %v24108_v29  ;;  %14283 = vmatpush1.bf16.msra.mxu1 %v20191_v56  ;;  %v20218_v56 = vld [vmem:[%s27379_s9 + $0x5b8] ss:$168 sps:$4 sm:$0xff]  }
 0x6c2   :  { %14314 = vmatprep.mubr.bf16.mxu1 %v23992_v52  ;;  %14365 = vmatpush1.bf16.msra.mxu0 %v20194_v8  ;;  %v20223_v8 = vld [vmem:[%s27379_s9 + $0x704] ss:$168 sps:$4 sm:$0xff]  }
 0x6c3   :  { %14396 = vmatprep.mubr.bf16.mxu0 %v23992_v52  ;;  %14284 = vmatprep.subr.bf16.mxu1 %v20199_v15  ;;  %v20226_v15 = vld [vmem:[%s27379_s9 + $0x70c] ss:$168 sps:$4 sm:$0xff]  }
 0x6c4   :  { %14366 = vmatprep.subr.bf16.mxu0 %v20202_v31  ;;  %v20221_v31 = vld [vmem:[%s27379_s9 + $0x700] ss:$168 sps:$4 sm:$0xff]  }
 0x6c5   :  { %14285 = vmatpush1.bf16.msra.mxu1 %v20197_v46  ;;  %v20224_v46 = vld [vmem:[%s27379_s9 + $0x708] ss:$168 sps:$4 sm:$0xff]  }
 0x6c6   :  { %14367 = vmatpush1.bf16.msra.mxu0 %v20200_v47  ;;  %14286 = vmatprep.subr.bf16.mxu1 %v20205_v32  ;;  %v20229_v47 = vld [vmem:[%s27379_s9 + $0x854] ss:$168 sps:$4 sm:$0xff]  }
 0x6c7   :  { %14368 = vmatprep.subr.bf16.mxu0 %v20208_v30  ;;  %v20227_v30 = vld [vmem:[%s27379_s9 + $0x850] ss:$168 sps:$4 sm:$0xff]  }
 0x6c9   :  { %14287 = vmatpush1.bf16.msra.mxu1 %v20203_v36  ;;  %v20232_v36 = vld [vmem:[%s27379_s9 + $0x85c] ss:$168 sps:$4 sm:$0xff]  }
 0x6ca   :  { %14369 = vmatpush1.bf16.msra.mxu0 %v20206_v58  ;;  %14288 = vmatprep.subr.bf16.mxu1 %v20211_v5 }
 0x6cb   :  { %14370 = vmatprep.subr.bf16.mxu0 %v20214_v43 }
 0x6cd   :  { %14289 = vmatpush1.bf16.msra.mxu1 %v20209_v54  ;;  %v20230_v54 = vld [vmem:[%s27379_s9 + $0x858] ss:$168 sps:$4 sm:$0xff]  }
 0x6ce   :  { %14371 = vmatpush1.bf16.msra.mxu0 %v20212_v57  ;;  %14290 = vmatprep.subr.bf16.mxu1 %v20217_v10 }
 0x6cf   :  { %14372 = vmatprep.subr.bf16.mxu0 %v20220_v37 }
 0x6d1   :  { %14291 = vmatpush1.bf16.msra.mxu1 %v20215_v62 }
 0x6d2   :  { %14373 = vmatpush1.bf16.msra.mxu0 %v20218_v56  ;;  %14292 = vmatprep.subr.bf16.mxu1 %v20223_v8 }
 0x6d3   :  { %v13865_v32 = vpop.f32.mrb[80].mxu1  ;;  %14374 = vmatprep.subr.bf16.mxu0 %v20226_v15 }
 0x6d4   :  { %v17693_v58 = vmul.f32 -1.442695, %v13865_v32  ;;  %v13947_v5 = vpop.f32.mrb[92].mxu0  ;;  %v13867_v43 = vpop.f32.mrb[81].mxu1  ;;  %v20235_v32 = vld [vmem:[%s27379_s9 + $0x9a4] ss:$168 sps:$4 sm:$0xff]  }
 0x6d5   :  { %v17695_v57 = vmul.f32 -1.442695, %v13947_v5  ;;  %v17694_v10 = vmul.f32 -1.442695, %v13867_v43  ;;  %v13949_v37 = vpop.f32.mrb[93].mxu0  ;;  %v13869_v62 = vpop.f32.mrb[82].mxu1  ;;  %14293 = vmatpush1.bf16.msra.mxu1 %v20221_v31 }
 0x6d6   :  { %20819 = vpow2.f32 %v17693_v58  ;;  %v17696_v56 = vmul.f32 -1.442695, %v13949_v37  ;;  %v13951_v8 = vpop.f32.mrb[94].mxu0  ;;  %14375 = vmatpush1.bf16.msra.mxu0 %v20224_v46  ;;  %v13870_v15 = vpop.f32.mrb[83].mxu1  ;;  %14294 = vmatprep.subr.bf16.mxu1 %v20229_v47  ;;  %v20238_v5 = vld [vmem:[%s27379_s9 + $0x9ac] ss:$168 sps:$4 sm:$0xff]  }
 0x6d7   :  { %20821 = vpow2.f32 %v17695_v57  ;;  %v13952_v1 = vpop.f32.mrb[95].mxu0  ;;  %14376 = vmatprep.subr.bf16.mxu0 %v20232_v36  ;;  %v20233_v31 = vld [vmem:[%s27379_s9 + $0x9a0] ss:$168 sps:$4 sm:$0xff]   ;;  %v20244_v47 = vld [vmem:[%s27379_s9 + $0xafc] ss:$168 sps:$4 sm:$0xff]  }
 0x6d8   :  { %20823 = vpow2.f32 %v17694_v10  ;;  %v20236_v46 = vld [vmem:[%s27379_s9 + $0x9a8] ss:$168 sps:$4 sm:$0xff]   ;;  %v20241_v1 = vld [vmem:[%s27379_s9 + $0xaf4] ss:$168 sps:$4 sm:$0xff]   ;;  %v20242_v36 = vld [vmem:[%s27379_s9 + $0xaf8] ss:$168 sps:$4 sm:$0xff]  }
 0x6d9   :  { %20825 = vpow2.f32 %v17696_v56  ;;  %14295 = vmatpush1.bf16.msra.mxu1 %v20227_v30  ;;  %v20239_v30 = vld [vmem:[%s27379_s9 + $0xaf0] ss:$168 sps:$4 sm:$0xff]   ;;  %v20247_v58 = vld [vmem:[%s27379_s9 + $0xc44] ss:$168 sps:$4 sm:$0xff]   ;;  %v20245_v37 = vld [vmem:[%s27379_s9 + $0xc40] ss:$168 sps:$4 sm:$0xff]  }
 0x6da   :  { %14377 = vmatpush1.bf16.msra.mxu0 %v20230_v54  ;;  %14296 = vmatprep.subr.bf16.mxu1 %v20235_v32  ;;  %v20250_v43 = vld [vmem:[%s27379_s9 + $0xc4c] ss:$168 sps:$4 sm:$0xff]   ;;  %v20248_v8 = vld [vmem:[%s27379_s9 + $0xc48] ss:$168 sps:$4 sm:$0xff]  }
 0x6db   :  { %14378 = vmatprep.subr.bf16.mxu0 %v20238_v5  ;;  %v20253_v15 = vld [vmem:[%s27379_s9 + $0xd94] ss:$168 sps:$4 sm:$0xff]  }
 0x6dd   :  { %14297 = vmatpush1.bf16.msra.mxu1 %v20233_v31  ;;  %v20256_v31 = vld [vmem:[%s27379_s9 + $0xd9c] ss:$168 sps:$4 sm:$0xff]  }
 0x6de   :  { %14379 = vmatpush1.bf16.msra.mxu0 %v20236_v46  ;;  %14298 = vmatprep.subr.bf16.mxu1 %v20241_v1  ;;  %v20251_v1 = vld [vmem:[%s27379_s9 + $0xd90] ss:$168 sps:$4 sm:$0xff]  }
 0x6df   :  { %14380 = vmatprep.subr.bf16.mxu0 %v20244_v47  ;;  %v20254_v47 = vld [vmem:[%s27379_s9 + $0xd98] ss:$168 sps:$4 sm:$0xff]  }
 0x6e0   :  { %v20820_v54 = vpop.eup %20819 }
 0x6e1   :  { %v20822_v57 = vpop.eup %20821  ;;  %v14998_v10 = vadd.f32 1.0, %v20820_v54  ;;  %14299 = vmatpush1.bf16.msra.mxu1 %v20239_v30  ;;  %v20259_v30 = vld [vmem:[%s27379_s9 + $0xee4] ss:$168 sps:$4 sm:$0xff]   ;;  %v20265_v54 = vld [vmem:[%s27379_s9 + $0x1034] ss:$168 sps:$4 sm:$0xff]  }
 0x6e2   :  { %v20824_v62 = vpop.eup %20823  ;;  %v15000_v56 = vadd.f32 1.0, %v20822_v57  ;;  %14381 = vmatpush1.bf16.msra.mxu0 %v20242_v36  ;;  %14300 = vmatprep.subr.bf16.mxu1 %v20247_v58  ;;  %v20262_v36 = vld [vmem:[%s27379_s9 + $0xeec] ss:$168 sps:$4 sm:$0xff]   ;;  %v20257_v58 = vld [vmem:[%s27379_s9 + $0xee0] ss:$168 sps:$4 sm:$0xff]  }
 0x6e3   :  { %v20826_v32 = vpop.eup %20825  ;;  %20827 = vrcp.f32 %v14998_v10  ;;  %v14999_v5 = vadd.f32 1.0, %v20824_v62  ;;  %14382 = vmatprep.subr.bf16.mxu0 %v20250_v43  ;;  %v20260_v43 = vld [vmem:[%s27379_s9 + $0xee8] ss:$168 sps:$4 sm:$0xff]   ;;  %v20268_v57 = vld [vmem:[%s27379_s9 + $0x103c] ss:$168 sps:$4 sm:$0xff]  }
 0x6e4   :  { %20829 = vrcp.f32 %v15000_v56  ;;  %v15001_v46 = vadd.f32 1.0, %v20826_v32  ;;  %v20271_v32 = vld [vmem:[%s27379_s9 + $0x1184] ss:$168 sps:$4 sm:$0xff]  }
 0x6e5   :  { %20831 = vrcp.f32 %v14999_v5  ;;  %14301 = vmatpush1.bf16.msra.mxu1 %v20245_v37  ;;  %v20263_v37 = vld [vmem:[%s27379_s9 + $0x1030] ss:$168 sps:$4 sm:$0xff]  }
 0x6e6   :  { %20833 = vrcp.f32 %v15001_v46  ;;  %14383 = vmatpush1.bf16.msra.mxu0 %v20248_v8  ;;  %14302 = vmatprep.subr.bf16.mxu1 %v20253_v15  ;;  %v15576_v8 = vrot.slane %v25816_v18, %v21605_v14  ;;  %v20266_v15 = vld [vmem:[%s27379_s9 + $0x1038] ss:$168 sps:$4 sm:$0xff]  }
 0x6e7   :  { %14384 = vmatprep.subr.bf16.mxu0 %v20256_v31  ;;  %v15488_v31 = vrot.slane %v25824_v19, %v21605_v14 }
 0x6e9   :  { %14303 = vmatpush1.bf16.msra.mxu1 %v20251_v1  ;;  %v15584_v1 = vrot.slane %v25816_v18, %v21681_v0 }
 0x6ea   :  { %14385 = vmatpush1.bf16.msra.mxu0 %v20254_v47  ;;  %14304 = vmatprep.subr.bf16.mxu1 %v20259_v30  ;;  %v20274_v47 = vld [vmem:[%s27379_s9 + $0x118c] ss:$168 sps:$4 sm:$0xff]  }
 0x6eb   :  { %14386 = vmatprep.subr.bf16.mxu0 %v20262_v36 }
 0x6ed   :  { %v20828_v10 = vpop.eup %20827  ;;  %14305 = vmatpush1.bf16.msra.mxu1 %v20257_v58 }
 0x6ee   :  { %v20830_v62 = vpop.eup %20829  ;;  %v15172_v56 = vrot.slane %v20828_v10, 6  ;;  %14387 = vmatpush1.bf16.msra.mxu0 %v20260_v43  ;;  %14306 = vmatprep.subr.bf16.mxu1 %v20265_v54  ;;  %v15492_v43 = vrot.slane %v25824_v19, %v21610_v16  ;;  %v15580_v54 = vrot.slane %v25816_v18, %v21610_v16  ;;  %v15549_v18 = vmul.f32 %v15488_v31, %v24872_v21 }
 0x6ef   :  { %v20832_v5 = vpop.eup %20831  ;;  %v15174_v46 = vrot.slane %v20830_v62, 6  ;;  %14388 = vmatprep.subr.bf16.mxu0 %v20268_v57  ;;  %v15496_v57 = vrot.slane %v25824_v19, %v21681_v0 }
 0x6f0   :  { %v20834_v30 = vpop.eup %20833  ;;  %v15200_v36 = vmul.f32 %v15172_v56, %v21696_v17  ;;  %v15173_v58 = vrot.slane %v20832_v5, 6  ;;  %v20269_v56 = vld [vmem:[%s27379_s9 + $0x1180] ss:$168 sps:$4 sm:$0xff]   ;;  %v15550_v48 = vmul.f32 %v15492_v43, %v24884_v51  ;;  %v20283_v43 = vld [vmem:[%s27379_s9 + $0x1424] ss:$168 sps:$4 sm:$0xff]  }
 0x6f1   :  { %v26178_v10 = vmul.f32 %v15174_v46, %v21840_v49  ;;  %v15175_v62 = vrot.slane %v20834_v30, 6  ;;  %14307 = vmatpush1.bf16.msra.mxu1 %v20263_v37  ;;  %v20272_v46 = vld [vmem:[%s27379_s9 + $0x1188] ss:$168 sps:$4 sm:$0xff]   ;;  %v20277_v30 = vld [vmem:[%s27379_s9 + $0x12d4] ss:$168 sps:$4 sm:$0xff]   ;;  %v15551_v21 = vmul.f32 %v15496_v57, %v25183_v26 }
 0x6f2   :  { %v15637_v5 = vmul.f32 %v15576_v8, %v15200_v36  ;;  %v15201_v55 = vmul.f32 %v15173_v58, %v21700_v20  ;;  %14389 = vmatpush1.bf16.msra.mxu0 %v20266_v15  ;;  %14308 = vmatprep.subr.bf16.mxu1 %v20271_v32  ;;  %v15500_v8 = vrot.slane %v25824_v19, %v21687_v4  ;;  %v20280_v15 = vld [vmem:[%s27379_s9 + $0x12dc] ss:$168 sps:$4 sm:$0xff]   ;;  %v20275_v19 = vld [vmem:[%s27379_s9 + $0x12d0] ss:$168 sps:$4 sm:$0xff]  }
 0x6f3   :  { %v15639_v37 = vmul.f32 %v15584_v1, %v26178_v10  ;;  %v26197_v49 = vmul.f32 %v15175_v62, %v21843_v50  ;;  %14390 = vmatprep.subr.bf16.mxu0 %v20274_v47  ;;  %v27422_v47 = vcombine.low %v25844_v44, %v25863_v13 }
 0x6f4   :  { %v15665_v32 = vrot.slane %v15637_v5, 2  ;;  %v15323_v58 = vcombine.low %v15200_v36, %v15201_v55  ;;  %v15638_v35 = vmul.f32 %v15580_v54, %v15201_v55  ;;  %v15552_v44 = vmul.f32 %v15500_v8, %v25198_v53  ;;  %v20284_v53 = vld [vmem:[%s27379_s9 + $0x1428] ss:$168 sps:$4 sm:$0xff]   ;;  %v20295_v8 = vld [vmem:[%s27379_s9 + $0x16c4] ss:$168 sps:$4 sm:$0xff]  }
 0x6f5   :  { %v15667_v31 = vrot.slane %v15639_v37, 2  ;;  %v15640_v62 = vmul.f32 %v15588_v24, %v26197_v49  ;;  %14309 = vmatpush1.bf16.msra.mxu1 %v20269_v56  ;;  %v15330_v36 = vrot.slane %v27422_v47, %v24878_v63  ;;  %v20278_v24 = vld [vmem:[%s27379_s9 + $0x12d8] ss:$168 sps:$4 sm:$0xff]  }
 0x6f6   :  { %v26216_v51 = vadd.f32 %v15665_v32, %v15549_v18  ;;  %v15337_v55 = vrot.slane %v15323_v58, %v24878_v63  ;;  %v15666_v26 = vrot.slane %v15638_v35, 2  ;;  %14391 = vmatpush1.bf16.msra.mxu0 %v20272_v46  ;;  %14310 = vmatprep.subr.bf16.mxu1 %v20277_v30  ;;  %v20286_v35 = vld [vmem:[%s27379_s9 + $0x142c] ss:$168 sps:$4 sm:$0xff]   ;;  %v20281_v46 = vld [vmem:[%s27379_s9 + $0x1420] ss:$168 sps:$4 sm:$0xff]  }
 0x6f7   :  { %v26225_v54 = vadd.f32 %v15667_v31, %v15551_v21  ;;  %v15668_v13 = vrot.slane %v15640_v62, 2  ;;  %14392 = vmatprep.subr.bf16.mxu0 %v20280_v15  ;;  %v20292_v30 = vld [vmem:[%s27379_s9 + $0x157c] ss:$168 sps:$4 sm:$0xff]   ;;  %v20287_v18 = vld [vmem:[%s27379_s9 + $0x1570] ss:$168 sps:$4 sm:$0xff]   ;;  %v27424_v62 = vmov 0  }
 0x6f8   :  { %v15338_v57 = vcombine.high %v15330_v36, %v15337_v55  ;;  %v26231_v56 = vadd.f32 %v15666_v26, %v15550_v48  ;;  %v20289_v48 = vld [vmem:[%s27379_s9 + $0x1574] ss:$168 sps:$4 sm:$0xff]   ;;  %v20290_v37 = vld [vmem:[%s27379_s9 + $0x1578] ss:$168 sps:$4 sm:$0xff]   ;;  %v20296_v58 = vld [vmem:[%s27379_s9 + $0x16c8] ss:$168 sps:$4 sm:$0xff]  }
 0x6f9   :  { %v26233_v5 = vadd.f32 %v15668_v13, %v15552_v44  ;;  %14311 = vmatpush1.bf16.msra.mxu1 %v20275_v19  ;;  %v20298_v15 = vld [vmem:[%s27379_s9 + $0x16cc] ss:$168 sps:$4 sm:$0xff]   ;;  %v20293_v32 = vld [vmem:[%s27379_s9 + $0x16c0] ss:$168 sps:$4 sm:$0xff]   ;;  %v20304_v31 = vld [vmem:[%s27379_s9 + $0x181c] ss:$168 sps:$4 sm:$0xff]  }
 0x6fa   :  { %15386 = vst [vmem:[%s27384_s17 + $0x1c] sm:$0xff] %v15338_v57  ;;  %14393 = vmatpush1.bf16.msra.mxu0 %v20278_v24  ;;  %14312 = vmatprep.subr.bf16.mxu1 %v20283_v43  ;;  %v20301_v21 = vld [vmem:[%s27379_s9 + $0x1814] ss:$168 sps:$4 sm:$0xff]   ;;  %v20299_v19 = vld [vmem:[%s27379_s9 + $0x1810] ss:$168 sps:$4 sm:$0xff]  }
 0x6fb   :  { %27423 = vst [vmem:[#allocation12_spill] sm:$0xff] %v26233_v5  ;;  %14394 = vmatprep.subr.bf16.mxu0 %v20286_v35  ;;  %v20302_v47 = vld [vmem:[%s27379_s9 + $0x1818] ss:$168 sps:$4 sm:$0xff]   ;;  %v20307_v36 = vld [vmem:[%s27379_s9 + $0x1964] ss:$168 sps:$4 sm:$0xff]  }
 0x6fc   :  { %v20310_v55 = vld [vmem:[%s27379_s9 + $0x196c] ss:$168 sps:$4 sm:$0xff]   ;;  %v20305_v26 = vld [vmem:[%s27379_s9 + $0x1960] ss:$168 sps:$4 sm:$0xff]   ;;  %v20316_v44 = vld [vmem:[%s27379_s9 + $0x1abc] ss:$168 sps:$4 sm:$0xff]  }
 0x6fd   :  { %14313 = vmatpush1.bf16.msra.mxu1 %v20281_v46  ;;  %v20308_v24 = vld [vmem:[%s27379_s9 + $0x1968] ss:$168 sps:$4 sm:$0xff]   ;;  %v20313_v43 = vld [vmem:[%s27379_s9 + $0x1ab4] ss:$168 sps:$4 sm:$0xff]   ;;  %v20314_v35 = vld [vmem:[%s27379_s9 + $0x1ab8] ss:$168 sps:$4 sm:$0xff]  }
 0x6fe   :  { %14395 = vmatpush1.bf16.msra.mxu0 %v20284_v53  ;;  %14323 = vmatprep.subr.bf16.mxu1 %v20289_v48  ;;  %v20311_v13 = vld [vmem:[%s27379_s9 + $0x1ab0] ss:$168 sps:$4 sm:$0xff]   ;;  %v20319_v57 = vld [vmem:[%s27379_s9 + $0x1c04] ss:$168 sps:$4 sm:$0xff]   ;;  %v20317_v53 = vld [vmem:[%s27379_s9 + $0x1c00] ss:$168 sps:$4 sm:$0xff]  }
 0x6ff   :  { %14405 = vmatprep.subr.bf16.mxu0 %v20292_v30  ;;  %v20322_v46 = vld [vmem:[%s27379_s9 + $0x1c0c] ss:$168 sps:$4 sm:$0xff]   ;;  %v20320_v48 = vld [vmem:[%s27379_s9 + $0x1c08] ss:$168 sps:$4 sm:$0xff]  }
 0x700   :  { %14315 = vmatmul.mubr.bf16.vlgmr.msra.gmra.mrb[92].mxu1 %v23994_v7  ;;  %v20325_v30 = vld [vmem:[%s27379_s9 + $0x1d54] ss:$168 sps:$4 sm:$0xff]  }
 0x701   :  { %14397 = vmatmul.mubr.bf16.vlgmr.msra.gmra.mrb[104].mxu0 %v23994_v7  ;;  %14324 = vmatpush1.bf16.msra.mxu1 %v20287_v18  ;;  %v20328_v18 = vld [vmem:[%s27379_s9 + $0x1d5c] ss:$168 sps:$4 sm:$0xff]  }
 0x702   :  { %14406 = vmatpush1.bf16.msra.mxu0 %v20290_v37  ;;  %14325 = vmatprep.subr.bf16.mxu1 %v20295_v8  ;;  %v20323_v37 = vld [vmem:[%s27379_s9 + $0x1d50] ss:$168 sps:$4 sm:$0xff]  }
 0x703   :  { %14407 = vmatprep.subr.bf16.mxu0 %v20298_v15  ;;  %14355 = vmatprep.mubr.bf16.mxu1 %v27424_v62  ;;  %v20326_v8 = vld [vmem:[%s27379_s9 + $0x1d58] ss:$168 sps:$4 sm:$0xff]   ;;  %v20331_v15 = vld [vmem:[%s27379_s9 + $0x1ea4] ss:$168 sps:$4 sm:$0xff]  }
 0x704   :  { %14437 = vmatprep.mubr.bf16.mxu0 %v27424_v62 }
 0x705   :  { %14326 = vmatpush1.bf16.msra.mxu1 %v20293_v32  ;;  %v20334_v32 = vld [vmem:[%s27379_s9 + $0x1eac] ss:$168 sps:$4 sm:$0xff]  }
 0x706   :  { %14408 = vmatpush1.bf16.msra.mxu0 %v20296_v58  ;;  %14327 = vmatprep.subr.bf16.mxu1 %v20301_v21  ;;  %v20329_v58 = vld [vmem:[%s27379_s9 + $0x1ea0] ss:$168 sps:$4 sm:$0xff]  }
 0x707   :  { %14409 = vmatprep.subr.bf16.mxu0 %v20304_v31  ;;  %v20332_v21 = vld [vmem:[%s27379_s9 + $0x1ea8] ss:$168 sps:$4 sm:$0xff]   ;;  %v20337_v31 = vld [vmem:[%s27379_s9 + $0x84] ss:$168 sps:$4 sm:$0xff]  }
 0x709   :  { %14328 = vmatpush1.bf16.msra.mxu1 %v20299_v19  ;;  %v20340_v19 = vld [vmem:[%s27379_s9 + $0x8c] ss:$168 sps:$4 sm:$0xff]  }
 0x70a   :  { %14410 = vmatpush1.bf16.msra.mxu0 %v20302_v47  ;;  %14329 = vmatprep.subr.bf16.mxu1 %v20307_v36  ;;  %v20335_v47 = vld [vmem:[%s27379_s9 + $0x80] ss:$168 sps:$4 sm:$0xff]  }
 0x70b   :  { %14411 = vmatprep.subr.bf16.mxu0 %v20310_v55  ;;  %v20338_v36 = vld [vmem:[%s27379_s9 + $0x88] ss:$168 sps:$4 sm:$0xff]   ;;  %v20343_v55 = vld [vmem:[%s27379_s9 + $0x1d4] ss:$168 sps:$4 sm:$0xff]  }
 0x70d   :  { %14330 = vmatpush1.bf16.msra.mxu1 %v20305_v26  ;;  %v20346_v26 = vld [vmem:[%s27379_s9 + $0x1dc] ss:$168 sps:$4 sm:$0xff]  }
 0x70e   :  { %14412 = vmatpush1.bf16.msra.mxu0 %v20308_v24  ;;  %14331 = vmatprep.subr.bf16.mxu1 %v20313_v43  ;;  %v20341_v24 = vld [vmem:[%s27379_s9 + $0x1d0] ss:$168 sps:$4 sm:$0xff]  }
 0x70f   :  { %14413 = vmatprep.subr.bf16.mxu0 %v20316_v44  ;;  %v20344_v43 = vld [vmem:[%s27379_s9 + $0x1d8] ss:$168 sps:$4 sm:$0xff]   ;;  %v20349_v44 = vld [vmem:[%s27379_s9 + $0x324] ss:$168 sps:$4 sm:$0xff]  }
 0x711   :  { %14332 = vmatpush1.bf16.msra.mxu1 %v20311_v13  ;;  %v20352_v13 = vld [vmem:[%s27379_s9 + $0x32c] ss:$168 sps:$4 sm:$0xff]  }
 0x712   :  { %14414 = vmatpush1.bf16.msra.mxu0 %v20314_v35  ;;  %14333 = vmatprep.subr.bf16.mxu1 %v20319_v57  ;;  %v20347_v35 = vld [vmem:[%s27379_s9 + $0x320] ss:$168 sps:$4 sm:$0xff]  }
 0x713   :  { %14415 = vmatprep.subr.bf16.mxu0 %v20322_v46  ;;  %v20350_v57 = vld [vmem:[%s27379_s9 + $0x328] ss:$168 sps:$4 sm:$0xff]   ;;  %v20355_v46 = vld [vmem:[%s27379_s9 + $0x474] ss:$168 sps:$4 sm:$0xff]  }
 0x715   :  { %14334 = vmatpush1.bf16.msra.mxu1 %v20317_v53  ;;  %v20358_v53 = vld [vmem:[%s27379_s9 + $0x47c] ss:$168 sps:$4 sm:$0xff]  }
 0x716   :  { %14416 = vmatpush1.bf16.msra.mxu0 %v20320_v48  ;;  %14335 = vmatprep.subr.bf16.mxu1 %v20325_v30  ;;  %v20353_v48 = vld [vmem:[%s27379_s9 + $0x470] ss:$168 sps:$4 sm:$0xff]  }
 0x717   :  { %14417 = vmatprep.subr.bf16.mxu0 %v20328_v18  ;;  %v20356_v30 = vld [vmem:[%s27379_s9 + $0x478] ss:$168 sps:$4 sm:$0xff]   ;;  %v20361_v18 = vld [vmem:[%s27379_s9 + $0x5c4] ss:$168 sps:$4 sm:$0xff]  }
 0x719   :  { %14336 = vmatpush1.bf16.msra.mxu1 %v20323_v37  ;;  %v20364_v37 = vld [vmem:[%s27379_s9 + $0x5cc] ss:$168 sps:$4 sm:$0xff]  }
 0x71a   :  { %14418 = vmatpush1.bf16.msra.mxu0 %v20326_v8  ;;  %14337 = vmatprep.subr.bf16.mxu1 %v20331_v15  ;;  %v20359_v8 = vld [vmem:[%s27379_s9 + $0x5c0] ss:$168 sps:$4 sm:$0xff]  }
 0x71b   :  { %14419 = vmatprep.subr.bf16.mxu0 %v20334_v32  ;;  %v20362_v15 = vld [vmem:[%s27379_s9 + $0x5c8] ss:$168 sps:$4 sm:$0xff]   ;;  %v20367_v32 = vld [vmem:[%s27379_s9 + $0x714] ss:$168 sps:$4 sm:$0xff]  }
 0x71d   :  { %14338 = vmatpush1.bf16.msra.mxu1 %v20329_v58  ;;  %v20370_v58 = vld [vmem:[%s27379_s9 + $0x71c] ss:$168 sps:$4 sm:$0xff]  }
 0x71e   :  { %14420 = vmatpush1.bf16.msra.mxu0 %v20332_v21  ;;  %14446 = vmatprep.subr.bf16.mxu1 %v20337_v31  ;;  %v20365_v21 = vld [vmem:[%s27379_s9 + $0x710] ss:$168 sps:$4 sm:$0xff]  }
 0x71f   :  { %14528 = vmatprep.subr.bf16.mxu0 %v20340_v19  ;;  %v20368_v31 = vld [vmem:[%s27379_s9 + $0x718] ss:$168 sps:$4 sm:$0xff]   ;;  %v20373_v19 = vld [vmem:[%s27379_s9 + $0x864] ss:$168 sps:$4 sm:$0xff]  }
 0x720   :  { %14356 = vmatmul.mubr.bf16.vlgmr.msra.gmra.mrb[92].mxu1 %v24108_v29 }
 0x721   :  { %14438 = vmatmul.mubr.bf16.vlgmr.msra.gmra.mrb[104].mxu0 %v24108_v29  ;;  %14447 = vmatpush1.bf16.msra.mxu1 %v20335_v47 }
 0x722   :  { %14478 = vmatprep.mubr.bf16.mxu1 %v23992_v52  ;;  %14529 = vmatpush1.bf16.msra.mxu0 %v20338_v36  ;;  %v20371_v36 = vld [vmem:[%s27379_s9 + $0x860] ss:$168 sps:$4 sm:$0xff]  }
 0x723   :  { %14560 = vmatprep.mubr.bf16.mxu0 %v23992_v52  ;;  %14448 = vmatprep.subr.bf16.mxu1 %v20343_v55  ;;  %v20376_v55 = vld [vmem:[%s27379_s9 + $0x86c] ss:$168 sps:$4 sm:$0xff]  }
 0x724   :  { %14530 = vmatprep.subr.bf16.mxu0 %v20346_v26 }
 0x725   :  { %14449 = vmatpush1.bf16.msra.mxu1 %v20341_v24 }
 0x726   :  { %14531 = vmatpush1.bf16.msra.mxu0 %v20344_v43  ;;  %14450 = vmatprep.subr.bf16.mxu1 %v20349_v44  ;;  %v20374_v44 = vld [vmem:[%s27379_s9 + $0x868] ss:$168 sps:$4 sm:$0xff]  }
 0x727   :  { %14532 = vmatprep.subr.bf16.mxu0 %v20352_v13 }
 0x729   :  { %14451 = vmatpush1.bf16.msra.mxu1 %v20347_v35 }
 0x72a   :  { %14533 = vmatpush1.bf16.msra.mxu0 %v20350_v57  ;;  %14452 = vmatprep.subr.bf16.mxu1 %v20355_v46 }
 0x72b   :  { %14534 = vmatprep.subr.bf16.mxu0 %v20358_v53 }
 0x72d   :  { %14453 = vmatpush1.bf16.msra.mxu1 %v20353_v48 }
 0x72e   :  { %14535 = vmatpush1.bf16.msra.mxu0 %v20356_v30  ;;  %14454 = vmatprep.subr.bf16.mxu1 %v20361_v18  ;;  %v20379_v18 = vld [vmem:[%s27379_s9 + $0x9b4] ss:$168 sps:$4 sm:$0xff]  }
 0x72f   :  { %14536 = vmatprep.subr.bf16.mxu0 %v20364_v37 }
 0x731   :  { %14455 = vmatpush1.bf16.msra.mxu1 %v20359_v8  ;;  %v20382_v8 = vld [vmem:[%s27379_s9 + $0x9bc] ss:$168 sps:$4 sm:$0xff]  }
 0x732   :  { %14537 = vmatpush1.bf16.msra.mxu0 %v20362_v15  ;;  %14456 = vmatprep.subr.bf16.mxu1 %v20367_v32  ;;  %v20377_v15 = vld [vmem:[%s27379_s9 + $0x9b0] ss:$168 sps:$4 sm:$0xff]  }
 0x733   :  { %v14029_v47 = vpop.f32.mrb[84].mxu1  ;;  %14538 = vmatprep.subr.bf16.mxu0 %v20370_v58  ;;  %v20380_v32 = vld [vmem:[%s27379_s9 + $0x9b8] ss:$168 sps:$4 sm:$0xff]   ;;  %v20385_v58 = vld [vmem:[%s27379_s9 + $0xb04] ss:$168 sps:$4 sm:$0xff]  }
 0x734   :  { %v17697_v26 = vmul.f32 -1.442695, %v14029_v47  ;;  %v14111_v24 = vpop.f32.mrb[96].mxu0  ;;  %v14031_v43 = vpop.f32.mrb[85].mxu1  ;;  %v20391_v47 = vld [vmem:[%s27379_s9 + $0xc54] ss:$168 sps:$4 sm:$0xff]  }
 0x735   :  { %v17699_v13 = vmul.f32 -1.442695, %v14111_v24  ;;  %v17698_v35 = vmul.f32 -1.442695, %v14031_v43  ;;  %v14113_v57 = vpop.f32.mrb[97].mxu0  ;;  %v14033_v46 = vpop.f32.mrb[86].mxu1  ;;  %14457 = vmatpush1.bf16.msra.mxu1 %v20365_v21 }
 0x736   :  { %20835 = vpow2.f32 %v17697_v26  ;;  %v17700_v53 = vmul.f32 -1.442695, %v14113_v57  ;;  %v14115_v48 = vpop.f32.mrb[98].mxu0  ;;  %14539 = vmatpush1.bf16.msra.mxu0 %v20368_v31  ;;  %v14034_v30 = vpop.f32.mrb[87].mxu1  ;;  %14458 = vmatprep.subr.bf16.mxu1 %v20373_v19  ;;  %v20388_v21 = vld [vmem:[%s27379_s9 + $0xb0c] ss:$168 sps:$4 sm:$0xff]  }
 0x737   :  { %20837 = vpow2.f32 %v17699_v13  ;;  %v14116_v37 = vpop.f32.mrb[99].mxu0  ;;  %14540 = vmatprep.subr.bf16.mxu0 %v20376_v55  ;;  %v20383_v31 = vld [vmem:[%s27379_s9 + $0xb00] ss:$168 sps:$4 sm:$0xff]   ;;  %v20389_v43 = vld [vmem:[%s27379_s9 + $0xc50] ss:$168 sps:$4 sm:$0xff]  }
 0x738   :  { %20839 = vpow2.f32 %v17698_v35  ;;  %v20386_v19 = vld [vmem:[%s27379_s9 + $0xb08] ss:$168 sps:$4 sm:$0xff]   ;;  %v20392_v35 = vld [vmem:[%s27379_s9 + $0xc58] ss:$168 sps:$4 sm:$0xff]   ;;  %v20397_v57 = vld [vmem:[%s27379_s9 + $0xda4] ss:$168 sps:$4 sm:$0xff]  }
 0x739   :  { %20841 = vpow2.f32 %v17700_v53  ;;  %14459 = vmatpush1.bf16.msra.mxu1 %v20371_v36  ;;  %v20394_v36 = vld [vmem:[%s27379_s9 + $0xc5c] ss:$168 sps:$4 sm:$0xff]   ;;  %v20400_v48 = vld [vmem:[%s27379_s9 + $0xdac] ss:$168 sps:$4 sm:$0xff]   ;;  %v20398_v37 = vld [vmem:[%s27379_s9 + $0xda8] ss:$168 sps:$4 sm:$0xff]  }
 0x73a   :  { %14541 = vmatpush1.bf16.msra.mxu0 %v20374_v44  ;;  %14460 = vmatprep.subr.bf16.mxu1 %v20379_v18  ;;  %v20395_v18 = vld [vmem:[%s27379_s9 + $0xda0] ss:$168 sps:$4 sm:$0xff]  }
 0x73b   :  { %14542 = vmatprep.subr.bf16.mxu0 %v20382_v8  ;;  %v20403_v8 = vld [vmem:[%s27379_s9 + $0xef4] ss:$168 sps:$4 sm:$0xff]  }
 0x73d   :  { %14461 = vmatpush1.bf16.msra.mxu1 %v20377_v15  ;;  %v20406_v15 = vld [vmem:[%s27379_s9 + $0xefc] ss:$168 sps:$4 sm:$0xff]  }
 0x73e   :  { %14543 = vmatpush1.bf16.msra.mxu0 %v20380_v32  ;;  %14462 = vmatprep.subr.bf16.mxu1 %v20385_v58  ;;  %v20401_v32 = vld [vmem:[%s27379_s9 + $0xef0] ss:$168 sps:$4 sm:$0xff]  }
 0x73f   :  { %14544 = vmatprep.subr.bf16.mxu0 %v20388_v21  ;;  %v20404_v58 = vld [vmem:[%s27379_s9 + $0xef8] ss:$168 sps:$4 sm:$0xff]   ;;  %v20409_v21 = vld [vmem:[%s27379_s9 + $0x1044] ss:$168 sps:$4 sm:$0xff]  }
 0x740   :  { %v20836_v55 = vpop.eup %20835 }
 0x741   :  { %v20838_v26 = vpop.eup %20837  ;;  %v15002_v24 = vadd.f32 1.0, %v20836_v55  ;;  %14463 = vmatpush1.bf16.msra.mxu1 %v20383_v31  ;;  %v20412_v31 = vld [vmem:[%s27379_s9 + $0x104c] ss:$168 sps:$4 sm:$0xff]   ;;  %v20407_v55 = vld [vmem:[%s27379_s9 + $0x1040] ss:$168 sps:$4 sm:$0xff]  }
 0x742   :  { %v20840_v44 = vpop.eup %20839  ;;  %v15004_v13 = vadd.f32 1.0, %v20838_v26  ;;  %14545 = vmatpush1.bf16.msra.mxu0 %v20386_v19  ;;  %14464 = vmatprep.subr.bf16.mxu1 %v20391_v47  ;;  %v26501_v19 = vld [vmem:[%s27385_s12 + $0x8] sm:$0x3f] }
 0x743   :  { %v20842_v46 = vpop.eup %20841  ;;  %20843 = vrcp.f32 %v15002_v24  ;;  %v15003_v53 = vadd.f32 1.0, %v20840_v44  ;;  %14546 = vmatprep.subr.bf16.mxu0 %v20394_v36  ;;  %v26506_v36 = vld [vmem:[%s27386_s11 + $0x8] sm:$0x3f] }
 0x744   :  { %20845 = vrcp.f32 %v15004_v13  ;;  %v15005_v30 = vadd.f32 1.0, %v20842_v46  ;;  %v20410_v13 = vld [vmem:[%s27379_s9 + $0x1048] ss:$168 sps:$4 sm:$0xff]   ;;  %v20925_v46 = vld [vmem:[%s27386_s11] sm:$0xff] }
 0x745   :  { %20847 = vrcp.f32 %v15003_v53  ;;  %14465 = vmatpush1.bf16.msra.mxu1 %v20389_v43  ;;  %v20924_v43 = vld [vmem:[%s27385_s12] sm:$0xff]  ;;  %v15504_v53 = vrot.slane %v20925_v46, %v21783_v2 }
 0x746   :  { %20849 = vrcp.f32 %v15005_v30  ;;  %14547 = vmatpush1.bf16.msra.mxu0 %v20392_v35  ;;  %14466 = vmatprep.subr.bf16.mxu1 %v20397_v57  ;;  %v15592_v44 = vrot.slane %v20924_v43, %v21783_v2  ;;  %v20415_v35 = vld [vmem:[%s27379_s9 + $0x1194] ss:$168 sps:$4 sm:$0xff]   ;;  %v15600_v30 = vrot.slane %v26501_v19, %v21590_v59 }
 0x747   :  { %14548 = vmatprep.subr.bf16.mxu0 %v20400_v48 }
 0x749   :  { %14467 = vmatpush1.bf16.msra.mxu1 %v20395_v18  ;;  %v20418_v18 = vld [vmem:[%s27379_s9 + $0x119c] ss:$168 sps:$4 sm:$0xff]  }
 0x74a   :  { %14549 = vmatpush1.bf16.msra.mxu0 %v20398_v37  ;;  %14468 = vmatprep.subr.bf16.mxu1 %v20403_v8 }
 0x74b   :  { %14550 = vmatprep.subr.bf16.mxu0 %v20406_v15 }
 0x74d   :  { %v20844_v47 = vpop.eup %20843  ;;  %14469 = vmatpush1.bf16.msra.mxu1 %v20401_v32  ;;  %v15508_v32 = vrot.slane %v20925_v46, %v21600_v12 }
 0x74e   :  { %v20846_v26 = vpop.eup %20845  ;;  %v15176_v24 = vrot.slane %v20844_v47, 6  ;;  %14551 = vmatpush1.bf16.msra.mxu0 %v20404_v58  ;;  %14470 = vmatprep.subr.bf16.mxu1 %v20409_v21  ;;  %v15596_v58 = vrot.slane %v20924_v43, %v21600_v12  ;;  %v15512_v47 = vrot.slane %v26506_v36, %v21590_v59  ;;  %v20416_v43 = vld [vmem:[%s27379_s9 + $0x1198] ss:$168 sps:$4 sm:$0xff]  }
 0x74f   :  { %v20848_v57 = vpop.eup %20847  ;;  %v15178_v48 = vrot.slane %v20846_v26, 6  ;;  %14552 = vmatprep.subr.bf16.mxu0 %v20412_v31  ;;  %v15604_v31 = vrot.slane %v26501_v19, %v21593_v60 }
 0x750   :  { %v20850_v37 = vpop.eup %20849  ;;  %v15204_v8 = vmul.f32 %v15176_v24, %v21969_v42  ;;  %v15177_v15 = vrot.slane %v20848_v57, 6  ;;  %v20413_v24 = vld [vmem:[%s27379_s9 + $0x1190] ss:$168 sps:$4 sm:$0xff]  }
 0x751   :  { %v26534_v21 = vmul.f32 %v15178_v48, %v22098_v33  ;;  %v15179_v26 = vrot.slane %v20850_v37, 6  ;;  %14471 = vmatpush1.bf16.msra.mxu1 %v20407_v55  ;;  %v20421_v48 = vld [vmem:[%s27379_s9 + $0x12e4] ss:$168 sps:$4 sm:$0xff]   ;;  %v15553_v37 = vmul.f32 %v15504_v53, %v25192_v34  ;;  %v15554_v33 = vmul.f32 %v15508_v32, %v25201_v38 }
 0x752   :  { %v15641_v57 = vmul.f32 %v15592_v44, %v15204_v8  ;;  %v15205_v46 = vmul.f32 %v15177_v15, %v21708_v25  ;;  %14553 = vmatpush1.bf16.msra.mxu0 %v20410_v13  ;;  %14472 = vmatprep.subr.bf16.mxu1 %v20415_v35  ;;  %v20424_v44 = vld [vmem:[%s27379_s9 + $0x12ec] ss:$168 sps:$4 sm:$0xff]   ;;  %v15516_v13 = vrot.slane %v26506_v36, %v21593_v60 }
 0x753   :  { %v15643_v55 = vmul.f32 %v15600_v30, %v26534_v21  ;;  %v26553_v1 = vmul.f32 %v15179_v26, %v21974_v6  ;;  %14554 = vmatprep.subr.bf16.mxu0 %v20418_v18  ;;  %v15555_v34 = vmul.f32 %v15512_v47, %v25500_v61  ;;  %v20419_v26 = vld [vmem:[%s27379_s9 + $0x12e0] ss:$168 sps:$4 sm:$0xff]   ;;  %v20427_v47 = vld [vmem:[%s27379_s9 + $0x1434] ss:$168 sps:$4 sm:$0xff]  }
 0x754   :  { %v15669_v35 = vrot.slane %v15641_v57, 2  ;;  %v15340_v15 = vcombine.low %v15204_v8, %v15205_v46  ;;  %v15642_v5 = vmul.f32 %v15596_v58, %v15205_v46  ;;  %v27425_v8 = vcombine.low %v26178_v10, %v26197_v49  ;;  %v20422_v58 = vld [vmem:[%s27379_s9 + $0x12e8] ss:$168 sps:$4 sm:$0xff]   ;;  %v20430_v49 = vld [vmem:[%s27379_s9 + $0x143c] ss:$168 sps:$4 sm:$0xff]  }
 0x755   :  { %v15671_v53 = vrot.slane %v15643_v55, 2  ;;  %v15644_v18 = vmul.f32 %v15604_v31, %v26553_v1  ;;  %14473 = vmatpush1.bf16.msra.mxu1 %v20413_v24  ;;  %v15556_v10 = vmul.f32 %v15516_v13, %v25515_v28  ;;  %v20428_v28 = vld [vmem:[%s27379_s9 + $0x1438] ss:$168 sps:$4 sm:$0xff]   ;;  %v20439_v13 = vld [vmem:[%s27379_s9 + $0x16d4] ss:$168 sps:$4 sm:$0xff]  }
 0x756   :  { %v15347_v57 = vrot.slane %v27425_v8, %v24878_v63  ;;  %v26572_v38 = vadd.f32 %v15669_v35, %v15553_v37  ;;  %v15354_v61 = vrot.slane %v15340_v15, %v24878_v63  ;;  %v15670_v32 = vrot.slane %v15642_v5, 2  ;;  %14555 = vmatpush1.bf16.msra.mxu0 %v20416_v43  ;;  %14474 = vmatprep.subr.bf16.mxu1 %v20421_v48  ;;  %v20425_v43 = vld [vmem:[%s27379_s9 + $0x1430] ss:$168 sps:$4 sm:$0xff]   ;;  %v20436_v37 = vld [vmem:[%s27379_s9 + $0x158c] ss:$168 sps:$4 sm:$0xff]  }
 0x757   :  { %v26581_v31 = vadd.f32 %v15671_v53, %v15555_v34  ;;  %v15672_v24 = vrot.slane %v15644_v18, 2  ;;  %14556 = vmatprep.subr.bf16.mxu0 %v20424_v44  ;;  %v20431_v55 = vld [vmem:[%s27379_s9 + $0x1580] ss:$168 sps:$4 sm:$0xff]   ;;  %v20442_v35 = vld [vmem:[%s27379_s9 + $0x16dc] ss:$168 sps:$4 sm:$0xff]  }
 0x758   :  { %v15355_v5 = vcombine.high %v15347_v57, %v15354_v61  ;;  %v26587_v46 = vadd.f32 %v15670_v32, %v15554_v33  ;;  %v20433_v33 = vld [vmem:[%s27379_s9 + $0x1584] ss:$168 sps:$4 sm:$0xff]   ;;  %v20434_v44 = vld [vmem:[%s27379_s9 + $0x1588] ss:$168 sps:$4 sm:$0xff]   ;;  %v20440_v34 = vld [vmem:[%s27379_s9 + $0x16d8] ss:$168 sps:$4 sm:$0xff]  }
 0x759   :  { %14475 = vmatpush1.bf16.msra.mxu1 %v20419_v26  ;;  %v26592_v48 = vadd.f32 %v15672_v24, %v15556_v10  ;;  %v20437_v15 = vld [vmem:[%s27379_s9 + $0x16d0] ss:$168 sps:$4 sm:$0xff]   ;;  %v20445_v53 = vld [vmem:[%s27379_s9 + $0x1824] ss:$168 sps:$4 sm:$0xff]   ;;  %v20443_v26 = vld [vmem:[%s27379_s9 + $0x1820] ss:$168 sps:$4 sm:$0xff]  }
 0x75a   :  { %15387 = vst [vmem:[%s27384_s17 + $0x24] sm:$0xff] %v15355_v5  ;;  %14557 = vmatpush1.bf16.msra.mxu0 %v20422_v58  ;;  %14476 = vmatprep.subr.bf16.mxu1 %v20427_v47  ;;  %v20448_v18 = vld [vmem:[%s27379_s9 + $0x182c] ss:$168 sps:$4 sm:$0xff]   ;;  %v20446_v8 = vld [vmem:[%s27379_s9 + $0x1828] ss:$168 sps:$4 sm:$0xff]  }
 0x75b   :  { %14558 = vmatprep.subr.bf16.mxu0 %v20430_v49  ;;  %v20451_v57 = vld [vmem:[%s27379_s9 + $0x1974] ss:$168 sps:$4 sm:$0xff]   ;;  %v20449_v32 = vld [vmem:[%s27379_s9 + $0x1970] ss:$168 sps:$4 sm:$0xff]   ;;  %v20457_v47 = vld [vmem:[%s27379_s9 + $0x1ac4] ss:$168 sps:$4 sm:$0xff]  }
 0x75c   :  { %v20454_v61 = vld [vmem:[%s27379_s9 + $0x197c] ss:$168 sps:$4 sm:$0xff]   ;;  %v20452_v58 = vld [vmem:[%s27379_s9 + $0x1978] ss:$168 sps:$4 sm:$0xff]   ;;  %v20460_v24 = vld [vmem:[%s27379_s9 + $0x1acc] ss:$168 sps:$4 sm:$0xff]  }
 0x75d   :  { %14477 = vmatpush1.bf16.msra.mxu1 %v20425_v43  ;;  %v20455_v49 = vld [vmem:[%s27379_s9 + $0x1ac0] ss:$168 sps:$4 sm:$0xff]   ;;  %v20463_v5 = vld [vmem:[%s27379_s9 + $0x1c14] ss:$168 sps:$4 sm:$0xff]  }
 0x75e   :  { %14559 = vmatpush1.bf16.msra.mxu0 %v20428_v28  ;;  %14487 = vmatprep.subr.bf16.mxu1 %v20433_v33  ;;  %v20458_v10 = vld [vmem:[%s27379_s9 + $0x1ac8] ss:$168 sps:$4 sm:$0xff]   ;;  %v20466_v43 = vld [vmem:[%s27379_s9 + $0x1c1c] ss:$168 sps:$4 sm:$0xff]   ;;  %v20464_v33 = vld [vmem:[%s27379_s9 + $0x1c18] ss:$168 sps:$4 sm:$0xff]  }
 0x75f   :  { %14569 = vmatprep.subr.bf16.mxu0 %v20436_v37  ;;  %v20461_v28 = vld [vmem:[%s27379_s9 + $0x1c10] ss:$168 sps:$4 sm:$0xff]   ;;  %v20469_v37 = vld [vmem:[%s27379_s9 + $0x1d64] ss:$168 sps:$4 sm:$0xff]  }
 0x760   :  { %14479 = vmatmul.mubr.bf16.vlgmr.msra.gmra.mrb[96].mxu1 %v23994_v7 }
 0x761   :  { %14561 = vmatmul.mubr.bf16.vlgmr.msra.gmra.mrb[108].mxu0 %v23994_v7  ;;  %14488 = vmatpush1.bf16.msra.mxu1 %v20431_v55  ;;  %v20472_v55 = vld [vmem:[%s27379_s9 + $0x1d6c] ss:$168 sps:$4 sm:$0xff]  }
 0x762   :  { %14570 = vmatpush1.bf16.msra.mxu0 %v20434_v44  ;;  %14489 = vmatprep.subr.bf16.mxu1 %v20439_v13  ;;  %v20467_v44 = vld [vmem:[%s27379_s9 + $0x1d60] ss:$168 sps:$4 sm:$0xff]  }
 0x763   :  { %14571 = vmatprep.subr.bf16.mxu0 %v20442_v35  ;;  %14519 = vmatprep.mubr.bf16.mxu1 %v27424_v62  ;;  %v20470_v13 = vld [vmem:[%s27379_s9 + $0x1d68] ss:$168 sps:$4 sm:$0xff]   ;;  %v20475_v35 = vld [vmem:[%s27379_s9 + $0x1eb4] ss:$168 sps:$4 sm:$0xff]  }
 0x764   :  { %14601 = vmatprep.mubr.bf16.mxu0 %v27424_v62 }
 0x765   :  { %14490 = vmatpush1.bf16.msra.mxu1 %v20437_v15  ;;  %v20478_v15 = vld [vmem:[%s27379_s9 + $0x1ebc] ss:$168 sps:$4 sm:$0xff]  }
 0x766   :  { %14572 = vmatpush1.bf16.msra.mxu0 %v20440_v34  ;;  %14491 = vmatprep.subr.bf16.mxu1 %v20445_v53  ;;  %v20473_v34 = vld [vmem:[%s27379_s9 + $0x1eb0] ss:$168 sps:$4 sm:$0xff]  }
 0x767   :  { %14573 = vmatprep.subr.bf16.mxu0 %v20448_v18  ;;  %v20476_v53 = vld [vmem:[%s27379_s9 + $0x1eb8] ss:$168 sps:$4 sm:$0xff]   ;;  %v20481_v18 = vld [vmem:[%s27379_s9 + $0x94] ss:$168 sps:$4 sm:$0xff]  }
 0x769   :  { %14492 = vmatpush1.bf16.msra.mxu1 %v20443_v26  ;;  %v20484_v26 = vld [vmem:[%s27379_s9 + $0x9c] ss:$168 sps:$4 sm:$0xff]  }
 0x76a   :  { %14574 = vmatpush1.bf16.msra.mxu0 %v20446_v8  ;;  %14493 = vmatprep.subr.bf16.mxu1 %v20451_v57  ;;  %v20479_v8 = vld [vmem:[%s27379_s9 + $0x90] ss:$168 sps:$4 sm:$0xff]  }
 0x76b   :  { %14575 = vmatprep.subr.bf16.mxu0 %v20454_v61  ;;  %v20482_v57 = vld [vmem:[%s27379_s9 + $0x98] ss:$168 sps:$4 sm:$0xff]   ;;  %v20487_v61 = vld [vmem:[%s27379_s9 + $0x1e4] ss:$168 sps:$4 sm:$0xff]  }
 0x76d   :  { %14494 = vmatpush1.bf16.msra.mxu1 %v20449_v32  ;;  %v20490_v32 = vld [vmem:[%s27379_s9 + $0x1ec] ss:$168 sps:$4 sm:$0xff]  }
 0x76e   :  { %14576 = vmatpush1.bf16.msra.mxu0 %v20452_v58  ;;  %14495 = vmatprep.subr.bf16.mxu1 %v20457_v47  ;;  %v20485_v58 = vld [vmem:[%s27379_s9 + $0x1e0] ss:$168 sps:$4 sm:$0xff]  }
 0x76f   :  { %14577 = vmatprep.subr.bf16.mxu0 %v20460_v24  ;;  %v20488_v47 = vld [vmem:[%s27379_s9 + $0x1e8] ss:$168 sps:$4 sm:$0xff]   ;;  %v20493_v24 = vld [vmem:[%s27379_s9 + $0x334] ss:$168 sps:$4 sm:$0xff]  }
 0x771   :  { %14496 = vmatpush1.bf16.msra.mxu1 %v20455_v49  ;;  %v20496_v49 = vld [vmem:[%s27379_s9 + $0x33c] ss:$168 sps:$4 sm:$0xff]  }
 0x772   :  { %14578 = vmatpush1.bf16.msra.mxu0 %v20458_v10  ;;  %14497 = vmatprep.subr.bf16.mxu1 %v20463_v5  ;;  %v20491_v10 = vld [vmem:[%s27379_s9 + $0x330] ss:$168 sps:$4 sm:$0xff]  }
 0x773   :  { %14579 = vmatprep.subr.bf16.mxu0 %v20466_v43  ;;  %v20494_v5 = vld [vmem:[%s27379_s9 + $0x338] ss:$168 sps:$4 sm:$0xff]   ;;  %v20499_v43 = vld [vmem:[%s27379_s9 + $0x484] ss:$168 sps:$4 sm:$0xff]  }
 0x775   :  { %14498 = vmatpush1.bf16.msra.mxu1 %v20461_v28  ;;  %v20502_v28 = vld [vmem:[%s27379_s9 + $0x48c] ss:$168 sps:$4 sm:$0xff]  }
 0x776   :  { %14580 = vmatpush1.bf16.msra.mxu0 %v20464_v33  ;;  %14499 = vmatprep.subr.bf16.mxu1 %v20469_v37  ;;  %v20497_v33 = vld [vmem:[%s27379_s9 + $0x480] ss:$168 sps:$4 sm:$0xff]  }
 0x777   :  { %14581 = vmatprep.subr.bf16.mxu0 %v20472_v55  ;;  %v20500_v37 = vld [vmem:[%s27379_s9 + $0x488] ss:$168 sps:$4 sm:$0xff]   ;;  %v20505_v55 = vld [vmem:[%s27379_s9 + $0x5d4] ss:$168 sps:$4 sm:$0xff]  }
 0x779   :  { %14500 = vmatpush1.bf16.msra.mxu1 %v20467_v44  ;;  %v20508_v44 = vld [vmem:[%s27379_s9 + $0x5dc] ss:$168 sps:$4 sm:$0xff]  }
 0x77a   :  { %14582 = vmatpush1.bf16.msra.mxu0 %v20470_v13  ;;  %14501 = vmatprep.subr.bf16.mxu1 %v20475_v35  ;;  %v20503_v13 = vld [vmem:[%s27379_s9 + $0x5d0] ss:$168 sps:$4 sm:$0xff]  }
 0x77b   :  { %14583 = vmatprep.subr.bf16.mxu0 %v20478_v15  ;;  %v20506_v35 = vld [vmem:[%s27379_s9 + $0x5d8] ss:$168 sps:$4 sm:$0xff]   ;;  %v20511_v15 = vld [vmem:[%s27379_s9 + $0x724] ss:$168 sps:$4 sm:$0xff]  }
 0x77d   :  { %14502 = vmatpush1.bf16.msra.mxu1 %v20473_v34  ;;  %v20514_v34 = vld [vmem:[%s27379_s9 + $0x72c] ss:$168 sps:$4 sm:$0xff]  }
 0x77e   :  { %14584 = vmatpush1.bf16.msra.mxu0 %v20476_v53  ;;  %14610 = vmatprep.subr.bf16.mxu1 %v20481_v18  ;;  %v20509_v53 = vld [vmem:[%s27379_s9 + $0x720] ss:$168 sps:$4 sm:$0xff]  }
 0x77f   :  { %14692 = vmatprep.subr.bf16.mxu0 %v20484_v26  ;;  %v20512_v18 = vld [vmem:[%s27379_s9 + $0x728] ss:$168 sps:$4 sm:$0xff]   ;;  %v20517_v26 = vld [vmem:[%s27379_s9 + $0x874] ss:$168 sps:$4 sm:$0xff]  }
 0x780   :  { %14520 = vmatmul.mubr.bf16.vlgmr.msra.gmra.mrb[96].mxu1 %v24108_v29 }
 0x781   :  { %14602 = vmatmul.mubr.bf16.vlgmr.msra.gmra.mrb[108].mxu0 %v24108_v29  ;;  %14611 = vmatpush1.bf16.msra.mxu1 %v20479_v8 }
 0x782   :  { %14642 = vmatprep.mubr.bf16.mxu1 %v23992_v52  ;;  %14693 = vmatpush1.bf16.msra.mxu0 %v20482_v57  ;;  %v20515_v57 = vld [vmem:[%s27379_s9 + $0x870] ss:$168 sps:$4 sm:$0xff]  }
 0x783   :  { %14724 = vmatprep.mubr.bf16.mxu0 %v23992_v52  ;;  %14612 = vmatprep.subr.bf16.mxu1 %v20487_v61  ;;  %v20520_v61 = vld [vmem:[%s27379_s9 + $0x87c] ss:$168 sps:$4 sm:$0xff]  }
 0x784   :  { %14694 = vmatprep.subr.bf16.mxu0 %v20490_v32 }
 0x785   :  { %14613 = vmatpush1.bf16.msra.mxu1 %v20485_v58 }
 0x786   :  { %14695 = vmatpush1.bf16.msra.mxu0 %v20488_v47  ;;  %14614 = vmatprep.subr.bf16.mxu1 %v20493_v24  ;;  %v20518_v24 = vld [vmem:[%s27379_s9 + $0x878] ss:$168 sps:$4 sm:$0xff]  }
 0x787   :  { %14696 = vmatprep.subr.bf16.mxu0 %v20496_v49 }
 0x789   :  { %14615 = vmatpush1.bf16.msra.mxu1 %v20491_v10 }
 0x78a   :  { %14697 = vmatpush1.bf16.msra.mxu0 %v20494_v5  ;;  %14616 = vmatprep.subr.bf16.mxu1 %v20499_v43 }
 0x78b   :  { %14698 = vmatprep.subr.bf16.mxu0 %v20502_v28 }
 0x78d   :  { %14617 = vmatpush1.bf16.msra.mxu1 %v20497_v33 }
 0x78e   :  { %14699 = vmatpush1.bf16.msra.mxu0 %v20500_v37  ;;  %14618 = vmatprep.subr.bf16.mxu1 %v20505_v55  ;;  %v20523_v55 = vld [vmem:[%s27379_s9 + $0x9c4] ss:$168 sps:$4 sm:$0xff]  }
 0x78f   :  { %14700 = vmatprep.subr.bf16.mxu0 %v20508_v44 }
 0x791   :  { %14619 = vmatpush1.bf16.msra.mxu1 %v20503_v13  ;;  %v20526_v13 = vld [vmem:[%s27379_s9 + $0x9cc] ss:$168 sps:$4 sm:$0xff]  }
 0x792   :  { %14701 = vmatpush1.bf16.msra.mxu0 %v20506_v35  ;;  %14620 = vmatprep.subr.bf16.mxu1 %v20511_v15  ;;  %v20521_v35 = vld [vmem:[%s27379_s9 + $0x9c0] ss:$168 sps:$4 sm:$0xff]  }
 0x793   :  { %v14193_v8 = vpop.f32.mrb[88].mxu1  ;;  %14702 = vmatprep.subr.bf16.mxu0 %v20514_v34  ;;  %v20524_v15 = vld [vmem:[%s27379_s9 + $0x9c8] ss:$168 sps:$4 sm:$0xff]   ;;  %v20529_v34 = vld [vmem:[%s27379_s9 + $0xb14] ss:$168 sps:$4 sm:$0xff]  }
 0x794   :  { %v17701_v32 = vmul.f32 -1.442695, %v14193_v8  ;;  %v14275_v58 = vpop.f32.mrb[100].mxu0  ;;  %v14195_v47 = vpop.f32.mrb[89].mxu1  ;;  %v20535_v8 = vld [vmem:[%s27379_s9 + $0xc64] ss:$168 sps:$4 sm:$0xff]  }
 0x795   :  { %v17703_v49 = vmul.f32 -1.442695, %v14275_v58  ;;  %v17702_v10 = vmul.f32 -1.442695, %v14195_v47  ;;  %v14277_v5 = vpop.f32.mrb[101].mxu0  ;;  %v14197_v43 = vpop.f32.mrb[90].mxu1  ;;  %14621 = vmatpush1.bf16.msra.mxu1 %v20509_v53 }
 0x796   :  { %20851 = vpow2.f32 %v17701_v32  ;;  %v17704_v28 = vmul.f32 -1.442695, %v14277_v5  ;;  %v14279_v33 = vpop.f32.mrb[102].mxu0  ;;  %14703 = vmatpush1.bf16.msra.mxu0 %v20512_v18  ;;  %v14198_v37 = vpop.f32.mrb[91].mxu1  ;;  %14622 = vmatprep.subr.bf16.mxu1 %v20517_v26  ;;  %v20532_v53 = vld [vmem:[%s27379_s9 + $0xb1c] ss:$168 sps:$4 sm:$0xff]  }
 0x797   :  { %20853 = vpow2.f32 %v17703_v49  ;;  %v14280_v44 = vpop.f32.mrb[103].mxu0  ;;  %14704 = vmatprep.subr.bf16.mxu0 %v20520_v61  ;;  %v20527_v18 = vld [vmem:[%s27379_s9 + $0xb10] ss:$168 sps:$4 sm:$0xff]   ;;  %v20533_v47 = vld [vmem:[%s27379_s9 + $0xc60] ss:$168 sps:$4 sm:$0xff]  }
 0x798   :  { %20855 = vpow2.f32 %v17702_v10  ;;  %v20530_v26 = vld [vmem:[%s27379_s9 + $0xb18] ss:$168 sps:$4 sm:$0xff]   ;;  %v20536_v10 = vld [vmem:[%s27379_s9 + $0xc68] ss:$168 sps:$4 sm:$0xff]   ;;  %v20541_v5 = vld [vmem:[%s27379_s9 + $0xdb4] ss:$168 sps:$4 sm:$0xff]  }
 0x799   :  { %20857 = vpow2.f32 %v17704_v28  ;;  %14623 = vmatpush1.bf16.msra.mxu1 %v20515_v57  ;;  %v20538_v57 = vld [vmem:[%s27379_s9 + $0xc6c] ss:$168 sps:$4 sm:$0xff]   ;;  %v20544_v33 = vld [vmem:[%s27379_s9 + $0xdbc] ss:$168 sps:$4 sm:$0xff]   ;;  %v20542_v44 = vld [vmem:[%s27379_s9 + $0xdb8] ss:$168 sps:$4 sm:$0xff]  }
 0x79a   :  { %14705 = vmatpush1.bf16.msra.mxu0 %v20518_v24  ;;  %14624 = vmatprep.subr.bf16.mxu1 %v20523_v55  ;;  %v20539_v55 = vld [vmem:[%s27379_s9 + $0xdb0] ss:$168 sps:$4 sm:$0xff]  }
 0x79b   :  { %14706 = vmatprep.subr.bf16.mxu0 %v20526_v13  ;;  %v20547_v13 = vld [vmem:[%s27379_s9 + $0xf04] ss:$168 sps:$4 sm:$0xff]  }
 0x79d   :  { %14625 = vmatpush1.bf16.msra.mxu1 %v20521_v35  ;;  %v20550_v35 = vld [vmem:[%s27379_s9 + $0xf0c] ss:$168 sps:$4 sm:$0xff]  }
 0x79e   :  { %14707 = vmatpush1.bf16.msra.mxu0 %v20524_v15  ;;  %14626 = vmatprep.subr.bf16.mxu1 %v20529_v34  ;;  %v20545_v15 = vld [vmem:[%s27379_s9 + $0xf00] ss:$168 sps:$4 sm:$0xff]  }
 0x79f   :  { %14708 = vmatprep.subr.bf16.mxu0 %v20532_v53  ;;  %v20548_v34 = vld [vmem:[%s27379_s9 + $0xf08] ss:$168 sps:$4 sm:$0xff]   ;;  %v20553_v53 = vld [vmem:[%s27379_s9 + $0x1054] ss:$168 sps:$4 sm:$0xff]  }
 0x7a0   :  { %v20852_v61 = vpop.eup %20851 }
 0x7a1   :  { %v20854_v32 = vpop.eup %20853  ;;  %v15006_v58 = vadd.f32 1.0, %v20852_v61  ;;  %14627 = vmatpush1.bf16.msra.mxu1 %v20527_v18  ;;  %v20556_v18 = vld [vmem:[%s27379_s9 + $0x105c] ss:$168 sps:$4 sm:$0xff]  }
 0x7a2   :  { %v20856_v24 = vpop.eup %20855  ;;  %v15008_v49 = vadd.f32 1.0, %v20854_v32  ;;  %14709 = vmatpush1.bf16.msra.mxu0 %v20530_v26  ;;  %14628 = vmatprep.subr.bf16.mxu1 %v20535_v8  ;;  %v20551_v8 = vld [vmem:[%s27379_s9 + $0x1050] ss:$168 sps:$4 sm:$0xff]   ;;  %v15608_v32 = vrot.slane %v26501_v19, %v21605_v14 }
 0x7a3   :  { %v20858_v43 = vpop.eup %20857  ;;  %20859 = vrcp.f32 %v15006_v58  ;;  %v15007_v28 = vadd.f32 1.0, %v20856_v24  ;;  %14710 = vmatprep.subr.bf16.mxu0 %v20538_v57  ;;  %v20554_v58 = vld [vmem:[%s27379_s9 + $0x1058] ss:$168 sps:$4 sm:$0xff]  }
 0x7a4   :  { %20861 = vrcp.f32 %v15008_v49  ;;  %v15009_v37 = vadd.f32 1.0, %v20858_v43  ;;  %v15616_v43 = vrot.slane %v26501_v19, %v21681_v0 }
 0x7a5   :  { %20863 = vrcp.f32 %v15007_v28  ;;  %14629 = vmatpush1.bf16.msra.mxu1 %v20533_v47  ;;  %v20559_v47 = vld [vmem:[%s27379_s9 + $0x11a4] ss:$168 sps:$4 sm:$0xff]  }
 0x7a6   :  { %20865 = vrcp.f32 %v15009_v37  ;;  %14711 = vmatpush1.bf16.msra.mxu0 %v20536_v10  ;;  %14630 = vmatprep.subr.bf16.mxu1 %v20541_v5  ;;  %v20562_v10 = vld [vmem:[%s27379_s9 + $0x11ac] ss:$168 sps:$4 sm:$0xff]   ;;  %v15520_v5 = vrot.slane %v26506_v36, %v21605_v14 }
 0x7a7   :  { %14712 = vmatprep.subr.bf16.mxu0 %v20544_v33 }
 0x7a9   :  { %14631 = vmatpush1.bf16.msra.mxu1 %v20539_v55  ;;  %v15612_v55 = vrot.slane %v26501_v19, %v21610_v16 }
 0x7aa   :  { %14713 = vmatpush1.bf16.msra.mxu0 %v20542_v44  ;;  %14632 = vmatprep.subr.bf16.mxu1 %v20547_v13  ;;  %v15524_v44 = vrot.slane %v26506_v36, %v21610_v16 }
 0x7ab   :  { %14714 = vmatprep.subr.bf16.mxu0 %v20550_v35 }
 0x7ad   :  { %v20860_v26 = vpop.eup %20859  ;;  %14633 = vmatpush1.bf16.msra.mxu1 %v20545_v15  ;;  %v20557_v15 = vld [vmem:[%s27379_s9 + $0x11a0] ss:$168 sps:$4 sm:$0xff]  }
 0x7ae   :  { %v20862_v57 = vpop.eup %20861  ;;  %v15180_v61 = vrot.slane %v20860_v26, 6  ;;  %14715 = vmatpush1.bf16.msra.mxu0 %v20548_v34  ;;  %14634 = vmatprep.subr.bf16.mxu1 %v20553_v53  ;;  %v15528_v34 = vrot.slane %v26506_v36, %v21681_v0  ;;  %v15620_v53 = vrot.slane %v26501_v19, %v21687_v4  ;;  %v20568_v19 = vld [vmem:[%s27379_s9 + $0x12fc] ss:$168 sps:$4 sm:$0xff]  }
 0x7af   :  { %v20864_v24 = vpop.eup %20863  ;;  %v15182_v49 = vrot.slane %v20862_v57, 6  ;;  %14716 = vmatprep.subr.bf16.mxu0 %v20556_v18  ;;  %v20560_v57 = vld [vmem:[%s27379_s9 + $0x11a8] ss:$168 sps:$4 sm:$0xff]  }
 0x7b0   :  { %v20866_v28 = vpop.eup %20865  ;;  %v15208_v33 = vmul.f32 %v15180_v61, %v22222_v22  ;;  %v15181_v37 = vrot.slane %v20864_v24, 6 }
 0x7b1   :  { %v15210_v13 = vmul.f32 %v15182_v49, %v22336_v40  ;;  %v15183_v35 = vrot.slane %v20866_v28, 6  ;;  %14635 = vmatpush1.bf16.msra.mxu1 %v20551_v8  ;;  %v20565_v8 = vld [vmem:[%s27379_s9 + $0x12f4] ss:$168 sps:$4 sm:$0xff]  }
 0x7b2   :  { %v15645_v18 = vmul.f32 %v15608_v32, %v15208_v33  ;;  %v15209_v26 = vmul.f32 %v15181_v37, %v21977_v45  ;;  %14717 = vmatpush1.bf16.msra.mxu0 %v20554_v58  ;;  %14636 = vmatprep.subr.bf16.mxu1 %v20559_v47  ;;  %v15532_v32 = vrot.slane %v26506_v36, %v21687_v4 }
 0x7b3   :  { %v15211_v61 = vmul.f32 %v15183_v35, %v22112_v11  ;;  %14718 = vmatprep.subr.bf16.mxu0 %v20562_v10  ;;  %v15557_v58 = vmul.f32 %v15520_v5, %v25512_v39  ;;  %v15647_v47 = vmul.f32 %v15616_v43, %v15210_v13  ;;  %v15558_v37 = vmul.f32 %v15524_v44, %v25521_v41  ;;  %v20563_v10 = vld [vmem:[%s27379_s9 + $0x12f0] ss:$168 sps:$4 sm:$0xff]   ;;  %v20571_v43 = vld [vmem:[%s27379_s9 + $0x1444] ss:$168 sps:$4 sm:$0xff]  }
 0x7b4   :  { %v15673_v24 = vrot.slane %v15645_v18, 2  ;;  %v15357_v49 = vcombine.low %v15208_v33, %v15209_v26  ;;  %v15646_v28 = vmul.f32 %v15612_v55, %v15209_v26  ;;  %v15559_v35 = vmul.f32 %v15528_v34, %v25833_v9  ;;  %v20566_v41 = vld [vmem:[%s27379_s9 + $0x12f8] ss:$168 sps:$4 sm:$0xff]  }
 0x7b5   :  { %v15373_v30 = vcombine.low %v15210_v13, %v15211_v61  ;;  %14637 = vmatpush1.bf16.msra.mxu1 %v20557_v15  ;;  %v15648_v11 = vmul.f32 %v15620_v53, %v15211_v61  ;;  %v15675_v40 = vrot.slane %v15647_v47, 2  ;;  %v27426_v39 = vcombine.low %v26534_v21, %v26553_v1  ;;  %v20574_v1 = vld [vmem:[%s27379_s9 + $0x144c] ss:$168 sps:$4 sm:$0xff]   ;;  %v20569_v18 = vld [vmem:[%s27379_s9 + $0x1440] ss:$168 sps:$4 sm:$0xff]  }
 0x7b6   :  { %v15371_v5 = vrot.slane %v15357_v49, %v24878_v63  ;;  %14719 = vmatpush1.bf16.msra.mxu0 %v20560_v57  ;;  %14638 = vmatprep.subr.bf16.mxu1 %v20565_v8  ;;  %v15674_v9 = vrot.slane %v15646_v28, 2  ;;  %v26915_v33 = vadd.f32 %v15673_v24, %v15557_v58  ;;  %v15560_v21 = vmul.f32 %v15532_v32, %v25841_v3  ;;  %v20580_v3 = vld [vmem:[%s27379_s9 + $0x159c] ss:$168 sps:$4 sm:$0xff]   ;;  %v20575_v26 = vld [vmem:[%s27379_s9 + $0x1590] ss:$168 sps:$4 sm:$0xff]  }
 0x7b7   :  { %v15364_v36 = vrot.slane %v27426_v39, %v24878_v63  ;;  %v15380_v55 = vrot.slane %v15373_v30, %v24878_v63  ;;  %14720 = vmatprep.subr.bf16.mxu0 %v20568_v19  ;;  %v15676_v44 = vrot.slane %v15648_v11, 2  ;;  %v26922_v13 = vadd.f32 %v15675_v40, %v15559_v35  ;;  %v20572_v11 = vld [vmem:[%s27379_s9 + $0x1448] ss:$168 sps:$4 sm:$0xff]   ;;  %v20577_v40 = vld [vmem:[%s27379_s9 + $0x1594] ss:$168 sps:$4 sm:$0xff]  }
 0x7b8   :  { %v26924_v34 = vadd.f32 %v15674_v9, %v15558_v37  ;;  %v20578_v57 = vld [vmem:[%s27379_s9 + $0x1598] ss:$168 sps:$4 sm:$0xff]   ;;  %v20583_v8 = vld [vmem:[%s27379_s9 + $0x16e4] ss:$168 sps:$4 sm:$0xff]   ;;  %v20584_v32 = vld [vmem:[%s27379_s9 + $0x16e8] ss:$168 sps:$4 sm:$0xff]  }
 0x7b9   :  { %v15372_v15 = vcombine.high %v15364_v36, %v15371_v5  ;;  %v15381_v53 = vcombine.high %v15380_v55, %v15380_v55  ;;  %14639 = vmatpush1.bf16.msra.mxu1 %v20563_v10  ;;  %v26929_v30 = vadd.f32 %v15676_v44, %v15560_v21  ;;  %v20586_v61 = vld [vmem:[%s27379_s9 + $0x16ec] ss:$168 sps:$4 sm:$0xff]   ;;  %v20581_v19 = vld [vmem:[%s27379_s9 + $0x16e0] ss:$168 sps:$4 sm:$0xff]   ;;  %v20592_v47 = vld [vmem:[%s27379_s9 + $0x183c] ss:$168 sps:$4 sm:$0xff]  }
 0x7ba   :  { %14721 = vmatpush1.bf16.msra.mxu0 %v20566_v41  ;;  %14640 = vmatprep.subr.bf16.mxu1 %v20571_v43  ;;  %v20589_v58 = vld [vmem:[%s27379_s9 + $0x1834] ss:$168 sps:$4 sm:$0xff]   ;;  %v20587_v24 = vld [vmem:[%s27379_s9 + $0x1830] ss:$168 sps:$4 sm:$0xff]   ;;  %v20595_v28 = vld [vmem:[%s27379_s9 + $0x1984] ss:$168 sps:$4 sm:$0xff]  }
 0x7bb   :  { %15388 = vst [vmem:[%s27384_s17 + $0x2c] sm:$0xff] %v15372_v15  ;;  %15389 = vst [vmem:[%s27384_s17 + $0x34] sm:$0xf] %v15381_v53  ;;  %14722 = vmatprep.subr.bf16.mxu0 %v20574_v1  ;;  %v20590_v49 = vld [vmem:[%s27379_s9 + $0x1838] ss:$168 sps:$4 sm:$0xff]  }
 0x7bc   :  { %v20598_v37 = vld [vmem:[%s27379_s9 + $0x198c] ss:$168 sps:$4 sm:$0xff]   ;;  %v20593_v10 = vld [vmem:[%s27379_s9 + $0x1980] ss:$168 sps:$4 sm:$0xff]   ;;  %v20604_v36 = vld [vmem:[%s27379_s9 + $0x1adc] ss:$168 sps:$4 sm:$0xff]  }
 0x7bd   :  { %14641 = vmatpush1.bf16.msra.mxu1 %v20569_v18  ;;  %v20596_v35 = vld [vmem:[%s27379_s9 + $0x1988] ss:$168 sps:$4 sm:$0xff]   ;;  %v20601_v39 = vld [vmem:[%s27379_s9 + $0x1ad4] ss:$168 sps:$4 sm:$0xff]   ;;  %v20602_v41 = vld [vmem:[%s27379_s9 + $0x1ad8] ss:$168 sps:$4 sm:$0xff]  }
 0x7be   :  { %14723 = vmatpush1.bf16.msra.mxu0 %v20572_v11  ;;  %14651 = vmatprep.subr.bf16.mxu1 %v20577_v40  ;;  %v20599_v5 = vld [vmem:[%s27379_s9 + $0x1ad0] ss:$168 sps:$4 sm:$0xff]   ;;  %v20607_v43 = vld [vmem:[%s27379_s9 + $0x1c24] ss:$168 sps:$4 sm:$0xff]   ;;  %v20605_v55 = vld [vmem:[%s27379_s9 + $0x1c20] ss:$168 sps:$4 sm:$0xff]  }
 0x7bf   :  { %14733 = vmatprep.subr.bf16.mxu0 %v20580_v3  ;;  %v20610_v9 = vld [vmem:[%s27379_s9 + $0x1c2c] ss:$168 sps:$4 sm:$0xff]   ;;  %v20608_v1 = vld [vmem:[%s27379_s9 + $0x1c28] ss:$168 sps:$4 sm:$0xff]   ;;  %v20616_v44 = vld [vmem:[%s27379_s9 + $0x1d7c] ss:$168 sps:$4 sm:$0xff]  }
 0x7c0   :  { %14643 = vmatmul.mubr.bf16.vlgmr.msra.gmra.mrb[100].mxu1 %v23994_v7  ;;  %v20613_v21 = vld [vmem:[%s27379_s9 + $0x1d74] ss:$168 sps:$4 sm:$0xff]   ;;  %v20611_v15 = vld [vmem:[%s27379_s9 + $0x1d70] ss:$168 sps:$4 sm:$0xff]   ;;  %v20619_v18 = vld [vmem:[%s27379_s9 + $0x1ec4] ss:$168 sps:$4 sm:$0xff]  }
 0x7c1   :  { %14725 = vmatmul.mubr.bf16.vlgmr.msra.gmra.mrb[112].mxu0 %v23994_v7  ;;  %14652 = vmatpush1.bf16.msra.mxu1 %v20575_v26  ;;  %v20614_v53 = vld [vmem:[%s27379_s9 + $0x1d78] ss:$168 sps:$4 sm:$0xff]   ;;  %v20622_v11 = vld [vmem:[%s27379_s9 + $0x1ecc] ss:$168 sps:$4 sm:$0xff]   ;;  %v20620_v3 = vld [vmem:[%s27379_s9 + $0x1ec8] ss:$168 sps:$4 sm:$0xff]  }
 0x7c2   :  { %14734 = vmatpush1.bf16.msra.mxu0 %v20578_v57  ;;  %14653 = vmatprep.subr.bf16.mxu1 %v20583_v8  ;;  %v20617_v40 = vld [vmem:[%s27379_s9 + $0x1ec0] ss:$168 sps:$4 sm:$0xff]   ;;  %v20625_v26 = vld [vmem:[%s27379_s9 + $0xa4] ss:$168 sps:$4 sm:$0xff]   ;;  %v20628_v8 = vld [vmem:[%s27379_s9 + $0x1f4] ss:$168 sps:$4 sm:$0xff]  }
 0x7c3   :  { %14735 = vmatprep.subr.bf16.mxu0 %v20586_v61  ;;  %14683 = vmatprep.mubr.bf16.mxu1 %v27424_v62  ;;  %v20623_v57 = vld [vmem:[%s27379_s9 + $0xa0] ss:$168 sps:$4 sm:$0xff]   ;;  %v20626_v61 = vld [vmem:[%s27379_s9 + $0x1f0] ss:$168 sps:$4 sm:$0xff]  }
 0x7c4   :  { %14765 = vmatprep.mubr.bf16.mxu0 %v27424_v62 }
 0x7c5   :  { %14654 = vmatpush1.bf16.msra.mxu1 %v20581_v19  ;;  %v20631_v19 = vld [vmem:[%s27379_s9 + $0x344] ss:$168 sps:$4 sm:$0xff]  }
 0x7c6   :  { %14736 = vmatpush1.bf16.msra.mxu0 %v20584_v32  ;;  %14655 = vmatprep.subr.bf16.mxu1 %v20589_v58  ;;  %v20629_v32 = vld [vmem:[%s27379_s9 + $0x340] ss:$168 sps:$4 sm:$0xff]   ;;  %v20634_v58 = vld [vmem:[%s27379_s9 + $0x494] ss:$168 sps:$4 sm:$0xff]  }
 0x7c7   :  { %14737 = vmatprep.subr.bf16.mxu0 %v20592_v47  ;;  %v20637_v47 = vld [vmem:[%s27379_s9 + $0x5e4] ss:$168 sps:$4 sm:$0xff]  }
 0x7c9   :  { %14656 = vmatpush1.bf16.msra.mxu1 %v20587_v24  ;;  %v20635_v24 = vld [vmem:[%s27379_s9 + $0x5e0] ss:$168 sps:$4 sm:$0xff]  }
 0x7ca   :  { %14738 = vmatpush1.bf16.msra.mxu0 %v20590_v49  ;;  %14657 = vmatprep.subr.bf16.mxu1 %v20595_v28  ;;  %v20640_v49 = vld [vmem:[%s27379_s9 + $0x734] ss:$168 sps:$4 sm:$0xff]   ;;  %v20638_v28 = vld [vmem:[%s27379_s9 + $0x730] ss:$168 sps:$4 sm:$0xff]  }
 0x7cb   :  { %14739 = vmatprep.subr.bf16.mxu0 %v20598_v37  ;;  %v20643_v37 = vld [vmem:[%s27379_s9 + $0x884] ss:$168 sps:$4 sm:$0xff]  }
 0x7cd   :  { %14658 = vmatpush1.bf16.msra.mxu1 %v20593_v10 }
 0x7ce   :  { %14740 = vmatpush1.bf16.msra.mxu0 %v20596_v35  ;;  %14659 = vmatprep.subr.bf16.mxu1 %v20601_v39 }
 0x7cf   :  { %14741 = vmatprep.subr.bf16.mxu0 %v20604_v36 }
 0x7d1   :  { %14660 = vmatpush1.bf16.msra.mxu1 %v20599_v5  ;;  %v20641_v5 = vld [vmem:[%s27379_s9 + $0x880] ss:$168 sps:$4 sm:$0xff]  }
 0x7d2   :  { %14742 = vmatpush1.bf16.msra.mxu0 %v20602_v41  ;;  %14661 = vmatprep.subr.bf16.mxu1 %v20607_v43 }
 0x7d3   :  { %14743 = vmatprep.subr.bf16.mxu0 %v20610_v9 }
 0x7d5   :  { %14662 = vmatpush1.bf16.msra.mxu1 %v20605_v55 }
 0x7d6   :  { %14744 = vmatpush1.bf16.msra.mxu0 %v20608_v1  ;;  %14663 = vmatprep.subr.bf16.mxu1 %v20613_v21 }
 0x7d7   :  { %14745 = vmatprep.subr.bf16.mxu0 %v20616_v44 }
 0x7d9   :  { %14664 = vmatpush1.bf16.msra.mxu1 %v20611_v15  ;;  %v20646_v15 = vld [vmem:[%s27379_s9 + $0x9d4] ss:$168 sps:$4 sm:$0xff]  }
 0x7da   :  { %14746 = vmatpush1.bf16.msra.mxu0 %v20614_v53  ;;  %14665 = vmatprep.subr.bf16.mxu1 %v20619_v18  ;;  %v20644_v18 = vld [vmem:[%s27379_s9 + $0x9d0] ss:$168 sps:$4 sm:$0xff]  }
 0x7db   :  { %14747 = vmatprep.subr.bf16.mxu0 %v20622_v11  ;;  %v20649_v11 = vld [vmem:[%s27379_s9 + $0xb24] ss:$168 sps:$4 sm:$0xff]  }
 0x7dd   :  { %14666 = vmatpush1.bf16.msra.mxu1 %v20617_v40  ;;  %v20647_v40 = vld [vmem:[%s27379_s9 + $0xb20] ss:$168 sps:$4 sm:$0xff]  }
 0x7de   :  { %14748 = vmatpush1.bf16.msra.mxu0 %v20620_v3  ;;  %14774 = vmatprep.subr.bf16.mxu1 %v20625_v26  ;;  %v20652_v3 = vld [vmem:[%s27379_s9 + $0xc74] ss:$168 sps:$4 sm:$0xff]  }
 0x7e0   :  { %14684 = vmatmul.mubr.bf16.vlgmr.msra.gmra.mrb[100].mxu1 %v24108_v29 }
 0x7e1   :  { %14766 = vmatmul.mubr.bf16.vlgmr.msra.gmra.mrb[112].mxu0 %v24108_v29  ;;  %14775 = vmatpush1.bf16.msra.mxu1 %v20623_v57 }
 0x7e2   :  { %14806 = vmatprep.mubr.bf16.mxu1 %v23992_v52  ;;  %14776 = vmatprep.subr.bf16.mxu1 %v20628_v8  ;;  %v20632_v52 = vld [vmem:[%s27379_s9 + $0x490] ss:$168 sps:$4 sm:$0xff]  }
 0x7e5   :  { %14777 = vmatpush1.bf16.msra.mxu1 %v20626_v61  ;;  %v20650_v61 = vld [vmem:[%s27379_s9 + $0xc70] ss:$168 sps:$4 sm:$0xff]  }
 0x7e6   :  { %14778 = vmatprep.subr.bf16.mxu1 %v20631_v19 }
 0x7e9   :  { %14779 = vmatpush1.bf16.msra.mxu1 %v20629_v32 }
 0x7ea   :  { %14780 = vmatprep.subr.bf16.mxu1 %v20634_v58  ;;  %v20655_v58 = vld [vmem:[%s27379_s9 + $0xdc4] ss:$168 sps:$4 sm:$0xff]  }
 0x7ed   :  { %14781 = vmatpush1.bf16.msra.mxu1 %v20632_v52 }
 0x7ee   :  { %14782 = vmatprep.subr.bf16.mxu1 %v20637_v47 }
 0x7f1   :  { %14783 = vmatpush1.bf16.msra.mxu1 %v20635_v24 }
 0x7f2   :  { %14784 = vmatprep.subr.bf16.mxu1 %v20640_v49  ;;  %v20653_v49 = vld [vmem:[%s27379_s9 + $0xdc0] ss:$168 sps:$4 sm:$0xff]  }
 0x7f3   :  { %v14357_v10 = vpop.f32.mrb[92].mxu1 }
 0x7f4   :  { %v17705_v35 = vmul.f32 -1.442695, %v14357_v10  ;;  %v14439_v39 = vpop.f32.mrb[104].mxu0  ;;  %v14359_v36 = vpop.f32.mrb[93].mxu1  ;;  %v1342_v10 = vrot.slane %v21696_v17, 2 }
 0x7f5   :  { %v17707_v41 = vmul.f32 -1.442695, %v14439_v39  ;;  %v17706_v43 = vmul.f32 -1.442695, %v14359_v36  ;;  %v14441_v9 = vpop.f32.mrb[105].mxu0  ;;  %v14361_v55 = vpop.f32.mrb[94].mxu1  ;;  %14785 = vmatpush1.bf16.msra.mxu1 %v20638_v28 }
 0x7f6   :  { %20867 = vpow2.f32 %v17705_v35  ;;  %v17708_v1 = vmul.f32 -1.442695, %v14441_v9  ;;  %v14443_v21 = vpop.f32.mrb[106].mxu0  ;;  %v14362_v44 = vpop.f32.mrb[95].mxu1  ;;  %14786 = vmatprep.subr.bf16.mxu1 %v20643_v37  ;;  %v20658_v28 = vld [vmem:[%s27379_s9 + $0xf14] ss:$168 sps:$4 sm:$0xff]  }
 0x7f7   :  { %20869 = vpow2.f32 %v17707_v41  ;;  %v14444_v53 = vpop.f32.mrb[107].mxu0  ;;  %v1340_v37 = vrot.slane %v21614_v23, 2  ;;  %v20656_v35 = vld [vmem:[%s27379_s9 + $0xf10] ss:$168 sps:$4 sm:$0xff]   ;;  %v27120_v39 = vld [vmem:[%s27387_s13] sm:$0xff]  ;;  %v1341_v36 = vrot.slane %v21619_v27, 2 }
 0x7f8   :  { %20871 = vpow2.f32 %v17706_v43  ;;  %v1343_v41 = vrot.slane %v21700_v20, 2  ;;  %v15712_v9 = vrot.slane %v27120_v39, %v21590_v59  ;;  %v20659_v21 = vld [vmem:[%s27379_s9 + $0x1060] ss:$168 sps:$4 sm:$0xff]   ;;  %v15720_v44 = vrot.slane %v27120_v39, %v21605_v14 }
 0x7f9   :  { %20873 = vpow2.f32 %v17708_v1  ;;  %14787 = vmatpush1.bf16.msra.mxu1 %v20641_v5  ;;  %v20661_v5 = vld [vmem:[%s27379_s9 + $0x1064] ss:$168 sps:$4 sm:$0xff]   ;;  %v1368_v43 = vsub.f32 %v21614_v23, %v1340_v37  ;;  %v1370_v1 = vsub.f32 %v21696_v17, %v1342_v10 }
 0x7fa   :  { %14788 = vmatprep.subr.bf16.mxu1 %v20646_v15  ;;  %v27427_v37 = vld [vmem:[#allocation10_spill] sm:$0xff] }
 0x7fd   :  { %14789 = vmatpush1.bf16.msra.mxu1 %v20644_v18  ;;  %v1369_v18 = vsub.f32 %v21619_v27, %v1341_v36 }
 0x7fe   :  { %14790 = vmatprep.subr.bf16.mxu1 %v20649_v11  ;;  %v20664_v11 = vld [vmem:[%s27379_s9 + $0x11b4] ss:$168 sps:$4 sm:$0xff]  }
 0x800   :  { %v20868_v26 = vpop.eup %20867 }
 0x801   :  { %v20870_v57 = vpop.eup %20869  ;;  %v15010_v8 = vadd.f32 1.0, %v20868_v26  ;;  %14791 = vmatpush1.bf16.msra.mxu1 %v20647_v40  ;;  %v15716_v40 = vrot.slane %v27120_v39, %v21593_v60 }
 0x802   :  { %v20872_v19 = vpop.eup %20871  ;;  %v15012_v32 = vadd.f32 1.0, %v20870_v57  ;;  %14792 = vmatprep.subr.bf16.mxu1 %v20652_v3  ;;  %v1371_v57 = vsub.f32 %v21700_v20, %v1343_v41 }
 0x803   :  { %v20874_v52 = vpop.eup %20873  ;;  %20875 = vrcp.f32 %v15010_v8  ;;  %v15011_v47 = vadd.f32 1.0, %v20872_v19  ;;  %v15724_v8 = vrot.slane %v27120_v39, %v21610_v16 }
 0x804   :  { %20877 = vrcp.f32 %v15012_v32  ;;  %v15013_v24 = vadd.f32 1.0, %v20874_v52  ;;  %v20662_v52 = vld [vmem:[%s27379_s9 + $0x11b0] ss:$168 sps:$4 sm:$0xff]  }
 0x805   :  { %20879 = vrcp.f32 %v15011_v47  ;;  %14793 = vmatpush1.bf16.msra.mxu1 %v20650_v61 }
 0x806   :  { %20881 = vrcp.f32 %v15013_v24  ;;  %14794 = vmatprep.subr.bf16.mxu1 %v20655_v58 }
 0x809   :  { %14795 = vmatpush1.bf16.msra.mxu1 %v20653_v49  ;;  %v20667_v49 = vld [vmem:[%s27379_s9 + $0x1304] ss:$168 sps:$4 sm:$0xff]  }
 0x80a   :  { %14796 = vmatprep.subr.bf16.mxu1 %v20658_v28 }
 0x80d   :  { %v20876_v55 = vpop.eup %20875  ;;  %14797 = vmatpush1.bf16.msra.mxu1 %v20656_v35 }
 0x80e   :  { %v20878_v15 = vpop.eup %20877  ;;  %v15212_v53 = vmul.f32 %v20876_v55, %v1368_v43  ;;  %14798 = vmatprep.subr.bf16.mxu1 %v20661_v5  ;;  %v27428_v43 = vld [vmem:[#allocation11_spill] sm:$0xff] }
 0x80f   :  { %v20880_v3 = vpop.eup %20879  ;;  %v15214_v26 = vmul.f32 %v20878_v15, %v1370_v1 }
 0x810   :  { %v20882_v61 = vpop.eup %20881  ;;  %v15213_v19 = vmul.f32 %v20880_v3, %v1369_v18  ;;  %v15779_v32 = vmul.f32 %v15712_v9, %v15212_v53  ;;  %v20673_v3 = vld [vmem:[%s27379_s9 + $0x15a4] ss:$168 sps:$4 sm:$0xff]  }
 0x811   :  { %v15215_v58 = vmul.f32 %v20882_v61, %v1371_v57  ;;  %14799 = vmatpush1.bf16.msra.mxu1 %v20659_v21  ;;  %v15781_v47 = vmul.f32 %v15720_v44, %v15214_v26  ;;  %v20665_v21 = vld [vmem:[%s27379_s9 + $0x1300] ss:$168 sps:$4 sm:$0xff]   ;;  %v20676_v61 = vld [vmem:[%s27379_s9 + $0x16f4] ss:$168 sps:$4 sm:$0xff]  }
 0x812   :  { %v15404_v24 = vcombine.low %v15212_v53, %v15213_v19  ;;  %14800 = vmatprep.subr.bf16.mxu1 %v20664_v11  ;;  %v15780_v28 = vmul.f32 %v15716_v40, %v15213_v19  ;;  %v15793_v10 = vadd.f32 %v15779_v32, %v27427_v37  ;;  %v20674_v19 = vld [vmem:[%s27379_s9 + $0x16f0] ss:$168 sps:$4 sm:$0xff]   ;;  %v20679_v32 = vld [vmem:[%s27379_s9 + $0x1844] ss:$168 sps:$4 sm:$0xff]   ;;  %v20689_v37 = vld [vmem:[%s27379_s9 + $0x1d80] ss:$168 sps:$4 sm:$0xff]  }
 0x813   :  { %v15405_v35 = vcombine.low %v15214_v26, %v15215_v58  ;;  %v15782_v36 = vmul.f32 %v15724_v8, %v15215_v58  ;;  %v15795_v5 = vadd.f32 %v15781_v47, %v26216_v51  ;;  %v20670_v51 = vld [vmem:[%s27379_s9 + $0x1454] ss:$168 sps:$4 sm:$0xff]   ;;  %v20671_v8 = vld [vmem:[%s27379_s9 + $0x15a0] ss:$168 sps:$4 sm:$0xff]  }
 0x814   :  { %v15412_v41 = vrot.slane %v15404_v24, %v24878_v63  ;;  %v15794_v9 = vadd.f32 %v15780_v28, %v27428_v43  ;;  %v15807_v55 = vsel %vm15128_vm0, %v15793_v10, 0.0  ;;  %v20677_v58 = vld [vmem:[%s27379_s9 + $0x1840] ss:$168 sps:$4 sm:$0xff]   ;;  %v20688_v24 = vld [vmem:[%s27379_s9 + $0x1c34] ss:$168 sps:$4 sm:$0xff]  }
 0x815   :  { %v15419_v1 = vrot.slane %v15405_v35, %v24878_v63  ;;  %14801 = vmatpush1.bf16.msra.mxu1 %v20662_v52  ;;  %v15796_v44 = vadd.f32 %v15782_v36, %v26231_v56  ;;  %v15810_v11 = vsel %vm15128_vm0, %v15795_v5, 0.0  ;;  %v20668_v56 = vld [vmem:[%s27379_s9 + $0x1450] ss:$168 sps:$4 sm:$0xff]   ;;  %v20685_v52 = vld [vmem:[%s27379_s9 + $0x1ae4] ss:$168 sps:$4 sm:$0xff]  }
 0x816   :  { %14802 = vmatprep.subr.bf16.mxu1 %v20667_v49  ;;  %v15808_v15 = vsel %vm15128_vm0, %v15794_v9, 0.0  ;;  %v20683_v47 = vld [vmem:[%s27379_s9 + $0x1ae0] ss:$168 sps:$4 sm:$0xff]   ;;  %v20686_v49 = vld [vmem:[%s27379_s9 + $0x1c30] ss:$168 sps:$4 sm:$0xff]  }
 0x817   :  { %v15420_v53 = vcombine.low %v15412_v41, %v15419_v1  ;;  %v15809_v18 = vadd.f32 %v15808_v15, %v15807_v55  ;;  %v15812_v26 = vsel %vm15128_vm0, %v15796_v44, 0.0  ;;  %v20691_v28 = vld [vmem:[%s27379_s9 + $0x1d84] ss:$168 sps:$4 sm:$0xff]   ;;  %v20694_v10 = vld [vmem:[%s27379_s9 + $0x1ed4] ss:$168 sps:$4 sm:$0xff]  }
 0x818   :  { %v20692_v35 = vld [vmem:[%s27379_s9 + $0x1ed0] ss:$168 sps:$4 sm:$0xff]  }
 0x819   :  { %15467 = vst [vmem:[%s27384_s17 + $0x38] sm:$0xff] %v15420_v53  ;;  %14803 = vmatpush1.bf16.msra.mxu1 %v20665_v21  ;;  %v15811_v40 = vadd.f32 %v15810_v11, %v15809_v18 }
 0x81a   :  { %14804 = vmatprep.subr.bf16.mxu1 %v20670_v51 }
 0x81b   :  { %v27176_v57 = vadd.f32 %v15812_v26, %v15811_v40 }
 0x81d   :  { %14805 = vmatpush1.bf16.msra.mxu1 %v20668_v56 }
 0x81e   :  { %14815 = vmatprep.subr.bf16.mxu1 %v20673_v3 }
 0x820   :  { %14807 = vmatmul.mubr.bf16.vlgmr.msra.gmra.mrb[104].mxu1 %v23994_v7  ;;  %v20682_v7 = vld [vmem:[%s27379_s9 + $0x1994] ss:$168 sps:$4 sm:$0xff]  }
 0x821   :  { %14816 = vmatpush1.bf16.msra.mxu1 %v20671_v8  ;;  %14847 = vmatprep.mubr.bf16.mxu1 %v27424_v62  ;;  %v20680_v62 = vld [vmem:[%s27379_s9 + $0x1990] ss:$168 sps:$4 sm:$0xff]  }
 0x822   :  { %14817 = vmatprep.subr.bf16.mxu1 %v20676_v61  ;;  %v27429_v61 = vld [vmem:[#allocation5_spill] sm:$0xff] }
 0x825   :  { %14818 = vmatpush1.bf16.msra.mxu1 %v20674_v19  ;;  %v1344_v19 = vrot.slane %v27429_v61, 2 }
 0x826   :  { %14819 = vmatprep.subr.bf16.mxu1 %v20679_v32  ;;  %v1346_v32 = vrot.slane %v21969_v42, 2 }
 0x829   :  { %14820 = vmatpush1.bf16.msra.mxu1 %v20677_v58  ;;  %v1345_v58 = vrot.slane %v21843_v50, 2 }
 0x82a   :  { %14821 = vmatprep.subr.bf16.mxu1 %v20682_v7  ;;  %v1347_v7 = vrot.slane %v21708_v25, 2 }
 0x82d   :  { %14822 = vmatpush1.bf16.msra.mxu1 %v20680_v62  ;;  %v1372_v62 = vsub.f32 %v27429_v61, %v1344_v19 }
 0x82e   :  { %14823 = vmatprep.subr.bf16.mxu1 %v20685_v52  ;;  %v15728_v52 = vrot.slane %v27120_v39, %v21681_v0 }
 0x831   :  { %14824 = vmatpush1.bf16.msra.mxu1 %v20683_v47 }
 0x832   :  { %14825 = vmatprep.subr.bf16.mxu1 %v20688_v24  ;;  %v1374_v24 = vsub.f32 %v21969_v42, %v1346_v32 }
 0x835   :  { %14826 = vmatpush1.bf16.msra.mxu1 %v20686_v49  ;;  %v15736_v49 = vrot.slane %v27120_v39, %v21783_v2 }
 0x836   :  { %14827 = vmatprep.subr.bf16.mxu1 %v20691_v28 }
 0x839   :  { %14828 = vmatpush1.bf16.msra.mxu1 %v20689_v37 }
 0x83a   :  { %14829 = vmatprep.subr.bf16.mxu1 %v20694_v10  ;;  %v1373_v10 = vsub.f32 %v21843_v50, %v1345_v58 }
 0x83d   :  { %14830 = vmatpush1.bf16.msra.mxu1 %v20692_v35  ;;  %v15732_v35 = vrot.slane %v27120_v39, %v21687_v4 }
 0x840   :  { %14848 = vmatmul.mubr.bf16.vlgmr.msra.gmra.mrb[104].mxu1 %v24108_v29 }
 0x853   :  { %v14521_v36 = vpop.f32.mrb[96].mxu1 }
 0x854   :  { %v17709_v5 = vmul.f32 -1.442695, %v14521_v36  ;;  %v14603_v41 = vpop.f32.mrb[108].mxu0  ;;  %v14523_v43 = vpop.f32.mrb[97].mxu1 }
 0x855   :  { %v17711_v9 = vmul.f32 -1.442695, %v14603_v41  ;;  %v17710_v55 = vmul.f32 -1.442695, %v14523_v43  ;;  %v14605_v1 = vpop.f32.mrb[109].mxu0  ;;  %v14525_v21 = vpop.f32.mrb[98].mxu1  ;;  %v1375_v41 = vsub.f32 %v21708_v25, %v1347_v7  ;;  %v15740_v43 = vrot.slane %v27120_v39, %v21600_v12 }
 0x856   :  { %20883 = vpow2.f32 %v17709_v5  ;;  %v17712_v44 = vmul.f32 -1.442695, %v14605_v1  ;;  %v14607_v51 = vpop.f32.mrb[110].mxu0  ;;  %v14526_v15 = vpop.f32.mrb[99].mxu1 }
 0x857   :  { %20885 = vpow2.f32 %v17711_v9  ;;  %v14608_v53 = vpop.f32.mrb[111].mxu0 }
 0x858   :  { %20887 = vpow2.f32 %v17710_v55 }
 0x859   :  { %20889 = vpow2.f32 %v17712_v44 }
 0x860   :  { %v20884_v18 = vpop.eup %20883 }
 0x861   :  { %v20886_v11 = vpop.eup %20885  ;;  %v15014_v56 = vadd.f32 1.0, %v20884_v18 }
 0x862   :  { %v20888_v29 = vpop.eup %20887  ;;  %v15016_v40 = vadd.f32 1.0, %v20886_v11 }
 0x863   :  { %v20890_v3 = vpop.eup %20889  ;;  %20891 = vrcp.f32 %v15014_v56  ;;  %v15015_v26 = vadd.f32 1.0, %v20888_v29 }
 0x864   :  { %20893 = vrcp.f32 %v15016_v40  ;;  %v15017_v8 = vadd.f32 1.0, %v20890_v3  ;;  %v27430_v40 = vld [vmem:[#allocation12_spill] sm:$0xff] }
 0x865   :  { %20895 = vrcp.f32 %v15015_v26 }
 0x866   :  { %20897 = vrcp.f32 %v15017_v8 }
 0x86d   :  { %v20892_v47 = vpop.eup %20891 }
 0x86e   :  { %v20894_v28 = vpop.eup %20893  ;;  %v15216_v37 = vmul.f32 %v20892_v47, %v1372_v62 }
 0x86f   :  { %v20896_v36 = vpop.eup %20895  ;;  %v15218_v5 = vmul.f32 %v20894_v28, %v1374_v24 }
 0x870   :  { %v20898_v9 = vpop.eup %20897  ;;  %v15217_v55 = vmul.f32 %v20896_v36, %v1373_v10  ;;  %v15783_v1 = vmul.f32 %v15728_v52, %v15216_v37 }
 0x871   :  { %v15219_v21 = vmul.f32 %v20898_v9, %v1375_v41  ;;  %v15785_v44 = vmul.f32 %v15736_v49, %v15218_v5 }
 0x872   :  { %v15421_v51 = vcombine.low %v15216_v37, %v15217_v55  ;;  %v15784_v15 = vmul.f32 %v15732_v35, %v15217_v55  ;;  %v15797_v53 = vadd.f32 %v15783_v1, %v26225_v54 }
 0x873   :  { %v15422_v18 = vcombine.low %v15218_v5, %v15219_v21  ;;  %v15786_v11 = vmul.f32 %v15740_v43, %v15219_v21  ;;  %v15799_v56 = vadd.f32 %v15785_v44, %v26572_v38  ;;  %v29_v43 = vstv %s27388_s15 }
 0x874   :  { %v15429_v29 = vrot.slane %v15421_v51, %v24878_v63  ;;  %v15798_v3 = vadd.f32 %v15784_v15, %v27430_v40  ;;  %v15814_v26 = vsel %vm15128_vm0, %v15797_v53, 0.0  ;;  %30 = vst [vmem:[#allocation4] sm:$0x1] %v29_v43  ;;  %v1349_v40 = vrot.slane %v21974_v6, 2 }
 0x875   :  { %v15436_v39 = vrot.slane %v15422_v18, %v24878_v63  ;;  %v15800_v8 = vadd.f32 %v15786_v11, %v26587_v46  ;;  %v15815_v19 = vadd.f32 %v15814_v26, %v27176_v57  ;;  %v15818_v7 = vsel %vm15128_vm0, %v15799_v56, 0.0  ;;  %v27431_v18 = vld [vmem:[#allocation6_spill] sm:$0xff] }
 0x876   :  { %v15816_v32 = vsel %vm15128_vm0, %v15798_v3, 0.0  ;;  %v1348_v11 = vrot.slane %v27431_v18, 2  ;;  %v1350_v56 = vrot.slane %v22222_v22, 2  ;;  %v1351_v3 = vrot.slane %v21977_v45, 2 }
 0x877   :  { %v15437_v58 = vcombine.low %v15429_v29, %v15436_v39  ;;  %v15817_v54 = vadd.f32 %v15816_v32, %v15815_v19  ;;  %v15820_v62 = vsel %vm15128_vm0, %v15800_v8, 0.0  ;;  %v27266_v29 = vld [vmem:[%s27387_s13 + $0x8] sm:$0x3f] }
 0x878   :  { %v1376_v26 = vsub.f32 %v27431_v18, %v1348_v11  ;;  %v15744_v39 = vrot.slane %v27266_v29, %v21590_v59  ;;  %v1378_v19 = vsub.f32 %v22222_v22, %v1350_v56  ;;  %v15752_v32 = vrot.slane %v27266_v29, %v21605_v14 }
 0x879   :  { %15468 = vst [vmem:[%s27384_s17 + $0x40] sm:$0xff] %v15437_v58  ;;  %v15819_v38 = vadd.f32 %v15818_v7, %v15817_v54  ;;  %v1377_v7 = vsub.f32 %v21974_v6, %v1349_v40 }
 0x87b   :  { %v27256_v52 = vadd.f32 %v15820_v62, %v15819_v38  ;;  %v15748_v38 = vrot.slane %v27266_v29, %v21593_v60 }
 0x8b3   :  { %v14685_v47 = vpop.f32.mrb[100].mxu1 }
 0x8b4   :  { %v17713_v24 = vmul.f32 -1.442695, %v14685_v47  ;;  %v14767_v46 = vpop.f32.mrb[112].mxu0  ;;  %v14687_v49 = vpop.f32.mrb[101].mxu1  ;;  %v1379_v47 = vsub.f32 %v21977_v45, %v1351_v3 }
 0x8b5   :  { %v17715_v57 = vmul.f32 -1.442695, %v14767_v46  ;;  %v17714_v28 = vmul.f32 -1.442695, %v14687_v49  ;;  %v14769_v37 = vpop.f32.mrb[113].mxu0  ;;  %v14689_v10 = vpop.f32.mrb[102].mxu1  ;;  %v15756_v46 = vrot.slane %v27266_v29, %v21610_v16 }
 0x8b6   :  { %20899 = vpow2.f32 %v17713_v24  ;;  %v17716_v35 = vmul.f32 -1.442695, %v14769_v37  ;;  %v14771_v36 = vpop.f32.mrb[114].mxu0  ;;  %v14690_v5 = vpop.f32.mrb[103].mxu1 }
 0x8b7   :  { %20901 = vpow2.f32 %v17715_v57  ;;  %v14772_v41 = vpop.f32.mrb[115].mxu0 }
 0x8b8   :  { %20903 = vpow2.f32 %v17714_v28 }
 0x8b9   :  { %20905 = vpow2.f32 %v17716_v35 }
 0x8c0   :  { %v20900_v9 = vpop.eup %20899 }
 0x8c1   :  { %v20902_v55 = vpop.eup %20901  ;;  %v15018_v1 = vadd.f32 1.0, %v20900_v9 }
 0x8c2   :  { %v20904_v21 = vpop.eup %20903  ;;  %v15020_v44 = vadd.f32 1.0, %v20902_v55 }
 0x8c3   :  { %v20906_v51 = vpop.eup %20905  ;;  %20907 = vrcp.f32 %v15018_v1  ;;  %v15019_v15 = vadd.f32 1.0, %v20904_v21 }
 0x8c4   :  { %20909 = vrcp.f32 %v15020_v44  ;;  %v15021_v53 = vadd.f32 1.0, %v20906_v51 }
 0x8c5   :  { %20911 = vrcp.f32 %v15019_v15 }
 0x8c6   :  { %20913 = vrcp.f32 %v15021_v53 }
 0x8cd   :  { %v20908_v8 = vpop.eup %20907 }
 0x8ce   :  { %v20910_v58 = vpop.eup %20909  ;;  %v15220_v54 = vmul.f32 %v20908_v8, %v1376_v26 }
 0x8cf   :  { %v20912_v62 = vpop.eup %20911  ;;  %v15222_v24 = vmul.f32 %v20910_v58, %v1378_v19 }
 0x8d0   :  { %v20914_v49 = vpop.eup %20913  ;;  %v15221_v57 = vmul.f32 %v20912_v62, %v1377_v7  ;;  %v15787_v28 = vmul.f32 %v15744_v39, %v15220_v54 }
 0x8d1   :  { %v15223_v37 = vmul.f32 %v20914_v49, %v1379_v47  ;;  %v15789_v10 = vmul.f32 %v15752_v32, %v15222_v24 }
 0x8d2   :  { %v15438_v35 = vcombine.low %v15220_v54, %v15221_v57  ;;  %v15788_v36 = vmul.f32 %v15748_v38, %v15221_v57  ;;  %v15801_v5 = vadd.f32 %v15787_v28, %v26581_v31 }
 0x8d3   :  { %v15439_v41 = vcombine.low %v15222_v24, %v15223_v37  ;;  %v15790_v43 = vmul.f32 %v15756_v46, %v15223_v37  ;;  %v15803_v9 = vadd.f32 %v15789_v10, %v26915_v33 }
 0x8d4   :  { %v15446_v55 = vrot.slane %v15438_v35, %v24878_v63  ;;  %v15802_v1 = vadd.f32 %v15788_v36, %v26592_v48  ;;  %v15822_v21 = vsel %vm15128_vm0, %v15801_v5, 0.0  ;;  %v1198_v5 = vld [vmem:[%s27389_s4 + $0x8] sm:$0x3f] }
 0x8d5   :  { %v15453_v44 = vrot.slane %v15439_v41, %v24878_v63  ;;  %v15804_v51 = vadd.f32 %v15790_v43, %v26924_v34  ;;  %v15823_v15 = vadd.f32 %v15822_v21, %v27256_v52  ;;  %v15826_v56 = vsel %vm15128_vm0, %v15803_v9, 0.0  ;;  %v1197_v63 = vld [vmem:[%s27389_s4] sm:$0xff] }
 0x8d6   :  { %v15824_v53 = vsel %vm15128_vm0, %v15802_v1, 0.0  ;;  %v1204_v34 = vrot.slane %v1197_v63, %v21590_v59  ;;  %v1208_v52 = vrot.slane %v1197_v63, %v21593_v60  ;;  %v1212_v3 = vrot.slane %v1197_v63, %v21605_v14 }
 0x8d7   :  { %v15454_v11 = vcombine.low %v15446_v55, %v15453_v44  ;;  %v15825_v31 = vadd.f32 %v15824_v53, %v15823_v15  ;;  %v15828_v48 = vsel %vm15128_vm0, %v15804_v51, 0.0  ;;  %v1216_v8 = vrot.slane %v1197_v63, %v21610_v16 }
 0x8d8   :  { %v1271_v26 = vmul.f32 %v1204_v34, %v21614_v23  ;;  %v1272_v39 = vmul.f32 %v1208_v52, %v21619_v27  ;;  %v1273_v19 = vmul.f32 %v1212_v3, %v21696_v17  ;;  %v1220_v32 = vrot.slane %v1197_v63, %v21681_v0 }
 0x8d9   :  { %15469 = vst [vmem:[%s27384_s17 + $0x48] sm:$0xff] %v15454_v11  ;;  %v15827_v33 = vadd.f32 %v15826_v56, %v15825_v31  ;;  %v1274_v7 = vmul.f32 %v1216_v8, %v21700_v20  ;;  %v1224_v27 = vrot.slane %v1197_v63, %v21687_v4  ;;  %v1228_v20 = vrot.slane %v1197_v63, %v21783_v2 }
 0x8da   :  { %v1286_v58 = vsel %vm1285_vm2, %v1271_v26, 0.0  ;;  %v1287_v54 = vsel %vm1285_vm2, %v1272_v39, 0.0  ;;  %v1289_v38 = vsel %vm1285_vm2, %v1273_v19, 0.0  ;;  %v1275_v46 = vmul.f32 %v1220_v32, %v27429_v61 }
 0x8db   :  { %v27296_v40 = vadd.f32 %v15828_v48, %v15827_v33  ;;  %v1288_v47 = vadd.f32 %v1287_v54, %v1286_v58  ;;  %v1291_v37 = vsel %vm1285_vm2, %v1274_v7, 0.0  ;;  %v1276_v10 = vmul.f32 %v1224_v27, %v21843_v50  ;;  %v27432_v33 = vld [vmem:[#allocation8_spill] sm:$0xff] }
 0x8dc   :  { %v1293_v35 = vsel %vm1285_vm2, %v1275_v46, 0.0  ;;  %v1232_v41 = vrot.slane %v1197_v63, %v21600_v12  ;;  %v1277_v43 = vmul.f32 %v1228_v20, %v21969_v42  ;;  %v1236_v55 = vrot.slane %v1198_v5, %v21590_v59  ;;  %v27433_v63 = vld [vmem:[#allocation7_spill] sm:$0xff] }
 0x8dd   :  { %v1290_v57 = vadd.f32 %v1289_v38, %v1288_v47  ;;  %v1295_v9 = vsel %vm1285_vm2, %v1276_v10, 0.0  ;;  %v1240_v53 = vrot.slane %v1198_v5, %v21593_v60  ;;  %v1244_v59 = vrot.slane %v1198_v5, %v21605_v14 }
 0x8de   :  { %v1278_v50 = vmul.f32 %v1232_v41, %v21708_v25  ;;  %v1297_v21 = vsel %vm1285_vm2, %v1277_v43, 0.0  ;;  %v1279_v11 = vmul.f32 %v1236_v55, %v27431_v18  ;;  %v1352_v48 = vrot.slane %v27432_v33, 2 }
 0x8df   :  { %v1292_v36 = vadd.f32 %v1291_v37, %v1290_v57  ;;  %v1280_v31 = vmul.f32 %v1240_v53, %v21974_v6  ;;  %v1353_v34 = vrot.slane %v27433_v63, 2  ;;  %v1248_v60 = vrot.slane %v1198_v5, %v21610_v16 }
 0x8e0   :  { %v1299_v42 = vsel %vm1285_vm2, %v1278_v50, 0.0  ;;  %v1301_v25 = vsel %vm1285_vm2, %v1279_v11, 0.0  ;;  %v1281_v18 = vmul.f32 %v1244_v59, %v22222_v22  ;;  %v1380_v26 = vsub.f32 %v27432_v33, %v1352_v48 }
 0x8e1   :  { %v1294_v61 = vadd.f32 %v1293_v35, %v1292_v36  ;;  %v1303_v3 = vsel %vm1285_vm2, %v1280_v31, 0.0  ;;  %v15760_v14 = vrot.slane %v27266_v29, %v21681_v0  ;;  %v1252_v6 = vrot.slane %v1198_v5, %v21681_v0  ;;  %v17722_v35 = vld [vmem:[#allocation3] ss:$0 sm:$0xff]  ;;  %v27434_v36 = vld [vmem:[#allocation9_spill] sm:$0xff] }
 0x8e2   :  { %v1381_v8 = vsub.f32 %v27433_v63, %v1353_v34  ;;  %v15764_v19 = vrot.slane %v27266_v29, %v21687_v4  ;;  %v1282_v22 = vmul.f32 %v1248_v60, %v21977_v45  ;;  %v1305_v54 = vsel %vm1285_vm2, %v1281_v18, 0.0 }
 0x8e3   :  { %v1296_v1 = vadd.f32 %v1295_v9, %v1294_v61  ;;  %v1283_v47 = vmul.f32 %v1252_v6, %v27432_v33  ;;  %v17723_v61 = vld [vmem:[#allocation4] ss:$0 sm:$0xff] }
 0x8e4   :  { %v1307_v29 = vsel %vm1285_vm2, %v1282_v22, 0.0 }
 0x8e5   :  { %v1298_v12 = vadd.f32 %v1297_v21, %v1296_v1 }
 0x8e7   :  { %v1300_v56 = vadd.f32 %v1299_v42, %v1298_v12 }
 0x8e9   :  { %v1302_v52 = vadd.f32 %v1301_v25, %v1300_v56 }
 0x8eb   :  { %v1304_v32 = vadd.f32 %v1303_v3, %v1302_v52 }
 0x913   :  { %v14849_v62 = vpop.f32.mrb[104].mxu1 }
 0x914   :  { %v17717_v23 = vmul.f32 -1.442695, %v14849_v62  ;;  %v14851_v24 = vpop.f32.mrb[105].mxu1  ;;  %v1256_v62 = vrot.slane %v1198_v5, %v21687_v4  ;;  %v1309_v4 = vsel %vm1285_vm2, %v1283_v47, 0.0  ;;  %v15843_v5 = vmul.f32 %v17722_v35, %v27434_v36 }
 0x915   :  { %v17718_v49 = vmul.f32 -1.442695, %v14851_v24  ;;  %v14853_v17 = vpop.f32.mrb[106].mxu1  ;;  %v1306_v24 = vadd.f32 %v1305_v54, %v1304_v32 }
 0x916   :  { %20915 = vpow2.f32 %v17717_v23  ;;  %v14854_v28 = vpop.f32.mrb[107].mxu1 }
 0x917   :  { %20917 = vpow2.f32 %v17718_v49  ;;  %v1284_v49 = vmul.f32 %v1256_v62, %v27433_v63  ;;  %v1308_v28 = vadd.f32 %v1307_v29, %v1306_v24 }
 0x919   :  { %v1310_v37 = vadd.f32 %v1309_v4, %v1308_v28  ;;  %v1311_v20 = vsel %vm1285_vm2, %v1284_v49, 0.0 }
 0x91b   :  { %v1312_v10 = vadd.f32 %v1311_v20, %v1310_v37 }
 0x920   :  { %v20916_v2 = vpop.eup %20915 }
 0x921   :  { %v20918_v44 = vpop.eup %20917  ;;  %v15022_v51 = vadd.f32 1.0, %v20916_v2 }
 0x922   :  { %v15023_v15 = vadd.f32 1.0, %v20918_v44 }
 0x923   :  { %20919 = vrcp.f32 %v15022_v51 }
 0x924   :  { %20921 = vrcp.f32 %v15023_v15 }
 0x92d   :  { %v20920_v39 = vpop.eup %20919 }
 0x92e   :  { %v20922_v58 = vpop.eup %20921  ;;  %v15224_v16 = vmul.f32 %v20920_v39, %v1380_v26 }
 0x92f   :  { %v15225_v7 = vmul.f32 %v20922_v58, %v1381_v8 }
 0x930   :  { %v15791_v38 = vmul.f32 %v15760_v14, %v15224_v16 }
 0x931   :  { %v15455_v0 = vcombine.low %v15224_v16, %v15225_v7  ;;  %v15792_v23 = vmul.f32 %v15764_v19, %v15225_v7 }
 0x932   :  { %v15805_v27 = vadd.f32 %v15791_v38, %v26922_v13 }
 0x933   :  { %17721 = vst.sshfl [vmem:[%s27384_s17 + $0x50] sm:$0x33 pattern:$0x76325410] %v15455_v0  ;;  %v15806_v45 = vadd.f32 %v15792_v23, %v26929_v30  ;;  %v25_v30 = vstv %s27390_s5 }
 0x934   :  { %v15830_v46 = vsel %vm15128_vm0, %v15805_v27, 0.0  ;;  %26 = vst [vmem:[#allocation2] sm:$0x1] %v25_v30 }
 0x935   :  { %v15831_v17 = vadd.f32 %v15830_v46, %v27296_v40  ;;  %v15832_v57 = vsel %vm15128_vm0, %v15806_v45, 0.0 }
 0x937   :  { %v15833_v13 = vadd.f32 %v15832_v57, %v15831_v17 }
 0x939   :  { %15834 = vadd.xlane.f32.xlu1 %v15833_v13 }
 0x93b   :  { %v15996_v43 = vld [vmem:[#allocation2] ss:$0 sm:$0xff] }
 0x93d   :  { %1313 = vadd.xlane.f32.xlu1 %v1312_v10 }
 0x9c6   :  { %v15835_v40 = vpop.xlane.xlu1 %15834 }
 0x9c7   :  { %v15844_v41 = vadd.f32 %v15843_v5, %v15835_v40 }
 0x9c9   :  { %v15852_v9 = vadd.f32 %v17723_v61, %v15844_v41 }
 0x9ca   :  { %v1314_v55 = vpop.xlane.xlu1 %1313 }
 0x9cb   :  { %15853 = vst.msk [vmem:[%s27391_s19] sm:$0x3] %vm15471_vm1, %v15852_v9  ;;  %v1322_v1 = vadd.f32 %v15996_v43, %v1314_v55 }
 0x9cd   :  { %1324 = vst.msk [vmem:[%s27392_s16] sm:$0xf] %vm1323_vm3, %v1322_v1 }

</bundles_post_ra>
